<compile_context>
chip_gen: v7x
topology: tpu7x:2x2x1
jax: 0.10.0
libtpu: 0.0.40
codegen_flags: <defaults>
</compile_context>

<pallas_src>
import functools
import math

import jax
import jax.numpy as jnp
from jax.experimental import pallas as pl
from jax.experimental.pallas import tpu as pltpu


# Order of weight arrays fed to the kernel (after the 5 activation/bias inputs).
_WEIGHT_KEYS = (
    # encoder layers (stacked over n_enc on the leading axis)
    "e_wqkv", "e_bqkv", "e_wo", "e_bo", "e_ln1_g", "e_ln1_b",
    "e_w1", "e_b1", "e_w2", "e_b2", "e_ln2_g", "e_ln2_b",
    # final encoder norm
    "enc_norm_g", "enc_norm_b",
    # decoder layers (stacked over n_dec)
    "d_sa_wqkv", "d_sa_bqkv", "d_sa_wo", "d_sa_bo", "d_ln1_g", "d_ln1_b",
    "d_ca_wqkv", "d_ca_bqkv", "d_ca_wo", "d_ca_bo", "d_ln2_g", "d_ln2_b",
    "d_w1", "d_b1", "d_w2", "d_b2", "d_ln3_g", "d_ln3_b",
    # final decoder norm + output head (vocab padded up to a multiple of 128)
    "dec_norm_g", "dec_norm_b", "fc_w", "fc_b",
)


# ------------------------------------------------------------------ kernel

def _transformer_kernel(
    enc_bias_ref, dec_bias_ref, cross_bias_ref, x_src_ref, y_trg_ref,
    e_wqkv, e_bqkv, e_wo, e_bo, e_ln1_g, e_ln1_b,
    e_w1, e_b1, e_w2, e_b2, e_ln2_g, e_ln2_b,
    enc_norm_g, enc_norm_b,
    d_sa_wqkv, d_sa_bqkv, d_sa_wo, d_sa_bo, d_ln1_g, d_ln1_b,
    d_ca_wqkv, d_ca_bqkv, d_ca_wo, d_ca_bo, d_ln2_g, d_ln2_b,
    d_w1, d_b1, d_w2, d_b2, d_ln3_g, d_ln3_b,
    dec_norm_g, dec_norm_b, fc_w, fc_b,
    out_ref,
    *, n_enc, n_dec, num_heads, head_dim, eps,
):
    H, Dh = num_heads, head_dim
    scale = 1.0 / math.sqrt(Dh)
    bf16 = jnp.bfloat16
    f32 = jnp.float32

    def mm(a, w_bf16):
        # bf16 MXU operands (weights are pre-cast in HBM), f32 accumulation.
        return jnp.dot(a.astype(bf16), w_bf16, preferred_element_type=f32)

    def layer_norm(v, g, b):
        mu = jnp.mean(v, axis=-1, keepdims=True)
        var = jnp.mean(jnp.square(v - mu), axis=-1, keepdims=True)
        return (v - mu) * jax.lax.rsqrt(var + eps) * g + b

    def mha(q_src, kv_src, wqkv_ref, bqkv_ref, layer, wo, bo, bias):
        # wqkv_ref: (n_layers, 3*H, E, Dh) bf16, head-major.  All per-head
        # weight lookups index LEADING axes (free views) -- no lane slicing
        # of activations.  Head outputs are concatenated and hit a single
        # (E, E) output-projection matmul.
        q_b = q_src.astype(bf16)
        kv_b = kv_src.astype(bf16)
        heads = []
        for h in range(H):
            qh = jnp.dot(q_b, wqkv_ref[layer, 0 * H + h],
                         preferred_element_type=f32) + bqkv_ref[layer, 0 * H + h]
            kh = jnp.dot(kv_b, wqkv_ref[layer, 1 * H + h],
                         preferred_element_type=f32) + bqkv_ref[layer, 1 * H + h]
            vh = jnp.dot(kv_b, wqkv_ref[layer, 2 * H + h],
                         preferred_element_type=f32) + bqkv_ref[layer, 2 * H + h]
            s = jax.lax.dot_general(
                qh.astype(bf16), kh.astype(bf16),
                (((1,), (1,)), ((), ())),
                preferred_element_type=f32) * scale + bias
            p = jnp.exp(s - jnp.max(s, axis=-1, keepdims=True))
            o = jnp.dot(p.astype(bf16), vh.astype(bf16),
                        preferred_element_type=f32)
            # Exact post-PV normalization (matches PyTorch softmax closely).
            o = o * pl.reciprocal(jnp.sum(p, axis=-1, keepdims=True), approx=False)
            heads.append(o)
        o_cat = jnp.concatenate(heads, axis=-1)          # (Lq, E) -- one vreg wide
        return mm(o_cat, wo) + bo

    x = x_src_ref[...]               # (S*Ls,  E)  batch folded into rows
    y = y_trg_ref[...]               # (S*Ltp, E)  batch folded + Lt padded to 8
    enc_bias = enc_bias_ref[...]     # (S*Ls,  S*Ls)  block-diag + key padding
    dec_bias = dec_bias_ref[...]     # (S*Ltp, S*Ltp) block-diag + causal
    cross_bias = cross_bias_ref[...]  # (S*Ltp, S*Ls)  block-diag only

    # ---------------- encoder stack (post-norm, ReLU FFN) ----------------
    for l in range(n_enc):
        a = mha(x, x, e_wqkv, e_bqkv, l, e_wo[l], e_bo[l], enc_bias)
        x = layer_norm(x + a, e_ln1_g[l], e_ln1_b[l])
        h = jnp.maximum(mm(x, e_w1[l]) + e_b1[l], 0.0)
        h = mm(h, e_w2[l]) + e_b2[l]
        x = layer_norm(x + h, e_ln2_g[l], e_ln2_b[l])
    memory = layer_norm(x, enc_norm_g[...], enc_norm_b[...])

    # ---------------- decoder stack ----------------
    for l in range(n_dec):
        a = mha(y, y, d_sa_wqkv, d_sa_bqkv, l, d_sa_wo[l], d_sa_bo[l], dec_bias)
        y = layer_norm(y + a, d_ln1_g[l], d_ln1_b[l])

        a = mha(y, memory, d_ca_wqkv, d_ca_bqkv, l, d_ca_wo[l], d_ca_bo[l],
                cross_bias)                              # no memory key padding (PyTorch default)
        y = layer_norm(y + a, d_ln2_g[l], d_ln2_b[l])

        h = jnp.maximum(mm(y, d_w1[l]) + d_b1[l], 0.0)
        h = mm(h, d_w2[l]) + d_b2[l]
        y = layer_norm(y + h, d_ln3_g[l], d_ln3_b[l])
    y = layer_norm(y, dec_norm_g[...], dec_norm_b[...])

    # Output head: vocab padded to 128 lanes -> single dense vst slab.
    out_ref[...] = (mm(y, fc_w[...]) + fc_b[...]).astype(out_ref.dtype)


# ------------------------------------------------------------------ wrapper

@functools.partial(jax.jit, static_argnames=("pad_idx", "num_heads", "trg_vocab"))
def transformer_forward(params, src, trg, *, pad_idx, num_heads, trg_vocab):
    Ls, S = src.shape
    Lt, _ = trg.shape
    E = params["src_emb"].shape[1]
    Dh = E // num_heads
    VP = params["fc_w"].shape[1]                       # padded vocab (multiple of 128)
    n_enc = params["e_wo"].shape[0]
    n_dec = params["d_sa_wo"].shape[0]
    Ltp = ((Lt + 7) // 8) * 8                          # pad target length to sublane multiple
    neg = jnp.float32(-1e9)

    # Embedding + positional lookups (gathers) in XLA.
    # TODO(synk): dropout is treated as identity (inference semantics), no RNG masking.
    es = params["src_emb"][src] + params["src_pos_emb"][:Ls][:, None, :]     # (Ls, S, E)
    x_src = jnp.transpose(es, (1, 0, 2)).reshape(S * Ls, E)                  # batch folded into rows

    et = params["trg_emb"][trg] + params["trg_pos_emb"][:Lt][:, None, :]     # (Lt, S, E)
    et = jnp.transpose(et, (1, 0, 2))                                        # (S, Lt, E)
    et = jnp.pad(et, ((0, 0), (0, Ltp - Lt), (0, 0)))                        # pad Lt -> Ltp
    y_trg = et.reshape(S * Ltp, E)

    # Tiny additive attention biases (batch fold => block-diagonal structure).
    src_batch = (jnp.arange(S * Ls) // Ls).astype(jnp.int32)
    src_is_pad = (src.T == pad_idx).reshape(S * Ls)
    enc_bias = jnp.where(
        (src_batch[:, None] != src_batch[None, :]) | src_is_pad[None, :],
        neg, jnp.float32(0.0))

    trg_batch = (jnp.arange(S * Ltp) // Ltp).astype(jnp.int32)
    trg_pos = (jnp.arange(S * Ltp) % Ltp).astype(jnp.int32)
    dec_bias = jnp.where(
        (trg_batch[:, None] != trg_batch[None, :]) |
        (trg_pos[None, :] > trg_pos[:, None]),
        neg, jnp.float32(0.0))

    cross_bias = jnp.where(trg_batch[:, None] != src_batch[None, :],
                           neg, jnp.float32(0.0))

    kern = functools.partial(
        _transformer_kernel, n_enc=n_enc, n_dec=n_dec,
        num_heads=num_heads, head_dim=Dh, eps=1e-5)

    # Gridless pallas_call: whole arrays resident in VMEM, single invocation
    # (no serial batch grid, no double-buffered weight copies).
    out = pl.pallas_call(
        kern,
        out_shape=jax.ShapeDtypeStruct((S * Ltp, VP), jnp.float32),
        compiler_params=pltpu.CompilerParams(
            vmem_limit_bytes=32 * 1024 * 1024),
    )(enc_bias, dec_bias, cross_bias, x_src, y_trg,
      *[params[k] for k in _WEIGHT_KEYS])

    # Drop target-length / vocab padding and return PyTorch layout (Lt, S, V).
    out = out.reshape(S, Ltp, VP)[:, :Lt, :trg_vocab]
    return jnp.transpose(out, (1, 0, 2))


# ------------------------------------------------------------------ param init

class _KeyGen:
    def __init__(self, key):
        self.key = key

    def __call__(self):
        self.key, sub = jax.random.split(self.key)
        return sub


def init_params(key, E, H, F, n_enc, n_dec, src_vocab, trg_vocab, max_len):
    Dh = E // H
    kg = _KeyGen(key)
    w_f32 = lambda shape: jax.random.normal(kg(), shape, jnp.float32) * 0.02
    # Matmul weights pre-cast to bf16 (MXU-native; halves weight DMA bytes).
    w_bf16 = lambda shape: (jax.random.normal(kg(), shape, jnp.float32) * 0.02
                            ).astype(jnp.bfloat16)
    ones = lambda shape: jnp.ones(shape, jnp.float32)
    zeros = lambda shape: jnp.zeros(shape, jnp.float32)

    VP = ((trg_vocab + 127) // 128) * 128              # lane-dense output head
    fc_w = (jnp.zeros((E, VP), jnp.float32)
            .at[:, :trg_vocab].set(jax.random.normal(kg(), (E, trg_vocab), jnp.float32) * 0.02)
            ).astype(jnp.bfloat16)
    fc_b = zeros((1, VP))

    # Head-major attention weights: (layers, 3*H, E, Dh), indexed on leading axes.
    attn_w = lambda n: w_bf16((n, 3 * H, E, Dh))
    attn_b = lambda n: zeros((n, 3 * H, 1, Dh))

    return dict(
        src_emb=w_f32((src_vocab, E)), src_pos_emb=w_f32((max_len, E)),
        trg_emb=w_f32((trg_vocab, E)), trg_pos_emb=w_f32((max_len, E)),
        # encoder (stacked over layers)
        e_wqkv=attn_w(n_enc), e_bqkv=attn_b(n_enc),
        e_wo=w_bf16((n_enc, E, E)), e_bo=zeros((n_enc, 1, E)),
        e_ln1_g=ones((n_enc, 1, E)), e_ln1_b=zeros((n_enc, 1, E)),
        e_w1=w_bf16((n_enc, E, F)), e_b1=zeros((n_enc, 1, F)),
        e_w2=w_bf16((n_enc, F, E)), e_b2=zeros((n_enc, 1, E)),
        e_ln2_g=ones((n_enc, 1, E)), e_ln2_b=zeros((n_enc, 1, E)),
        enc_norm_g=ones((1, E)), enc_norm_b=zeros((1, E)),
        # decoder (stacked over layers)
        d_sa_wqkv=attn_w(n_dec), d_sa_bqkv=attn_b(n_dec),
        d_sa_wo=w_bf16((n_dec, E, E)), d_sa_bo=zeros((n_dec, 1, E)),
        d_ln1_g=ones((n_dec, 1, E)), d_ln1_b=zeros((n_dec, 1, E)),
        d_ca_wqkv=attn_w(n_dec), d_ca_bqkv=attn_b(n_dec),
        d_ca_wo=w_bf16((n_dec, E, E)), d_ca_bo=zeros((n_dec, 1, E)),
        d_ln2_g=ones((n_dec, 1, E)), d_ln2_b=zeros((n_dec, 1, E)),
        d_w1=w_bf16((n_dec, E, F)), d_b1=zeros((n_dec, 1, F)),
        d_w2=w_bf16((n_dec, F, E)), d_b2=zeros((n_dec, 1, E)),
        d_ln3_g=ones((n_dec, 1, E)), d_ln3_b=zeros((n_dec, 1, E)),
        dec_norm_g=ones((1, E)), dec_norm_b=zeros((1, E)),
        fc_w=fc_w, fc_b=fc_b,
    )


# ------------------------------------------------------------------ main

if __name__ == "__main__":
    # module hyper-params (small): embedding_size=32, heads=4, 2 enc / 2 dec layers,
    # dim_feedforward=64, max_len=16, pad_idx=0
    E, H, N_ENC, N_DEC, F = 32, 4, 2, 2, 64
    SRC_VOCAB, TRG_VOCAB, MAX_LEN, PAD_IDX = 50, 60, 16, 0
    LS, LT, S = 8, 6, 2    # src seq len, trg seq len, batch

    root = jax.random.PRNGKey(0)
    k_src, k_trg, k_par = jax.random.split(root, 3)
    src = jax.random.randint(k_src, (LS, S), 0, SRC_VOCAB, dtype=jnp.int32)
    trg = jax.random.randint(k_trg, (LT, S), 0, TRG_VOCAB, dtype=jnp.int32)

    params = init_params(k_par, E, H, F, N_ENC, N_DEC, SRC_VOCAB, TRG_VOCAB, MAX_LEN)

    out = transformer_forward(params, src, trg,
                              pad_idx=PAD_IDX, num_heads=H, trg_vocab=TRG_VOCAB)
    out = jax.block_until_ready(out)
    assert out.shape == (LT, S, TRG_VOCAB), out.shape
    assert bool(jnp.all(jnp.isfinite(out)))
    print("KERNEL_OK")
</pallas_src>

<mosaic_0001>
module attributes {stable_mosaic.version = 11 : i64} {
  func.func @_transformer_kernel(%arg0: memref<16x16xf32, #tpu.memory_space<vmem>>, %arg1: memref<16x16xf32, #tpu.memory_space<vmem>>, %arg2: memref<16x16xf32, #tpu.memory_space<vmem>>, %arg3: memref<16x32xf32, #tpu.memory_space<vmem>>, %arg4: memref<16x32xf32, #tpu.memory_space<vmem>>, %arg5: memref<2x12x32x8xbf16, #tpu.memory_space<vmem>>, %arg6: memref<2x12x1x8xf32, #tpu.memory_space<vmem>>, %arg7: memref<2x32x32xbf16, #tpu.memory_space<vmem>>, %arg8: memref<2x1x32xf32, #tpu.memory_space<vmem>>, %arg9: memref<2x1x32xf32, #tpu.memory_space<vmem>>, %arg10: memref<2x1x32xf32, #tpu.memory_space<vmem>>, %arg11: memref<2x32x64xbf16, #tpu.memory_space<vmem>>, %arg12: memref<2x1x64xf32, #tpu.memory_space<vmem>>, %arg13: memref<2x64x32xbf16, #tpu.memory_space<vmem>>, %arg14: memref<2x1x32xf32, #tpu.memory_space<vmem>>, %arg15: memref<2x1x32xf32, #tpu.memory_space<vmem>>, %arg16: memref<2x1x32xf32, #tpu.memory_space<vmem>>, %arg17: memref<1x32xf32, #tpu.memory_space<vmem>>, %arg18: memref<1x32xf32, #tpu.memory_space<vmem>>, %arg19: memref<2x12x32x8xbf16, #tpu.memory_space<vmem>>, %arg20: memref<2x12x1x8xf32, #tpu.memory_space<vmem>>, %arg21: memref<2x32x32xbf16, #tpu.memory_space<vmem>>, %arg22: memref<2x1x32xf32, #tpu.memory_space<vmem>>, %arg23: memref<2x1x32xf32, #tpu.memory_space<vmem>>, %arg24: memref<2x1x32xf32, #tpu.memory_space<vmem>>, %arg25: memref<2x12x32x8xbf16, #tpu.memory_space<vmem>>, %arg26: memref<2x12x1x8xf32, #tpu.memory_space<vmem>>, %arg27: memref<2x32x32xbf16, #tpu.memory_space<vmem>>, %arg28: memref<2x1x32xf32, #tpu.memory_space<vmem>>, %arg29: memref<2x1x32xf32, #tpu.memory_space<vmem>>, %arg30: memref<2x1x32xf32, #tpu.memory_space<vmem>>, %arg31: memref<2x32x64xbf16, #tpu.memory_space<vmem>>, %arg32: memref<2x1x64xf32, #tpu.memory_space<vmem>>, %arg33: memref<2x64x32xbf16, #tpu.memory_space<vmem>>, %arg34: memref<2x1x32xf32, #tpu.memory_space<vmem>>, %arg35: memref<2x1x32xf32, #tpu.memory_space<vmem>>, %arg36: memref<2x1x32xf32, #tpu.memory_space<vmem>>, %arg37: memref<1x32xf32, #tpu.memory_space<vmem>>, %arg38: memref<1x32xf32, #tpu.memory_space<vmem>>, %arg39: memref<32x128xbf16, #tpu.memory_space<vmem>>, %arg40: memref<1x128xf32, #tpu.memory_space<vmem>>, %arg41: memref<16x128xf32, #tpu.memory_space<vmem>>) attributes {dimension_semantics = [], scalar_prefetch = 0 : i64, scratch_operands = 0 : i64, tpu.core_type = #tpu.core_type<tc>} {
    %c0 = arith.constant 0 : index
    %c0_0 = arith.constant 0 : index
    %0 = vector.load %arg3[%c0, %c0_0] : memref<16x32xf32, #tpu.memory_space<vmem>>, vector<16x32xf32>
    %c0_1 = arith.constant 0 : index
    %c0_2 = arith.constant 0 : index
    %1 = vector.load %arg4[%c0_1, %c0_2] : memref<16x32xf32, #tpu.memory_space<vmem>>, vector<16x32xf32>
    %c0_3 = arith.constant 0 : index
    %c0_4 = arith.constant 0 : index
    %2 = vector.load %arg0[%c0_3, %c0_4] : memref<16x16xf32, #tpu.memory_space<vmem>>, vector<16x16xf32>
    %c0_5 = arith.constant 0 : index
    %c0_6 = arith.constant 0 : index
    %3 = vector.load %arg1[%c0_5, %c0_6] : memref<16x16xf32, #tpu.memory_space<vmem>>, vector<16x16xf32>
    %c0_7 = arith.constant 0 : index
    %c0_8 = arith.constant 0 : index
    %4 = vector.load %arg2[%c0_7, %c0_8] : memref<16x16xf32, #tpu.memory_space<vmem>>, vector<16x16xf32>
    %c0_9 = arith.constant 0 : index
    %c0_10 = arith.constant 0 : index
    %c0_11 = arith.constant 0 : index
    %5 = vector.load %arg7[%c0_9, %c0_10, %c0_11] : memref<2x32x32xbf16, #tpu.memory_space<vmem>>, vector<1x32x32xbf16>
    %6 = vector.shape_cast %5 : vector<1x32x32xbf16> to vector<32x32xbf16>
    %c0_12 = arith.constant 0 : index
    %c0_13 = arith.constant 0 : index
    %c0_14 = arith.constant 0 : index
    %7 = vector.load %arg8[%c0_12, %c0_13, %c0_14] : memref<2x1x32xf32, #tpu.memory_space<vmem>>, vector<1x1x32xf32>
    %8 = vector.shape_cast %7 : vector<1x1x32xf32> to vector<1x32xf32>
    %9 = arith.truncf %0 : vector<16x32xf32> to vector<16x32xbf16>
    %10 = arith.truncf %0 : vector<16x32xf32> to vector<16x32xbf16>
    %c0_15 = arith.constant 0 : index
    %c0_16 = arith.constant 0 : index
    %c0_17 = arith.constant 0 : index
    %c0_18 = arith.constant 0 : index
    %11 = vector.load %arg5[%c0_15, %c0_16, %c0_17, %c0_18] : memref<2x12x32x8xbf16, #tpu.memory_space<vmem>>, vector<1x1x32x8xbf16>
    %12 = vector.shape_cast %11 : vector<1x1x32x8xbf16> to vector<32x8xbf16>
    %cst = arith.constant dense<0.000000e+00> : vector<16x8xf32>
    %13 = tpu.matmul %9, %12, %cst {dimension_numbers = #tpu.dot_dimension_numbers<[1], [0], [0], [1], [0, 0, 1, 1], [], []>} : vector<16x32xbf16>, vector<32x8xbf16>, vector<16x8xf32> -> vector<16x8xf32>
    %c0_19 = arith.constant 0 : index
    %c0_20 = arith.constant 0 : index
    %c0_21 = arith.constant 0 : index
    %c0_22 = arith.constant 0 : index
    %14 = vector.load %arg6[%c0_19, %c0_20, %c0_21, %c0_22] : memref<2x12x1x8xf32, #tpu.memory_space<vmem>>, vector<1x1x1x8xf32>
    %15 = vector.shape_cast %14 : vector<1x1x1x8xf32> to vector<1x8xf32>
    %16 = vector.broadcast %15 : vector<1x8xf32> to vector<16x8xf32>
    %17 = arith.addf %13, %16 : vector<16x8xf32>
    %c0_23 = arith.constant 0 : index
    %c4 = arith.constant 4 : index
    %c0_24 = arith.constant 0 : index
    %c0_25 = arith.constant 0 : index
    %18 = vector.load %arg5[%c0_23, %c4, %c0_24, %c0_25] : memref<2x12x32x8xbf16, #tpu.memory_space<vmem>>, vector<1x1x32x8xbf16>
    %19 = vector.shape_cast %18 : vector<1x1x32x8xbf16> to vector<32x8xbf16>
    %cst_26 = arith.constant dense<0.000000e+00> : vector<16x8xf32>
    %20 = tpu.matmul %10, %19, %cst_26 {dimension_numbers = #tpu.dot_dimension_numbers<[1], [0], [0], [1], [0, 0, 1, 1], [], []>} : vector<16x32xbf16>, vector<32x8xbf16>, vector<16x8xf32> -> vector<16x8xf32>
    %c0_27 = arith.constant 0 : index
    %c4_28 = arith.constant 4 : index
    %c0_29 = arith.constant 0 : index
    %c0_30 = arith.constant 0 : index
    %21 = vector.load %arg6[%c0_27, %c4_28, %c0_29, %c0_30] : memref<2x12x1x8xf32, #tpu.memory_space<vmem>>, vector<1x1x1x8xf32>
    %22 = vector.shape_cast %21 : vector<1x1x1x8xf32> to vector<1x8xf32>
    %23 = vector.broadcast %22 : vector<1x8xf32> to vector<16x8xf32>
    %24 = arith.addf %20, %23 : vector<16x8xf32>
    %c0_31 = arith.constant 0 : index
    %c8 = arith.constant 8 : index
    %c0_32 = arith.constant 0 : index
    %c0_33 = arith.constant 0 : index
    %25 = vector.load %arg5[%c0_31, %c8, %c0_32, %c0_33] : memref<2x12x32x8xbf16, #tpu.memory_space<vmem>>, vector<1x1x32x8xbf16>
    %26 = vector.shape_cast %25 : vector<1x1x32x8xbf16> to vector<32x8xbf16>
    %cst_34 = arith.constant dense<0.000000e+00> : vector<16x8xf32>
    %27 = tpu.matmul %10, %26, %cst_34 {dimension_numbers = #tpu.dot_dimension_numbers<[1], [0], [0], [1], [0, 0, 1, 1], [], []>} : vector<16x32xbf16>, vector<32x8xbf16>, vector<16x8xf32> -> vector<16x8xf32>
    %c0_35 = arith.constant 0 : index
    %c8_36 = arith.constant 8 : index
    %c0_37 = arith.constant 0 : index
    %c0_38 = arith.constant 0 : index
    %28 = vector.load %arg6[%c0_35, %c8_36, %c0_37, %c0_38] : memref<2x12x1x8xf32, #tpu.memory_space<vmem>>, vector<1x1x1x8xf32>
    %29 = vector.shape_cast %28 : vector<1x1x1x8xf32> to vector<1x8xf32>
    %30 = vector.broadcast %29 : vector<1x8xf32> to vector<16x8xf32>
    %31 = arith.addf %27, %30 : vector<16x8xf32>
    %32 = arith.truncf %17 : vector<16x8xf32> to vector<16x8xbf16>
    %33 = arith.truncf %24 : vector<16x8xf32> to vector<16x8xbf16>
    %cst_39 = arith.constant dense<0.000000e+00> : vector<16x16xf32>
    %34 = tpu.matmul %32, %33, %cst_39 {dimension_numbers = #tpu.dot_dimension_numbers<[1], [1], [0], [0], [0, 0, 1, 0], [], []>} : vector<16x8xbf16>, vector<16x8xbf16>, vector<16x16xf32> -> vector<16x16xf32>
    %cst_40 = arith.constant 0.353553385 : f32
    %35 = vector.broadcast %cst_40 : f32 to vector<16x16xf32>
    %36 = arith.mulf %34, %35 : vector<16x16xf32>
    %37 = arith.addf %36, %2 : vector<16x16xf32>
    %cst_41 = arith.constant dense<0xFF800000> : vector<16xf32>
    %38 = vector.multi_reduction <maximumf>, %37, %cst_41 [1] : vector<16x16xf32> to vector<16xf32>
    %39 = vector.shape_cast %38 : vector<16xf32> to vector<16x1xf32>
    %40 = vector.broadcast %39 : vector<16x1xf32> to vector<16x16xf32>
    %41 = arith.subf %37, %40 : vector<16x16xf32>
    %42 = math.exp %41 : vector<16x16xf32>
    %43 = arith.truncf %42 : vector<16x16xf32> to vector<16x16xbf16>
    %44 = arith.truncf %31 : vector<16x8xf32> to vector<16x8xbf16>
    %cst_42 = arith.constant dense<0.000000e+00> : vector<16x8xf32>
    %45 = tpu.matmul %43, %44, %cst_42 {dimension_numbers = #tpu.dot_dimension_numbers<[1], [0], [0], [1], [0, 0, 1, 1], [], []>} : vector<16x16xbf16>, vector<16x8xbf16>, vector<16x8xf32> -> vector<16x8xf32>
    %cst_43 = arith.constant dense<0.000000e+00> : vector<16xf32>
    %46 = vector.multi_reduction <add>, %42, %cst_43 [1] : vector<16x16xf32> to vector<16xf32>
    %47 = vector.shape_cast %46 : vector<16xf32> to vector<16x1xf32>
    %48 = tpu.reciprocal %47 : vector<16x1xf32> -> vector<16x1xf32>
    %49 = vector.broadcast %48 : vector<16x1xf32> to vector<16x8xf32>
    %50 = arith.mulf %45, %49 : vector<16x8xf32>
    %c0_44 = arith.constant 0 : index
    %c1 = arith.constant 1 : index
    %c0_45 = arith.constant 0 : index
    %c0_46 = arith.constant 0 : index
    %51 = vector.load %arg5[%c0_44, %c1, %c0_45, %c0_46] : memref<2x12x32x8xbf16, #tpu.memory_space<vmem>>, vector<1x1x32x8xbf16>
    %52 = vector.shape_cast %51 : vector<1x1x32x8xbf16> to vector<32x8xbf16>
    %cst_47 = arith.constant dense<0.000000e+00> : vector<16x8xf32>
    %53 = tpu.matmul %9, %52, %cst_47 {dimension_numbers = #tpu.dot_dimension_numbers<[1], [0], [0], [1], [0, 0, 1, 1], [], []>} : vector<16x32xbf16>, vector<32x8xbf16>, vector<16x8xf32> -> vector<16x8xf32>
    %c0_48 = arith.constant 0 : index
    %c1_49 = arith.constant 1 : index
    %c0_50 = arith.constant 0 : index
    %c0_51 = arith.constant 0 : index
    %54 = vector.load %arg6[%c0_48, %c1_49, %c0_50, %c0_51] : memref<2x12x1x8xf32, #tpu.memory_space<vmem>>, vector<1x1x1x8xf32>
    %55 = vector.shape_cast %54 : vector<1x1x1x8xf32> to vector<1x8xf32>
    %56 = vector.broadcast %55 : vector<1x8xf32> to vector<16x8xf32>
    %57 = arith.addf %53, %56 : vector<16x8xf32>
    %c0_52 = arith.constant 0 : index
    %c5 = arith.constant 5 : index
    %c0_53 = arith.constant 0 : index
    %c0_54 = arith.constant 0 : index
    %58 = vector.load %arg5[%c0_52, %c5, %c0_53, %c0_54] : memref<2x12x32x8xbf16, #tpu.memory_space<vmem>>, vector<1x1x32x8xbf16>
    %59 = vector.shape_cast %58 : vector<1x1x32x8xbf16> to vector<32x8xbf16>
    %cst_55 = arith.constant dense<0.000000e+00> : vector<16x8xf32>
    %60 = tpu.matmul %10, %59, %cst_55 {dimension_numbers = #tpu.dot_dimension_numbers<[1], [0], [0], [1], [0, 0, 1, 1], [], []>} : vector<16x32xbf16>, vector<32x8xbf16>, vector<16x8xf32> -> vector<16x8xf32>
    %c0_56 = arith.constant 0 : index
    %c5_57 = arith.constant 5 : index
    %c0_58 = arith.constant 0 : index
    %c0_59 = arith.constant 0 : index
    %61 = vector.load %arg6[%c0_56, %c5_57, %c0_58, %c0_59] : memref<2x12x1x8xf32, #tpu.memory_space<vmem>>, vector<1x1x1x8xf32>
    %62 = vector.shape_cast %61 : vector<1x1x1x8xf32> to vector<1x8xf32>
    %63 = vector.broadcast %62 : vector<1x8xf32> to vector<16x8xf32>
    %64 = arith.addf %60, %63 : vector<16x8xf32>
    %c0_60 = arith.constant 0 : index
    %c9 = arith.constant 9 : index
    %c0_61 = arith.constant 0 : index
    %c0_62 = arith.constant 0 : index
    %65 = vector.load %arg5[%c0_60, %c9, %c0_61, %c0_62] : memref<2x12x32x8xbf16, #tpu.memory_space<vmem>>, vector<1x1x32x8xbf16>
    %66 = vector.shape_cast %65 : vector<1x1x32x8xbf16> to vector<32x8xbf16>
    %cst_63 = arith.constant dense<0.000000e+00> : vector<16x8xf32>
    %67 = tpu.matmul %10, %66, %cst_63 {dimension_numbers = #tpu.dot_dimension_numbers<[1], [0], [0], [1], [0, 0, 1, 1], [], []>} : vector<16x32xbf16>, vector<32x8xbf16>, vector<16x8xf32> -> vector<16x8xf32>
    %c0_64 = arith.constant 0 : index
    %c9_65 = arith.constant 9 : index
    %c0_66 = arith.constant 0 : index
    %c0_67 = arith.constant 0 : index
    %68 = vector.load %arg6[%c0_64, %c9_65, %c0_66, %c0_67] : memref<2x12x1x8xf32, #tpu.memory_space<vmem>>, vector<1x1x1x8xf32>
    %69 = vector.shape_cast %68 : vector<1x1x1x8xf32> to vector<1x8xf32>
    %70 = vector.broadcast %69 : vector<1x8xf32> to vector<16x8xf32>
    %71 = arith.addf %67, %70 : vector<16x8xf32>
    %72 = arith.truncf %57 : vector<16x8xf32> to vector<16x8xbf16>
    %73 = arith.truncf %64 : vector<16x8xf32> to vector<16x8xbf16>
    %cst_68 = arith.constant dense<0.000000e+00> : vector<16x16xf32>
    %74 = tpu.matmul %72, %73, %cst_68 {dimension_numbers = #tpu.dot_dimension_numbers<[1], [1], [0], [0], [0, 0, 1, 0], [], []>} : vector<16x8xbf16>, vector<16x8xbf16>, vector<16x16xf32> -> vector<16x16xf32>
    %cst_69 = arith.constant 0.353553385 : f32
    %75 = vector.broadcast %cst_69 : f32 to vector<16x16xf32>
    %76 = arith.mulf %74, %75 : vector<16x16xf32>
    %77 = arith.addf %76, %2 : vector<16x16xf32>
    %cst_70 = arith.constant dense<0xFF800000> : vector<16xf32>
    %78 = vector.multi_reduction <maximumf>, %77, %cst_70 [1] : vector<16x16xf32> to vector<16xf32>
    %79 = vector.shape_cast %78 : vector<16xf32> to vector<16x1xf32>
    %80 = vector.broadcast %79 : vector<16x1xf32> to vector<16x16xf32>
    %81 = arith.subf %77, %80 : vector<16x16xf32>
    %82 = math.exp %81 : vector<16x16xf32>
    %83 = arith.truncf %82 : vector<16x16xf32> to vector<16x16xbf16>
    %84 = arith.truncf %71 : vector<16x8xf32> to vector<16x8xbf16>
    %cst_71 = arith.constant dense<0.000000e+00> : vector<16x8xf32>
    %85 = tpu.matmul %83, %84, %cst_71 {dimension_numbers = #tpu.dot_dimension_numbers<[1], [0], [0], [1], [0, 0, 1, 1], [], []>} : vector<16x16xbf16>, vector<16x8xbf16>, vector<16x8xf32> -> vector<16x8xf32>
    %cst_72 = arith.constant dense<0.000000e+00> : vector<16xf32>
    %86 = vector.multi_reduction <add>, %82, %cst_72 [1] : vector<16x16xf32> to vector<16xf32>
    %87 = vector.shape_cast %86 : vector<16xf32> to vector<16x1xf32>
    %88 = tpu.reciprocal %87 : vector<16x1xf32> -> vector<16x1xf32>
    %89 = vector.broadcast %88 : vector<16x1xf32> to vector<16x8xf32>
    %90 = arith.mulf %85, %89 : vector<16x8xf32>
    %c0_73 = arith.constant 0 : index
    %c2 = arith.constant 2 : index
    %c0_74 = arith.constant 0 : index
    %c0_75 = arith.constant 0 : index
    %91 = vector.load %arg5[%c0_73, %c2, %c0_74, %c0_75] : memref<2x12x32x8xbf16, #tpu.memory_space<vmem>>, vector<1x1x32x8xbf16>
    %92 = vector.shape_cast %91 : vector<1x1x32x8xbf16> to vector<32x8xbf16>
    %cst_76 = arith.constant dense<0.000000e+00> : vector<16x8xf32>
    %93 = tpu.matmul %9, %92, %cst_76 {dimension_numbers = #tpu.dot_dimension_numbers<[1], [0], [0], [1], [0, 0, 1, 1], [], []>} : vector<16x32xbf16>, vector<32x8xbf16>, vector<16x8xf32> -> vector<16x8xf32>
    %c0_77 = arith.constant 0 : index
    %c2_78 = arith.constant 2 : index
    %c0_79 = arith.constant 0 : index
    %c0_80 = arith.constant 0 : index
    %94 = vector.load %arg6[%c0_77, %c2_78, %c0_79, %c0_80] : memref<2x12x1x8xf32, #tpu.memory_space<vmem>>, vector<1x1x1x8xf32>
    %95 = vector.shape_cast %94 : vector<1x1x1x8xf32> to vector<1x8xf32>
    %96 = vector.broadcast %95 : vector<1x8xf32> to vector<16x8xf32>
    %97 = arith.addf %93, %96 : vector<16x8xf32>
    %c0_81 = arith.constant 0 : index
    %c6 = arith.constant 6 : index
    %c0_82 = arith.constant 0 : index
    %c0_83 = arith.constant 0 : index
    %98 = vector.load %arg5[%c0_81, %c6, %c0_82, %c0_83] : memref<2x12x32x8xbf16, #tpu.memory_space<vmem>>, vector<1x1x32x8xbf16>
    %99 = vector.shape_cast %98 : vector<1x1x32x8xbf16> to vector<32x8xbf16>
    %cst_84 = arith.constant dense<0.000000e+00> : vector<16x8xf32>
    %100 = tpu.matmul %10, %99, %cst_84 {dimension_numbers = #tpu.dot_dimension_numbers<[1], [0], [0], [1], [0, 0, 1, 1], [], []>} : vector<16x32xbf16>, vector<32x8xbf16>, vector<16x8xf32> -> vector<16x8xf32>
    %c0_85 = arith.constant 0 : index
    %c6_86 = arith.constant 6 : index
    %c0_87 = arith.constant 0 : index
    %c0_88 = arith.constant 0 : index
    %101 = vector.load %arg6[%c0_85, %c6_86, %c0_87, %c0_88] : memref<2x12x1x8xf32, #tpu.memory_space<vmem>>, vector<1x1x1x8xf32>
    %102 = vector.shape_cast %101 : vector<1x1x1x8xf32> to vector<1x8xf32>
    %103 = vector.broadcast %102 : vector<1x8xf32> to vector<16x8xf32>
    %104 = arith.addf %100, %103 : vector<16x8xf32>
    %c0_89 = arith.constant 0 : index
    %c10 = arith.constant 10 : index
    %c0_90 = arith.constant 0 : index
    %c0_91 = arith.constant 0 : index
    %105 = vector.load %arg5[%c0_89, %c10, %c0_90, %c0_91] : memref<2x12x32x8xbf16, #tpu.memory_space<vmem>>, vector<1x1x32x8xbf16>
    %106 = vector.shape_cast %105 : vector<1x1x32x8xbf16> to vector<32x8xbf16>
    %cst_92 = arith.constant dense<0.000000e+00> : vector<16x8xf32>
    %107 = tpu.matmul %10, %106, %cst_92 {dimension_numbers = #tpu.dot_dimension_numbers<[1], [0], [0], [1], [0, 0, 1, 1], [], []>} : vector<16x32xbf16>, vector<32x8xbf16>, vector<16x8xf32> -> vector<16x8xf32>
    %c0_93 = arith.constant 0 : index
    %c10_94 = arith.constant 10 : index
    %c0_95 = arith.constant 0 : index
    %c0_96 = arith.constant 0 : index
    %108 = vector.load %arg6[%c0_93, %c10_94, %c0_95, %c0_96] : memref<2x12x1x8xf32, #tpu.memory_space<vmem>>, vector<1x1x1x8xf32>
    %109 = vector.shape_cast %108 : vector<1x1x1x8xf32> to vector<1x8xf32>
    %110 = vector.broadcast %109 : vector<1x8xf32> to vector<16x8xf32>
    %111 = arith.addf %107, %110 : vector<16x8xf32>
    %112 = arith.truncf %97 : vector<16x8xf32> to vector<16x8xbf16>
    %113 = arith.truncf %104 : vector<16x8xf32> to vector<16x8xbf16>
    %cst_97 = arith.constant dense<0.000000e+00> : vector<16x16xf32>
    %114 = tpu.matmul %112, %113, %cst_97 {dimension_numbers = #tpu.dot_dimension_numbers<[1], [1], [0], [0], [0, 0, 1, 0], [], []>} : vector<16x8xbf16>, vector<16x8xbf16>, vector<16x16xf32> -> vector<16x16xf32>
    %cst_98 = arith.constant 0.353553385 : f32
    %115 = vector.broadcast %cst_98 : f32 to vector<16x16xf32>
    %116 = arith.mulf %114, %115 : vector<16x16xf32>
    %117 = arith.addf %116, %2 : vector<16x16xf32>
    %cst_99 = arith.constant dense<0xFF800000> : vector<16xf32>
    %118 = vector.multi_reduction <maximumf>, %117, %cst_99 [1] : vector<16x16xf32> to vector<16xf32>
    %119 = vector.shape_cast %118 : vector<16xf32> to vector<16x1xf32>
    %120 = vector.broadcast %119 : vector<16x1xf32> to vector<16x16xf32>
    %121 = arith.subf %117, %120 : vector<16x16xf32>
    %122 = math.exp %121 : vector<16x16xf32>
    %123 = arith.truncf %122 : vector<16x16xf32> to vector<16x16xbf16>
    %124 = arith.truncf %111 : vector<16x8xf32> to vector<16x8xbf16>
    %cst_100 = arith.constant dense<0.000000e+00> : vector<16x8xf32>
    %125 = tpu.matmul %123, %124, %cst_100 {dimension_numbers = #tpu.dot_dimension_numbers<[1], [0], [0], [1], [0, 0, 1, 1], [], []>} : vector<16x16xbf16>, vector<16x8xbf16>, vector<16x8xf32> -> vector<16x8xf32>
    %cst_101 = arith.constant dense<0.000000e+00> : vector<16xf32>
    %126 = vector.multi_reduction <add>, %122, %cst_101 [1] : vector<16x16xf32> to vector<16xf32>
    %127 = vector.shape_cast %126 : vector<16xf32> to vector<16x1xf32>
    %128 = tpu.reciprocal %127 : vector<16x1xf32> -> vector<16x1xf32>
    %129 = vector.broadcast %128 : vector<16x1xf32> to vector<16x8xf32>
    %130 = arith.mulf %125, %129 : vector<16x8xf32>
    %c0_102 = arith.constant 0 : index
    %c3 = arith.constant 3 : index
    %c0_103 = arith.constant 0 : index
    %c0_104 = arith.constant 0 : index
    %131 = vector.load %arg5[%c0_102, %c3, %c0_103, %c0_104] : memref<2x12x32x8xbf16, #tpu.memory_space<vmem>>, vector<1x1x32x8xbf16>
    %132 = vector.shape_cast %131 : vector<1x1x32x8xbf16> to vector<32x8xbf16>
    %cst_105 = arith.constant dense<0.000000e+00> : vector<16x8xf32>
    %133 = tpu.matmul %9, %132, %cst_105 {dimension_numbers = #tpu.dot_dimension_numbers<[1], [0], [0], [1], [0, 0, 1, 1], [], []>} : vector<16x32xbf16>, vector<32x8xbf16>, vector<16x8xf32> -> vector<16x8xf32>
    %c0_106 = arith.constant 0 : index
    %c3_107 = arith.constant 3 : index
    %c0_108 = arith.constant 0 : index
    %c0_109 = arith.constant 0 : index
    %134 = vector.load %arg6[%c0_106, %c3_107, %c0_108, %c0_109] : memref<2x12x1x8xf32, #tpu.memory_space<vmem>>, vector<1x1x1x8xf32>
    %135 = vector.shape_cast %134 : vector<1x1x1x8xf32> to vector<1x8xf32>
    %136 = vector.broadcast %135 : vector<1x8xf32> to vector<16x8xf32>
    %137 = arith.addf %133, %136 : vector<16x8xf32>
    %c0_110 = arith.constant 0 : index
    %c7 = arith.constant 7 : index
    %c0_111 = arith.constant 0 : index
    %c0_112 = arith.constant 0 : index
    %138 = vector.load %arg5[%c0_110, %c7, %c0_111, %c0_112] : memref<2x12x32x8xbf16, #tpu.memory_space<vmem>>, vector<1x1x32x8xbf16>
    %139 = vector.shape_cast %138 : vector<1x1x32x8xbf16> to vector<32x8xbf16>
    %cst_113 = arith.constant dense<0.000000e+00> : vector<16x8xf32>
    %140 = tpu.matmul %10, %139, %cst_113 {dimension_numbers = #tpu.dot_dimension_numbers<[1], [0], [0], [1], [0, 0, 1, 1], [], []>} : vector<16x32xbf16>, vector<32x8xbf16>, vector<16x8xf32> -> vector<16x8xf32>
    %c0_114 = arith.constant 0 : index
    %c7_115 = arith.constant 7 : index
    %c0_116 = arith.constant 0 : index
    %c0_117 = arith.constant 0 : index
    %141 = vector.load %arg6[%c0_114, %c7_115, %c0_116, %c0_117] : memref<2x12x1x8xf32, #tpu.memory_space<vmem>>, vector<1x1x1x8xf32>
    %142 = vector.shape_cast %141 : vector<1x1x1x8xf32> to vector<1x8xf32>
    %143 = vector.broadcast %142 : vector<1x8xf32> to vector<16x8xf32>
    %144 = arith.addf %140, %143 : vector<16x8xf32>
    %c0_118 = arith.constant 0 : index
    %c11 = arith.constant 11 : index
    %c0_119 = arith.constant 0 : index
    %c0_120 = arith.constant 0 : index
    %145 = vector.load %arg5[%c0_118, %c11, %c0_119, %c0_120] : memref<2x12x32x8xbf16, #tpu.memory_space<vmem>>, vector<1x1x32x8xbf16>
    %146 = vector.shape_cast %145 : vector<1x1x32x8xbf16> to vector<32x8xbf16>
    %cst_121 = arith.constant dense<0.000000e+00> : vector<16x8xf32>
    %147 = tpu.matmul %10, %146, %cst_121 {dimension_numbers = #tpu.dot_dimension_numbers<[1], [0], [0], [1], [0, 0, 1, 1], [], []>} : vector<16x32xbf16>, vector<32x8xbf16>, vector<16x8xf32> -> vector<16x8xf32>
    %c0_122 = arith.constant 0 : index
    %c11_123 = arith.constant 11 : index
    %c0_124 = arith.constant 0 : index
    %c0_125 = arith.constant 0 : index
    %148 = vector.load %arg6[%c0_122, %c11_123, %c0_124, %c0_125] : memref<2x12x1x8xf32, #tpu.memory_space<vmem>>, vector<1x1x1x8xf32>
    %149 = vector.shape_cast %148 : vector<1x1x1x8xf32> to vector<1x8xf32>
    %150 = vector.broadcast %149 : vector<1x8xf32> to vector<16x8xf32>
    %151 = arith.addf %147, %150 : vector<16x8xf32>
    %152 = arith.truncf %137 : vector<16x8xf32> to vector<16x8xbf16>
    %153 = arith.truncf %144 : vector<16x8xf32> to vector<16x8xbf16>
    %cst_126 = arith.constant dense<0.000000e+00> : vector<16x16xf32>
    %154 = tpu.matmul %152, %153, %cst_126 {dimension_numbers = #tpu.dot_dimension_numbers<[1], [1], [0], [0], [0, 0, 1, 0], [], []>} : vector<16x8xbf16>, vector<16x8xbf16>, vector<16x16xf32> -> vector<16x16xf32>
    %cst_127 = arith.constant 0.353553385 : f32
    %155 = vector.broadcast %cst_127 : f32 to vector<16x16xf32>
    %156 = arith.mulf %154, %155 : vector<16x16xf32>
    %157 = arith.addf %156, %2 : vector<16x16xf32>
    %cst_128 = arith.constant dense<0xFF800000> : vector<16xf32>
    %158 = vector.multi_reduction <maximumf>, %157, %cst_128 [1] : vector<16x16xf32> to vector<16xf32>
    %159 = vector.shape_cast %158 : vector<16xf32> to vector<16x1xf32>
    %160 = vector.broadcast %159 : vector<16x1xf32> to vector<16x16xf32>
    %161 = arith.subf %157, %160 : vector<16x16xf32>
    %162 = math.exp %161 : vector<16x16xf32>
    %163 = arith.truncf %162 : vector<16x16xf32> to vector<16x16xbf16>
    %164 = arith.truncf %151 : vector<16x8xf32> to vector<16x8xbf16>
    %cst_129 = arith.constant dense<0.000000e+00> : vector<16x8xf32>
    %165 = tpu.matmul %163, %164, %cst_129 {dimension_numbers = #tpu.dot_dimension_numbers<[1], [0], [0], [1], [0, 0, 1, 1], [], []>} : vector<16x16xbf16>, vector<16x8xbf16>, vector<16x8xf32> -> vector<16x8xf32>
    %cst_130 = arith.constant dense<0.000000e+00> : vector<16xf32>
    %166 = vector.multi_reduction <add>, %162, %cst_130 [1] : vector<16x16xf32> to vector<16xf32>
    %167 = vector.shape_cast %166 : vector<16xf32> to vector<16x1xf32>
    %168 = tpu.reciprocal %167 : vector<16x1xf32> -> vector<16x1xf32>
    %169 = vector.broadcast %168 : vector<16x1xf32> to vector<16x8xf32>
    %170 = arith.mulf %165, %169 : vector<16x8xf32>
    %171 = tpu.concatenate %50, %90, %130, %170 in 1 : vector<16x8xf32>, vector<16x8xf32>, vector<16x8xf32>, vector<16x8xf32> -> vector<16x32xf32>
    %172 = arith.truncf %171 : vector<16x32xf32> to vector<16x32xbf16>
    %cst_131 = arith.constant dense<0.000000e+00> : vector<16x32xf32>
    %173 = tpu.matmul %172, %6, %cst_131 {dimension_numbers = #tpu.dot_dimension_numbers<[1], [0], [0], [1], [0, 0, 1, 1], [], []>} : vector<16x32xbf16>, vector<32x32xbf16>, vector<16x32xf32> -> vector<16x32xf32>
    %174 = vector.broadcast %8 : vector<1x32xf32> to vector<16x32xf32>
    %175 = arith.addf %173, %174 : vector<16x32xf32>
    %176 = arith.addf %0, %175 : vector<16x32xf32>
    %c0_132 = arith.constant 0 : index
    %c0_133 = arith.constant 0 : index
    %c0_134 = arith.constant 0 : index
    %177 = vector.load %arg9[%c0_132, %c0_133, %c0_134] : memref<2x1x32xf32, #tpu.memory_space<vmem>>, vector<1x1x32xf32>
    %178 = vector.shape_cast %177 : vector<1x1x32xf32> to vector<1x32xf32>
    %c0_135 = arith.constant 0 : index
    %c0_136 = arith.constant 0 : index
    %c0_137 = arith.constant 0 : index
    %179 = vector.load %arg10[%c0_135, %c0_136, %c0_137] : memref<2x1x32xf32, #tpu.memory_space<vmem>>, vector<1x1x32xf32>
    %180 = vector.shape_cast %179 : vector<1x1x32xf32> to vector<1x32xf32>
    %cst_138 = arith.constant dense<0.000000e+00> : vector<16xf32>
    %181 = vector.multi_reduction <add>, %176, %cst_138 [1] : vector<16x32xf32> to vector<16xf32>
    %182 = vector.shape_cast %181 : vector<16xf32> to vector<16x1xf32>
    %cst_139 = arith.constant 3.200000e+01 : f32
    %183 = vector.broadcast %cst_139 : f32 to vector<16x1xf32>
    %184 = arith.divf %182, %183 : vector<16x1xf32>
    %185 = vector.broadcast %184 : vector<16x1xf32> to vector<16x32xf32>
    %186 = arith.subf %176, %185 : vector<16x32xf32>
    %187 = arith.mulf %186, %186 : vector<16x32xf32>
    %cst_140 = arith.constant dense<0.000000e+00> : vector<16xf32>
    %188 = vector.multi_reduction <add>, %187, %cst_140 [1] : vector<16x32xf32> to vector<16xf32>
    %189 = vector.shape_cast %188 : vector<16xf32> to vector<16x1xf32>
    %cst_141 = arith.constant 3.200000e+01 : f32
    %190 = vector.broadcast %cst_141 : f32 to vector<16x1xf32>
    %191 = arith.divf %189, %190 : vector<16x1xf32>
    %192 = vector.broadcast %184 : vector<16x1xf32> to vector<16x32xf32>
    %193 = arith.subf %176, %192 : vector<16x32xf32>
    %cst_142 = arith.constant 9.99999974E-6 : f32
    %194 = vector.broadcast %cst_142 : f32 to vector<16x1xf32>
    %195 = arith.addf %191, %194 : vector<16x1xf32>
    %196 = math.rsqrt %195 : vector<16x1xf32>
    %197 = vector.broadcast %196 : vector<16x1xf32> to vector<16x32xf32>
    %198 = arith.mulf %193, %197 : vector<16x32xf32>
    %199 = vector.broadcast %178 : vector<1x32xf32> to vector<16x32xf32>
    %200 = arith.mulf %198, %199 : vector<16x32xf32>
    %201 = vector.broadcast %180 : vector<1x32xf32> to vector<16x32xf32>
    %202 = arith.addf %200, %201 : vector<16x32xf32>
    %c0_143 = arith.constant 0 : index
    %c0_144 = arith.constant 0 : index
    %c0_145 = arith.constant 0 : index
    %203 = vector.load %arg11[%c0_143, %c0_144, %c0_145] : memref<2x32x64xbf16, #tpu.memory_space<vmem>>, vector<1x32x64xbf16>
    %204 = vector.shape_cast %203 : vector<1x32x64xbf16> to vector<32x64xbf16>
    %205 = arith.truncf %202 : vector<16x32xf32> to vector<16x32xbf16>
    %cst_146 = arith.constant dense<0.000000e+00> : vector<16x64xf32>
    %206 = tpu.matmul %205, %204, %cst_146 {dimension_numbers = #tpu.dot_dimension_numbers<[1], [0], [0], [1], [0, 0, 1, 1], [], []>} : vector<16x32xbf16>, vector<32x64xbf16>, vector<16x64xf32> -> vector<16x64xf32>
    %c0_147 = arith.constant 0 : index
    %c0_148 = arith.constant 0 : index
    %c0_149 = arith.constant 0 : index
    %207 = vector.load %arg12[%c0_147, %c0_148, %c0_149] : memref<2x1x64xf32, #tpu.memory_space<vmem>>, vector<1x1x64xf32>
    %208 = vector.shape_cast %207 : vector<1x1x64xf32> to vector<1x64xf32>
    %209 = vector.broadcast %208 : vector<1x64xf32> to vector<16x64xf32>
    %210 = arith.addf %206, %209 : vector<16x64xf32>
    %cst_150 = arith.constant 0.000000e+00 : f32
    %211 = vector.broadcast %cst_150 : f32 to vector<16x64xf32>
    %212 = arith.maximumf %210, %211 : vector<16x64xf32>
    %c0_151 = arith.constant 0 : index
    %c0_152 = arith.constant 0 : index
    %c0_153 = arith.constant 0 : index
    %213 = vector.load %arg13[%c0_151, %c0_152, %c0_153] : memref<2x64x32xbf16, #tpu.memory_space<vmem>>, vector<1x64x32xbf16>
    %214 = vector.shape_cast %213 : vector<1x64x32xbf16> to vector<64x32xbf16>
    %215 = arith.truncf %212 : vector<16x64xf32> to vector<16x64xbf16>
    %cst_154 = arith.constant dense<0.000000e+00> : vector<16x32xf32>
    %216 = tpu.matmul %215, %214, %cst_154 {dimension_numbers = #tpu.dot_dimension_numbers<[1], [0], [0], [1], [0, 0, 1, 1], [], []>} : vector<16x64xbf16>, vector<64x32xbf16>, vector<16x32xf32> -> vector<16x32xf32>
    %c0_155 = arith.constant 0 : index
    %c0_156 = arith.constant 0 : index
    %c0_157 = arith.constant 0 : index
    %217 = vector.load %arg14[%c0_155, %c0_156, %c0_157] : memref<2x1x32xf32, #tpu.memory_space<vmem>>, vector<1x1x32xf32>
    %218 = vector.shape_cast %217 : vector<1x1x32xf32> to vector<1x32xf32>
    %219 = vector.broadcast %218 : vector<1x32xf32> to vector<16x32xf32>
    %220 = arith.addf %216, %219 : vector<16x32xf32>
    %221 = arith.addf %202, %220 : vector<16x32xf32>
    %c0_158 = arith.constant 0 : index
    %c0_159 = arith.constant 0 : index
    %c0_160 = arith.constant 0 : index
    %222 = vector.load %arg15[%c0_158, %c0_159, %c0_160] : memref<2x1x32xf32, #tpu.memory_space<vmem>>, vector<1x1x32xf32>
    %223 = vector.shape_cast %222 : vector<1x1x32xf32> to vector<1x32xf32>
    %c0_161 = arith.constant 0 : index
    %c0_162 = arith.constant 0 : index
    %c0_163 = arith.constant 0 : index
    %224 = vector.load %arg16[%c0_161, %c0_162, %c0_163] : memref<2x1x32xf32, #tpu.memory_space<vmem>>, vector<1x1x32xf32>
    %225 = vector.shape_cast %224 : vector<1x1x32xf32> to vector<1x32xf32>
    %cst_164 = arith.constant dense<0.000000e+00> : vector<16xf32>
    %226 = vector.multi_reduction <add>, %221, %cst_164 [1] : vector<16x32xf32> to vector<16xf32>
    %227 = vector.shape_cast %226 : vector<16xf32> to vector<16x1xf32>
    %cst_165 = arith.constant 3.200000e+01 : f32
    %228 = vector.broadcast %cst_165 : f32 to vector<16x1xf32>
    %229 = arith.divf %227, %228 : vector<16x1xf32>
    %230 = vector.broadcast %229 : vector<16x1xf32> to vector<16x32xf32>
    %231 = arith.subf %221, %230 : vector<16x32xf32>
    %232 = arith.mulf %231, %231 : vector<16x32xf32>
    %cst_166 = arith.constant dense<0.000000e+00> : vector<16xf32>
    %233 = vector.multi_reduction <add>, %232, %cst_166 [1] : vector<16x32xf32> to vector<16xf32>
    %234 = vector.shape_cast %233 : vector<16xf32> to vector<16x1xf32>
    %cst_167 = arith.constant 3.200000e+01 : f32
    %235 = vector.broadcast %cst_167 : f32 to vector<16x1xf32>
    %236 = arith.divf %234, %235 : vector<16x1xf32>
    %237 = vector.broadcast %229 : vector<16x1xf32> to vector<16x32xf32>
    %238 = arith.subf %221, %237 : vector<16x32xf32>
    %cst_168 = arith.constant 9.99999974E-6 : f32
    %239 = vector.broadcast %cst_168 : f32 to vector<16x1xf32>
    %240 = arith.addf %236, %239 : vector<16x1xf32>
    %241 = math.rsqrt %240 : vector<16x1xf32>
    %242 = vector.broadcast %241 : vector<16x1xf32> to vector<16x32xf32>
    %243 = arith.mulf %238, %242 : vector<16x32xf32>
    %244 = vector.broadcast %223 : vector<1x32xf32> to vector<16x32xf32>
    %245 = arith.mulf %243, %244 : vector<16x32xf32>
    %246 = vector.broadcast %225 : vector<1x32xf32> to vector<16x32xf32>
    %247 = arith.addf %245, %246 : vector<16x32xf32>
    %c1_169 = arith.constant 1 : index
    %c0_170 = arith.constant 0 : index
    %c0_171 = arith.constant 0 : index
    %248 = vector.load %arg7[%c1_169, %c0_170, %c0_171] : memref<2x32x32xbf16, #tpu.memory_space<vmem>>, vector<1x32x32xbf16>
    %249 = vector.shape_cast %248 : vector<1x32x32xbf16> to vector<32x32xbf16>
    %c1_172 = arith.constant 1 : index
    %c0_173 = arith.constant 0 : index
    %c0_174 = arith.constant 0 : index
    %250 = vector.load %arg8[%c1_172, %c0_173, %c0_174] : memref<2x1x32xf32, #tpu.memory_space<vmem>>, vector<1x1x32xf32>
    %251 = vector.shape_cast %250 : vector<1x1x32xf32> to vector<1x32xf32>
    %252 = arith.truncf %247 : vector<16x32xf32> to vector<16x32xbf16>
    %253 = arith.truncf %247 : vector<16x32xf32> to vector<16x32xbf16>
    %c1_175 = arith.constant 1 : index
    %c0_176 = arith.constant 0 : index
    %c0_177 = arith.constant 0 : index
    %c0_178 = arith.constant 0 : index
    %254 = vector.load %arg5[%c1_175, %c0_176, %c0_177, %c0_178] : memref<2x12x32x8xbf16, #tpu.memory_space<vmem>>, vector<1x1x32x8xbf16>
    %255 = vector.shape_cast %254 : vector<1x1x32x8xbf16> to vector<32x8xbf16>
    %cst_179 = arith.constant dense<0.000000e+00> : vector<16x8xf32>
    %256 = tpu.matmul %252, %255, %cst_179 {dimension_numbers = #tpu.dot_dimension_numbers<[1], [0], [0], [1], [0, 0, 1, 1], [], []>} : vector<16x32xbf16>, vector<32x8xbf16>, vector<16x8xf32> -> vector<16x8xf32>
    %c1_180 = arith.constant 1 : index
    %c0_181 = arith.constant 0 : index
    %c0_182 = arith.constant 0 : index
    %c0_183 = arith.constant 0 : index
    %257 = vector.load %arg6[%c1_180, %c0_181, %c0_182, %c0_183] : memref<2x12x1x8xf32, #tpu.memory_space<vmem>>, vector<1x1x1x8xf32>
    %258 = vector.shape_cast %257 : vector<1x1x1x8xf32> to vector<1x8xf32>
    %259 = vector.broadcast %258 : vector<1x8xf32> to vector<16x8xf32>
    %260 = arith.addf %256, %259 : vector<16x8xf32>
    %c1_184 = arith.constant 1 : index
    %c4_185 = arith.constant 4 : index
    %c0_186 = arith.constant 0 : index
    %c0_187 = arith.constant 0 : index
    %261 = vector.load %arg5[%c1_184, %c4_185, %c0_186, %c0_187] : memref<2x12x32x8xbf16, #tpu.memory_space<vmem>>, vector<1x1x32x8xbf16>
    %262 = vector.shape_cast %261 : vector<1x1x32x8xbf16> to vector<32x8xbf16>
    %cst_188 = arith.constant dense<0.000000e+00> : vector<16x8xf32>
    %263 = tpu.matmul %253, %262, %cst_188 {dimension_numbers = #tpu.dot_dimension_numbers<[1], [0], [0], [1], [0, 0, 1, 1], [], []>} : vector<16x32xbf16>, vector<32x8xbf16>, vector<16x8xf32> -> vector<16x8xf32>
    %c1_189 = arith.constant 1 : index
    %c4_190 = arith.constant 4 : index
    %c0_191 = arith.constant 0 : index
    %c0_192 = arith.constant 0 : index
    %264 = vector.load %arg6[%c1_189, %c4_190, %c0_191, %c0_192] : memref<2x12x1x8xf32, #tpu.memory_space<vmem>>, vector<1x1x1x8xf32>
    %265 = vector.shape_cast %264 : vector<1x1x1x8xf32> to vector<1x8xf32>
    %266 = vector.broadcast %265 : vector<1x8xf32> to vector<16x8xf32>
    %267 = arith.addf %263, %266 : vector<16x8xf32>
    %c1_193 = arith.constant 1 : index
    %c8_194 = arith.constant 8 : index
    %c0_195 = arith.constant 0 : index
    %c0_196 = arith.constant 0 : index
    %268 = vector.load %arg5[%c1_193, %c8_194, %c0_195, %c0_196] : memref<2x12x32x8xbf16, #tpu.memory_space<vmem>>, vector<1x1x32x8xbf16>
    %269 = vector.shape_cast %268 : vector<1x1x32x8xbf16> to vector<32x8xbf16>
    %cst_197 = arith.constant dense<0.000000e+00> : vector<16x8xf32>
    %270 = tpu.matmul %253, %269, %cst_197 {dimension_numbers = #tpu.dot_dimension_numbers<[1], [0], [0], [1], [0, 0, 1, 1], [], []>} : vector<16x32xbf16>, vector<32x8xbf16>, vector<16x8xf32> -> vector<16x8xf32>
    %c1_198 = arith.constant 1 : index
    %c8_199 = arith.constant 8 : index
    %c0_200 = arith.constant 0 : index
    %c0_201 = arith.constant 0 : index
    %271 = vector.load %arg6[%c1_198, %c8_199, %c0_200, %c0_201] : memref<2x12x1x8xf32, #tpu.memory_space<vmem>>, vector<1x1x1x8xf32>
    %272 = vector.shape_cast %271 : vector<1x1x1x8xf32> to vector<1x8xf32>
    %273 = vector.broadcast %272 : vector<1x8xf32> to vector<16x8xf32>
    %274 = arith.addf %270, %273 : vector<16x8xf32>
    %275 = arith.truncf %260 : vector<16x8xf32> to vector<16x8xbf16>
    %276 = arith.truncf %267 : vector<16x8xf32> to vector<16x8xbf16>
    %cst_202 = arith.constant dense<0.000000e+00> : vector<16x16xf32>
    %277 = tpu.matmul %275, %276, %cst_202 {dimension_numbers = #tpu.dot_dimension_numbers<[1], [1], [0], [0], [0, 0, 1, 0], [], []>} : vector<16x8xbf16>, vector<16x8xbf16>, vector<16x16xf32> -> vector<16x16xf32>
    %cst_203 = arith.constant 0.353553385 : f32
    %278 = vector.broadcast %cst_203 : f32 to vector<16x16xf32>
    %279 = arith.mulf %277, %278 : vector<16x16xf32>
    %280 = arith.addf %279, %2 : vector<16x16xf32>
    %cst_204 = arith.constant dense<0xFF800000> : vector<16xf32>
    %281 = vector.multi_reduction <maximumf>, %280, %cst_204 [1] : vector<16x16xf32> to vector<16xf32>
    %282 = vector.shape_cast %281 : vector<16xf32> to vector<16x1xf32>
    %283 = vector.broadcast %282 : vector<16x1xf32> to vector<16x16xf32>
    %284 = arith.subf %280, %283 : vector<16x16xf32>
    %285 = math.exp %284 : vector<16x16xf32>
    %286 = arith.truncf %285 : vector<16x16xf32> to vector<16x16xbf16>
    %287 = arith.truncf %274 : vector<16x8xf32> to vector<16x8xbf16>
    %cst_205 = arith.constant dense<0.000000e+00> : vector<16x8xf32>
    %288 = tpu.matmul %286, %287, %cst_205 {dimension_numbers = #tpu.dot_dimension_numbers<[1], [0], [0], [1], [0, 0, 1, 1], [], []>} : vector<16x16xbf16>, vector<16x8xbf16>, vector<16x8xf32> -> vector<16x8xf32>
    %cst_206 = arith.constant dense<0.000000e+00> : vector<16xf32>
    %289 = vector.multi_reduction <add>, %285, %cst_206 [1] : vector<16x16xf32> to vector<16xf32>
    %290 = vector.shape_cast %289 : vector<16xf32> to vector<16x1xf32>
    %291 = tpu.reciprocal %290 : vector<16x1xf32> -> vector<16x1xf32>
    %292 = vector.broadcast %291 : vector<16x1xf32> to vector<16x8xf32>
    %293 = arith.mulf %288, %292 : vector<16x8xf32>
    %c1_207 = arith.constant 1 : index
    %c1_208 = arith.constant 1 : index
    %c0_209 = arith.constant 0 : index
    %c0_210 = arith.constant 0 : index
    %294 = vector.load %arg5[%c1_207, %c1_208, %c0_209, %c0_210] : memref<2x12x32x8xbf16, #tpu.memory_space<vmem>>, vector<1x1x32x8xbf16>
    %295 = vector.shape_cast %294 : vector<1x1x32x8xbf16> to vector<32x8xbf16>
    %cst_211 = arith.constant dense<0.000000e+00> : vector<16x8xf32>
    %296 = tpu.matmul %252, %295, %cst_211 {dimension_numbers = #tpu.dot_dimension_numbers<[1], [0], [0], [1], [0, 0, 1, 1], [], []>} : vector<16x32xbf16>, vector<32x8xbf16>, vector<16x8xf32> -> vector<16x8xf32>
    %c1_212 = arith.constant 1 : index
    %c1_213 = arith.constant 1 : index
    %c0_214 = arith.constant 0 : index
    %c0_215 = arith.constant 0 : index
    %297 = vector.load %arg6[%c1_212, %c1_213, %c0_214, %c0_215] : memref<2x12x1x8xf32, #tpu.memory_space<vmem>>, vector<1x1x1x8xf32>
    %298 = vector.shape_cast %297 : vector<1x1x1x8xf32> to vector<1x8xf32>
    %299 = vector.broadcast %298 : vector<1x8xf32> to vector<16x8xf32>
    %300 = arith.addf %296, %299 : vector<16x8xf32>
    %c1_216 = arith.constant 1 : index
    %c5_217 = arith.constant 5 : index
    %c0_218 = arith.constant 0 : index
    %c0_219 = arith.constant 0 : index
    %301 = vector.load %arg5[%c1_216, %c5_217, %c0_218, %c0_219] : memref<2x12x32x8xbf16, #tpu.memory_space<vmem>>, vector<1x1x32x8xbf16>
    %302 = vector.shape_cast %301 : vector<1x1x32x8xbf16> to vector<32x8xbf16>
    %cst_220 = arith.constant dense<0.000000e+00> : vector<16x8xf32>
    %303 = tpu.matmul %253, %302, %cst_220 {dimension_numbers = #tpu.dot_dimension_numbers<[1], [0], [0], [1], [0, 0, 1, 1], [], []>} : vector<16x32xbf16>, vector<32x8xbf16>, vector<16x8xf32> -> vector<16x8xf32>
    %c1_221 = arith.constant 1 : index
    %c5_222 = arith.constant 5 : index
    %c0_223 = arith.constant 0 : index
    %c0_224 = arith.constant 0 : index
    %304 = vector.load %arg6[%c1_221, %c5_222, %c0_223, %c0_224] : memref<2x12x1x8xf32, #tpu.memory_space<vmem>>, vector<1x1x1x8xf32>
    %305 = vector.shape_cast %304 : vector<1x1x1x8xf32> to vector<1x8xf32>
    %306 = vector.broadcast %305 : vector<1x8xf32> to vector<16x8xf32>
    %307 = arith.addf %303, %306 : vector<16x8xf32>
    %c1_225 = arith.constant 1 : index
    %c9_226 = arith.constant 9 : index
    %c0_227 = arith.constant 0 : index
    %c0_228 = arith.constant 0 : index
    %308 = vector.load %arg5[%c1_225, %c9_226, %c0_227, %c0_228] : memref<2x12x32x8xbf16, #tpu.memory_space<vmem>>, vector<1x1x32x8xbf16>
    %309 = vector.shape_cast %308 : vector<1x1x32x8xbf16> to vector<32x8xbf16>
    %cst_229 = arith.constant dense<0.000000e+00> : vector<16x8xf32>
    %310 = tpu.matmul %253, %309, %cst_229 {dimension_numbers = #tpu.dot_dimension_numbers<[1], [0], [0], [1], [0, 0, 1, 1], [], []>} : vector<16x32xbf16>, vector<32x8xbf16>, vector<16x8xf32> -> vector<16x8xf32>
    %c1_230 = arith.constant 1 : index
    %c9_231 = arith.constant 9 : index
    %c0_232 = arith.constant 0 : index
    %c0_233 = arith.constant 0 : index
    %311 = vector.load %arg6[%c1_230, %c9_231, %c0_232, %c0_233] : memref<2x12x1x8xf32, #tpu.memory_space<vmem>>, vector<1x1x1x8xf32>
    %312 = vector.shape_cast %311 : vector<1x1x1x8xf32> to vector<1x8xf32>
    %313 = vector.broadcast %312 : vector<1x8xf32> to vector<16x8xf32>
    %314 = arith.addf %310, %313 : vector<16x8xf32>
    %315 = arith.truncf %300 : vector<16x8xf32> to vector<16x8xbf16>
    %316 = arith.truncf %307 : vector<16x8xf32> to vector<16x8xbf16>
    %cst_234 = arith.constant dense<0.000000e+00> : vector<16x16xf32>
    %317 = tpu.matmul %315, %316, %cst_234 {dimension_numbers = #tpu.dot_dimension_numbers<[1], [1], [0], [0], [0, 0, 1, 0], [], []>} : vector<16x8xbf16>, vector<16x8xbf16>, vector<16x16xf32> -> vector<16x16xf32>
    %cst_235 = arith.constant 0.353553385 : f32
    %318 = vector.broadcast %cst_235 : f32 to vector<16x16xf32>
    %319 = arith.mulf %317, %318 : vector<16x16xf32>
    %320 = arith.addf %319, %2 : vector<16x16xf32>
    %cst_236 = arith.constant dense<0xFF800000> : vector<16xf32>
    %321 = vector.multi_reduction <maximumf>, %320, %cst_236 [1] : vector<16x16xf32> to vector<16xf32>
    %322 = vector.shape_cast %321 : vector<16xf32> to vector<16x1xf32>
    %323 = vector.broadcast %322 : vector<16x1xf32> to vector<16x16xf32>
    %324 = arith.subf %320, %323 : vector<16x16xf32>
    %325 = math.exp %324 : vector<16x16xf32>
    %326 = arith.truncf %325 : vector<16x16xf32> to vector<16x16xbf16>
    %327 = arith.truncf %314 : vector<16x8xf32> to vector<16x8xbf16>
    %cst_237 = arith.constant dense<0.000000e+00> : vector<16x8xf32>
    %328 = tpu.matmul %326, %327, %cst_237 {dimension_numbers = #tpu.dot_dimension_numbers<[1], [0], [0], [1], [0, 0, 1, 1], [], []>} : vector<16x16xbf16>, vector<16x8xbf16>, vector<16x8xf32> -> vector<16x8xf32>
    %cst_238 = arith.constant dense<0.000000e+00> : vector<16xf32>
    %329 = vector.multi_reduction <add>, %325, %cst_238 [1] : vector<16x16xf32> to vector<16xf32>
    %330 = vector.shape_cast %329 : vector<16xf32> to vector<16x1xf32>
    %331 = tpu.reciprocal %330 : vector<16x1xf32> -> vector<16x1xf32>
    %332 = vector.broadcast %331 : vector<16x1xf32> to vector<16x8xf32>
    %333 = arith.mulf %328, %332 : vector<16x8xf32>
    %c1_239 = arith.constant 1 : index
    %c2_240 = arith.constant 2 : index
    %c0_241 = arith.constant 0 : index
    %c0_242 = arith.constant 0 : index
    %334 = vector.load %arg5[%c1_239, %c2_240, %c0_241, %c0_242] : memref<2x12x32x8xbf16, #tpu.memory_space<vmem>>, vector<1x1x32x8xbf16>
    %335 = vector.shape_cast %334 : vector<1x1x32x8xbf16> to vector<32x8xbf16>
    %cst_243 = arith.constant dense<0.000000e+00> : vector<16x8xf32>
    %336 = tpu.matmul %252, %335, %cst_243 {dimension_numbers = #tpu.dot_dimension_numbers<[1], [0], [0], [1], [0, 0, 1, 1], [], []>} : vector<16x32xbf16>, vector<32x8xbf16>, vector<16x8xf32> -> vector<16x8xf32>
    %c1_244 = arith.constant 1 : index
    %c2_245 = arith.constant 2 : index
    %c0_246 = arith.constant 0 : index
    %c0_247 = arith.constant 0 : index
    %337 = vector.load %arg6[%c1_244, %c2_245, %c0_246, %c0_247] : memref<2x12x1x8xf32, #tpu.memory_space<vmem>>, vector<1x1x1x8xf32>
    %338 = vector.shape_cast %337 : vector<1x1x1x8xf32> to vector<1x8xf32>
    %339 = vector.broadcast %338 : vector<1x8xf32> to vector<16x8xf32>
    %340 = arith.addf %336, %339 : vector<16x8xf32>
    %c1_248 = arith.constant 1 : index
    %c6_249 = arith.constant 6 : index
    %c0_250 = arith.constant 0 : index
    %c0_251 = arith.constant 0 : index
    %341 = vector.load %arg5[%c1_248, %c6_249, %c0_250, %c0_251] : memref<2x12x32x8xbf16, #tpu.memory_space<vmem>>, vector<1x1x32x8xbf16>
    %342 = vector.shape_cast %341 : vector<1x1x32x8xbf16> to vector<32x8xbf16>
    %cst_252 = arith.constant dense<0.000000e+00> : vector<16x8xf32>
    %343 = tpu.matmul %253, %342, %cst_252 {dimension_numbers = #tpu.dot_dimension_numbers<[1], [0], [0], [1], [0, 0, 1, 1], [], []>} : vector<16x32xbf16>, vector<32x8xbf16>, vector<16x8xf32> -> vector<16x8xf32>
    %c1_253 = arith.constant 1 : index
    %c6_254 = arith.constant 6 : index
    %c0_255 = arith.constant 0 : index
    %c0_256 = arith.constant 0 : index
    %344 = vector.load %arg6[%c1_253, %c6_254, %c0_255, %c0_256] : memref<2x12x1x8xf32, #tpu.memory_space<vmem>>, vector<1x1x1x8xf32>
    %345 = vector.shape_cast %344 : vector<1x1x1x8xf32> to vector<1x8xf32>
    %346 = vector.broadcast %345 : vector<1x8xf32> to vector<16x8xf32>
    %347 = arith.addf %343, %346 : vector<16x8xf32>
    %c1_257 = arith.constant 1 : index
    %c10_258 = arith.constant 10 : index
    %c0_259 = arith.constant 0 : index
    %c0_260 = arith.constant 0 : index
    %348 = vector.load %arg5[%c1_257, %c10_258, %c0_259, %c0_260] : memref<2x12x32x8xbf16, #tpu.memory_space<vmem>>, vector<1x1x32x8xbf16>
    %349 = vector.shape_cast %348 : vector<1x1x32x8xbf16> to vector<32x8xbf16>
    %cst_261 = arith.constant dense<0.000000e+00> : vector<16x8xf32>
    %350 = tpu.matmul %253, %349, %cst_261 {dimension_numbers = #tpu.dot_dimension_numbers<[1], [0], [0], [1], [0, 0, 1, 1], [], []>} : vector<16x32xbf16>, vector<32x8xbf16>, vector<16x8xf32> -> vector<16x8xf32>
    %c1_262 = arith.constant 1 : index
    %c10_263 = arith.constant 10 : index
    %c0_264 = arith.constant 0 : index
    %c0_265 = arith.constant 0 : index
    %351 = vector.load %arg6[%c1_262, %c10_263, %c0_264, %c0_265] : memref<2x12x1x8xf32, #tpu.memory_space<vmem>>, vector<1x1x1x8xf32>
    %352 = vector.shape_cast %351 : vector<1x1x1x8xf32> to vector<1x8xf32>
    %353 = vector.broadcast %352 : vector<1x8xf32> to vector<16x8xf32>
    %354 = arith.addf %350, %353 : vector<16x8xf32>
    %355 = arith.truncf %340 : vector<16x8xf32> to vector<16x8xbf16>
    %356 = arith.truncf %347 : vector<16x8xf32> to vector<16x8xbf16>
    %cst_266 = arith.constant dense<0.000000e+00> : vector<16x16xf32>
    %357 = tpu.matmul %355, %356, %cst_266 {dimension_numbers = #tpu.dot_dimension_numbers<[1], [1], [0], [0], [0, 0, 1, 0], [], []>} : vector<16x8xbf16>, vector<16x8xbf16>, vector<16x16xf32> -> vector<16x16xf32>
    %cst_267 = arith.constant 0.353553385 : f32
    %358 = vector.broadcast %cst_267 : f32 to vector<16x16xf32>
    %359 = arith.mulf %357, %358 : vector<16x16xf32>
    %360 = arith.addf %359, %2 : vector<16x16xf32>
    %cst_268 = arith.constant dense<0xFF800000> : vector<16xf32>
    %361 = vector.multi_reduction <maximumf>, %360, %cst_268 [1] : vector<16x16xf32> to vector<16xf32>
    %362 = vector.shape_cast %361 : vector<16xf32> to vector<16x1xf32>
    %363 = vector.broadcast %362 : vector<16x1xf32> to vector<16x16xf32>
    %364 = arith.subf %360, %363 : vector<16x16xf32>
    %365 = math.exp %364 : vector<16x16xf32>
    %366 = arith.truncf %365 : vector<16x16xf32> to vector<16x16xbf16>
    %367 = arith.truncf %354 : vector<16x8xf32> to vector<16x8xbf16>
    %cst_269 = arith.constant dense<0.000000e+00> : vector<16x8xf32>
    %368 = tpu.matmul %366, %367, %cst_269 {dimension_numbers = #tpu.dot_dimension_numbers<[1], [0], [0], [1], [0, 0, 1, 1], [], []>} : vector<16x16xbf16>, vector<16x8xbf16>, vector<16x8xf32> -> vector<16x8xf32>
    %cst_270 = arith.constant dense<0.000000e+00> : vector<16xf32>
    %369 = vector.multi_reduction <add>, %365, %cst_270 [1] : vector<16x16xf32> to vector<16xf32>
    %370 = vector.shape_cast %369 : vector<16xf32> to vector<16x1xf32>
    %371 = tpu.reciprocal %370 : vector<16x1xf32> -> vector<16x1xf32>
    %372 = vector.broadcast %371 : vector<16x1xf32> to vector<16x8xf32>
    %373 = arith.mulf %368, %372 : vector<16x8xf32>
    %c1_271 = arith.constant 1 : index
    %c3_272 = arith.constant 3 : index
    %c0_273 = arith.constant 0 : index
    %c0_274 = arith.constant 0 : index
    %374 = vector.load %arg5[%c1_271, %c3_272, %c0_273, %c0_274] : memref<2x12x32x8xbf16, #tpu.memory_space<vmem>>, vector<1x1x32x8xbf16>
    %375 = vector.shape_cast %374 : vector<1x1x32x8xbf16> to vector<32x8xbf16>
    %cst_275 = arith.constant dense<0.000000e+00> : vector<16x8xf32>
    %376 = tpu.matmul %252, %375, %cst_275 {dimension_numbers = #tpu.dot_dimension_numbers<[1], [0], [0], [1], [0, 0, 1, 1], [], []>} : vector<16x32xbf16>, vector<32x8xbf16>, vector<16x8xf32> -> vector<16x8xf32>
    %c1_276 = arith.constant 1 : index
    %c3_277 = arith.constant 3 : index
    %c0_278 = arith.constant 0 : index
    %c0_279 = arith.constant 0 : index
    %377 = vector.load %arg6[%c1_276, %c3_277, %c0_278, %c0_279] : memref<2x12x1x8xf32, #tpu.memory_space<vmem>>, vector<1x1x1x8xf32>
    %378 = vector.shape_cast %377 : vector<1x1x1x8xf32> to vector<1x8xf32>
    %379 = vector.broadcast %378 : vector<1x8xf32> to vector<16x8xf32>
    %380 = arith.addf %376, %379 : vector<16x8xf32>
    %c1_280 = arith.constant 1 : index
    %c7_281 = arith.constant 7 : index
    %c0_282 = arith.constant 0 : index
    %c0_283 = arith.constant 0 : index
    %381 = vector.load %arg5[%c1_280, %c7_281, %c0_282, %c0_283] : memref<2x12x32x8xbf16, #tpu.memory_space<vmem>>, vector<1x1x32x8xbf16>
    %382 = vector.shape_cast %381 : vector<1x1x32x8xbf16> to vector<32x8xbf16>
    %cst_284 = arith.constant dense<0.000000e+00> : vector<16x8xf32>
    %383 = tpu.matmul %253, %382, %cst_284 {dimension_numbers = #tpu.dot_dimension_numbers<[1], [0], [0], [1], [0, 0, 1, 1], [], []>} : vector<16x32xbf16>, vector<32x8xbf16>, vector<16x8xf32> -> vector<16x8xf32>
    %c1_285 = arith.constant 1 : index
    %c7_286 = arith.constant 7 : index
    %c0_287 = arith.constant 0 : index
    %c0_288 = arith.constant 0 : index
    %384 = vector.load %arg6[%c1_285, %c7_286, %c0_287, %c0_288] : memref<2x12x1x8xf32, #tpu.memory_space<vmem>>, vector<1x1x1x8xf32>
    %385 = vector.shape_cast %384 : vector<1x1x1x8xf32> to vector<1x8xf32>
    %386 = vector.broadcast %385 : vector<1x8xf32> to vector<16x8xf32>
    %387 = arith.addf %383, %386 : vector<16x8xf32>
    %c1_289 = arith.constant 1 : index
    %c11_290 = arith.constant 11 : index
    %c0_291 = arith.constant 0 : index
    %c0_292 = arith.constant 0 : index
    %388 = vector.load %arg5[%c1_289, %c11_290, %c0_291, %c0_292] : memref<2x12x32x8xbf16, #tpu.memory_space<vmem>>, vector<1x1x32x8xbf16>
    %389 = vector.shape_cast %388 : vector<1x1x32x8xbf16> to vector<32x8xbf16>
    %cst_293 = arith.constant dense<0.000000e+00> : vector<16x8xf32>
    %390 = tpu.matmul %253, %389, %cst_293 {dimension_numbers = #tpu.dot_dimension_numbers<[1], [0], [0], [1], [0, 0, 1, 1], [], []>} : vector<16x32xbf16>, vector<32x8xbf16>, vector<16x8xf32> -> vector<16x8xf32>
    %c1_294 = arith.constant 1 : index
    %c11_295 = arith.constant 11 : index
    %c0_296 = arith.constant 0 : index
    %c0_297 = arith.constant 0 : index
    %391 = vector.load %arg6[%c1_294, %c11_295, %c0_296, %c0_297] : memref<2x12x1x8xf32, #tpu.memory_space<vmem>>, vector<1x1x1x8xf32>
    %392 = vector.shape_cast %391 : vector<1x1x1x8xf32> to vector<1x8xf32>
    %393 = vector.broadcast %392 : vector<1x8xf32> to vector<16x8xf32>
    %394 = arith.addf %390, %393 : vector<16x8xf32>
    %395 = arith.truncf %380 : vector<16x8xf32> to vector<16x8xbf16>
    %396 = arith.truncf %387 : vector<16x8xf32> to vector<16x8xbf16>
    %cst_298 = arith.constant dense<0.000000e+00> : vector<16x16xf32>
    %397 = tpu.matmul %395, %396, %cst_298 {dimension_numbers = #tpu.dot_dimension_numbers<[1], [1], [0], [0], [0, 0, 1, 0], [], []>} : vector<16x8xbf16>, vector<16x8xbf16>, vector<16x16xf32> -> vector<16x16xf32>
    %cst_299 = arith.constant 0.353553385 : f32
    %398 = vector.broadcast %cst_299 : f32 to vector<16x16xf32>
    %399 = arith.mulf %397, %398 : vector<16x16xf32>
    %400 = arith.addf %399, %2 : vector<16x16xf32>
    %cst_300 = arith.constant dense<0xFF800000> : vector<16xf32>
    %401 = vector.multi_reduction <maximumf>, %400, %cst_300 [1] : vector<16x16xf32> to vector<16xf32>
    %402 = vector.shape_cast %401 : vector<16xf32> to vector<16x1xf32>
    %403 = vector.broadcast %402 : vector<16x1xf32> to vector<16x16xf32>
    %404 = arith.subf %400, %403 : vector<16x16xf32>
    %405 = math.exp %404 : vector<16x16xf32>
    %406 = arith.truncf %405 : vector<16x16xf32> to vector<16x16xbf16>
    %407 = arith.truncf %394 : vector<16x8xf32> to vector<16x8xbf16>
    %cst_301 = arith.constant dense<0.000000e+00> : vector<16x8xf32>
    %408 = tpu.matmul %406, %407, %cst_301 {dimension_numbers = #tpu.dot_dimension_numbers<[1], [0], [0], [1], [0, 0, 1, 1], [], []>} : vector<16x16xbf16>, vector<16x8xbf16>, vector<16x8xf32> -> vector<16x8xf32>
    %cst_302 = arith.constant dense<0.000000e+00> : vector<16xf32>
    %409 = vector.multi_reduction <add>, %405, %cst_302 [1] : vector<16x16xf32> to vector<16xf32>
    %410 = vector.shape_cast %409 : vector<16xf32> to vector<16x1xf32>
    %411 = tpu.reciprocal %410 : vector<16x1xf32> -> vector<16x1xf32>
    %412 = vector.broadcast %411 : vector<16x1xf32> to vector<16x8xf32>
    %413 = arith.mulf %408, %412 : vector<16x8xf32>
    %414 = tpu.concatenate %293, %333, %373, %413 in 1 : vector<16x8xf32>, vector<16x8xf32>, vector<16x8xf32>, vector<16x8xf32> -> vector<16x32xf32>
    %415 = arith.truncf %414 : vector<16x32xf32> to vector<16x32xbf16>
    %cst_303 = arith.constant dense<0.000000e+00> : vector<16x32xf32>
    %416 = tpu.matmul %415, %249, %cst_303 {dimension_numbers = #tpu.dot_dimension_numbers<[1], [0], [0], [1], [0, 0, 1, 1], [], []>} : vector<16x32xbf16>, vector<32x32xbf16>, vector<16x32xf32> -> vector<16x32xf32>
    %417 = vector.broadcast %251 : vector<1x32xf32> to vector<16x32xf32>
    %418 = arith.addf %416, %417 : vector<16x32xf32>
    %419 = arith.addf %247, %418 : vector<16x32xf32>
    %c1_304 = arith.constant 1 : index
    %c0_305 = arith.constant 0 : index
    %c0_306 = arith.constant 0 : index
    %420 = vector.load %arg9[%c1_304, %c0_305, %c0_306] : memref<2x1x32xf32, #tpu.memory_space<vmem>>, vector<1x1x32xf32>
    %421 = vector.shape_cast %420 : vector<1x1x32xf32> to vector<1x32xf32>
    %c1_307 = arith.constant 1 : index
    %c0_308 = arith.constant 0 : index
    %c0_309 = arith.constant 0 : index
    %422 = vector.load %arg10[%c1_307, %c0_308, %c0_309] : memref<2x1x32xf32, #tpu.memory_space<vmem>>, vector<1x1x32xf32>
    %423 = vector.shape_cast %422 : vector<1x1x32xf32> to vector<1x32xf32>
    %cst_310 = arith.constant dense<0.000000e+00> : vector<16xf32>
    %424 = vector.multi_reduction <add>, %419, %cst_310 [1] : vector<16x32xf32> to vector<16xf32>
    %425 = vector.shape_cast %424 : vector<16xf32> to vector<16x1xf32>
    %cst_311 = arith.constant 3.200000e+01 : f32
    %426 = vector.broadcast %cst_311 : f32 to vector<16x1xf32>
    %427 = arith.divf %425, %426 : vector<16x1xf32>
    %428 = vector.broadcast %427 : vector<16x1xf32> to vector<16x32xf32>
    %429 = arith.subf %419, %428 : vector<16x32xf32>
    %430 = arith.mulf %429, %429 : vector<16x32xf32>
    %cst_312 = arith.constant dense<0.000000e+00> : vector<16xf32>
    %431 = vector.multi_reduction <add>, %430, %cst_312 [1] : vector<16x32xf32> to vector<16xf32>
    %432 = vector.shape_cast %431 : vector<16xf32> to vector<16x1xf32>
    %cst_313 = arith.constant 3.200000e+01 : f32
    %433 = vector.broadcast %cst_313 : f32 to vector<16x1xf32>
    %434 = arith.divf %432, %433 : vector<16x1xf32>
    %435 = vector.broadcast %427 : vector<16x1xf32> to vector<16x32xf32>
    %436 = arith.subf %419, %435 : vector<16x32xf32>
    %cst_314 = arith.constant 9.99999974E-6 : f32
    %437 = vector.broadcast %cst_314 : f32 to vector<16x1xf32>
    %438 = arith.addf %434, %437 : vector<16x1xf32>
    %439 = math.rsqrt %438 : vector<16x1xf32>
    %440 = vector.broadcast %439 : vector<16x1xf32> to vector<16x32xf32>
    %441 = arith.mulf %436, %440 : vector<16x32xf32>
    %442 = vector.broadcast %421 : vector<1x32xf32> to vector<16x32xf32>
    %443 = arith.mulf %441, %442 : vector<16x32xf32>
    %444 = vector.broadcast %423 : vector<1x32xf32> to vector<16x32xf32>
    %445 = arith.addf %443, %444 : vector<16x32xf32>
    %c1_315 = arith.constant 1 : index
    %c0_316 = arith.constant 0 : index
    %c0_317 = arith.constant 0 : index
    %446 = vector.load %arg11[%c1_315, %c0_316, %c0_317] : memref<2x32x64xbf16, #tpu.memory_space<vmem>>, vector<1x32x64xbf16>
    %447 = vector.shape_cast %446 : vector<1x32x64xbf16> to vector<32x64xbf16>
    %448 = arith.truncf %445 : vector<16x32xf32> to vector<16x32xbf16>
    %cst_318 = arith.constant dense<0.000000e+00> : vector<16x64xf32>
    %449 = tpu.matmul %448, %447, %cst_318 {dimension_numbers = #tpu.dot_dimension_numbers<[1], [0], [0], [1], [0, 0, 1, 1], [], []>} : vector<16x32xbf16>, vector<32x64xbf16>, vector<16x64xf32> -> vector<16x64xf32>
    %c1_319 = arith.constant 1 : index
    %c0_320 = arith.constant 0 : index
    %c0_321 = arith.constant 0 : index
    %450 = vector.load %arg12[%c1_319, %c0_320, %c0_321] : memref<2x1x64xf32, #tpu.memory_space<vmem>>, vector<1x1x64xf32>
    %451 = vector.shape_cast %450 : vector<1x1x64xf32> to vector<1x64xf32>
    %452 = vector.broadcast %451 : vector<1x64xf32> to vector<16x64xf32>
    %453 = arith.addf %449, %452 : vector<16x64xf32>
    %cst_322 = arith.constant 0.000000e+00 : f32
    %454 = vector.broadcast %cst_322 : f32 to vector<16x64xf32>
    %455 = arith.maximumf %453, %454 : vector<16x64xf32>
    %c1_323 = arith.constant 1 : index
    %c0_324 = arith.constant 0 : index
    %c0_325 = arith.constant 0 : index
    %456 = vector.load %arg13[%c1_323, %c0_324, %c0_325] : memref<2x64x32xbf16, #tpu.memory_space<vmem>>, vector<1x64x32xbf16>
    %457 = vector.shape_cast %456 : vector<1x64x32xbf16> to vector<64x32xbf16>
    %458 = arith.truncf %455 : vector<16x64xf32> to vector<16x64xbf16>
    %cst_326 = arith.constant dense<0.000000e+00> : vector<16x32xf32>
    %459 = tpu.matmul %458, %457, %cst_326 {dimension_numbers = #tpu.dot_dimension_numbers<[1], [0], [0], [1], [0, 0, 1, 1], [], []>} : vector<16x64xbf16>, vector<64x32xbf16>, vector<16x32xf32> -> vector<16x32xf32>
    %c1_327 = arith.constant 1 : index
    %c0_328 = arith.constant 0 : index
    %c0_329 = arith.constant 0 : index
    %460 = vector.load %arg14[%c1_327, %c0_328, %c0_329] : memref<2x1x32xf32, #tpu.memory_space<vmem>>, vector<1x1x32xf32>
    %461 = vector.shape_cast %460 : vector<1x1x32xf32> to vector<1x32xf32>
    %462 = vector.broadcast %461 : vector<1x32xf32> to vector<16x32xf32>
    %463 = arith.addf %459, %462 : vector<16x32xf32>
    %464 = arith.addf %445, %463 : vector<16x32xf32>
    %c1_330 = arith.constant 1 : index
    %c0_331 = arith.constant 0 : index
    %c0_332 = arith.constant 0 : index
    %465 = vector.load %arg15[%c1_330, %c0_331, %c0_332] : memref<2x1x32xf32, #tpu.memory_space<vmem>>, vector<1x1x32xf32>
    %466 = vector.shape_cast %465 : vector<1x1x32xf32> to vector<1x32xf32>
    %c1_333 = arith.constant 1 : index
    %c0_334 = arith.constant 0 : index
    %c0_335 = arith.constant 0 : index
    %467 = vector.load %arg16[%c1_333, %c0_334, %c0_335] : memref<2x1x32xf32, #tpu.memory_space<vmem>>, vector<1x1x32xf32>
    %468 = vector.shape_cast %467 : vector<1x1x32xf32> to vector<1x32xf32>
    %cst_336 = arith.constant dense<0.000000e+00> : vector<16xf32>
    %469 = vector.multi_reduction <add>, %464, %cst_336 [1] : vector<16x32xf32> to vector<16xf32>
    %470 = vector.shape_cast %469 : vector<16xf32> to vector<16x1xf32>
    %cst_337 = arith.constant 3.200000e+01 : f32
    %471 = vector.broadcast %cst_337 : f32 to vector<16x1xf32>
    %472 = arith.divf %470, %471 : vector<16x1xf32>
    %473 = vector.broadcast %472 : vector<16x1xf32> to vector<16x32xf32>
    %474 = arith.subf %464, %473 : vector<16x32xf32>
    %475 = arith.mulf %474, %474 : vector<16x32xf32>
    %cst_338 = arith.constant dense<0.000000e+00> : vector<16xf32>
    %476 = vector.multi_reduction <add>, %475, %cst_338 [1] : vector<16x32xf32> to vector<16xf32>
    %477 = vector.shape_cast %476 : vector<16xf32> to vector<16x1xf32>
    %cst_339 = arith.constant 3.200000e+01 : f32
    %478 = vector.broadcast %cst_339 : f32 to vector<16x1xf32>
    %479 = arith.divf %477, %478 : vector<16x1xf32>
    %480 = vector.broadcast %472 : vector<16x1xf32> to vector<16x32xf32>
    %481 = arith.subf %464, %480 : vector<16x32xf32>
    %cst_340 = arith.constant 9.99999974E-6 : f32
    %482 = vector.broadcast %cst_340 : f32 to vector<16x1xf32>
    %483 = arith.addf %479, %482 : vector<16x1xf32>
    %484 = math.rsqrt %483 : vector<16x1xf32>
    %485 = vector.broadcast %484 : vector<16x1xf32> to vector<16x32xf32>
    %486 = arith.mulf %481, %485 : vector<16x32xf32>
    %487 = vector.broadcast %466 : vector<1x32xf32> to vector<16x32xf32>
    %488 = arith.mulf %486, %487 : vector<16x32xf32>
    %489 = vector.broadcast %468 : vector<1x32xf32> to vector<16x32xf32>
    %490 = arith.addf %488, %489 : vector<16x32xf32>
    %c0_341 = arith.constant 0 : index
    %c0_342 = arith.constant 0 : index
    %491 = vector.load %arg17[%c0_341, %c0_342] : memref<1x32xf32, #tpu.memory_space<vmem>>, vector<1x32xf32>
    %c0_343 = arith.constant 0 : index
    %c0_344 = arith.constant 0 : index
    %492 = vector.load %arg18[%c0_343, %c0_344] : memref<1x32xf32, #tpu.memory_space<vmem>>, vector<1x32xf32>
    %cst_345 = arith.constant dense<0.000000e+00> : vector<16xf32>
    %493 = vector.multi_reduction <add>, %490, %cst_345 [1] : vector<16x32xf32> to vector<16xf32>
    %494 = vector.shape_cast %493 : vector<16xf32> to vector<16x1xf32>
    %cst_346 = arith.constant 3.200000e+01 : f32
    %495 = vector.broadcast %cst_346 : f32 to vector<16x1xf32>
    %496 = arith.divf %494, %495 : vector<16x1xf32>
    %497 = vector.broadcast %496 : vector<16x1xf32> to vector<16x32xf32>
    %498 = arith.subf %490, %497 : vector<16x32xf32>
    %499 = arith.mulf %498, %498 : vector<16x32xf32>
    %cst_347 = arith.constant dense<0.000000e+00> : vector<16xf32>
    %500 = vector.multi_reduction <add>, %499, %cst_347 [1] : vector<16x32xf32> to vector<16xf32>
    %501 = vector.shape_cast %500 : vector<16xf32> to vector<16x1xf32>
    %cst_348 = arith.constant 3.200000e+01 : f32
    %502 = vector.broadcast %cst_348 : f32 to vector<16x1xf32>
    %503 = arith.divf %501, %502 : vector<16x1xf32>
    %504 = vector.broadcast %496 : vector<16x1xf32> to vector<16x32xf32>
    %505 = arith.subf %490, %504 : vector<16x32xf32>
    %cst_349 = arith.constant 9.99999974E-6 : f32
    %506 = vector.broadcast %cst_349 : f32 to vector<16x1xf32>
    %507 = arith.addf %503, %506 : vector<16x1xf32>
    %508 = math.rsqrt %507 : vector<16x1xf32>
    %509 = vector.broadcast %508 : vector<16x1xf32> to vector<16x32xf32>
    %510 = arith.mulf %505, %509 : vector<16x32xf32>
    %511 = vector.broadcast %491 : vector<1x32xf32> to vector<16x32xf32>
    %512 = arith.mulf %510, %511 : vector<16x32xf32>
    %513 = vector.broadcast %492 : vector<1x32xf32> to vector<16x32xf32>
    %514 = arith.addf %512, %513 : vector<16x32xf32>
    %c0_350 = arith.constant 0 : index
    %c0_351 = arith.constant 0 : index
    %c0_352 = arith.constant 0 : index
    %515 = vector.load %arg21[%c0_350, %c0_351, %c0_352] : memref<2x32x32xbf16, #tpu.memory_space<vmem>>, vector<1x32x32xbf16>
    %516 = vector.shape_cast %515 : vector<1x32x32xbf16> to vector<32x32xbf16>
    %c0_353 = arith.constant 0 : index
    %c0_354 = arith.constant 0 : index
    %c0_355 = arith.constant 0 : index
    %517 = vector.load %arg22[%c0_353, %c0_354, %c0_355] : memref<2x1x32xf32, #tpu.memory_space<vmem>>, vector<1x1x32xf32>
    %518 = vector.shape_cast %517 : vector<1x1x32xf32> to vector<1x32xf32>
    %519 = arith.truncf %1 : vector<16x32xf32> to vector<16x32xbf16>
    %520 = arith.truncf %1 : vector<16x32xf32> to vector<16x32xbf16>
    %c0_356 = arith.constant 0 : index
    %c0_357 = arith.constant 0 : index
    %c0_358 = arith.constant 0 : index
    %c0_359 = arith.constant 0 : index
    %521 = vector.load %arg19[%c0_356, %c0_357, %c0_358, %c0_359] : memref<2x12x32x8xbf16, #tpu.memory_space<vmem>>, vector<1x1x32x8xbf16>
    %522 = vector.shape_cast %521 : vector<1x1x32x8xbf16> to vector<32x8xbf16>
    %cst_360 = arith.constant dense<0.000000e+00> : vector<16x8xf32>
    %523 = tpu.matmul %519, %522, %cst_360 {dimension_numbers = #tpu.dot_dimension_numbers<[1], [0], [0], [1], [0, 0, 1, 1], [], []>} : vector<16x32xbf16>, vector<32x8xbf16>, vector<16x8xf32> -> vector<16x8xf32>
    %c0_361 = arith.constant 0 : index
    %c0_362 = arith.constant 0 : index
    %c0_363 = arith.constant 0 : index
    %c0_364 = arith.constant 0 : index
    %524 = vector.load %arg20[%c0_361, %c0_362, %c0_363, %c0_364] : memref<2x12x1x8xf32, #tpu.memory_space<vmem>>, vector<1x1x1x8xf32>
    %525 = vector.shape_cast %524 : vector<1x1x1x8xf32> to vector<1x8xf32>
    %526 = vector.broadcast %525 : vector<1x8xf32> to vector<16x8xf32>
    %527 = arith.addf %523, %526 : vector<16x8xf32>
    %c0_365 = arith.constant 0 : index
    %c4_366 = arith.constant 4 : index
    %c0_367 = arith.constant 0 : index
    %c0_368 = arith.constant 0 : index
    %528 = vector.load %arg19[%c0_365, %c4_366, %c0_367, %c0_368] : memref<2x12x32x8xbf16, #tpu.memory_space<vmem>>, vector<1x1x32x8xbf16>
    %529 = vector.shape_cast %528 : vector<1x1x32x8xbf16> to vector<32x8xbf16>
    %cst_369 = arith.constant dense<0.000000e+00> : vector<16x8xf32>
    %530 = tpu.matmul %520, %529, %cst_369 {dimension_numbers = #tpu.dot_dimension_numbers<[1], [0], [0], [1], [0, 0, 1, 1], [], []>} : vector<16x32xbf16>, vector<32x8xbf16>, vector<16x8xf32> -> vector<16x8xf32>
    %c0_370 = arith.constant 0 : index
    %c4_371 = arith.constant 4 : index
    %c0_372 = arith.constant 0 : index
    %c0_373 = arith.constant 0 : index
    %531 = vector.load %arg20[%c0_370, %c4_371, %c0_372, %c0_373] : memref<2x12x1x8xf32, #tpu.memory_space<vmem>>, vector<1x1x1x8xf32>
    %532 = vector.shape_cast %531 : vector<1x1x1x8xf32> to vector<1x8xf32>
    %533 = vector.broadcast %532 : vector<1x8xf32> to vector<16x8xf32>
    %534 = arith.addf %530, %533 : vector<16x8xf32>
    %c0_374 = arith.constant 0 : index
    %c8_375 = arith.constant 8 : index
    %c0_376 = arith.constant 0 : index
    %c0_377 = arith.constant 0 : index
    %535 = vector.load %arg19[%c0_374, %c8_375, %c0_376, %c0_377] : memref<2x12x32x8xbf16, #tpu.memory_space<vmem>>, vector<1x1x32x8xbf16>
    %536 = vector.shape_cast %535 : vector<1x1x32x8xbf16> to vector<32x8xbf16>
    %cst_378 = arith.constant dense<0.000000e+00> : vector<16x8xf32>
    %537 = tpu.matmul %520, %536, %cst_378 {dimension_numbers = #tpu.dot_dimension_numbers<[1], [0], [0], [1], [0, 0, 1, 1], [], []>} : vector<16x32xbf16>, vector<32x8xbf16>, vector<16x8xf32> -> vector<16x8xf32>
    %c0_379 = arith.constant 0 : index
    %c8_380 = arith.constant 8 : index
    %c0_381 = arith.constant 0 : index
    %c0_382 = arith.constant 0 : index
    %538 = vector.load %arg20[%c0_379, %c8_380, %c0_381, %c0_382] : memref<2x12x1x8xf32, #tpu.memory_space<vmem>>, vector<1x1x1x8xf32>
    %539 = vector.shape_cast %538 : vector<1x1x1x8xf32> to vector<1x8xf32>
    %540 = vector.broadcast %539 : vector<1x8xf32> to vector<16x8xf32>
    %541 = arith.addf %537, %540 : vector<16x8xf32>
    %542 = arith.truncf %527 : vector<16x8xf32> to vector<16x8xbf16>
    %543 = arith.truncf %534 : vector<16x8xf32> to vector<16x8xbf16>
    %cst_383 = arith.constant dense<0.000000e+00> : vector<16x16xf32>
    %544 = tpu.matmul %542, %543, %cst_383 {dimension_numbers = #tpu.dot_dimension_numbers<[1], [1], [0], [0], [0, 0, 1, 0], [], []>} : vector<16x8xbf16>, vector<16x8xbf16>, vector<16x16xf32> -> vector<16x16xf32>
    %cst_384 = arith.constant 0.353553385 : f32
    %545 = vector.broadcast %cst_384 : f32 to vector<16x16xf32>
    %546 = arith.mulf %544, %545 : vector<16x16xf32>
    %547 = arith.addf %546, %3 : vector<16x16xf32>
    %cst_385 = arith.constant dense<0xFF800000> : vector<16xf32>
    %548 = vector.multi_reduction <maximumf>, %547, %cst_385 [1] : vector<16x16xf32> to vector<16xf32>
    %549 = vector.shape_cast %548 : vector<16xf32> to vector<16x1xf32>
    %550 = vector.broadcast %549 : vector<16x1xf32> to vector<16x16xf32>
    %551 = arith.subf %547, %550 : vector<16x16xf32>
    %552 = math.exp %551 : vector<16x16xf32>
    %553 = arith.truncf %552 : vector<16x16xf32> to vector<16x16xbf16>
    %554 = arith.truncf %541 : vector<16x8xf32> to vector<16x8xbf16>
    %cst_386 = arith.constant dense<0.000000e+00> : vector<16x8xf32>
    %555 = tpu.matmul %553, %554, %cst_386 {dimension_numbers = #tpu.dot_dimension_numbers<[1], [0], [0], [1], [0, 0, 1, 1], [], []>} : vector<16x16xbf16>, vector<16x8xbf16>, vector<16x8xf32> -> vector<16x8xf32>
    %cst_387 = arith.constant dense<0.000000e+00> : vector<16xf32>
    %556 = vector.multi_reduction <add>, %552, %cst_387 [1] : vector<16x16xf32> to vector<16xf32>
    %557 = vector.shape_cast %556 : vector<16xf32> to vector<16x1xf32>
    %558 = tpu.reciprocal %557 : vector<16x1xf32> -> vector<16x1xf32>
    %559 = vector.broadcast %558 : vector<16x1xf32> to vector<16x8xf32>
    %560 = arith.mulf %555, %559 : vector<16x8xf32>
    %c0_388 = arith.constant 0 : index
    %c1_389 = arith.constant 1 : index
    %c0_390 = arith.constant 0 : index
    %c0_391 = arith.constant 0 : index
    %561 = vector.load %arg19[%c0_388, %c1_389, %c0_390, %c0_391] : memref<2x12x32x8xbf16, #tpu.memory_space<vmem>>, vector<1x1x32x8xbf16>
    %562 = vector.shape_cast %561 : vector<1x1x32x8xbf16> to vector<32x8xbf16>
    %cst_392 = arith.constant dense<0.000000e+00> : vector<16x8xf32>
    %563 = tpu.matmul %519, %562, %cst_392 {dimension_numbers = #tpu.dot_dimension_numbers<[1], [0], [0], [1], [0, 0, 1, 1], [], []>} : vector<16x32xbf16>, vector<32x8xbf16>, vector<16x8xf32> -> vector<16x8xf32>
    %c0_393 = arith.constant 0 : index
    %c1_394 = arith.constant 1 : index
    %c0_395 = arith.constant 0 : index
    %c0_396 = arith.constant 0 : index
    %564 = vector.load %arg20[%c0_393, %c1_394, %c0_395, %c0_396] : memref<2x12x1x8xf32, #tpu.memory_space<vmem>>, vector<1x1x1x8xf32>
    %565 = vector.shape_cast %564 : vector<1x1x1x8xf32> to vector<1x8xf32>
    %566 = vector.broadcast %565 : vector<1x8xf32> to vector<16x8xf32>
    %567 = arith.addf %563, %566 : vector<16x8xf32>
    %c0_397 = arith.constant 0 : index
    %c5_398 = arith.constant 5 : index
    %c0_399 = arith.constant 0 : index
    %c0_400 = arith.constant 0 : index
    %568 = vector.load %arg19[%c0_397, %c5_398, %c0_399, %c0_400] : memref<2x12x32x8xbf16, #tpu.memory_space<vmem>>, vector<1x1x32x8xbf16>
    %569 = vector.shape_cast %568 : vector<1x1x32x8xbf16> to vector<32x8xbf16>
    %cst_401 = arith.constant dense<0.000000e+00> : vector<16x8xf32>
    %570 = tpu.matmul %520, %569, %cst_401 {dimension_numbers = #tpu.dot_dimension_numbers<[1], [0], [0], [1], [0, 0, 1, 1], [], []>} : vector<16x32xbf16>, vector<32x8xbf16>, vector<16x8xf32> -> vector<16x8xf32>
    %c0_402 = arith.constant 0 : index
    %c5_403 = arith.constant 5 : index
    %c0_404 = arith.constant 0 : index
    %c0_405 = arith.constant 0 : index
    %571 = vector.load %arg20[%c0_402, %c5_403, %c0_404, %c0_405] : memref<2x12x1x8xf32, #tpu.memory_space<vmem>>, vector<1x1x1x8xf32>
    %572 = vector.shape_cast %571 : vector<1x1x1x8xf32> to vector<1x8xf32>
    %573 = vector.broadcast %572 : vector<1x8xf32> to vector<16x8xf32>
    %574 = arith.addf %570, %573 : vector<16x8xf32>
    %c0_406 = arith.constant 0 : index
    %c9_407 = arith.constant 9 : index
    %c0_408 = arith.constant 0 : index
    %c0_409 = arith.constant 0 : index
    %575 = vector.load %arg19[%c0_406, %c9_407, %c0_408, %c0_409] : memref<2x12x32x8xbf16, #tpu.memory_space<vmem>>, vector<1x1x32x8xbf16>
    %576 = vector.shape_cast %575 : vector<1x1x32x8xbf16> to vector<32x8xbf16>
    %cst_410 = arith.constant dense<0.000000e+00> : vector<16x8xf32>
    %577 = tpu.matmul %520, %576, %cst_410 {dimension_numbers = #tpu.dot_dimension_numbers<[1], [0], [0], [1], [0, 0, 1, 1], [], []>} : vector<16x32xbf16>, vector<32x8xbf16>, vector<16x8xf32> -> vector<16x8xf32>
    %c0_411 = arith.constant 0 : index
    %c9_412 = arith.constant 9 : index
    %c0_413 = arith.constant 0 : index
    %c0_414 = arith.constant 0 : index
    %578 = vector.load %arg20[%c0_411, %c9_412, %c0_413, %c0_414] : memref<2x12x1x8xf32, #tpu.memory_space<vmem>>, vector<1x1x1x8xf32>
    %579 = vector.shape_cast %578 : vector<1x1x1x8xf32> to vector<1x8xf32>
    %580 = vector.broadcast %579 : vector<1x8xf32> to vector<16x8xf32>
    %581 = arith.addf %577, %580 : vector<16x8xf32>
    %582 = arith.truncf %567 : vector<16x8xf32> to vector<16x8xbf16>
    %583 = arith.truncf %574 : vector<16x8xf32> to vector<16x8xbf16>
    %cst_415 = arith.constant dense<0.000000e+00> : vector<16x16xf32>
    %584 = tpu.matmul %582, %583, %cst_415 {dimension_numbers = #tpu.dot_dimension_numbers<[1], [1], [0], [0], [0, 0, 1, 0], [], []>} : vector<16x8xbf16>, vector<16x8xbf16>, vector<16x16xf32> -> vector<16x16xf32>
    %cst_416 = arith.constant 0.353553385 : f32
    %585 = vector.broadcast %cst_416 : f32 to vector<16x16xf32>
    %586 = arith.mulf %584, %585 : vector<16x16xf32>
    %587 = arith.addf %586, %3 : vector<16x16xf32>
    %cst_417 = arith.constant dense<0xFF800000> : vector<16xf32>
    %588 = vector.multi_reduction <maximumf>, %587, %cst_417 [1] : vector<16x16xf32> to vector<16xf32>
    %589 = vector.shape_cast %588 : vector<16xf32> to vector<16x1xf32>
    %590 = vector.broadcast %589 : vector<16x1xf32> to vector<16x16xf32>
    %591 = arith.subf %587, %590 : vector<16x16xf32>
    %592 = math.exp %591 : vector<16x16xf32>
    %593 = arith.truncf %592 : vector<16x16xf32> to vector<16x16xbf16>
    %594 = arith.truncf %581 : vector<16x8xf32> to vector<16x8xbf16>
    %cst_418 = arith.constant dense<0.000000e+00> : vector<16x8xf32>
    %595 = tpu.matmul %593, %594, %cst_418 {dimension_numbers = #tpu.dot_dimension_numbers<[1], [0], [0], [1], [0, 0, 1, 1], [], []>} : vector<16x16xbf16>, vector<16x8xbf16>, vector<16x8xf32> -> vector<16x8xf32>
    %cst_419 = arith.constant dense<0.000000e+00> : vector<16xf32>
    %596 = vector.multi_reduction <add>, %592, %cst_419 [1] : vector<16x16xf32> to vector<16xf32>
    %597 = vector.shape_cast %596 : vector<16xf32> to vector<16x1xf32>
    %598 = tpu.reciprocal %597 : vector<16x1xf32> -> vector<16x1xf32>
    %599 = vector.broadcast %598 : vector<16x1xf32> to vector<16x8xf32>
    %600 = arith.mulf %595, %599 : vector<16x8xf32>
    %c0_420 = arith.constant 0 : index
    %c2_421 = arith.constant 2 : index
    %c0_422 = arith.constant 0 : index
    %c0_423 = arith.constant 0 : index
    %601 = vector.load %arg19[%c0_420, %c2_421, %c0_422, %c0_423] : memref<2x12x32x8xbf16, #tpu.memory_space<vmem>>, vector<1x1x32x8xbf16>
    %602 = vector.shape_cast %601 : vector<1x1x32x8xbf16> to vector<32x8xbf16>
    %cst_424 = arith.constant dense<0.000000e+00> : vector<16x8xf32>
    %603 = tpu.matmul %519, %602, %cst_424 {dimension_numbers = #tpu.dot_dimension_numbers<[1], [0], [0], [1], [0, 0, 1, 1], [], []>} : vector<16x32xbf16>, vector<32x8xbf16>, vector<16x8xf32> -> vector<16x8xf32>
    %c0_425 = arith.constant 0 : index
    %c2_426 = arith.constant 2 : index
    %c0_427 = arith.constant 0 : index
    %c0_428 = arith.constant 0 : index
    %604 = vector.load %arg20[%c0_425, %c2_426, %c0_427, %c0_428] : memref<2x12x1x8xf32, #tpu.memory_space<vmem>>, vector<1x1x1x8xf32>
    %605 = vector.shape_cast %604 : vector<1x1x1x8xf32> to vector<1x8xf32>
    %606 = vector.broadcast %605 : vector<1x8xf32> to vector<16x8xf32>
    %607 = arith.addf %603, %606 : vector<16x8xf32>
    %c0_429 = arith.constant 0 : index
    %c6_430 = arith.constant 6 : index
    %c0_431 = arith.constant 0 : index
    %c0_432 = arith.constant 0 : index
    %608 = vector.load %arg19[%c0_429, %c6_430, %c0_431, %c0_432] : memref<2x12x32x8xbf16, #tpu.memory_space<vmem>>, vector<1x1x32x8xbf16>
    %609 = vector.shape_cast %608 : vector<1x1x32x8xbf16> to vector<32x8xbf16>
    %cst_433 = arith.constant dense<0.000000e+00> : vector<16x8xf32>
    %610 = tpu.matmul %520, %609, %cst_433 {dimension_numbers = #tpu.dot_dimension_numbers<[1], [0], [0], [1], [0, 0, 1, 1], [], []>} : vector<16x32xbf16>, vector<32x8xbf16>, vector<16x8xf32> -> vector<16x8xf32>
    %c0_434 = arith.constant 0 : index
    %c6_435 = arith.constant 6 : index
    %c0_436 = arith.constant 0 : index
    %c0_437 = arith.constant 0 : index
    %611 = vector.load %arg20[%c0_434, %c6_435, %c0_436, %c0_437] : memref<2x12x1x8xf32, #tpu.memory_space<vmem>>, vector<1x1x1x8xf32>
    %612 = vector.shape_cast %611 : vector<1x1x1x8xf32> to vector<1x8xf32>
    %613 = vector.broadcast %612 : vector<1x8xf32> to vector<16x8xf32>
    %614 = arith.addf %610, %613 : vector<16x8xf32>
    %c0_438 = arith.constant 0 : index
    %c10_439 = arith.constant 10 : index
    %c0_440 = arith.constant 0 : index
    %c0_441 = arith.constant 0 : index
    %615 = vector.load %arg19[%c0_438, %c10_439, %c0_440, %c0_441] : memref<2x12x32x8xbf16, #tpu.memory_space<vmem>>, vector<1x1x32x8xbf16>
    %616 = vector.shape_cast %615 : vector<1x1x32x8xbf16> to vector<32x8xbf16>
    %cst_442 = arith.constant dense<0.000000e+00> : vector<16x8xf32>
    %617 = tpu.matmul %520, %616, %cst_442 {dimension_numbers = #tpu.dot_dimension_numbers<[1], [0], [0], [1], [0, 0, 1, 1], [], []>} : vector<16x32xbf16>, vector<32x8xbf16>, vector<16x8xf32> -> vector<16x8xf32>
    %c0_443 = arith.constant 0 : index
    %c10_444 = arith.constant 10 : index
    %c0_445 = arith.constant 0 : index
    %c0_446 = arith.constant 0 : index
    %618 = vector.load %arg20[%c0_443, %c10_444, %c0_445, %c0_446] : memref<2x12x1x8xf32, #tpu.memory_space<vmem>>, vector<1x1x1x8xf32>
    %619 = vector.shape_cast %618 : vector<1x1x1x8xf32> to vector<1x8xf32>
    %620 = vector.broadcast %619 : vector<1x8xf32> to vector<16x8xf32>
    %621 = arith.addf %617, %620 : vector<16x8xf32>
    %622 = arith.truncf %607 : vector<16x8xf32> to vector<16x8xbf16>
    %623 = arith.truncf %614 : vector<16x8xf32> to vector<16x8xbf16>
    %cst_447 = arith.constant dense<0.000000e+00> : vector<16x16xf32>
    %624 = tpu.matmul %622, %623, %cst_447 {dimension_numbers = #tpu.dot_dimension_numbers<[1], [1], [0], [0], [0, 0, 1, 0], [], []>} : vector<16x8xbf16>, vector<16x8xbf16>, vector<16x16xf32> -> vector<16x16xf32>
    %cst_448 = arith.constant 0.353553385 : f32
    %625 = vector.broadcast %cst_448 : f32 to vector<16x16xf32>
    %626 = arith.mulf %624, %625 : vector<16x16xf32>
    %627 = arith.addf %626, %3 : vector<16x16xf32>
    %cst_449 = arith.constant dense<0xFF800000> : vector<16xf32>
    %628 = vector.multi_reduction <maximumf>, %627, %cst_449 [1] : vector<16x16xf32> to vector<16xf32>
    %629 = vector.shape_cast %628 : vector<16xf32> to vector<16x1xf32>
    %630 = vector.broadcast %629 : vector<16x1xf32> to vector<16x16xf32>
    %631 = arith.subf %627, %630 : vector<16x16xf32>
    %632 = math.exp %631 : vector<16x16xf32>
    %633 = arith.truncf %632 : vector<16x16xf32> to vector<16x16xbf16>
    %634 = arith.truncf %621 : vector<16x8xf32> to vector<16x8xbf16>
    %cst_450 = arith.constant dense<0.000000e+00> : vector<16x8xf32>
    %635 = tpu.matmul %633, %634, %cst_450 {dimension_numbers = #tpu.dot_dimension_numbers<[1], [0], [0], [1], [0, 0, 1, 1], [], []>} : vector<16x16xbf16>, vector<16x8xbf16>, vector<16x8xf32> -> vector<16x8xf32>
    %cst_451 = arith.constant dense<0.000000e+00> : vector<16xf32>
    %636 = vector.multi_reduction <add>, %632, %cst_451 [1] : vector<16x16xf32> to vector<16xf32>
    %637 = vector.shape_cast %636 : vector<16xf32> to vector<16x1xf32>
    %638 = tpu.reciprocal %637 : vector<16x1xf32> -> vector<16x1xf32>
    %639 = vector.broadcast %638 : vector<16x1xf32> to vector<16x8xf32>
    %640 = arith.mulf %635, %639 : vector<16x8xf32>
    %c0_452 = arith.constant 0 : index
    %c3_453 = arith.constant 3 : index
    %c0_454 = arith.constant 0 : index
    %c0_455 = arith.constant 0 : index
    %641 = vector.load %arg19[%c0_452, %c3_453, %c0_454, %c0_455] : memref<2x12x32x8xbf16, #tpu.memory_space<vmem>>, vector<1x1x32x8xbf16>
    %642 = vector.shape_cast %641 : vector<1x1x32x8xbf16> to vector<32x8xbf16>
    %cst_456 = arith.constant dense<0.000000e+00> : vector<16x8xf32>
    %643 = tpu.matmul %519, %642, %cst_456 {dimension_numbers = #tpu.dot_dimension_numbers<[1], [0], [0], [1], [0, 0, 1, 1], [], []>} : vector<16x32xbf16>, vector<32x8xbf16>, vector<16x8xf32> -> vector<16x8xf32>
    %c0_457 = arith.constant 0 : index
    %c3_458 = arith.constant 3 : index
    %c0_459 = arith.constant 0 : index
    %c0_460 = arith.constant 0 : index
    %644 = vector.load %arg20[%c0_457, %c3_458, %c0_459, %c0_460] : memref<2x12x1x8xf32, #tpu.memory_space<vmem>>, vector<1x1x1x8xf32>
    %645 = vector.shape_cast %644 : vector<1x1x1x8xf32> to vector<1x8xf32>
    %646 = vector.broadcast %645 : vector<1x8xf32> to vector<16x8xf32>
    %647 = arith.addf %643, %646 : vector<16x8xf32>
    %c0_461 = arith.constant 0 : index
    %c7_462 = arith.constant 7 : index
    %c0_463 = arith.constant 0 : index
    %c0_464 = arith.constant 0 : index
    %648 = vector.load %arg19[%c0_461, %c7_462, %c0_463, %c0_464] : memref<2x12x32x8xbf16, #tpu.memory_space<vmem>>, vector<1x1x32x8xbf16>
    %649 = vector.shape_cast %648 : vector<1x1x32x8xbf16> to vector<32x8xbf16>
    %cst_465 = arith.constant dense<0.000000e+00> : vector<16x8xf32>
    %650 = tpu.matmul %520, %649, %cst_465 {dimension_numbers = #tpu.dot_dimension_numbers<[1], [0], [0], [1], [0, 0, 1, 1], [], []>} : vector<16x32xbf16>, vector<32x8xbf16>, vector<16x8xf32> -> vector<16x8xf32>
    %c0_466 = arith.constant 0 : index
    %c7_467 = arith.constant 7 : index
    %c0_468 = arith.constant 0 : index
    %c0_469 = arith.constant 0 : index
    %651 = vector.load %arg20[%c0_466, %c7_467, %c0_468, %c0_469] : memref<2x12x1x8xf32, #tpu.memory_space<vmem>>, vector<1x1x1x8xf32>
    %652 = vector.shape_cast %651 : vector<1x1x1x8xf32> to vector<1x8xf32>
    %653 = vector.broadcast %652 : vector<1x8xf32> to vector<16x8xf32>
    %654 = arith.addf %650, %653 : vector<16x8xf32>
    %c0_470 = arith.constant 0 : index
    %c11_471 = arith.constant 11 : index
    %c0_472 = arith.constant 0 : index
    %c0_473 = arith.constant 0 : index
    %655 = vector.load %arg19[%c0_470, %c11_471, %c0_472, %c0_473] : memref<2x12x32x8xbf16, #tpu.memory_space<vmem>>, vector<1x1x32x8xbf16>
    %656 = vector.shape_cast %655 : vector<1x1x32x8xbf16> to vector<32x8xbf16>
    %cst_474 = arith.constant dense<0.000000e+00> : vector<16x8xf32>
    %657 = tpu.matmul %520, %656, %cst_474 {dimension_numbers = #tpu.dot_dimension_numbers<[1], [0], [0], [1], [0, 0, 1, 1], [], []>} : vector<16x32xbf16>, vector<32x8xbf16>, vector<16x8xf32> -> vector<16x8xf32>
    %c0_475 = arith.constant 0 : index
    %c11_476 = arith.constant 11 : index
    %c0_477 = arith.constant 0 : index
    %c0_478 = arith.constant 0 : index
    %658 = vector.load %arg20[%c0_475, %c11_476, %c0_477, %c0_478] : memref<2x12x1x8xf32, #tpu.memory_space<vmem>>, vector<1x1x1x8xf32>
    %659 = vector.shape_cast %658 : vector<1x1x1x8xf32> to vector<1x8xf32>
    %660 = vector.broadcast %659 : vector<1x8xf32> to vector<16x8xf32>
    %661 = arith.addf %657, %660 : vector<16x8xf32>
    %662 = arith.truncf %647 : vector<16x8xf32> to vector<16x8xbf16>
    %663 = arith.truncf %654 : vector<16x8xf32> to vector<16x8xbf16>
    %cst_479 = arith.constant dense<0.000000e+00> : vector<16x16xf32>
    %664 = tpu.matmul %662, %663, %cst_479 {dimension_numbers = #tpu.dot_dimension_numbers<[1], [1], [0], [0], [0, 0, 1, 0], [], []>} : vector<16x8xbf16>, vector<16x8xbf16>, vector<16x16xf32> -> vector<16x16xf32>
    %cst_480 = arith.constant 0.353553385 : f32
    %665 = vector.broadcast %cst_480 : f32 to vector<16x16xf32>
    %666 = arith.mulf %664, %665 : vector<16x16xf32>
    %667 = arith.addf %666, %3 : vector<16x16xf32>
    %cst_481 = arith.constant dense<0xFF800000> : vector<16xf32>
    %668 = vector.multi_reduction <maximumf>, %667, %cst_481 [1] : vector<16x16xf32> to vector<16xf32>
    %669 = vector.shape_cast %668 : vector<16xf32> to vector<16x1xf32>
    %670 = vector.broadcast %669 : vector<16x1xf32> to vector<16x16xf32>
    %671 = arith.subf %667, %670 : vector<16x16xf32>
    %672 = math.exp %671 : vector<16x16xf32>
    %673 = arith.truncf %672 : vector<16x16xf32> to vector<16x16xbf16>
    %674 = arith.truncf %661 : vector<16x8xf32> to vector<16x8xbf16>
    %cst_482 = arith.constant dense<0.000000e+00> : vector<16x8xf32>
    %675 = tpu.matmul %673, %674, %cst_482 {dimension_numbers = #tpu.dot_dimension_numbers<[1], [0], [0], [1], [0, 0, 1, 1], [], []>} : vector<16x16xbf16>, vector<16x8xbf16>, vector<16x8xf32> -> vector<16x8xf32>
    %cst_483 = arith.constant dense<0.000000e+00> : vector<16xf32>
    %676 = vector.multi_reduction <add>, %672, %cst_483 [1] : vector<16x16xf32> to vector<16xf32>
    %677 = vector.shape_cast %676 : vector<16xf32> to vector<16x1xf32>
    %678 = tpu.reciprocal %677 : vector<16x1xf32> -> vector<16x1xf32>
    %679 = vector.broadcast %678 : vector<16x1xf32> to vector<16x8xf32>
    %680 = arith.mulf %675, %679 : vector<16x8xf32>
    %681 = tpu.concatenate %560, %600, %640, %680 in 1 : vector<16x8xf32>, vector<16x8xf32>, vector<16x8xf32>, vector<16x8xf32> -> vector<16x32xf32>
    %682 = arith.truncf %681 : vector<16x32xf32> to vector<16x32xbf16>
    %cst_484 = arith.constant dense<0.000000e+00> : vector<16x32xf32>
    %683 = tpu.matmul %682, %516, %cst_484 {dimension_numbers = #tpu.dot_dimension_numbers<[1], [0], [0], [1], [0, 0, 1, 1], [], []>} : vector<16x32xbf16>, vector<32x32xbf16>, vector<16x32xf32> -> vector<16x32xf32>
    %684 = vector.broadcast %518 : vector<1x32xf32> to vector<16x32xf32>
    %685 = arith.addf %683, %684 : vector<16x32xf32>
    %686 = arith.addf %1, %685 : vector<16x32xf32>
    %c0_485 = arith.constant 0 : index
    %c0_486 = arith.constant 0 : index
    %c0_487 = arith.constant 0 : index
    %687 = vector.load %arg23[%c0_485, %c0_486, %c0_487] : memref<2x1x32xf32, #tpu.memory_space<vmem>>, vector<1x1x32xf32>
    %688 = vector.shape_cast %687 : vector<1x1x32xf32> to vector<1x32xf32>
    %c0_488 = arith.constant 0 : index
    %c0_489 = arith.constant 0 : index
    %c0_490 = arith.constant 0 : index
    %689 = vector.load %arg24[%c0_488, %c0_489, %c0_490] : memref<2x1x32xf32, #tpu.memory_space<vmem>>, vector<1x1x32xf32>
    %690 = vector.shape_cast %689 : vector<1x1x32xf32> to vector<1x32xf32>
    %cst_491 = arith.constant dense<0.000000e+00> : vector<16xf32>
    %691 = vector.multi_reduction <add>, %686, %cst_491 [1] : vector<16x32xf32> to vector<16xf32>
    %692 = vector.shape_cast %691 : vector<16xf32> to vector<16x1xf32>
    %cst_492 = arith.constant 3.200000e+01 : f32
    %693 = vector.broadcast %cst_492 : f32 to vector<16x1xf32>
    %694 = arith.divf %692, %693 : vector<16x1xf32>
    %695 = vector.broadcast %694 : vector<16x1xf32> to vector<16x32xf32>
    %696 = arith.subf %686, %695 : vector<16x32xf32>
    %697 = arith.mulf %696, %696 : vector<16x32xf32>
    %cst_493 = arith.constant dense<0.000000e+00> : vector<16xf32>
    %698 = vector.multi_reduction <add>, %697, %cst_493 [1] : vector<16x32xf32> to vector<16xf32>
    %699 = vector.shape_cast %698 : vector<16xf32> to vector<16x1xf32>
    %cst_494 = arith.constant 3.200000e+01 : f32
    %700 = vector.broadcast %cst_494 : f32 to vector<16x1xf32>
    %701 = arith.divf %699, %700 : vector<16x1xf32>
    %702 = vector.broadcast %694 : vector<16x1xf32> to vector<16x32xf32>
    %703 = arith.subf %686, %702 : vector<16x32xf32>
    %cst_495 = arith.constant 9.99999974E-6 : f32
    %704 = vector.broadcast %cst_495 : f32 to vector<16x1xf32>
    %705 = arith.addf %701, %704 : vector<16x1xf32>
    %706 = math.rsqrt %705 : vector<16x1xf32>
    %707 = vector.broadcast %706 : vector<16x1xf32> to vector<16x32xf32>
    %708 = arith.mulf %703, %707 : vector<16x32xf32>
    %709 = vector.broadcast %688 : vector<1x32xf32> to vector<16x32xf32>
    %710 = arith.mulf %708, %709 : vector<16x32xf32>
    %711 = vector.broadcast %690 : vector<1x32xf32> to vector<16x32xf32>
    %712 = arith.addf %710, %711 : vector<16x32xf32>
    %c0_496 = arith.constant 0 : index
    %c0_497 = arith.constant 0 : index
    %c0_498 = arith.constant 0 : index
    %713 = vector.load %arg27[%c0_496, %c0_497, %c0_498] : memref<2x32x32xbf16, #tpu.memory_space<vmem>>, vector<1x32x32xbf16>
    %714 = vector.shape_cast %713 : vector<1x32x32xbf16> to vector<32x32xbf16>
    %c0_499 = arith.constant 0 : index
    %c0_500 = arith.constant 0 : index
    %c0_501 = arith.constant 0 : index
    %715 = vector.load %arg28[%c0_499, %c0_500, %c0_501] : memref<2x1x32xf32, #tpu.memory_space<vmem>>, vector<1x1x32xf32>
    %716 = vector.shape_cast %715 : vector<1x1x32xf32> to vector<1x32xf32>
    %717 = arith.truncf %712 : vector<16x32xf32> to vector<16x32xbf16>
    %718 = arith.truncf %514 : vector<16x32xf32> to vector<16x32xbf16>
    %c0_502 = arith.constant 0 : index
    %c0_503 = arith.constant 0 : index
    %c0_504 = arith.constant 0 : index
    %c0_505 = arith.constant 0 : index
    %719 = vector.load %arg25[%c0_502, %c0_503, %c0_504, %c0_505] : memref<2x12x32x8xbf16, #tpu.memory_space<vmem>>, vector<1x1x32x8xbf16>
    %720 = vector.shape_cast %719 : vector<1x1x32x8xbf16> to vector<32x8xbf16>
    %cst_506 = arith.constant dense<0.000000e+00> : vector<16x8xf32>
    %721 = tpu.matmul %717, %720, %cst_506 {dimension_numbers = #tpu.dot_dimension_numbers<[1], [0], [0], [1], [0, 0, 1, 1], [], []>} : vector<16x32xbf16>, vector<32x8xbf16>, vector<16x8xf32> -> vector<16x8xf32>
    %c0_507 = arith.constant 0 : index
    %c0_508 = arith.constant 0 : index
    %c0_509 = arith.constant 0 : index
    %c0_510 = arith.constant 0 : index
    %722 = vector.load %arg26[%c0_507, %c0_508, %c0_509, %c0_510] : memref<2x12x1x8xf32, #tpu.memory_space<vmem>>, vector<1x1x1x8xf32>
    %723 = vector.shape_cast %722 : vector<1x1x1x8xf32> to vector<1x8xf32>
    %724 = vector.broadcast %723 : vector<1x8xf32> to vector<16x8xf32>
    %725 = arith.addf %721, %724 : vector<16x8xf32>
    %c0_511 = arith.constant 0 : index
    %c4_512 = arith.constant 4 : index
    %c0_513 = arith.constant 0 : index
    %c0_514 = arith.constant 0 : index
    %726 = vector.load %arg25[%c0_511, %c4_512, %c0_513, %c0_514] : memref<2x12x32x8xbf16, #tpu.memory_space<vmem>>, vector<1x1x32x8xbf16>
    %727 = vector.shape_cast %726 : vector<1x1x32x8xbf16> to vector<32x8xbf16>
    %cst_515 = arith.constant dense<0.000000e+00> : vector<16x8xf32>
    %728 = tpu.matmul %718, %727, %cst_515 {dimension_numbers = #tpu.dot_dimension_numbers<[1], [0], [0], [1], [0, 0, 1, 1], [], []>} : vector<16x32xbf16>, vector<32x8xbf16>, vector<16x8xf32> -> vector<16x8xf32>
    %c0_516 = arith.constant 0 : index
    %c4_517 = arith.constant 4 : index
    %c0_518 = arith.constant 0 : index
    %c0_519 = arith.constant 0 : index
    %729 = vector.load %arg26[%c0_516, %c4_517, %c0_518, %c0_519] : memref<2x12x1x8xf32, #tpu.memory_space<vmem>>, vector<1x1x1x8xf32>
    %730 = vector.shape_cast %729 : vector<1x1x1x8xf32> to vector<1x8xf32>
    %731 = vector.broadcast %730 : vector<1x8xf32> to vector<16x8xf32>
    %732 = arith.addf %728, %731 : vector<16x8xf32>
    %c0_520 = arith.constant 0 : index
    %c8_521 = arith.constant 8 : index
    %c0_522 = arith.constant 0 : index
    %c0_523 = arith.constant 0 : index
    %733 = vector.load %arg25[%c0_520, %c8_521, %c0_522, %c0_523] : memref<2x12x32x8xbf16, #tpu.memory_space<vmem>>, vector<1x1x32x8xbf16>
    %734 = vector.shape_cast %733 : vector<1x1x32x8xbf16> to vector<32x8xbf16>
    %cst_524 = arith.constant dense<0.000000e+00> : vector<16x8xf32>
    %735 = tpu.matmul %718, %734, %cst_524 {dimension_numbers = #tpu.dot_dimension_numbers<[1], [0], [0], [1], [0, 0, 1, 1], [], []>} : vector<16x32xbf16>, vector<32x8xbf16>, vector<16x8xf32> -> vector<16x8xf32>
    %c0_525 = arith.constant 0 : index
    %c8_526 = arith.constant 8 : index
    %c0_527 = arith.constant 0 : index
    %c0_528 = arith.constant 0 : index
    %736 = vector.load %arg26[%c0_525, %c8_526, %c0_527, %c0_528] : memref<2x12x1x8xf32, #tpu.memory_space<vmem>>, vector<1x1x1x8xf32>
    %737 = vector.shape_cast %736 : vector<1x1x1x8xf32> to vector<1x8xf32>
    %738 = vector.broadcast %737 : vector<1x8xf32> to vector<16x8xf32>
    %739 = arith.addf %735, %738 : vector<16x8xf32>
    %740 = arith.truncf %725 : vector<16x8xf32> to vector<16x8xbf16>
    %741 = arith.truncf %732 : vector<16x8xf32> to vector<16x8xbf16>
    %cst_529 = arith.constant dense<0.000000e+00> : vector<16x16xf32>
    %742 = tpu.matmul %740, %741, %cst_529 {dimension_numbers = #tpu.dot_dimension_numbers<[1], [1], [0], [0], [0, 0, 1, 0], [], []>} : vector<16x8xbf16>, vector<16x8xbf16>, vector<16x16xf32> -> vector<16x16xf32>
    %cst_530 = arith.constant 0.353553385 : f32
    %743 = vector.broadcast %cst_530 : f32 to vector<16x16xf32>
    %744 = arith.mulf %742, %743 : vector<16x16xf32>
    %745 = arith.addf %744, %4 : vector<16x16xf32>
    %cst_531 = arith.constant dense<0xFF800000> : vector<16xf32>
    %746 = vector.multi_reduction <maximumf>, %745, %cst_531 [1] : vector<16x16xf32> to vector<16xf32>
    %747 = vector.shape_cast %746 : vector<16xf32> to vector<16x1xf32>
    %748 = vector.broadcast %747 : vector<16x1xf32> to vector<16x16xf32>
    %749 = arith.subf %745, %748 : vector<16x16xf32>
    %750 = math.exp %749 : vector<16x16xf32>
    %751 = arith.truncf %750 : vector<16x16xf32> to vector<16x16xbf16>
    %752 = arith.truncf %739 : vector<16x8xf32> to vector<16x8xbf16>
    %cst_532 = arith.constant dense<0.000000e+00> : vector<16x8xf32>
    %753 = tpu.matmul %751, %752, %cst_532 {dimension_numbers = #tpu.dot_dimension_numbers<[1], [0], [0], [1], [0, 0, 1, 1], [], []>} : vector<16x16xbf16>, vector<16x8xbf16>, vector<16x8xf32> -> vector<16x8xf32>
    %cst_533 = arith.constant dense<0.000000e+00> : vector<16xf32>
    %754 = vector.multi_reduction <add>, %750, %cst_533 [1] : vector<16x16xf32> to vector<16xf32>
    %755 = vector.shape_cast %754 : vector<16xf32> to vector<16x1xf32>
    %756 = tpu.reciprocal %755 : vector<16x1xf32> -> vector<16x1xf32>
    %757 = vector.broadcast %756 : vector<16x1xf32> to vector<16x8xf32>
    %758 = arith.mulf %753, %757 : vector<16x8xf32>
    %c0_534 = arith.constant 0 : index
    %c1_535 = arith.constant 1 : index
    %c0_536 = arith.constant 0 : index
    %c0_537 = arith.constant 0 : index
    %759 = vector.load %arg25[%c0_534, %c1_535, %c0_536, %c0_537] : memref<2x12x32x8xbf16, #tpu.memory_space<vmem>>, vector<1x1x32x8xbf16>
    %760 = vector.shape_cast %759 : vector<1x1x32x8xbf16> to vector<32x8xbf16>
    %cst_538 = arith.constant dense<0.000000e+00> : vector<16x8xf32>
    %761 = tpu.matmul %717, %760, %cst_538 {dimension_numbers = #tpu.dot_dimension_numbers<[1], [0], [0], [1], [0, 0, 1, 1], [], []>} : vector<16x32xbf16>, vector<32x8xbf16>, vector<16x8xf32> -> vector<16x8xf32>
    %c0_539 = arith.constant 0 : index
    %c1_540 = arith.constant 1 : index
    %c0_541 = arith.constant 0 : index
    %c0_542 = arith.constant 0 : index
    %762 = vector.load %arg26[%c0_539, %c1_540, %c0_541, %c0_542] : memref<2x12x1x8xf32, #tpu.memory_space<vmem>>, vector<1x1x1x8xf32>
    %763 = vector.shape_cast %762 : vector<1x1x1x8xf32> to vector<1x8xf32>
    %764 = vector.broadcast %763 : vector<1x8xf32> to vector<16x8xf32>
    %765 = arith.addf %761, %764 : vector<16x8xf32>
    %c0_543 = arith.constant 0 : index
    %c5_544 = arith.constant 5 : index
    %c0_545 = arith.constant 0 : index
    %c0_546 = arith.constant 0 : index
    %766 = vector.load %arg25[%c0_543, %c5_544, %c0_545, %c0_546] : memref<2x12x32x8xbf16, #tpu.memory_space<vmem>>, vector<1x1x32x8xbf16>
    %767 = vector.shape_cast %766 : vector<1x1x32x8xbf16> to vector<32x8xbf16>
    %cst_547 = arith.constant dense<0.000000e+00> : vector<16x8xf32>
    %768 = tpu.matmul %718, %767, %cst_547 {dimension_numbers = #tpu.dot_dimension_numbers<[1], [0], [0], [1], [0, 0, 1, 1], [], []>} : vector<16x32xbf16>, vector<32x8xbf16>, vector<16x8xf32> -> vector<16x8xf32>
    %c0_548 = arith.constant 0 : index
    %c5_549 = arith.constant 5 : index
    %c0_550 = arith.constant 0 : index
    %c0_551 = arith.constant 0 : index
    %769 = vector.load %arg26[%c0_548, %c5_549, %c0_550, %c0_551] : memref<2x12x1x8xf32, #tpu.memory_space<vmem>>, vector<1x1x1x8xf32>
    %770 = vector.shape_cast %769 : vector<1x1x1x8xf32> to vector<1x8xf32>
    %771 = vector.broadcast %770 : vector<1x8xf32> to vector<16x8xf32>
    %772 = arith.addf %768, %771 : vector<16x8xf32>
    %c0_552 = arith.constant 0 : index
    %c9_553 = arith.constant 9 : index
    %c0_554 = arith.constant 0 : index
    %c0_555 = arith.constant 0 : index
    %773 = vector.load %arg25[%c0_552, %c9_553, %c0_554, %c0_555] : memref<2x12x32x8xbf16, #tpu.memory_space<vmem>>, vector<1x1x32x8xbf16>
    %774 = vector.shape_cast %773 : vector<1x1x32x8xbf16> to vector<32x8xbf16>
    %cst_556 = arith.constant dense<0.000000e+00> : vector<16x8xf32>
    %775 = tpu.matmul %718, %774, %cst_556 {dimension_numbers = #tpu.dot_dimension_numbers<[1], [0], [0], [1], [0, 0, 1, 1], [], []>} : vector<16x32xbf16>, vector<32x8xbf16>, vector<16x8xf32> -> vector<16x8xf32>
    %c0_557 = arith.constant 0 : index
    %c9_558 = arith.constant 9 : index
    %c0_559 = arith.constant 0 : index
    %c0_560 = arith.constant 0 : index
    %776 = vector.load %arg26[%c0_557, %c9_558, %c0_559, %c0_560] : memref<2x12x1x8xf32, #tpu.memory_space<vmem>>, vector<1x1x1x8xf32>
    %777 = vector.shape_cast %776 : vector<1x1x1x8xf32> to vector<1x8xf32>
    %778 = vector.broadcast %777 : vector<1x8xf32> to vector<16x8xf32>
    %779 = arith.addf %775, %778 : vector<16x8xf32>
    %780 = arith.truncf %765 : vector<16x8xf32> to vector<16x8xbf16>
    %781 = arith.truncf %772 : vector<16x8xf32> to vector<16x8xbf16>
    %cst_561 = arith.constant dense<0.000000e+00> : vector<16x16xf32>
    %782 = tpu.matmul %780, %781, %cst_561 {dimension_numbers = #tpu.dot_dimension_numbers<[1], [1], [0], [0], [0, 0, 1, 0], [], []>} : vector<16x8xbf16>, vector<16x8xbf16>, vector<16x16xf32> -> vector<16x16xf32>
    %cst_562 = arith.constant 0.353553385 : f32
    %783 = vector.broadcast %cst_562 : f32 to vector<16x16xf32>
    %784 = arith.mulf %782, %783 : vector<16x16xf32>
    %785 = arith.addf %784, %4 : vector<16x16xf32>
    %cst_563 = arith.constant dense<0xFF800000> : vector<16xf32>
    %786 = vector.multi_reduction <maximumf>, %785, %cst_563 [1] : vector<16x16xf32> to vector<16xf32>
    %787 = vector.shape_cast %786 : vector<16xf32> to vector<16x1xf32>
    %788 = vector.broadcast %787 : vector<16x1xf32> to vector<16x16xf32>
    %789 = arith.subf %785, %788 : vector<16x16xf32>
    %790 = math.exp %789 : vector<16x16xf32>
    %791 = arith.truncf %790 : vector<16x16xf32> to vector<16x16xbf16>
    %792 = arith.truncf %779 : vector<16x8xf32> to vector<16x8xbf16>
    %cst_564 = arith.constant dense<0.000000e+00> : vector<16x8xf32>
    %793 = tpu.matmul %791, %792, %cst_564 {dimension_numbers = #tpu.dot_dimension_numbers<[1], [0], [0], [1], [0, 0, 1, 1], [], []>} : vector<16x16xbf16>, vector<16x8xbf16>, vector<16x8xf32> -> vector<16x8xf32>
    %cst_565 = arith.constant dense<0.000000e+00> : vector<16xf32>
    %794 = vector.multi_reduction <add>, %790, %cst_565 [1] : vector<16x16xf32> to vector<16xf32>
    %795 = vector.shape_cast %794 : vector<16xf32> to vector<16x1xf32>
    %796 = tpu.reciprocal %795 : vector<16x1xf32> -> vector<16x1xf32>
    %797 = vector.broadcast %796 : vector<16x1xf32> to vector<16x8xf32>
    %798 = arith.mulf %793, %797 : vector<16x8xf32>
    %c0_566 = arith.constant 0 : index
    %c2_567 = arith.constant 2 : index
    %c0_568 = arith.constant 0 : index
    %c0_569 = arith.constant 0 : index
    %799 = vector.load %arg25[%c0_566, %c2_567, %c0_568, %c0_569] : memref<2x12x32x8xbf16, #tpu.memory_space<vmem>>, vector<1x1x32x8xbf16>
    %800 = vector.shape_cast %799 : vector<1x1x32x8xbf16> to vector<32x8xbf16>
    %cst_570 = arith.constant dense<0.000000e+00> : vector<16x8xf32>
    %801 = tpu.matmul %717, %800, %cst_570 {dimension_numbers = #tpu.dot_dimension_numbers<[1], [0], [0], [1], [0, 0, 1, 1], [], []>} : vector<16x32xbf16>, vector<32x8xbf16>, vector<16x8xf32> -> vector<16x8xf32>
    %c0_571 = arith.constant 0 : index
    %c2_572 = arith.constant 2 : index
    %c0_573 = arith.constant 0 : index
    %c0_574 = arith.constant 0 : index
    %802 = vector.load %arg26[%c0_571, %c2_572, %c0_573, %c0_574] : memref<2x12x1x8xf32, #tpu.memory_space<vmem>>, vector<1x1x1x8xf32>
    %803 = vector.shape_cast %802 : vector<1x1x1x8xf32> to vector<1x8xf32>
    %804 = vector.broadcast %803 : vector<1x8xf32> to vector<16x8xf32>
    %805 = arith.addf %801, %804 : vector<16x8xf32>
    %c0_575 = arith.constant 0 : index
    %c6_576 = arith.constant 6 : index
    %c0_577 = arith.constant 0 : index
    %c0_578 = arith.constant 0 : index
    %806 = vector.load %arg25[%c0_575, %c6_576, %c0_577, %c0_578] : memref<2x12x32x8xbf16, #tpu.memory_space<vmem>>, vector<1x1x32x8xbf16>
    %807 = vector.shape_cast %806 : vector<1x1x32x8xbf16> to vector<32x8xbf16>
    %cst_579 = arith.constant dense<0.000000e+00> : vector<16x8xf32>
    %808 = tpu.matmul %718, %807, %cst_579 {dimension_numbers = #tpu.dot_dimension_numbers<[1], [0], [0], [1], [0, 0, 1, 1], [], []>} : vector<16x32xbf16>, vector<32x8xbf16>, vector<16x8xf32> -> vector<16x8xf32>
    %c0_580 = arith.constant 0 : index
    %c6_581 = arith.constant 6 : index
    %c0_582 = arith.constant 0 : index
    %c0_583 = arith.constant 0 : index
    %809 = vector.load %arg26[%c0_580, %c6_581, %c0_582, %c0_583] : memref<2x12x1x8xf32, #tpu.memory_space<vmem>>, vector<1x1x1x8xf32>
    %810 = vector.shape_cast %809 : vector<1x1x1x8xf32> to vector<1x8xf32>
    %811 = vector.broadcast %810 : vector<1x8xf32> to vector<16x8xf32>
    %812 = arith.addf %808, %811 : vector<16x8xf32>
    %c0_584 = arith.constant 0 : index
    %c10_585 = arith.constant 10 : index
    %c0_586 = arith.constant 0 : index
    %c0_587 = arith.constant 0 : index
    %813 = vector.load %arg25[%c0_584, %c10_585, %c0_586, %c0_587] : memref<2x12x32x8xbf16, #tpu.memory_space<vmem>>, vector<1x1x32x8xbf16>
    %814 = vector.shape_cast %813 : vector<1x1x32x8xbf16> to vector<32x8xbf16>
    %cst_588 = arith.constant dense<0.000000e+00> : vector<16x8xf32>
    %815 = tpu.matmul %718, %814, %cst_588 {dimension_numbers = #tpu.dot_dimension_numbers<[1], [0], [0], [1], [0, 0, 1, 1], [], []>} : vector<16x32xbf16>, vector<32x8xbf16>, vector<16x8xf32> -> vector<16x8xf32>
    %c0_589 = arith.constant 0 : index
    %c10_590 = arith.constant 10 : index
    %c0_591 = arith.constant 0 : index
    %c0_592 = arith.constant 0 : index
    %816 = vector.load %arg26[%c0_589, %c10_590, %c0_591, %c0_592] : memref<2x12x1x8xf32, #tpu.memory_space<vmem>>, vector<1x1x1x8xf32>
    %817 = vector.shape_cast %816 : vector<1x1x1x8xf32> to vector<1x8xf32>
    %818 = vector.broadcast %817 : vector<1x8xf32> to vector<16x8xf32>
    %819 = arith.addf %815, %818 : vector<16x8xf32>
    %820 = arith.truncf %805 : vector<16x8xf32> to vector<16x8xbf16>
    %821 = arith.truncf %812 : vector<16x8xf32> to vector<16x8xbf16>
    %cst_593 = arith.constant dense<0.000000e+00> : vector<16x16xf32>
    %822 = tpu.matmul %820, %821, %cst_593 {dimension_numbers = #tpu.dot_dimension_numbers<[1], [1], [0], [0], [0, 0, 1, 0], [], []>} : vector<16x8xbf16>, vector<16x8xbf16>, vector<16x16xf32> -> vector<16x16xf32>
    %cst_594 = arith.constant 0.353553385 : f32
    %823 = vector.broadcast %cst_594 : f32 to vector<16x16xf32>
    %824 = arith.mulf %822, %823 : vector<16x16xf32>
    %825 = arith.addf %824, %4 : vector<16x16xf32>
    %cst_595 = arith.constant dense<0xFF800000> : vector<16xf32>
    %826 = vector.multi_reduction <maximumf>, %825, %cst_595 [1] : vector<16x16xf32> to vector<16xf32>
    %827 = vector.shape_cast %826 : vector<16xf32> to vector<16x1xf32>
    %828 = vector.broadcast %827 : vector<16x1xf32> to vector<16x16xf32>
    %829 = arith.subf %825, %828 : vector<16x16xf32>
    %830 = math.exp %829 : vector<16x16xf32>
    %831 = arith.truncf %830 : vector<16x16xf32> to vector<16x16xbf16>
    %832 = arith.truncf %819 : vector<16x8xf32> to vector<16x8xbf16>
    %cst_596 = arith.constant dense<0.000000e+00> : vector<16x8xf32>
    %833 = tpu.matmul %831, %832, %cst_596 {dimension_numbers = #tpu.dot_dimension_numbers<[1], [0], [0], [1], [0, 0, 1, 1], [], []>} : vector<16x16xbf16>, vector<16x8xbf16>, vector<16x8xf32> -> vector<16x8xf32>
    %cst_597 = arith.constant dense<0.000000e+00> : vector<16xf32>
    %834 = vector.multi_reduction <add>, %830, %cst_597 [1] : vector<16x16xf32> to vector<16xf32>
    %835 = vector.shape_cast %834 : vector<16xf32> to vector<16x1xf32>
    %836 = tpu.reciprocal %835 : vector<16x1xf32> -> vector<16x1xf32>
    %837 = vector.broadcast %836 : vector<16x1xf32> to vector<16x8xf32>
    %838 = arith.mulf %833, %837 : vector<16x8xf32>
    %c0_598 = arith.constant 0 : index
    %c3_599 = arith.constant 3 : index
    %c0_600 = arith.constant 0 : index
    %c0_601 = arith.constant 0 : index
    %839 = vector.load %arg25[%c0_598, %c3_599, %c0_600, %c0_601] : memref<2x12x32x8xbf16, #tpu.memory_space<vmem>>, vector<1x1x32x8xbf16>
    %840 = vector.shape_cast %839 : vector<1x1x32x8xbf16> to vector<32x8xbf16>
    %cst_602 = arith.constant dense<0.000000e+00> : vector<16x8xf32>
    %841 = tpu.matmul %717, %840, %cst_602 {dimension_numbers = #tpu.dot_dimension_numbers<[1], [0], [0], [1], [0, 0, 1, 1], [], []>} : vector<16x32xbf16>, vector<32x8xbf16>, vector<16x8xf32> -> vector<16x8xf32>
    %c0_603 = arith.constant 0 : index
    %c3_604 = arith.constant 3 : index
    %c0_605 = arith.constant 0 : index
    %c0_606 = arith.constant 0 : index
    %842 = vector.load %arg26[%c0_603, %c3_604, %c0_605, %c0_606] : memref<2x12x1x8xf32, #tpu.memory_space<vmem>>, vector<1x1x1x8xf32>
    %843 = vector.shape_cast %842 : vector<1x1x1x8xf32> to vector<1x8xf32>
    %844 = vector.broadcast %843 : vector<1x8xf32> to vector<16x8xf32>
    %845 = arith.addf %841, %844 : vector<16x8xf32>
    %c0_607 = arith.constant 0 : index
    %c7_608 = arith.constant 7 : index
    %c0_609 = arith.constant 0 : index
    %c0_610 = arith.constant 0 : index
    %846 = vector.load %arg25[%c0_607, %c7_608, %c0_609, %c0_610] : memref<2x12x32x8xbf16, #tpu.memory_space<vmem>>, vector<1x1x32x8xbf16>
    %847 = vector.shape_cast %846 : vector<1x1x32x8xbf16> to vector<32x8xbf16>
    %cst_611 = arith.constant dense<0.000000e+00> : vector<16x8xf32>
    %848 = tpu.matmul %718, %847, %cst_611 {dimension_numbers = #tpu.dot_dimension_numbers<[1], [0], [0], [1], [0, 0, 1, 1], [], []>} : vector<16x32xbf16>, vector<32x8xbf16>, vector<16x8xf32> -> vector<16x8xf32>
    %c0_612 = arith.constant 0 : index
    %c7_613 = arith.constant 7 : index
    %c0_614 = arith.constant 0 : index
    %c0_615 = arith.constant 0 : index
    %849 = vector.load %arg26[%c0_612, %c7_613, %c0_614, %c0_615] : memref<2x12x1x8xf32, #tpu.memory_space<vmem>>, vector<1x1x1x8xf32>
    %850 = vector.shape_cast %849 : vector<1x1x1x8xf32> to vector<1x8xf32>
    %851 = vector.broadcast %850 : vector<1x8xf32> to vector<16x8xf32>
    %852 = arith.addf %848, %851 : vector<16x8xf32>
    %c0_616 = arith.constant 0 : index
    %c11_617 = arith.constant 11 : index
    %c0_618 = arith.constant 0 : index
    %c0_619 = arith.constant 0 : index
    %853 = vector.load %arg25[%c0_616, %c11_617, %c0_618, %c0_619] : memref<2x12x32x8xbf16, #tpu.memory_space<vmem>>, vector<1x1x32x8xbf16>
    %854 = vector.shape_cast %853 : vector<1x1x32x8xbf16> to vector<32x8xbf16>
    %cst_620 = arith.constant dense<0.000000e+00> : vector<16x8xf32>
    %855 = tpu.matmul %718, %854, %cst_620 {dimension_numbers = #tpu.dot_dimension_numbers<[1], [0], [0], [1], [0, 0, 1, 1], [], []>} : vector<16x32xbf16>, vector<32x8xbf16>, vector<16x8xf32> -> vector<16x8xf32>
    %c0_621 = arith.constant 0 : index
    %c11_622 = arith.constant 11 : index
    %c0_623 = arith.constant 0 : index
    %c0_624 = arith.constant 0 : index
    %856 = vector.load %arg26[%c0_621, %c11_622, %c0_623, %c0_624] : memref<2x12x1x8xf32, #tpu.memory_space<vmem>>, vector<1x1x1x8xf32>
    %857 = vector.shape_cast %856 : vector<1x1x1x8xf32> to vector<1x8xf32>
    %858 = vector.broadcast %857 : vector<1x8xf32> to vector<16x8xf32>
    %859 = arith.addf %855, %858 : vector<16x8xf32>
    %860 = arith.truncf %845 : vector<16x8xf32> to vector<16x8xbf16>
    %861 = arith.truncf %852 : vector<16x8xf32> to vector<16x8xbf16>
    %cst_625 = arith.constant dense<0.000000e+00> : vector<16x16xf32>
    %862 = tpu.matmul %860, %861, %cst_625 {dimension_numbers = #tpu.dot_dimension_numbers<[1], [1], [0], [0], [0, 0, 1, 0], [], []>} : vector<16x8xbf16>, vector<16x8xbf16>, vector<16x16xf32> -> vector<16x16xf32>
    %cst_626 = arith.constant 0.353553385 : f32
    %863 = vector.broadcast %cst_626 : f32 to vector<16x16xf32>
    %864 = arith.mulf %862, %863 : vector<16x16xf32>
    %865 = arith.addf %864, %4 : vector<16x16xf32>
    %cst_627 = arith.constant dense<0xFF800000> : vector<16xf32>
    %866 = vector.multi_reduction <maximumf>, %865, %cst_627 [1] : vector<16x16xf32> to vector<16xf32>
    %867 = vector.shape_cast %866 : vector<16xf32> to vector<16x1xf32>
    %868 = vector.broadcast %867 : vector<16x1xf32> to vector<16x16xf32>
    %869 = arith.subf %865, %868 : vector<16x16xf32>
    %870 = math.exp %869 : vector<16x16xf32>
    %871 = arith.truncf %870 : vector<16x16xf32> to vector<16x16xbf16>
    %872 = arith.truncf %859 : vector<16x8xf32> to vector<16x8xbf16>
    %cst_628 = arith.constant dense<0.000000e+00> : vector<16x8xf32>
    %873 = tpu.matmul %871, %872, %cst_628 {dimension_numbers = #tpu.dot_dimension_numbers<[1], [0], [0], [1], [0, 0, 1, 1], [], []>} : vector<16x16xbf16>, vector<16x8xbf16>, vector<16x8xf32> -> vector<16x8xf32>
    %cst_629 = arith.constant dense<0.000000e+00> : vector<16xf32>
    %874 = vector.multi_reduction <add>, %870, %cst_629 [1] : vector<16x16xf32> to vector<16xf32>
    %875 = vector.shape_cast %874 : vector<16xf32> to vector<16x1xf32>
    %876 = tpu.reciprocal %875 : vector<16x1xf32> -> vector<16x1xf32>
    %877 = vector.broadcast %876 : vector<16x1xf32> to vector<16x8xf32>
    %878 = arith.mulf %873, %877 : vector<16x8xf32>
    %879 = tpu.concatenate %758, %798, %838, %878 in 1 : vector<16x8xf32>, vector<16x8xf32>, vector<16x8xf32>, vector<16x8xf32> -> vector<16x32xf32>
    %880 = arith.truncf %879 : vector<16x32xf32> to vector<16x32xbf16>
    %cst_630 = arith.constant dense<0.000000e+00> : vector<16x32xf32>
    %881 = tpu.matmul %880, %714, %cst_630 {dimension_numbers = #tpu.dot_dimension_numbers<[1], [0], [0], [1], [0, 0, 1, 1], [], []>} : vector<16x32xbf16>, vector<32x32xbf16>, vector<16x32xf32> -> vector<16x32xf32>
    %882 = vector.broadcast %716 : vector<1x32xf32> to vector<16x32xf32>
    %883 = arith.addf %881, %882 : vector<16x32xf32>
    %884 = arith.addf %712, %883 : vector<16x32xf32>
    %c0_631 = arith.constant 0 : index
    %c0_632 = arith.constant 0 : index
    %c0_633 = arith.constant 0 : index
    %885 = vector.load %arg29[%c0_631, %c0_632, %c0_633] : memref<2x1x32xf32, #tpu.memory_space<vmem>>, vector<1x1x32xf32>
    %886 = vector.shape_cast %885 : vector<1x1x32xf32> to vector<1x32xf32>
    %c0_634 = arith.constant 0 : index
    %c0_635 = arith.constant 0 : index
    %c0_636 = arith.constant 0 : index
    %887 = vector.load %arg30[%c0_634, %c0_635, %c0_636] : memref<2x1x32xf32, #tpu.memory_space<vmem>>, vector<1x1x32xf32>
    %888 = vector.shape_cast %887 : vector<1x1x32xf32> to vector<1x32xf32>
    %cst_637 = arith.constant dense<0.000000e+00> : vector<16xf32>
    %889 = vector.multi_reduction <add>, %884, %cst_637 [1] : vector<16x32xf32> to vector<16xf32>
    %890 = vector.shape_cast %889 : vector<16xf32> to vector<16x1xf32>
    %cst_638 = arith.constant 3.200000e+01 : f32
    %891 = vector.broadcast %cst_638 : f32 to vector<16x1xf32>
    %892 = arith.divf %890, %891 : vector<16x1xf32>
    %893 = vector.broadcast %892 : vector<16x1xf32> to vector<16x32xf32>
    %894 = arith.subf %884, %893 : vector<16x32xf32>
    %895 = arith.mulf %894, %894 : vector<16x32xf32>
    %cst_639 = arith.constant dense<0.000000e+00> : vector<16xf32>
    %896 = vector.multi_reduction <add>, %895, %cst_639 [1] : vector<16x32xf32> to vector<16xf32>
    %897 = vector.shape_cast %896 : vector<16xf32> to vector<16x1xf32>
    %cst_640 = arith.constant 3.200000e+01 : f32
    %898 = vector.broadcast %cst_640 : f32 to vector<16x1xf32>
    %899 = arith.divf %897, %898 : vector<16x1xf32>
    %900 = vector.broadcast %892 : vector<16x1xf32> to vector<16x32xf32>
    %901 = arith.subf %884, %900 : vector<16x32xf32>
    %cst_641 = arith.constant 9.99999974E-6 : f32
    %902 = vector.broadcast %cst_641 : f32 to vector<16x1xf32>
    %903 = arith.addf %899, %902 : vector<16x1xf32>
    %904 = math.rsqrt %903 : vector<16x1xf32>
    %905 = vector.broadcast %904 : vector<16x1xf32> to vector<16x32xf32>
    %906 = arith.mulf %901, %905 : vector<16x32xf32>
    %907 = vector.broadcast %886 : vector<1x32xf32> to vector<16x32xf32>
    %908 = arith.mulf %906, %907 : vector<16x32xf32>
    %909 = vector.broadcast %888 : vector<1x32xf32> to vector<16x32xf32>
    %910 = arith.addf %908, %909 : vector<16x32xf32>
    %c0_642 = arith.constant 0 : index
    %c0_643 = arith.constant 0 : index
    %c0_644 = arith.constant 0 : index
    %911 = vector.load %arg31[%c0_642, %c0_643, %c0_644] : memref<2x32x64xbf16, #tpu.memory_space<vmem>>, vector<1x32x64xbf16>
    %912 = vector.shape_cast %911 : vector<1x32x64xbf16> to vector<32x64xbf16>
    %913 = arith.truncf %910 : vector<16x32xf32> to vector<16x32xbf16>
    %cst_645 = arith.constant dense<0.000000e+00> : vector<16x64xf32>
    %914 = tpu.matmul %913, %912, %cst_645 {dimension_numbers = #tpu.dot_dimension_numbers<[1], [0], [0], [1], [0, 0, 1, 1], [], []>} : vector<16x32xbf16>, vector<32x64xbf16>, vector<16x64xf32> -> vector<16x64xf32>
    %c0_646 = arith.constant 0 : index
    %c0_647 = arith.constant 0 : index
    %c0_648 = arith.constant 0 : index
    %915 = vector.load %arg32[%c0_646, %c0_647, %c0_648] : memref<2x1x64xf32, #tpu.memory_space<vmem>>, vector<1x1x64xf32>
    %916 = vector.shape_cast %915 : vector<1x1x64xf32> to vector<1x64xf32>
    %917 = vector.broadcast %916 : vector<1x64xf32> to vector<16x64xf32>
    %918 = arith.addf %914, %917 : vector<16x64xf32>
    %cst_649 = arith.constant 0.000000e+00 : f32
    %919 = vector.broadcast %cst_649 : f32 to vector<16x64xf32>
    %920 = arith.maximumf %918, %919 : vector<16x64xf32>
    %c0_650 = arith.constant 0 : index
    %c0_651 = arith.constant 0 : index
    %c0_652 = arith.constant 0 : index
    %921 = vector.load %arg33[%c0_650, %c0_651, %c0_652] : memref<2x64x32xbf16, #tpu.memory_space<vmem>>, vector<1x64x32xbf16>
    %922 = vector.shape_cast %921 : vector<1x64x32xbf16> to vector<64x32xbf16>
    %923 = arith.truncf %920 : vector<16x64xf32> to vector<16x64xbf16>
    %cst_653 = arith.constant dense<0.000000e+00> : vector<16x32xf32>
    %924 = tpu.matmul %923, %922, %cst_653 {dimension_numbers = #tpu.dot_dimension_numbers<[1], [0], [0], [1], [0, 0, 1, 1], [], []>} : vector<16x64xbf16>, vector<64x32xbf16>, vector<16x32xf32> -> vector<16x32xf32>
    %c0_654 = arith.constant 0 : index
    %c0_655 = arith.constant 0 : index
    %c0_656 = arith.constant 0 : index
    %925 = vector.load %arg34[%c0_654, %c0_655, %c0_656] : memref<2x1x32xf32, #tpu.memory_space<vmem>>, vector<1x1x32xf32>
    %926 = vector.shape_cast %925 : vector<1x1x32xf32> to vector<1x32xf32>
    %927 = vector.broadcast %926 : vector<1x32xf32> to vector<16x32xf32>
    %928 = arith.addf %924, %927 : vector<16x32xf32>
    %929 = arith.addf %910, %928 : vector<16x32xf32>
    %c0_657 = arith.constant 0 : index
    %c0_658 = arith.constant 0 : index
    %c0_659 = arith.constant 0 : index
    %930 = vector.load %arg35[%c0_657, %c0_658, %c0_659] : memref<2x1x32xf32, #tpu.memory_space<vmem>>, vector<1x1x32xf32>
    %931 = vector.shape_cast %930 : vector<1x1x32xf32> to vector<1x32xf32>
    %c0_660 = arith.constant 0 : index
    %c0_661 = arith.constant 0 : index
    %c0_662 = arith.constant 0 : index
    %932 = vector.load %arg36[%c0_660, %c0_661, %c0_662] : memref<2x1x32xf32, #tpu.memory_space<vmem>>, vector<1x1x32xf32>
    %933 = vector.shape_cast %932 : vector<1x1x32xf32> to vector<1x32xf32>
    %cst_663 = arith.constant dense<0.000000e+00> : vector<16xf32>
    %934 = vector.multi_reduction <add>, %929, %cst_663 [1] : vector<16x32xf32> to vector<16xf32>
    %935 = vector.shape_cast %934 : vector<16xf32> to vector<16x1xf32>
    %cst_664 = arith.constant 3.200000e+01 : f32
    %936 = vector.broadcast %cst_664 : f32 to vector<16x1xf32>
    %937 = arith.divf %935, %936 : vector<16x1xf32>
    %938 = vector.broadcast %937 : vector<16x1xf32> to vector<16x32xf32>
    %939 = arith.subf %929, %938 : vector<16x32xf32>
    %940 = arith.mulf %939, %939 : vector<16x32xf32>
    %cst_665 = arith.constant dense<0.000000e+00> : vector<16xf32>
    %941 = vector.multi_reduction <add>, %940, %cst_665 [1] : vector<16x32xf32> to vector<16xf32>
    %942 = vector.shape_cast %941 : vector<16xf32> to vector<16x1xf32>
    %cst_666 = arith.constant 3.200000e+01 : f32
    %943 = vector.broadcast %cst_666 : f32 to vector<16x1xf32>
    %944 = arith.divf %942, %943 : vector<16x1xf32>
    %945 = vector.broadcast %937 : vector<16x1xf32> to vector<16x32xf32>
    %946 = arith.subf %929, %945 : vector<16x32xf32>
    %cst_667 = arith.constant 9.99999974E-6 : f32
    %947 = vector.broadcast %cst_667 : f32 to vector<16x1xf32>
    %948 = arith.addf %944, %947 : vector<16x1xf32>
    %949 = math.rsqrt %948 : vector<16x1xf32>
    %950 = vector.broadcast %949 : vector<16x1xf32> to vector<16x32xf32>
    %951 = arith.mulf %946, %950 : vector<16x32xf32>
    %952 = vector.broadcast %931 : vector<1x32xf32> to vector<16x32xf32>
    %953 = arith.mulf %951, %952 : vector<16x32xf32>
    %954 = vector.broadcast %933 : vector<1x32xf32> to vector<16x32xf32>
    %955 = arith.addf %953, %954 : vector<16x32xf32>
    %c1_668 = arith.constant 1 : index
    %c0_669 = arith.constant 0 : index
    %c0_670 = arith.constant 0 : index
    %956 = vector.load %arg21[%c1_668, %c0_669, %c0_670] : memref<2x32x32xbf16, #tpu.memory_space<vmem>>, vector<1x32x32xbf16>
    %957 = vector.shape_cast %956 : vector<1x32x32xbf16> to vector<32x32xbf16>
    %c1_671 = arith.constant 1 : index
    %c0_672 = arith.constant 0 : index
    %c0_673 = arith.constant 0 : index
    %958 = vector.load %arg22[%c1_671, %c0_672, %c0_673] : memref<2x1x32xf32, #tpu.memory_space<vmem>>, vector<1x1x32xf32>
    %959 = vector.shape_cast %958 : vector<1x1x32xf32> to vector<1x32xf32>
    %960 = arith.truncf %955 : vector<16x32xf32> to vector<16x32xbf16>
    %961 = arith.truncf %955 : vector<16x32xf32> to vector<16x32xbf16>
    %c1_674 = arith.constant 1 : index
    %c0_675 = arith.constant 0 : index
    %c0_676 = arith.constant 0 : index
    %c0_677 = arith.constant 0 : index
    %962 = vector.load %arg19[%c1_674, %c0_675, %c0_676, %c0_677] : memref<2x12x32x8xbf16, #tpu.memory_space<vmem>>, vector<1x1x32x8xbf16>
    %963 = vector.shape_cast %962 : vector<1x1x32x8xbf16> to vector<32x8xbf16>
    %cst_678 = arith.constant dense<0.000000e+00> : vector<16x8xf32>
    %964 = tpu.matmul %960, %963, %cst_678 {dimension_numbers = #tpu.dot_dimension_numbers<[1], [0], [0], [1], [0, 0, 1, 1], [], []>} : vector<16x32xbf16>, vector<32x8xbf16>, vector<16x8xf32> -> vector<16x8xf32>
    %c1_679 = arith.constant 1 : index
    %c0_680 = arith.constant 0 : index
    %c0_681 = arith.constant 0 : index
    %c0_682 = arith.constant 0 : index
    %965 = vector.load %arg20[%c1_679, %c0_680, %c0_681, %c0_682] : memref<2x12x1x8xf32, #tpu.memory_space<vmem>>, vector<1x1x1x8xf32>
    %966 = vector.shape_cast %965 : vector<1x1x1x8xf32> to vector<1x8xf32>
    %967 = vector.broadcast %966 : vector<1x8xf32> to vector<16x8xf32>
    %968 = arith.addf %964, %967 : vector<16x8xf32>
    %c1_683 = arith.constant 1 : index
    %c4_684 = arith.constant 4 : index
    %c0_685 = arith.constant 0 : index
    %c0_686 = arith.constant 0 : index
    %969 = vector.load %arg19[%c1_683, %c4_684, %c0_685, %c0_686] : memref<2x12x32x8xbf16, #tpu.memory_space<vmem>>, vector<1x1x32x8xbf16>
    %970 = vector.shape_cast %969 : vector<1x1x32x8xbf16> to vector<32x8xbf16>
    %cst_687 = arith.constant dense<0.000000e+00> : vector<16x8xf32>
    %971 = tpu.matmul %961, %970, %cst_687 {dimension_numbers = #tpu.dot_dimension_numbers<[1], [0], [0], [1], [0, 0, 1, 1], [], []>} : vector<16x32xbf16>, vector<32x8xbf16>, vector<16x8xf32> -> vector<16x8xf32>
    %c1_688 = arith.constant 1 : index
    %c4_689 = arith.constant 4 : index
    %c0_690 = arith.constant 0 : index
    %c0_691 = arith.constant 0 : index
    %972 = vector.load %arg20[%c1_688, %c4_689, %c0_690, %c0_691] : memref<2x12x1x8xf32, #tpu.memory_space<vmem>>, vector<1x1x1x8xf32>
    %973 = vector.shape_cast %972 : vector<1x1x1x8xf32> to vector<1x8xf32>
    %974 = vector.broadcast %973 : vector<1x8xf32> to vector<16x8xf32>
    %975 = arith.addf %971, %974 : vector<16x8xf32>
    %c1_692 = arith.constant 1 : index
    %c8_693 = arith.constant 8 : index
    %c0_694 = arith.constant 0 : index
    %c0_695 = arith.constant 0 : index
    %976 = vector.load %arg19[%c1_692, %c8_693, %c0_694, %c0_695] : memref<2x12x32x8xbf16, #tpu.memory_space<vmem>>, vector<1x1x32x8xbf16>
    %977 = vector.shape_cast %976 : vector<1x1x32x8xbf16> to vector<32x8xbf16>
    %cst_696 = arith.constant dense<0.000000e+00> : vector<16x8xf32>
    %978 = tpu.matmul %961, %977, %cst_696 {dimension_numbers = #tpu.dot_dimension_numbers<[1], [0], [0], [1], [0, 0, 1, 1], [], []>} : vector<16x32xbf16>, vector<32x8xbf16>, vector<16x8xf32> -> vector<16x8xf32>
    %c1_697 = arith.constant 1 : index
    %c8_698 = arith.constant 8 : index
    %c0_699 = arith.constant 0 : index
    %c0_700 = arith.constant 0 : index
    %979 = vector.load %arg20[%c1_697, %c8_698, %c0_699, %c0_700] : memref<2x12x1x8xf32, #tpu.memory_space<vmem>>, vector<1x1x1x8xf32>
    %980 = vector.shape_cast %979 : vector<1x1x1x8xf32> to vector<1x8xf32>
    %981 = vector.broadcast %980 : vector<1x8xf32> to vector<16x8xf32>
    %982 = arith.addf %978, %981 : vector<16x8xf32>
    %983 = arith.truncf %968 : vector<16x8xf32> to vector<16x8xbf16>
    %984 = arith.truncf %975 : vector<16x8xf32> to vector<16x8xbf16>
    %cst_701 = arith.constant dense<0.000000e+00> : vector<16x16xf32>
    %985 = tpu.matmul %983, %984, %cst_701 {dimension_numbers = #tpu.dot_dimension_numbers<[1], [1], [0], [0], [0, 0, 1, 0], [], []>} : vector<16x8xbf16>, vector<16x8xbf16>, vector<16x16xf32> -> vector<16x16xf32>
    %cst_702 = arith.constant 0.353553385 : f32
    %986 = vector.broadcast %cst_702 : f32 to vector<16x16xf32>
    %987 = arith.mulf %985, %986 : vector<16x16xf32>
    %988 = arith.addf %987, %3 : vector<16x16xf32>
    %cst_703 = arith.constant dense<0xFF800000> : vector<16xf32>
    %989 = vector.multi_reduction <maximumf>, %988, %cst_703 [1] : vector<16x16xf32> to vector<16xf32>
    %990 = vector.shape_cast %989 : vector<16xf32> to vector<16x1xf32>
    %991 = vector.broadcast %990 : vector<16x1xf32> to vector<16x16xf32>
    %992 = arith.subf %988, %991 : vector<16x16xf32>
    %993 = math.exp %992 : vector<16x16xf32>
    %994 = arith.truncf %993 : vector<16x16xf32> to vector<16x16xbf16>
    %995 = arith.truncf %982 : vector<16x8xf32> to vector<16x8xbf16>
    %cst_704 = arith.constant dense<0.000000e+00> : vector<16x8xf32>
    %996 = tpu.matmul %994, %995, %cst_704 {dimension_numbers = #tpu.dot_dimension_numbers<[1], [0], [0], [1], [0, 0, 1, 1], [], []>} : vector<16x16xbf16>, vector<16x8xbf16>, vector<16x8xf32> -> vector<16x8xf32>
    %cst_705 = arith.constant dense<0.000000e+00> : vector<16xf32>
    %997 = vector.multi_reduction <add>, %993, %cst_705 [1] : vector<16x16xf32> to vector<16xf32>
    %998 = vector.shape_cast %997 : vector<16xf32> to vector<16x1xf32>
    %999 = tpu.reciprocal %998 : vector<16x1xf32> -> vector<16x1xf32>
    %1000 = vector.broadcast %999 : vector<16x1xf32> to vector<16x8xf32>
    %1001 = arith.mulf %996, %1000 : vector<16x8xf32>
    %c1_706 = arith.constant 1 : index
    %c1_707 = arith.constant 1 : index
    %c0_708 = arith.constant 0 : index
    %c0_709 = arith.constant 0 : index
    %1002 = vector.load %arg19[%c1_706, %c1_707, %c0_708, %c0_709] : memref<2x12x32x8xbf16, #tpu.memory_space<vmem>>, vector<1x1x32x8xbf16>
    %1003 = vector.shape_cast %1002 : vector<1x1x32x8xbf16> to vector<32x8xbf16>
    %cst_710 = arith.constant dense<0.000000e+00> : vector<16x8xf32>
    %1004 = tpu.matmul %960, %1003, %cst_710 {dimension_numbers = #tpu.dot_dimension_numbers<[1], [0], [0], [1], [0, 0, 1, 1], [], []>} : vector<16x32xbf16>, vector<32x8xbf16>, vector<16x8xf32> -> vector<16x8xf32>
    %c1_711 = arith.constant 1 : index
    %c1_712 = arith.constant 1 : index
    %c0_713 = arith.constant 0 : index
    %c0_714 = arith.constant 0 : index
    %1005 = vector.load %arg20[%c1_711, %c1_712, %c0_713, %c0_714] : memref<2x12x1x8xf32, #tpu.memory_space<vmem>>, vector<1x1x1x8xf32>
    %1006 = vector.shape_cast %1005 : vector<1x1x1x8xf32> to vector<1x8xf32>
    %1007 = vector.broadcast %1006 : vector<1x8xf32> to vector<16x8xf32>
    %1008 = arith.addf %1004, %1007 : vector<16x8xf32>
    %c1_715 = arith.constant 1 : index
    %c5_716 = arith.constant 5 : index
    %c0_717 = arith.constant 0 : index
    %c0_718 = arith.constant 0 : index
    %1009 = vector.load %arg19[%c1_715, %c5_716, %c0_717, %c0_718] : memref<2x12x32x8xbf16, #tpu.memory_space<vmem>>, vector<1x1x32x8xbf16>
    %1010 = vector.shape_cast %1009 : vector<1x1x32x8xbf16> to vector<32x8xbf16>
    %cst_719 = arith.constant dense<0.000000e+00> : vector<16x8xf32>
    %1011 = tpu.matmul %961, %1010, %cst_719 {dimension_numbers = #tpu.dot_dimension_numbers<[1], [0], [0], [1], [0, 0, 1, 1], [], []>} : vector<16x32xbf16>, vector<32x8xbf16>, vector<16x8xf32> -> vector<16x8xf32>
    %c1_720 = arith.constant 1 : index
    %c5_721 = arith.constant 5 : index
    %c0_722 = arith.constant 0 : index
    %c0_723 = arith.constant 0 : index
    %1012 = vector.load %arg20[%c1_720, %c5_721, %c0_722, %c0_723] : memref<2x12x1x8xf32, #tpu.memory_space<vmem>>, vector<1x1x1x8xf32>
    %1013 = vector.shape_cast %1012 : vector<1x1x1x8xf32> to vector<1x8xf32>
    %1014 = vector.broadcast %1013 : vector<1x8xf32> to vector<16x8xf32>
    %1015 = arith.addf %1011, %1014 : vector<16x8xf32>
    %c1_724 = arith.constant 1 : index
    %c9_725 = arith.constant 9 : index
    %c0_726 = arith.constant 0 : index
    %c0_727 = arith.constant 0 : index
    %1016 = vector.load %arg19[%c1_724, %c9_725, %c0_726, %c0_727] : memref<2x12x32x8xbf16, #tpu.memory_space<vmem>>, vector<1x1x32x8xbf16>
    %1017 = vector.shape_cast %1016 : vector<1x1x32x8xbf16> to vector<32x8xbf16>
    %cst_728 = arith.constant dense<0.000000e+00> : vector<16x8xf32>
    %1018 = tpu.matmul %961, %1017, %cst_728 {dimension_numbers = #tpu.dot_dimension_numbers<[1], [0], [0], [1], [0, 0, 1, 1], [], []>} : vector<16x32xbf16>, vector<32x8xbf16>, vector<16x8xf32> -> vector<16x8xf32>
    %c1_729 = arith.constant 1 : index
    %c9_730 = arith.constant 9 : index
    %c0_731 = arith.constant 0 : index
    %c0_732 = arith.constant 0 : index
    %1019 = vector.load %arg20[%c1_729, %c9_730, %c0_731, %c0_732] : memref<2x12x1x8xf32, #tpu.memory_space<vmem>>, vector<1x1x1x8xf32>
    %1020 = vector.shape_cast %1019 : vector<1x1x1x8xf32> to vector<1x8xf32>
    %1021 = vector.broadcast %1020 : vector<1x8xf32> to vector<16x8xf32>
    %1022 = arith.addf %1018, %1021 : vector<16x8xf32>
    %1023 = arith.truncf %1008 : vector<16x8xf32> to vector<16x8xbf16>
    %1024 = arith.truncf %1015 : vector<16x8xf32> to vector<16x8xbf16>
    %cst_733 = arith.constant dense<0.000000e+00> : vector<16x16xf32>
    %1025 = tpu.matmul %1023, %1024, %cst_733 {dimension_numbers = #tpu.dot_dimension_numbers<[1], [1], [0], [0], [0, 0, 1, 0], [], []>} : vector<16x8xbf16>, vector<16x8xbf16>, vector<16x16xf32> -> vector<16x16xf32>
    %cst_734 = arith.constant 0.353553385 : f32
    %1026 = vector.broadcast %cst_734 : f32 to vector<16x16xf32>
    %1027 = arith.mulf %1025, %1026 : vector<16x16xf32>
    %1028 = arith.addf %1027, %3 : vector<16x16xf32>
    %cst_735 = arith.constant dense<0xFF800000> : vector<16xf32>
    %1029 = vector.multi_reduction <maximumf>, %1028, %cst_735 [1] : vector<16x16xf32> to vector<16xf32>
    %1030 = vector.shape_cast %1029 : vector<16xf32> to vector<16x1xf32>
    %1031 = vector.broadcast %1030 : vector<16x1xf32> to vector<16x16xf32>
    %1032 = arith.subf %1028, %1031 : vector<16x16xf32>
    %1033 = math.exp %1032 : vector<16x16xf32>
    %1034 = arith.truncf %1033 : vector<16x16xf32> to vector<16x16xbf16>
    %1035 = arith.truncf %1022 : vector<16x8xf32> to vector<16x8xbf16>
    %cst_736 = arith.constant dense<0.000000e+00> : vector<16x8xf32>
    %1036 = tpu.matmul %1034, %1035, %cst_736 {dimension_numbers = #tpu.dot_dimension_numbers<[1], [0], [0], [1], [0, 0, 1, 1], [], []>} : vector<16x16xbf16>, vector<16x8xbf16>, vector<16x8xf32> -> vector<16x8xf32>
    %cst_737 = arith.constant dense<0.000000e+00> : vector<16xf32>
    %1037 = vector.multi_reduction <add>, %1033, %cst_737 [1] : vector<16x16xf32> to vector<16xf32>
    %1038 = vector.shape_cast %1037 : vector<16xf32> to vector<16x1xf32>
    %1039 = tpu.reciprocal %1038 : vector<16x1xf32> -> vector<16x1xf32>
    %1040 = vector.broadcast %1039 : vector<16x1xf32> to vector<16x8xf32>
    %1041 = arith.mulf %1036, %1040 : vector<16x8xf32>
    %c1_738 = arith.constant 1 : index
    %c2_739 = arith.constant 2 : index
    %c0_740 = arith.constant 0 : index
    %c0_741 = arith.constant 0 : index
    %1042 = vector.load %arg19[%c1_738, %c2_739, %c0_740, %c0_741] : memref<2x12x32x8xbf16, #tpu.memory_space<vmem>>, vector<1x1x32x8xbf16>
    %1043 = vector.shape_cast %1042 : vector<1x1x32x8xbf16> to vector<32x8xbf16>
    %cst_742 = arith.constant dense<0.000000e+00> : vector<16x8xf32>
    %1044 = tpu.matmul %960, %1043, %cst_742 {dimension_numbers = #tpu.dot_dimension_numbers<[1], [0], [0], [1], [0, 0, 1, 1], [], []>} : vector<16x32xbf16>, vector<32x8xbf16>, vector<16x8xf32> -> vector<16x8xf32>
    %c1_743 = arith.constant 1 : index
    %c2_744 = arith.constant 2 : index
    %c0_745 = arith.constant 0 : index
    %c0_746 = arith.constant 0 : index
    %1045 = vector.load %arg20[%c1_743, %c2_744, %c0_745, %c0_746] : memref<2x12x1x8xf32, #tpu.memory_space<vmem>>, vector<1x1x1x8xf32>
    %1046 = vector.shape_cast %1045 : vector<1x1x1x8xf32> to vector<1x8xf32>
    %1047 = vector.broadcast %1046 : vector<1x8xf32> to vector<16x8xf32>
    %1048 = arith.addf %1044, %1047 : vector<16x8xf32>
    %c1_747 = arith.constant 1 : index
    %c6_748 = arith.constant 6 : index
    %c0_749 = arith.constant 0 : index
    %c0_750 = arith.constant 0 : index
    %1049 = vector.load %arg19[%c1_747, %c6_748, %c0_749, %c0_750] : memref<2x12x32x8xbf16, #tpu.memory_space<vmem>>, vector<1x1x32x8xbf16>
    %1050 = vector.shape_cast %1049 : vector<1x1x32x8xbf16> to vector<32x8xbf16>
    %cst_751 = arith.constant dense<0.000000e+00> : vector<16x8xf32>
    %1051 = tpu.matmul %961, %1050, %cst_751 {dimension_numbers = #tpu.dot_dimension_numbers<[1], [0], [0], [1], [0, 0, 1, 1], [], []>} : vector<16x32xbf16>, vector<32x8xbf16>, vector<16x8xf32> -> vector<16x8xf32>
    %c1_752 = arith.constant 1 : index
    %c6_753 = arith.constant 6 : index
    %c0_754 = arith.constant 0 : index
    %c0_755 = arith.constant 0 : index
    %1052 = vector.load %arg20[%c1_752, %c6_753, %c0_754, %c0_755] : memref<2x12x1x8xf32, #tpu.memory_space<vmem>>, vector<1x1x1x8xf32>
    %1053 = vector.shape_cast %1052 : vector<1x1x1x8xf32> to vector<1x8xf32>
    %1054 = vector.broadcast %1053 : vector<1x8xf32> to vector<16x8xf32>
    %1055 = arith.addf %1051, %1054 : vector<16x8xf32>
    %c1_756 = arith.constant 1 : index
    %c10_757 = arith.constant 10 : index
    %c0_758 = arith.constant 0 : index
    %c0_759 = arith.constant 0 : index
    %1056 = vector.load %arg19[%c1_756, %c10_757, %c0_758, %c0_759] : memref<2x12x32x8xbf16, #tpu.memory_space<vmem>>, vector<1x1x32x8xbf16>
    %1057 = vector.shape_cast %1056 : vector<1x1x32x8xbf16> to vector<32x8xbf16>
    %cst_760 = arith.constant dense<0.000000e+00> : vector<16x8xf32>
    %1058 = tpu.matmul %961, %1057, %cst_760 {dimension_numbers = #tpu.dot_dimension_numbers<[1], [0], [0], [1], [0, 0, 1, 1], [], []>} : vector<16x32xbf16>, vector<32x8xbf16>, vector<16x8xf32> -> vector<16x8xf32>
    %c1_761 = arith.constant 1 : index
    %c10_762 = arith.constant 10 : index
    %c0_763 = arith.constant 0 : index
    %c0_764 = arith.constant 0 : index
    %1059 = vector.load %arg20[%c1_761, %c10_762, %c0_763, %c0_764] : memref<2x12x1x8xf32, #tpu.memory_space<vmem>>, vector<1x1x1x8xf32>
    %1060 = vector.shape_cast %1059 : vector<1x1x1x8xf32> to vector<1x8xf32>
    %1061 = vector.broadcast %1060 : vector<1x8xf32> to vector<16x8xf32>
    %1062 = arith.addf %1058, %1061 : vector<16x8xf32>
    %1063 = arith.truncf %1048 : vector<16x8xf32> to vector<16x8xbf16>
    %1064 = arith.truncf %1055 : vector<16x8xf32> to vector<16x8xbf16>
    %cst_765 = arith.constant dense<0.000000e+00> : vector<16x16xf32>
    %1065 = tpu.matmul %1063, %1064, %cst_765 {dimension_numbers = #tpu.dot_dimension_numbers<[1], [1], [0], [0], [0, 0, 1, 0], [], []>} : vector<16x8xbf16>, vector<16x8xbf16>, vector<16x16xf32> -> vector<16x16xf32>
    %cst_766 = arith.constant 0.353553385 : f32
    %1066 = vector.broadcast %cst_766 : f32 to vector<16x16xf32>
    %1067 = arith.mulf %1065, %1066 : vector<16x16xf32>
    %1068 = arith.addf %1067, %3 : vector<16x16xf32>
    %cst_767 = arith.constant dense<0xFF800000> : vector<16xf32>
    %1069 = vector.multi_reduction <maximumf>, %1068, %cst_767 [1] : vector<16x16xf32> to vector<16xf32>
    %1070 = vector.shape_cast %1069 : vector<16xf32> to vector<16x1xf32>
    %1071 = vector.broadcast %1070 : vector<16x1xf32> to vector<16x16xf32>
    %1072 = arith.subf %1068, %1071 : vector<16x16xf32>
    %1073 = math.exp %1072 : vector<16x16xf32>
    %1074 = arith.truncf %1073 : vector<16x16xf32> to vector<16x16xbf16>
    %1075 = arith.truncf %1062 : vector<16x8xf32> to vector<16x8xbf16>
    %cst_768 = arith.constant dense<0.000000e+00> : vector<16x8xf32>
    %1076 = tpu.matmul %1074, %1075, %cst_768 {dimension_numbers = #tpu.dot_dimension_numbers<[1], [0], [0], [1], [0, 0, 1, 1], [], []>} : vector<16x16xbf16>, vector<16x8xbf16>, vector<16x8xf32> -> vector<16x8xf32>
    %cst_769 = arith.constant dense<0.000000e+00> : vector<16xf32>
    %1077 = vector.multi_reduction <add>, %1073, %cst_769 [1] : vector<16x16xf32> to vector<16xf32>
    %1078 = vector.shape_cast %1077 : vector<16xf32> to vector<16x1xf32>
    %1079 = tpu.reciprocal %1078 : vector<16x1xf32> -> vector<16x1xf32>
    %1080 = vector.broadcast %1079 : vector<16x1xf32> to vector<16x8xf32>
    %1081 = arith.mulf %1076, %1080 : vector<16x8xf32>
    %c1_770 = arith.constant 1 : index
    %c3_771 = arith.constant 3 : index
    %c0_772 = arith.constant 0 : index
    %c0_773 = arith.constant 0 : index
    %1082 = vector.load %arg19[%c1_770, %c3_771, %c0_772, %c0_773] : memref<2x12x32x8xbf16, #tpu.memory_space<vmem>>, vector<1x1x32x8xbf16>
    %1083 = vector.shape_cast %1082 : vector<1x1x32x8xbf16> to vector<32x8xbf16>
    %cst_774 = arith.constant dense<0.000000e+00> : vector<16x8xf32>
    %1084 = tpu.matmul %960, %1083, %cst_774 {dimension_numbers = #tpu.dot_dimension_numbers<[1], [0], [0], [1], [0, 0, 1, 1], [], []>} : vector<16x32xbf16>, vector<32x8xbf16>, vector<16x8xf32> -> vector<16x8xf32>
    %c1_775 = arith.constant 1 : index
    %c3_776 = arith.constant 3 : index
    %c0_777 = arith.constant 0 : index
    %c0_778 = arith.constant 0 : index
    %1085 = vector.load %arg20[%c1_775, %c3_776, %c0_777, %c0_778] : memref<2x12x1x8xf32, #tpu.memory_space<vmem>>, vector<1x1x1x8xf32>
    %1086 = vector.shape_cast %1085 : vector<1x1x1x8xf32> to vector<1x8xf32>
    %1087 = vector.broadcast %1086 : vector<1x8xf32> to vector<16x8xf32>
    %1088 = arith.addf %1084, %1087 : vector<16x8xf32>
    %c1_779 = arith.constant 1 : index
    %c7_780 = arith.constant 7 : index
    %c0_781 = arith.constant 0 : index
    %c0_782 = arith.constant 0 : index
    %1089 = vector.load %arg19[%c1_779, %c7_780, %c0_781, %c0_782] : memref<2x12x32x8xbf16, #tpu.memory_space<vmem>>, vector<1x1x32x8xbf16>
    %1090 = vector.shape_cast %1089 : vector<1x1x32x8xbf16> to vector<32x8xbf16>
    %cst_783 = arith.constant dense<0.000000e+00> : vector<16x8xf32>
    %1091 = tpu.matmul %961, %1090, %cst_783 {dimension_numbers = #tpu.dot_dimension_numbers<[1], [0], [0], [1], [0, 0, 1, 1], [], []>} : vector<16x32xbf16>, vector<32x8xbf16>, vector<16x8xf32> -> vector<16x8xf32>
    %c1_784 = arith.constant 1 : index
    %c7_785 = arith.constant 7 : index
    %c0_786 = arith.constant 0 : index
    %c0_787 = arith.constant 0 : index
    %1092 = vector.load %arg20[%c1_784, %c7_785, %c0_786, %c0_787] : memref<2x12x1x8xf32, #tpu.memory_space<vmem>>, vector<1x1x1x8xf32>
    %1093 = vector.shape_cast %1092 : vector<1x1x1x8xf32> to vector<1x8xf32>
    %1094 = vector.broadcast %1093 : vector<1x8xf32> to vector<16x8xf32>
    %1095 = arith.addf %1091, %1094 : vector<16x8xf32>
    %c1_788 = arith.constant 1 : index
    %c11_789 = arith.constant 11 : index
    %c0_790 = arith.constant 0 : index
    %c0_791 = arith.constant 0 : index
    %1096 = vector.load %arg19[%c1_788, %c11_789, %c0_790, %c0_791] : memref<2x12x32x8xbf16, #tpu.memory_space<vmem>>, vector<1x1x32x8xbf16>
    %1097 = vector.shape_cast %1096 : vector<1x1x32x8xbf16> to vector<32x8xbf16>
    %cst_792 = arith.constant dense<0.000000e+00> : vector<16x8xf32>
    %1098 = tpu.matmul %961, %1097, %cst_792 {dimension_numbers = #tpu.dot_dimension_numbers<[1], [0], [0], [1], [0, 0, 1, 1], [], []>} : vector<16x32xbf16>, vector<32x8xbf16>, vector<16x8xf32> -> vector<16x8xf32>
    %c1_793 = arith.constant 1 : index
    %c11_794 = arith.constant 11 : index
    %c0_795 = arith.constant 0 : index
    %c0_796 = arith.constant 0 : index
    %1099 = vector.load %arg20[%c1_793, %c11_794, %c0_795, %c0_796] : memref<2x12x1x8xf32, #tpu.memory_space<vmem>>, vector<1x1x1x8xf32>
    %1100 = vector.shape_cast %1099 : vector<1x1x1x8xf32> to vector<1x8xf32>
    %1101 = vector.broadcast %1100 : vector<1x8xf32> to vector<16x8xf32>
    %1102 = arith.addf %1098, %1101 : vector<16x8xf32>
    %1103 = arith.truncf %1088 : vector<16x8xf32> to vector<16x8xbf16>
    %1104 = arith.truncf %1095 : vector<16x8xf32> to vector<16x8xbf16>
    %cst_797 = arith.constant dense<0.000000e+00> : vector<16x16xf32>
    %1105 = tpu.matmul %1103, %1104, %cst_797 {dimension_numbers = #tpu.dot_dimension_numbers<[1], [1], [0], [0], [0, 0, 1, 0], [], []>} : vector<16x8xbf16>, vector<16x8xbf16>, vector<16x16xf32> -> vector<16x16xf32>
    %cst_798 = arith.constant 0.353553385 : f32
    %1106 = vector.broadcast %cst_798 : f32 to vector<16x16xf32>
    %1107 = arith.mulf %1105, %1106 : vector<16x16xf32>
    %1108 = arith.addf %1107, %3 : vector<16x16xf32>
    %cst_799 = arith.constant dense<0xFF800000> : vector<16xf32>
    %1109 = vector.multi_reduction <maximumf>, %1108, %cst_799 [1] : vector<16x16xf32> to vector<16xf32>
    %1110 = vector.shape_cast %1109 : vector<16xf32> to vector<16x1xf32>
    %1111 = vector.broadcast %1110 : vector<16x1xf32> to vector<16x16xf32>
    %1112 = arith.subf %1108, %1111 : vector<16x16xf32>
    %1113 = math.exp %1112 : vector<16x16xf32>
    %1114 = arith.truncf %1113 : vector<16x16xf32> to vector<16x16xbf16>
    %1115 = arith.truncf %1102 : vector<16x8xf32> to vector<16x8xbf16>
    %cst_800 = arith.constant dense<0.000000e+00> : vector<16x8xf32>
    %1116 = tpu.matmul %1114, %1115, %cst_800 {dimension_numbers = #tpu.dot_dimension_numbers<[1], [0], [0], [1], [0, 0, 1, 1], [], []>} : vector<16x16xbf16>, vector<16x8xbf16>, vector<16x8xf32> -> vector<16x8xf32>
    %cst_801 = arith.constant dense<0.000000e+00> : vector<16xf32>
    %1117 = vector.multi_reduction <add>, %1113, %cst_801 [1] : vector<16x16xf32> to vector<16xf32>
    %1118 = vector.shape_cast %1117 : vector<16xf32> to vector<16x1xf32>
    %1119 = tpu.reciprocal %1118 : vector<16x1xf32> -> vector<16x1xf32>
    %1120 = vector.broadcast %1119 : vector<16x1xf32> to vector<16x8xf32>
    %1121 = arith.mulf %1116, %1120 : vector<16x8xf32>
    %1122 = tpu.concatenate %1001, %1041, %1081, %1121 in 1 : vector<16x8xf32>, vector<16x8xf32>, vector<16x8xf32>, vector<16x8xf32> -> vector<16x32xf32>
    %1123 = arith.truncf %1122 : vector<16x32xf32> to vector<16x32xbf16>
    %cst_802 = arith.constant dense<0.000000e+00> : vector<16x32xf32>
    %1124 = tpu.matmul %1123, %957, %cst_802 {dimension_numbers = #tpu.dot_dimension_numbers<[1], [0], [0], [1], [0, 0, 1, 1], [], []>} : vector<16x32xbf16>, vector<32x32xbf16>, vector<16x32xf32> -> vector<16x32xf32>
    %1125 = vector.broadcast %959 : vector<1x32xf32> to vector<16x32xf32>
    %1126 = arith.addf %1124, %1125 : vector<16x32xf32>
    %1127 = arith.addf %955, %1126 : vector<16x32xf32>
    %c1_803 = arith.constant 1 : index
    %c0_804 = arith.constant 0 : index
    %c0_805 = arith.constant 0 : index
    %1128 = vector.load %arg23[%c1_803, %c0_804, %c0_805] : memref<2x1x32xf32, #tpu.memory_space<vmem>>, vector<1x1x32xf32>
    %1129 = vector.shape_cast %1128 : vector<1x1x32xf32> to vector<1x32xf32>
    %c1_806 = arith.constant 1 : index
    %c0_807 = arith.constant 0 : index
    %c0_808 = arith.constant 0 : index
    %1130 = vector.load %arg24[%c1_806, %c0_807, %c0_808] : memref<2x1x32xf32, #tpu.memory_space<vmem>>, vector<1x1x32xf32>
    %1131 = vector.shape_cast %1130 : vector<1x1x32xf32> to vector<1x32xf32>
    %cst_809 = arith.constant dense<0.000000e+00> : vector<16xf32>
    %1132 = vector.multi_reduction <add>, %1127, %cst_809 [1] : vector<16x32xf32> to vector<16xf32>
    %1133 = vector.shape_cast %1132 : vector<16xf32> to vector<16x1xf32>
    %cst_810 = arith.constant 3.200000e+01 : f32
    %1134 = vector.broadcast %cst_810 : f32 to vector<16x1xf32>
    %1135 = arith.divf %1133, %1134 : vector<16x1xf32>
    %1136 = vector.broadcast %1135 : vector<16x1xf32> to vector<16x32xf32>
    %1137 = arith.subf %1127, %1136 : vector<16x32xf32>
    %1138 = arith.mulf %1137, %1137 : vector<16x32xf32>
    %cst_811 = arith.constant dense<0.000000e+00> : vector<16xf32>
    %1139 = vector.multi_reduction <add>, %1138, %cst_811 [1] : vector<16x32xf32> to vector<16xf32>
    %1140 = vector.shape_cast %1139 : vector<16xf32> to vector<16x1xf32>
    %cst_812 = arith.constant 3.200000e+01 : f32
    %1141 = vector.broadcast %cst_812 : f32 to vector<16x1xf32>
    %1142 = arith.divf %1140, %1141 : vector<16x1xf32>
    %1143 = vector.broadcast %1135 : vector<16x1xf32> to vector<16x32xf32>
    %1144 = arith.subf %1127, %1143 : vector<16x32xf32>
    %cst_813 = arith.constant 9.99999974E-6 : f32
    %1145 = vector.broadcast %cst_813 : f32 to vector<16x1xf32>
    %1146 = arith.addf %1142, %1145 : vector<16x1xf32>
    %1147 = math.rsqrt %1146 : vector<16x1xf32>
    %1148 = vector.broadcast %1147 : vector<16x1xf32> to vector<16x32xf32>
    %1149 = arith.mulf %1144, %1148 : vector<16x32xf32>
    %1150 = vector.broadcast %1129 : vector<1x32xf32> to vector<16x32xf32>
    %1151 = arith.mulf %1149, %1150 : vector<16x32xf32>
    %1152 = vector.broadcast %1131 : vector<1x32xf32> to vector<16x32xf32>
    %1153 = arith.addf %1151, %1152 : vector<16x32xf32>
    %c1_814 = arith.constant 1 : index
    %c0_815 = arith.constant 0 : index
    %c0_816 = arith.constant 0 : index
    %1154 = vector.load %arg27[%c1_814, %c0_815, %c0_816] : memref<2x32x32xbf16, #tpu.memory_space<vmem>>, vector<1x32x32xbf16>
    %1155 = vector.shape_cast %1154 : vector<1x32x32xbf16> to vector<32x32xbf16>
    %c1_817 = arith.constant 1 : index
    %c0_818 = arith.constant 0 : index
    %c0_819 = arith.constant 0 : index
    %1156 = vector.load %arg28[%c1_817, %c0_818, %c0_819] : memref<2x1x32xf32, #tpu.memory_space<vmem>>, vector<1x1x32xf32>
    %1157 = vector.shape_cast %1156 : vector<1x1x32xf32> to vector<1x32xf32>
    %1158 = arith.truncf %1153 : vector<16x32xf32> to vector<16x32xbf16>
    %1159 = arith.truncf %514 : vector<16x32xf32> to vector<16x32xbf16>
    %c1_820 = arith.constant 1 : index
    %c0_821 = arith.constant 0 : index
    %c0_822 = arith.constant 0 : index
    %c0_823 = arith.constant 0 : index
    %1160 = vector.load %arg25[%c1_820, %c0_821, %c0_822, %c0_823] : memref<2x12x32x8xbf16, #tpu.memory_space<vmem>>, vector<1x1x32x8xbf16>
    %1161 = vector.shape_cast %1160 : vector<1x1x32x8xbf16> to vector<32x8xbf16>
    %cst_824 = arith.constant dense<0.000000e+00> : vector<16x8xf32>
    %1162 = tpu.matmul %1158, %1161, %cst_824 {dimension_numbers = #tpu.dot_dimension_numbers<[1], [0], [0], [1], [0, 0, 1, 1], [], []>} : vector<16x32xbf16>, vector<32x8xbf16>, vector<16x8xf32> -> vector<16x8xf32>
    %c1_825 = arith.constant 1 : index
    %c0_826 = arith.constant 0 : index
    %c0_827 = arith.constant 0 : index
    %c0_828 = arith.constant 0 : index
    %1163 = vector.load %arg26[%c1_825, %c0_826, %c0_827, %c0_828] : memref<2x12x1x8xf32, #tpu.memory_space<vmem>>, vector<1x1x1x8xf32>
    %1164 = vector.shape_cast %1163 : vector<1x1x1x8xf32> to vector<1x8xf32>
    %1165 = vector.broadcast %1164 : vector<1x8xf32> to vector<16x8xf32>
    %1166 = arith.addf %1162, %1165 : vector<16x8xf32>
    %c1_829 = arith.constant 1 : index
    %c4_830 = arith.constant 4 : index
    %c0_831 = arith.constant 0 : index
    %c0_832 = arith.constant 0 : index
    %1167 = vector.load %arg25[%c1_829, %c4_830, %c0_831, %c0_832] : memref<2x12x32x8xbf16, #tpu.memory_space<vmem>>, vector<1x1x32x8xbf16>
    %1168 = vector.shape_cast %1167 : vector<1x1x32x8xbf16> to vector<32x8xbf16>
    %cst_833 = arith.constant dense<0.000000e+00> : vector<16x8xf32>
    %1169 = tpu.matmul %1159, %1168, %cst_833 {dimension_numbers = #tpu.dot_dimension_numbers<[1], [0], [0], [1], [0, 0, 1, 1], [], []>} : vector<16x32xbf16>, vector<32x8xbf16>, vector<16x8xf32> -> vector<16x8xf32>
    %c1_834 = arith.constant 1 : index
    %c4_835 = arith.constant 4 : index
    %c0_836 = arith.constant 0 : index
    %c0_837 = arith.constant 0 : index
    %1170 = vector.load %arg26[%c1_834, %c4_835, %c0_836, %c0_837] : memref<2x12x1x8xf32, #tpu.memory_space<vmem>>, vector<1x1x1x8xf32>
    %1171 = vector.shape_cast %1170 : vector<1x1x1x8xf32> to vector<1x8xf32>
    %1172 = vector.broadcast %1171 : vector<1x8xf32> to vector<16x8xf32>
    %1173 = arith.addf %1169, %1172 : vector<16x8xf32>
    %c1_838 = arith.constant 1 : index
    %c8_839 = arith.constant 8 : index
    %c0_840 = arith.constant 0 : index
    %c0_841 = arith.constant 0 : index
    %1174 = vector.load %arg25[%c1_838, %c8_839, %c0_840, %c0_841] : memref<2x12x32x8xbf16, #tpu.memory_space<vmem>>, vector<1x1x32x8xbf16>
    %1175 = vector.shape_cast %1174 : vector<1x1x32x8xbf16> to vector<32x8xbf16>
    %cst_842 = arith.constant dense<0.000000e+00> : vector<16x8xf32>
    %1176 = tpu.matmul %1159, %1175, %cst_842 {dimension_numbers = #tpu.dot_dimension_numbers<[1], [0], [0], [1], [0, 0, 1, 1], [], []>} : vector<16x32xbf16>, vector<32x8xbf16>, vector<16x8xf32> -> vector<16x8xf32>
    %c1_843 = arith.constant 1 : index
    %c8_844 = arith.constant 8 : index
    %c0_845 = arith.constant 0 : index
    %c0_846 = arith.constant 0 : index
    %1177 = vector.load %arg26[%c1_843, %c8_844, %c0_845, %c0_846] : memref<2x12x1x8xf32, #tpu.memory_space<vmem>>, vector<1x1x1x8xf32>
    %1178 = vector.shape_cast %1177 : vector<1x1x1x8xf32> to vector<1x8xf32>
    %1179 = vector.broadcast %1178 : vector<1x8xf32> to vector<16x8xf32>
    %1180 = arith.addf %1176, %1179 : vector<16x8xf32>
    %1181 = arith.truncf %1166 : vector<16x8xf32> to vector<16x8xbf16>
    %1182 = arith.truncf %1173 : vector<16x8xf32> to vector<16x8xbf16>
    %cst_847 = arith.constant dense<0.000000e+00> : vector<16x16xf32>
    %1183 = tpu.matmul %1181, %1182, %cst_847 {dimension_numbers = #tpu.dot_dimension_numbers<[1], [1], [0], [0], [0, 0, 1, 0], [], []>} : vector<16x8xbf16>, vector<16x8xbf16>, vector<16x16xf32> -> vector<16x16xf32>
    %cst_848 = arith.constant 0.353553385 : f32
    %1184 = vector.broadcast %cst_848 : f32 to vector<16x16xf32>
    %1185 = arith.mulf %1183, %1184 : vector<16x16xf32>
    %1186 = arith.addf %1185, %4 : vector<16x16xf32>
    %cst_849 = arith.constant dense<0xFF800000> : vector<16xf32>
    %1187 = vector.multi_reduction <maximumf>, %1186, %cst_849 [1] : vector<16x16xf32> to vector<16xf32>
    %1188 = vector.shape_cast %1187 : vector<16xf32> to vector<16x1xf32>
    %1189 = vector.broadcast %1188 : vector<16x1xf32> to vector<16x16xf32>
    %1190 = arith.subf %1186, %1189 : vector<16x16xf32>
    %1191 = math.exp %1190 : vector<16x16xf32>
    %1192 = arith.truncf %1191 : vector<16x16xf32> to vector<16x16xbf16>
    %1193 = arith.truncf %1180 : vector<16x8xf32> to vector<16x8xbf16>
    %cst_850 = arith.constant dense<0.000000e+00> : vector<16x8xf32>
    %1194 = tpu.matmul %1192, %1193, %cst_850 {dimension_numbers = #tpu.dot_dimension_numbers<[1], [0], [0], [1], [0, 0, 1, 1], [], []>} : vector<16x16xbf16>, vector<16x8xbf16>, vector<16x8xf32> -> vector<16x8xf32>
    %cst_851 = arith.constant dense<0.000000e+00> : vector<16xf32>
    %1195 = vector.multi_reduction <add>, %1191, %cst_851 [1] : vector<16x16xf32> to vector<16xf32>
    %1196 = vector.shape_cast %1195 : vector<16xf32> to vector<16x1xf32>
    %1197 = tpu.reciprocal %1196 : vector<16x1xf32> -> vector<16x1xf32>
    %1198 = vector.broadcast %1197 : vector<16x1xf32> to vector<16x8xf32>
    %1199 = arith.mulf %1194, %1198 : vector<16x8xf32>
    %c1_852 = arith.constant 1 : index
    %c1_853 = arith.constant 1 : index
    %c0_854 = arith.constant 0 : index
    %c0_855 = arith.constant 0 : index
    %1200 = vector.load %arg25[%c1_852, %c1_853, %c0_854, %c0_855] : memref<2x12x32x8xbf16, #tpu.memory_space<vmem>>, vector<1x1x32x8xbf16>
    %1201 = vector.shape_cast %1200 : vector<1x1x32x8xbf16> to vector<32x8xbf16>
    %cst_856 = arith.constant dense<0.000000e+00> : vector<16x8xf32>
    %1202 = tpu.matmul %1158, %1201, %cst_856 {dimension_numbers = #tpu.dot_dimension_numbers<[1], [0], [0], [1], [0, 0, 1, 1], [], []>} : vector<16x32xbf16>, vector<32x8xbf16>, vector<16x8xf32> -> vector<16x8xf32>
    %c1_857 = arith.constant 1 : index
    %c1_858 = arith.constant 1 : index
    %c0_859 = arith.constant 0 : index
    %c0_860 = arith.constant 0 : index
    %1203 = vector.load %arg26[%c1_857, %c1_858, %c0_859, %c0_860] : memref<2x12x1x8xf32, #tpu.memory_space<vmem>>, vector<1x1x1x8xf32>
    %1204 = vector.shape_cast %1203 : vector<1x1x1x8xf32> to vector<1x8xf32>
    %1205 = vector.broadcast %1204 : vector<1x8xf32> to vector<16x8xf32>
    %1206 = arith.addf %1202, %1205 : vector<16x8xf32>
    %c1_861 = arith.constant 1 : index
    %c5_862 = arith.constant 5 : index
    %c0_863 = arith.constant 0 : index
    %c0_864 = arith.constant 0 : index
    %1207 = vector.load %arg25[%c1_861, %c5_862, %c0_863, %c0_864] : memref<2x12x32x8xbf16, #tpu.memory_space<vmem>>, vector<1x1x32x8xbf16>
    %1208 = vector.shape_cast %1207 : vector<1x1x32x8xbf16> to vector<32x8xbf16>
    %cst_865 = arith.constant dense<0.000000e+00> : vector<16x8xf32>
    %1209 = tpu.matmul %1159, %1208, %cst_865 {dimension_numbers = #tpu.dot_dimension_numbers<[1], [0], [0], [1], [0, 0, 1, 1], [], []>} : vector<16x32xbf16>, vector<32x8xbf16>, vector<16x8xf32> -> vector<16x8xf32>
    %c1_866 = arith.constant 1 : index
    %c5_867 = arith.constant 5 : index
    %c0_868 = arith.constant 0 : index
    %c0_869 = arith.constant 0 : index
    %1210 = vector.load %arg26[%c1_866, %c5_867, %c0_868, %c0_869] : memref<2x12x1x8xf32, #tpu.memory_space<vmem>>, vector<1x1x1x8xf32>
    %1211 = vector.shape_cast %1210 : vector<1x1x1x8xf32> to vector<1x8xf32>
    %1212 = vector.broadcast %1211 : vector<1x8xf32> to vector<16x8xf32>
    %1213 = arith.addf %1209, %1212 : vector<16x8xf32>
    %c1_870 = arith.constant 1 : index
    %c9_871 = arith.constant 9 : index
    %c0_872 = arith.constant 0 : index
    %c0_873 = arith.constant 0 : index
    %1214 = vector.load %arg25[%c1_870, %c9_871, %c0_872, %c0_873] : memref<2x12x32x8xbf16, #tpu.memory_space<vmem>>, vector<1x1x32x8xbf16>
    %1215 = vector.shape_cast %1214 : vector<1x1x32x8xbf16> to vector<32x8xbf16>
    %cst_874 = arith.constant dense<0.000000e+00> : vector<16x8xf32>
    %1216 = tpu.matmul %1159, %1215, %cst_874 {dimension_numbers = #tpu.dot_dimension_numbers<[1], [0], [0], [1], [0, 0, 1, 1], [], []>} : vector<16x32xbf16>, vector<32x8xbf16>, vector<16x8xf32> -> vector<16x8xf32>
    %c1_875 = arith.constant 1 : index
    %c9_876 = arith.constant 9 : index
    %c0_877 = arith.constant 0 : index
    %c0_878 = arith.constant 0 : index
    %1217 = vector.load %arg26[%c1_875, %c9_876, %c0_877, %c0_878] : memref<2x12x1x8xf32, #tpu.memory_space<vmem>>, vector<1x1x1x8xf32>
    %1218 = vector.shape_cast %1217 : vector<1x1x1x8xf32> to vector<1x8xf32>
    %1219 = vector.broadcast %1218 : vector<1x8xf32> to vector<16x8xf32>
    %1220 = arith.addf %1216, %1219 : vector<16x8xf32>
    %1221 = arith.truncf %1206 : vector<16x8xf32> to vector<16x8xbf16>
    %1222 = arith.truncf %1213 : vector<16x8xf32> to vector<16x8xbf16>
    %cst_879 = arith.constant dense<0.000000e+00> : vector<16x16xf32>
    %1223 = tpu.matmul %1221, %1222, %cst_879 {dimension_numbers = #tpu.dot_dimension_numbers<[1], [1], [0], [0], [0, 0, 1, 0], [], []>} : vector<16x8xbf16>, vector<16x8xbf16>, vector<16x16xf32> -> vector<16x16xf32>
    %cst_880 = arith.constant 0.353553385 : f32
    %1224 = vector.broadcast %cst_880 : f32 to vector<16x16xf32>
    %1225 = arith.mulf %1223, %1224 : vector<16x16xf32>
    %1226 = arith.addf %1225, %4 : vector<16x16xf32>
    %cst_881 = arith.constant dense<0xFF800000> : vector<16xf32>
    %1227 = vector.multi_reduction <maximumf>, %1226, %cst_881 [1] : vector<16x16xf32> to vector<16xf32>
    %1228 = vector.shape_cast %1227 : vector<16xf32> to vector<16x1xf32>
    %1229 = vector.broadcast %1228 : vector<16x1xf32> to vector<16x16xf32>
    %1230 = arith.subf %1226, %1229 : vector<16x16xf32>
    %1231 = math.exp %1230 : vector<16x16xf32>
    %1232 = arith.truncf %1231 : vector<16x16xf32> to vector<16x16xbf16>
    %1233 = arith.truncf %1220 : vector<16x8xf32> to vector<16x8xbf16>
    %cst_882 = arith.constant dense<0.000000e+00> : vector<16x8xf32>
    %1234 = tpu.matmul %1232, %1233, %cst_882 {dimension_numbers = #tpu.dot_dimension_numbers<[1], [0], [0], [1], [0, 0, 1, 1], [], []>} : vector<16x16xbf16>, vector<16x8xbf16>, vector<16x8xf32> -> vector<16x8xf32>
    %cst_883 = arith.constant dense<0.000000e+00> : vector<16xf32>
    %1235 = vector.multi_reduction <add>, %1231, %cst_883 [1] : vector<16x16xf32> to vector<16xf32>
    %1236 = vector.shape_cast %1235 : vector<16xf32> to vector<16x1xf32>
    %1237 = tpu.reciprocal %1236 : vector<16x1xf32> -> vector<16x1xf32>
    %1238 = vector.broadcast %1237 : vector<16x1xf32> to vector<16x8xf32>
    %1239 = arith.mulf %1234, %1238 : vector<16x8xf32>
    %c1_884 = arith.constant 1 : index
    %c2_885 = arith.constant 2 : index
    %c0_886 = arith.constant 0 : index
    %c0_887 = arith.constant 0 : index
    %1240 = vector.load %arg25[%c1_884, %c2_885, %c0_886, %c0_887] : memref<2x12x32x8xbf16, #tpu.memory_space<vmem>>, vector<1x1x32x8xbf16>
    %1241 = vector.shape_cast %1240 : vector<1x1x32x8xbf16> to vector<32x8xbf16>
    %cst_888 = arith.constant dense<0.000000e+00> : vector<16x8xf32>
    %1242 = tpu.matmul %1158, %1241, %cst_888 {dimension_numbers = #tpu.dot_dimension_numbers<[1], [0], [0], [1], [0, 0, 1, 1], [], []>} : vector<16x32xbf16>, vector<32x8xbf16>, vector<16x8xf32> -> vector<16x8xf32>
    %c1_889 = arith.constant 1 : index
    %c2_890 = arith.constant 2 : index
    %c0_891 = arith.constant 0 : index
    %c0_892 = arith.constant 0 : index
    %1243 = vector.load %arg26[%c1_889, %c2_890, %c0_891, %c0_892] : memref<2x12x1x8xf32, #tpu.memory_space<vmem>>, vector<1x1x1x8xf32>
    %1244 = vector.shape_cast %1243 : vector<1x1x1x8xf32> to vector<1x8xf32>
    %1245 = vector.broadcast %1244 : vector<1x8xf32> to vector<16x8xf32>
    %1246 = arith.addf %1242, %1245 : vector<16x8xf32>
    %c1_893 = arith.constant 1 : index
    %c6_894 = arith.constant 6 : index
    %c0_895 = arith.constant 0 : index
    %c0_896 = arith.constant 0 : index
    %1247 = vector.load %arg25[%c1_893, %c6_894, %c0_895, %c0_896] : memref<2x12x32x8xbf16, #tpu.memory_space<vmem>>, vector<1x1x32x8xbf16>
    %1248 = vector.shape_cast %1247 : vector<1x1x32x8xbf16> to vector<32x8xbf16>
    %cst_897 = arith.constant dense<0.000000e+00> : vector<16x8xf32>
    %1249 = tpu.matmul %1159, %1248, %cst_897 {dimension_numbers = #tpu.dot_dimension_numbers<[1], [0], [0], [1], [0, 0, 1, 1], [], []>} : vector<16x32xbf16>, vector<32x8xbf16>, vector<16x8xf32> -> vector<16x8xf32>
    %c1_898 = arith.constant 1 : index
    %c6_899 = arith.constant 6 : index
    %c0_900 = arith.constant 0 : index
    %c0_901 = arith.constant 0 : index
    %1250 = vector.load %arg26[%c1_898, %c6_899, %c0_900, %c0_901] : memref<2x12x1x8xf32, #tpu.memory_space<vmem>>, vector<1x1x1x8xf32>
    %1251 = vector.shape_cast %1250 : vector<1x1x1x8xf32> to vector<1x8xf32>
    %1252 = vector.broadcast %1251 : vector<1x8xf32> to vector<16x8xf32>
    %1253 = arith.addf %1249, %1252 : vector<16x8xf32>
    %c1_902 = arith.constant 1 : index
    %c10_903 = arith.constant 10 : index
    %c0_904 = arith.constant 0 : index
    %c0_905 = arith.constant 0 : index
    %1254 = vector.load %arg25[%c1_902, %c10_903, %c0_904, %c0_905] : memref<2x12x32x8xbf16, #tpu.memory_space<vmem>>, vector<1x1x32x8xbf16>
    %1255 = vector.shape_cast %1254 : vector<1x1x32x8xbf16> to vector<32x8xbf16>
    %cst_906 = arith.constant dense<0.000000e+00> : vector<16x8xf32>
    %1256 = tpu.matmul %1159, %1255, %cst_906 {dimension_numbers = #tpu.dot_dimension_numbers<[1], [0], [0], [1], [0, 0, 1, 1], [], []>} : vector<16x32xbf16>, vector<32x8xbf16>, vector<16x8xf32> -> vector<16x8xf32>
    %c1_907 = arith.constant 1 : index
    %c10_908 = arith.constant 10 : index
    %c0_909 = arith.constant 0 : index
    %c0_910 = arith.constant 0 : index
    %1257 = vector.load %arg26[%c1_907, %c10_908, %c0_909, %c0_910] : memref<2x12x1x8xf32, #tpu.memory_space<vmem>>, vector<1x1x1x8xf32>
    %1258 = vector.shape_cast %1257 : vector<1x1x1x8xf32> to vector<1x8xf32>
    %1259 = vector.broadcast %1258 : vector<1x8xf32> to vector<16x8xf32>
    %1260 = arith.addf %1256, %1259 : vector<16x8xf32>
    %1261 = arith.truncf %1246 : vector<16x8xf32> to vector<16x8xbf16>
    %1262 = arith.truncf %1253 : vector<16x8xf32> to vector<16x8xbf16>
    %cst_911 = arith.constant dense<0.000000e+00> : vector<16x16xf32>
    %1263 = tpu.matmul %1261, %1262, %cst_911 {dimension_numbers = #tpu.dot_dimension_numbers<[1], [1], [0], [0], [0, 0, 1, 0], [], []>} : vector<16x8xbf16>, vector<16x8xbf16>, vector<16x16xf32> -> vector<16x16xf32>
    %cst_912 = arith.constant 0.353553385 : f32
    %1264 = vector.broadcast %cst_912 : f32 to vector<16x16xf32>
    %1265 = arith.mulf %1263, %1264 : vector<16x16xf32>
    %1266 = arith.addf %1265, %4 : vector<16x16xf32>
    %cst_913 = arith.constant dense<0xFF800000> : vector<16xf32>
    %1267 = vector.multi_reduction <maximumf>, %1266, %cst_913 [1] : vector<16x16xf32> to vector<16xf32>
    %1268 = vector.shape_cast %1267 : vector<16xf32> to vector<16x1xf32>
    %1269 = vector.broadcast %1268 : vector<16x1xf32> to vector<16x16xf32>
    %1270 = arith.subf %1266, %1269 : vector<16x16xf32>
    %1271 = math.exp %1270 : vector<16x16xf32>
    %1272 = arith.truncf %1271 : vector<16x16xf32> to vector<16x16xbf16>
    %1273 = arith.truncf %1260 : vector<16x8xf32> to vector<16x8xbf16>
    %cst_914 = arith.constant dense<0.000000e+00> : vector<16x8xf32>
    %1274 = tpu.matmul %1272, %1273, %cst_914 {dimension_numbers = #tpu.dot_dimension_numbers<[1], [0], [0], [1], [0, 0, 1, 1], [], []>} : vector<16x16xbf16>, vector<16x8xbf16>, vector<16x8xf32> -> vector<16x8xf32>
    %cst_915 = arith.constant dense<0.000000e+00> : vector<16xf32>
    %1275 = vector.multi_reduction <add>, %1271, %cst_915 [1] : vector<16x16xf32> to vector<16xf32>
    %1276 = vector.shape_cast %1275 : vector<16xf32> to vector<16x1xf32>
    %1277 = tpu.reciprocal %1276 : vector<16x1xf32> -> vector<16x1xf32>
    %1278 = vector.broadcast %1277 : vector<16x1xf32> to vector<16x8xf32>
    %1279 = arith.mulf %1274, %1278 : vector<16x8xf32>
    %c1_916 = arith.constant 1 : index
    %c3_917 = arith.constant 3 : index
    %c0_918 = arith.constant 0 : index
    %c0_919 = arith.constant 0 : index
    %1280 = vector.load %arg25[%c1_916, %c3_917, %c0_918, %c0_919] : memref<2x12x32x8xbf16, #tpu.memory_space<vmem>>, vector<1x1x32x8xbf16>
    %1281 = vector.shape_cast %1280 : vector<1x1x32x8xbf16> to vector<32x8xbf16>
    %cst_920 = arith.constant dense<0.000000e+00> : vector<16x8xf32>
    %1282 = tpu.matmul %1158, %1281, %cst_920 {dimension_numbers = #tpu.dot_dimension_numbers<[1], [0], [0], [1], [0, 0, 1, 1], [], []>} : vector<16x32xbf16>, vector<32x8xbf16>, vector<16x8xf32> -> vector<16x8xf32>
    %c1_921 = arith.constant 1 : index
    %c3_922 = arith.constant 3 : index
    %c0_923 = arith.constant 0 : index
    %c0_924 = arith.constant 0 : index
    %1283 = vector.load %arg26[%c1_921, %c3_922, %c0_923, %c0_924] : memref<2x12x1x8xf32, #tpu.memory_space<vmem>>, vector<1x1x1x8xf32>
    %1284 = vector.shape_cast %1283 : vector<1x1x1x8xf32> to vector<1x8xf32>
    %1285 = vector.broadcast %1284 : vector<1x8xf32> to vector<16x8xf32>
    %1286 = arith.addf %1282, %1285 : vector<16x8xf32>
    %c1_925 = arith.constant 1 : index
    %c7_926 = arith.constant 7 : index
    %c0_927 = arith.constant 0 : index
    %c0_928 = arith.constant 0 : index
    %1287 = vector.load %arg25[%c1_925, %c7_926, %c0_927, %c0_928] : memref<2x12x32x8xbf16, #tpu.memory_space<vmem>>, vector<1x1x32x8xbf16>
    %1288 = vector.shape_cast %1287 : vector<1x1x32x8xbf16> to vector<32x8xbf16>
    %cst_929 = arith.constant dense<0.000000e+00> : vector<16x8xf32>
    %1289 = tpu.matmul %1159, %1288, %cst_929 {dimension_numbers = #tpu.dot_dimension_numbers<[1], [0], [0], [1], [0, 0, 1, 1], [], []>} : vector<16x32xbf16>, vector<32x8xbf16>, vector<16x8xf32> -> vector<16x8xf32>
    %c1_930 = arith.constant 1 : index
    %c7_931 = arith.constant 7 : index
    %c0_932 = arith.constant 0 : index
    %c0_933 = arith.constant 0 : index
    %1290 = vector.load %arg26[%c1_930, %c7_931, %c0_932, %c0_933] : memref<2x12x1x8xf32, #tpu.memory_space<vmem>>, vector<1x1x1x8xf32>
    %1291 = vector.shape_cast %1290 : vector<1x1x1x8xf32> to vector<1x8xf32>
    %1292 = vector.broadcast %1291 : vector<1x8xf32> to vector<16x8xf32>
    %1293 = arith.addf %1289, %1292 : vector<16x8xf32>
    %c1_934 = arith.constant 1 : index
    %c11_935 = arith.constant 11 : index
    %c0_936 = arith.constant 0 : index
    %c0_937 = arith.constant 0 : index
    %1294 = vector.load %arg25[%c1_934, %c11_935, %c0_936, %c0_937] : memref<2x12x32x8xbf16, #tpu.memory_space<vmem>>, vector<1x1x32x8xbf16>
    %1295 = vector.shape_cast %1294 : vector<1x1x32x8xbf16> to vector<32x8xbf16>
    %cst_938 = arith.constant dense<0.000000e+00> : vector<16x8xf32>
    %1296 = tpu.matmul %1159, %1295, %cst_938 {dimension_numbers = #tpu.dot_dimension_numbers<[1], [0], [0], [1], [0, 0, 1, 1], [], []>} : vector<16x32xbf16>, vector<32x8xbf16>, vector<16x8xf32> -> vector<16x8xf32>
    %c1_939 = arith.constant 1 : index
    %c11_940 = arith.constant 11 : index
    %c0_941 = arith.constant 0 : index
    %c0_942 = arith.constant 0 : index
    %1297 = vector.load %arg26[%c1_939, %c11_940, %c0_941, %c0_942] : memref<2x12x1x8xf32, #tpu.memory_space<vmem>>, vector<1x1x1x8xf32>
    %1298 = vector.shape_cast %1297 : vector<1x1x1x8xf32> to vector<1x8xf32>
    %1299 = vector.broadcast %1298 : vector<1x8xf32> to vector<16x8xf32>
    %1300 = arith.addf %1296, %1299 : vector<16x8xf32>
    %1301 = arith.truncf %1286 : vector<16x8xf32> to vector<16x8xbf16>
    %1302 = arith.truncf %1293 : vector<16x8xf32> to vector<16x8xbf16>
    %cst_943 = arith.constant dense<0.000000e+00> : vector<16x16xf32>
    %1303 = tpu.matmul %1301, %1302, %cst_943 {dimension_numbers = #tpu.dot_dimension_numbers<[1], [1], [0], [0], [0, 0, 1, 0], [], []>} : vector<16x8xbf16>, vector<16x8xbf16>, vector<16x16xf32> -> vector<16x16xf32>
    %cst_944 = arith.constant 0.353553385 : f32
    %1304 = vector.broadcast %cst_944 : f32 to vector<16x16xf32>
    %1305 = arith.mulf %1303, %1304 : vector<16x16xf32>
    %1306 = arith.addf %1305, %4 : vector<16x16xf32>
    %cst_945 = arith.constant dense<0xFF800000> : vector<16xf32>
    %1307 = vector.multi_reduction <maximumf>, %1306, %cst_945 [1] : vector<16x16xf32> to vector<16xf32>
    %1308 = vector.shape_cast %1307 : vector<16xf32> to vector<16x1xf32>
    %1309 = vector.broadcast %1308 : vector<16x1xf32> to vector<16x16xf32>
    %1310 = arith.subf %1306, %1309 : vector<16x16xf32>
    %1311 = math.exp %1310 : vector<16x16xf32>
    %1312 = arith.truncf %1311 : vector<16x16xf32> to vector<16x16xbf16>
    %1313 = arith.truncf %1300 : vector<16x8xf32> to vector<16x8xbf16>
    %cst_946 = arith.constant dense<0.000000e+00> : vector<16x8xf32>
    %1314 = tpu.matmul %1312, %1313, %cst_946 {dimension_numbers = #tpu.dot_dimension_numbers<[1], [0], [0], [1], [0, 0, 1, 1], [], []>} : vector<16x16xbf16>, vector<16x8xbf16>, vector<16x8xf32> -> vector<16x8xf32>
    %cst_947 = arith.constant dense<0.000000e+00> : vector<16xf32>
    %1315 = vector.multi_reduction <add>, %1311, %cst_947 [1] : vector<16x16xf32> to vector<16xf32>
    %1316 = vector.shape_cast %1315 : vector<16xf32> to vector<16x1xf32>
    %1317 = tpu.reciprocal %1316 : vector<16x1xf32> -> vector<16x1xf32>
    %1318 = vector.broadcast %1317 : vector<16x1xf32> to vector<16x8xf32>
    %1319 = arith.mulf %1314, %1318 : vector<16x8xf32>
    %1320 = tpu.concatenate %1199, %1239, %1279, %1319 in 1 : vector<16x8xf32>, vector<16x8xf32>, vector<16x8xf32>, vector<16x8xf32> -> vector<16x32xf32>
    %1321 = arith.truncf %1320 : vector<16x32xf32> to vector<16x32xbf16>
    %cst_948 = arith.constant dense<0.000000e+00> : vector<16x32xf32>
    %1322 = tpu.matmul %1321, %1155, %cst_948 {dimension_numbers = #tpu.dot_dimension_numbers<[1], [0], [0], [1], [0, 0, 1, 1], [], []>} : vector<16x32xbf16>, vector<32x32xbf16>, vector<16x32xf32> -> vector<16x32xf32>
    %1323 = vector.broadcast %1157 : vector<1x32xf32> to vector<16x32xf32>
    %1324 = arith.addf %1322, %1323 : vector<16x32xf32>
    %1325 = arith.addf %1153, %1324 : vector<16x32xf32>
    %c1_949 = arith.constant 1 : index
    %c0_950 = arith.constant 0 : index
    %c0_951 = arith.constant 0 : index
    %1326 = vector.load %arg29[%c1_949, %c0_950, %c0_951] : memref<2x1x32xf32, #tpu.memory_space<vmem>>, vector<1x1x32xf32>
    %1327 = vector.shape_cast %1326 : vector<1x1x32xf32> to vector<1x32xf32>
    %c1_952 = arith.constant 1 : index
    %c0_953 = arith.constant 0 : index
    %c0_954 = arith.constant 0 : index
    %1328 = vector.load %arg30[%c1_952, %c0_953, %c0_954] : memref<2x1x32xf32, #tpu.memory_space<vmem>>, vector<1x1x32xf32>
    %1329 = vector.shape_cast %1328 : vector<1x1x32xf32> to vector<1x32xf32>
    %cst_955 = arith.constant dense<0.000000e+00> : vector<16xf32>
    %1330 = vector.multi_reduction <add>, %1325, %cst_955 [1] : vector<16x32xf32> to vector<16xf32>
    %1331 = vector.shape_cast %1330 : vector<16xf32> to vector<16x1xf32>
    %cst_956 = arith.constant 3.200000e+01 : f32
    %1332 = vector.broadcast %cst_956 : f32 to vector<16x1xf32>
    %1333 = arith.divf %1331, %1332 : vector<16x1xf32>
    %1334 = vector.broadcast %1333 : vector<16x1xf32> to vector<16x32xf32>
    %1335 = arith.subf %1325, %1334 : vector<16x32xf32>
    %1336 = arith.mulf %1335, %1335 : vector<16x32xf32>
    %cst_957 = arith.constant dense<0.000000e+00> : vector<16xf32>
    %1337 = vector.multi_reduction <add>, %1336, %cst_957 [1] : vector<16x32xf32> to vector<16xf32>
    %1338 = vector.shape_cast %1337 : vector<16xf32> to vector<16x1xf32>
    %cst_958 = arith.constant 3.200000e+01 : f32
    %1339 = vector.broadcast %cst_958 : f32 to vector<16x1xf32>
    %1340 = arith.divf %1338, %1339 : vector<16x1xf32>
    %1341 = vector.broadcast %1333 : vector<16x1xf32> to vector<16x32xf32>
    %1342 = arith.subf %1325, %1341 : vector<16x32xf32>
    %cst_959 = arith.constant 9.99999974E-6 : f32
    %1343 = vector.broadcast %cst_959 : f32 to vector<16x1xf32>
    %1344 = arith.addf %1340, %1343 : vector<16x1xf32>
    %1345 = math.rsqrt %1344 : vector<16x1xf32>
    %1346 = vector.broadcast %1345 : vector<16x1xf32> to vector<16x32xf32>
    %1347 = arith.mulf %1342, %1346 : vector<16x32xf32>
    %1348 = vector.broadcast %1327 : vector<1x32xf32> to vector<16x32xf32>
    %1349 = arith.mulf %1347, %1348 : vector<16x32xf32>
    %1350 = vector.broadcast %1329 : vector<1x32xf32> to vector<16x32xf32>
    %1351 = arith.addf %1349, %1350 : vector<16x32xf32>
    %c1_960 = arith.constant 1 : index
    %c0_961 = arith.constant 0 : index
    %c0_962 = arith.constant 0 : index
    %1352 = vector.load %arg31[%c1_960, %c0_961, %c0_962] : memref<2x32x64xbf16, #tpu.memory_space<vmem>>, vector<1x32x64xbf16>
    %1353 = vector.shape_cast %1352 : vector<1x32x64xbf16> to vector<32x64xbf16>
    %1354 = arith.truncf %1351 : vector<16x32xf32> to vector<16x32xbf16>
    %cst_963 = arith.constant dense<0.000000e+00> : vector<16x64xf32>
    %1355 = tpu.matmul %1354, %1353, %cst_963 {dimension_numbers = #tpu.dot_dimension_numbers<[1], [0], [0], [1], [0, 0, 1, 1], [], []>} : vector<16x32xbf16>, vector<32x64xbf16>, vector<16x64xf32> -> vector<16x64xf32>
    %c1_964 = arith.constant 1 : index
    %c0_965 = arith.constant 0 : index
    %c0_966 = arith.constant 0 : index
    %1356 = vector.load %arg32[%c1_964, %c0_965, %c0_966] : memref<2x1x64xf32, #tpu.memory_space<vmem>>, vector<1x1x64xf32>
    %1357 = vector.shape_cast %1356 : vector<1x1x64xf32> to vector<1x64xf32>
    %1358 = vector.broadcast %1357 : vector<1x64xf32> to vector<16x64xf32>
    %1359 = arith.addf %1355, %1358 : vector<16x64xf32>
    %cst_967 = arith.constant 0.000000e+00 : f32
    %1360 = vector.broadcast %cst_967 : f32 to vector<16x64xf32>
    %1361 = arith.maximumf %1359, %1360 : vector<16x64xf32>
    %c1_968 = arith.constant 1 : index
    %c0_969 = arith.constant 0 : index
    %c0_970 = arith.constant 0 : index
    %1362 = vector.load %arg33[%c1_968, %c0_969, %c0_970] : memref<2x64x32xbf16, #tpu.memory_space<vmem>>, vector<1x64x32xbf16>
    %1363 = vector.shape_cast %1362 : vector<1x64x32xbf16> to vector<64x32xbf16>
    %1364 = arith.truncf %1361 : vector<16x64xf32> to vector<16x64xbf16>
    %cst_971 = arith.constant dense<0.000000e+00> : vector<16x32xf32>
    %1365 = tpu.matmul %1364, %1363, %cst_971 {dimension_numbers = #tpu.dot_dimension_numbers<[1], [0], [0], [1], [0, 0, 1, 1], [], []>} : vector<16x64xbf16>, vector<64x32xbf16>, vector<16x32xf32> -> vector<16x32xf32>
    %c1_972 = arith.constant 1 : index
    %c0_973 = arith.constant 0 : index
    %c0_974 = arith.constant 0 : index
    %1366 = vector.load %arg34[%c1_972, %c0_973, %c0_974] : memref<2x1x32xf32, #tpu.memory_space<vmem>>, vector<1x1x32xf32>
    %1367 = vector.shape_cast %1366 : vector<1x1x32xf32> to vector<1x32xf32>
    %1368 = vector.broadcast %1367 : vector<1x32xf32> to vector<16x32xf32>
    %1369 = arith.addf %1365, %1368 : vector<16x32xf32>
    %1370 = arith.addf %1351, %1369 : vector<16x32xf32>
    %c1_975 = arith.constant 1 : index
    %c0_976 = arith.constant 0 : index
    %c0_977 = arith.constant 0 : index
    %1371 = vector.load %arg35[%c1_975, %c0_976, %c0_977] : memref<2x1x32xf32, #tpu.memory_space<vmem>>, vector<1x1x32xf32>
    %1372 = vector.shape_cast %1371 : vector<1x1x32xf32> to vector<1x32xf32>
    %c1_978 = arith.constant 1 : index
    %c0_979 = arith.constant 0 : index
    %c0_980 = arith.constant 0 : index
    %1373 = vector.load %arg36[%c1_978, %c0_979, %c0_980] : memref<2x1x32xf32, #tpu.memory_space<vmem>>, vector<1x1x32xf32>
    %1374 = vector.shape_cast %1373 : vector<1x1x32xf32> to vector<1x32xf32>
    %cst_981 = arith.constant dense<0.000000e+00> : vector<16xf32>
    %1375 = vector.multi_reduction <add>, %1370, %cst_981 [1] : vector<16x32xf32> to vector<16xf32>
    %1376 = vector.shape_cast %1375 : vector<16xf32> to vector<16x1xf32>
    %cst_982 = arith.constant 3.200000e+01 : f32
    %1377 = vector.broadcast %cst_982 : f32 to vector<16x1xf32>
    %1378 = arith.divf %1376, %1377 : vector<16x1xf32>
    %1379 = vector.broadcast %1378 : vector<16x1xf32> to vector<16x32xf32>
    %1380 = arith.subf %1370, %1379 : vector<16x32xf32>
    %1381 = arith.mulf %1380, %1380 : vector<16x32xf32>
    %cst_983 = arith.constant dense<0.000000e+00> : vector<16xf32>
    %1382 = vector.multi_reduction <add>, %1381, %cst_983 [1] : vector<16x32xf32> to vector<16xf32>
    %1383 = vector.shape_cast %1382 : vector<16xf32> to vector<16x1xf32>
    %cst_984 = arith.constant 3.200000e+01 : f32
    %1384 = vector.broadcast %cst_984 : f32 to vector<16x1xf32>
    %1385 = arith.divf %1383, %1384 : vector<16x1xf32>
    %1386 = vector.broadcast %1378 : vector<16x1xf32> to vector<16x32xf32>
    %1387 = arith.subf %1370, %1386 : vector<16x32xf32>
    %cst_985 = arith.constant 9.99999974E-6 : f32
    %1388 = vector.broadcast %cst_985 : f32 to vector<16x1xf32>
    %1389 = arith.addf %1385, %1388 : vector<16x1xf32>
    %1390 = math.rsqrt %1389 : vector<16x1xf32>
    %1391 = vector.broadcast %1390 : vector<16x1xf32> to vector<16x32xf32>
    %1392 = arith.mulf %1387, %1391 : vector<16x32xf32>
    %1393 = vector.broadcast %1372 : vector<1x32xf32> to vector<16x32xf32>
    %1394 = arith.mulf %1392, %1393 : vector<16x32xf32>
    %1395 = vector.broadcast %1374 : vector<1x32xf32> to vector<16x32xf32>
    %1396 = arith.addf %1394, %1395 : vector<16x32xf32>
    %c0_986 = arith.constant 0 : index
    %c0_987 = arith.constant 0 : index
    %1397 = vector.load %arg37[%c0_986, %c0_987] : memref<1x32xf32, #tpu.memory_space<vmem>>, vector<1x32xf32>
    %c0_988 = arith.constant 0 : index
    %c0_989 = arith.constant 0 : index
    %1398 = vector.load %arg38[%c0_988, %c0_989] : memref<1x32xf32, #tpu.memory_space<vmem>>, vector<1x32xf32>
    %cst_990 = arith.constant dense<0.000000e+00> : vector<16xf32>
    %1399 = vector.multi_reduction <add>, %1396, %cst_990 [1] : vector<16x32xf32> to vector<16xf32>
    %1400 = vector.shape_cast %1399 : vector<16xf32> to vector<16x1xf32>
    %cst_991 = arith.constant 3.200000e+01 : f32
    %1401 = vector.broadcast %cst_991 : f32 to vector<16x1xf32>
    %1402 = arith.divf %1400, %1401 : vector<16x1xf32>
    %1403 = vector.broadcast %1402 : vector<16x1xf32> to vector<16x32xf32>
    %1404 = arith.subf %1396, %1403 : vector<16x32xf32>
    %1405 = arith.mulf %1404, %1404 : vector<16x32xf32>
    %cst_992 = arith.constant dense<0.000000e+00> : vector<16xf32>
    %1406 = vector.multi_reduction <add>, %1405, %cst_992 [1] : vector<16x32xf32> to vector<16xf32>
    %1407 = vector.shape_cast %1406 : vector<16xf32> to vector<16x1xf32>
    %cst_993 = arith.constant 3.200000e+01 : f32
    %1408 = vector.broadcast %cst_993 : f32 to vector<16x1xf32>
    %1409 = arith.divf %1407, %1408 : vector<16x1xf32>
    %1410 = vector.broadcast %1402 : vector<16x1xf32> to vector<16x32xf32>
    %1411 = arith.subf %1396, %1410 : vector<16x32xf32>
    %cst_994 = arith.constant 9.99999974E-6 : f32
    %1412 = vector.broadcast %cst_994 : f32 to vector<16x1xf32>
    %1413 = arith.addf %1409, %1412 : vector<16x1xf32>
    %1414 = math.rsqrt %1413 : vector<16x1xf32>
    %1415 = vector.broadcast %1414 : vector<16x1xf32> to vector<16x32xf32>
    %1416 = arith.mulf %1411, %1415 : vector<16x32xf32>
    %1417 = vector.broadcast %1397 : vector<1x32xf32> to vector<16x32xf32>
    %1418 = arith.mulf %1416, %1417 : vector<16x32xf32>
    %1419 = vector.broadcast %1398 : vector<1x32xf32> to vector<16x32xf32>
    %1420 = arith.addf %1418, %1419 : vector<16x32xf32>
    %c0_995 = arith.constant 0 : index
    %c0_996 = arith.constant 0 : index
    %1421 = vector.load %arg39[%c0_995, %c0_996] : memref<32x128xbf16, #tpu.memory_space<vmem>>, vector<32x128xbf16>
    %1422 = arith.truncf %1420 : vector<16x32xf32> to vector<16x32xbf16>
    %cst_997 = arith.constant dense<0.000000e+00> : vector<16x128xf32>
    %1423 = tpu.matmul %1422, %1421, %cst_997 {dimension_numbers = #tpu.dot_dimension_numbers<[1], [0], [0], [1], [0, 0, 1, 1], [], []>} : vector<16x32xbf16>, vector<32x128xbf16>, vector<16x128xf32> -> vector<16x128xf32>
    %c0_998 = arith.constant 0 : index
    %c0_999 = arith.constant 0 : index
    %1424 = vector.load %arg40[%c0_998, %c0_999] : memref<1x128xf32, #tpu.memory_space<vmem>>, vector<1x128xf32>
    %1425 = vector.broadcast %1424 : vector<1x128xf32> to vector<16x128xf32>
    %1426 = arith.addf %1423, %1425 : vector<16x128xf32>
    %c0_1000 = arith.constant 0 : index
    %c0_1001 = arith.constant 0 : index
    %1427 = vector.load %arg41[%c0_1000, %c0_1001] : memref<16x128xf32, #tpu.memory_space<vmem>>, vector<16x128xf32>
    tpu.vector_store %arg41[%c0_1000, %c0_1001], %1426 {strides = array<i32>} : memref<16x128xf32, #tpu.memory_space<vmem>>, vector<16x128xf32>,
    return
  }
}

</mosaic_0001>

<bundles_post_ra>
// kernel: transformer_forward.1
= control target key start
LH: loop header
LB: loop body
LE: loop exit
PB: predicated region body
PF: predicated region fallthrough
CT: control target
= control target key end

     0   :  { %v12510_v0 = vmov 0.0   ;;  %s12511_s3 = smov 5   ;;  %vm12512_vm0 = vmmov 0   ;;  %s12513_s7 = smov 3   ;;  %vm210_vm1 = vcmask 261120   ;;  %vm389_vm2 = vcmask 64512   ;;  %s14342_s0 = inlined_call_operand.smem [shape: u32[42], index: -1, kind: input, shape index: {}] }
   0x1   :  { %10955 = vmatprep.subr.bf16.mxu1 %v12510_v0  ;;  %s12562_s6 = sld [smem:[%s14342_s0 + %s12511_s3]]   ;;  %10947 = vmatprep.subr.bf16.mxu0 %v12510_v0  ;;  %s12514_s11 = smov 6   ;;  %vm441_vm3 = vcmask 130048   ;;  %vm1495_vm4 = vcmask 195584   ;;  %vm1718_vm5 = vcmask 523264  }
   0x2   :  { %10959 = vmatprep.mubr.msk.bf16.mxu1 %vm12512_vm0, %v12510_v0  ;;  %s12570_s10 = sld [smem:[%s14342_s0 + %s12513_s7]]   ;;  %10951 = vmatprep.mubr.msk.bf16.mxu0 %vm12512_vm0, %v12510_v0  ;;  %s12515_s18 = smov 16  }
   0x3   :  { %s12605_s14 = sld [smem:[%s14342_s0 + %s12514_s11]]   ;;  %s12516_s19 = smov 8  }
   0x4   :  { %s12617_s17 = sld [smem:[%s14342_s0]]   ;;  %s12517_s20 = smov 7  }
   0x5   :  { %s12803_s23 = sld [smem:[%s14342_s0 + %s12517_s20]]   ;;  %s12518_s24 = smov 24  }
   0x6   :  { %s12825_s27 = sld [smem:[%s14342_s0 + %s12516_s19]]   ;;  %s12519_s28 = smov 11  }
   0x7   :  { %v12080_v1 = vld [vmem:[%s12562_s6 + $0x40] sm:$0xff]   ;;  %v12081_v2 = vld [vmem:[%s12562_s6 + $0x48] sm:$0xff]   ;;  %v12088_v47 = vld [vmem:[%s12562_s6 + $0x10] sm:$0xff]   ;;  %s12837_s1 = sld [smem:[%s14342_s0 + %s12519_s28]]   ;;  %s12520_s2 = smov 13  }
   0x8   :  { %10956 = vmatpush3.bf16.msra.mxu1 %v12080_v1  ;;  %v12082_v3 = vld [vmem:[%s12562_s6] sm:$0xff]   ;;  %v172_v5 = vld [vmem:[%s12570_s10 + $0x8] sm:$0xff]  ;;  %v12089_v48 = vld [vmem:[%s12562_s6 + $0x18] sm:$0xff]   ;;  %s12846_s5 = sld [smem:[%s14342_s0 + %s12520_s2]]   ;;  %s12521_s7 = smov 9  }
   0x9   :  { %10957 = vmatprep.subr.bf16.mxu1 %v12510_v0  ;;  %v171_v4 = vld [vmem:[%s12570_s10] sm:$0xff]  ;;  %10948 = vmatpush3.bf16.msra.mxu0 %v12082_v3  ;;  %v12083_v6 = vld [vmem:[%s12562_s6 + $0x8] sm:$0xff]   ;;  %v12086_v57 = vld [vmem:[%s12562_s6 + $0x50] sm:$0xff]   ;;  %s12522_s11 = smov 10   ;;  %s12523_s16 = smov 12  }
   0xa   :  { %v12581_v7 = vpack.c.bf16 %v172_v5, %v171_v4  ;;  %10949 = vmatprep.subr.bf16.mxu0 %v12510_v0  ;;  %v12084_v8 = vld [vmem:[%s12562_s6 + $0x80] sm:$0xff]   ;;  %v12085_v9 = vld [vmem:[%s12562_s6 + $0x88] sm:$0xff]   ;;  %v12087_v59 = vld [vmem:[%s12562_s6 + $0x58] sm:$0xff]   ;;  %s12860_s15 = sld [smem:[%s14342_s0 + %s12522_s11]]   ;;  %s12524_s25 = smov 14  }
   0xb   :  { %v9765_v10 = vld [vmem:[%s12605_s14 + $0x4] ss:$0 sm:$0xff]  ;;  %v9756_v12 = vld [vmem:[%s12605_s14] ss:$0 sm:$0xff]  ;;  %v12623_v32 = vld [vmem:[%s12617_s17 + $0x8] sm:$0xff]  ;;  %s12874_s22 = sld [smem:[%s14342_s0 + %s12523_s16]]   ;;  %s12525_s30 = smov 15  }
   0xc   :  { %10958 = vmatpush3.bf16.msra.mxu1 %v12081_v2  ;;  %v12620_v28 = vld [vmem:[%s12617_s17] sm:$0xff]  ;;  %v9774_v39 = vld [vmem:[%s12605_s14 + $0x8] ss:$0 sm:$0xff]  ;;  %v12090_v5 = vld [vmem:[%s12562_s6 + $0x90] sm:$0xff]   ;;  %s12883_s29 = sld [smem:[%s14342_s0 + %s12524_s25]]   ;;  %s12530_s25 = smov 21  }
   0xd   :  { %10971 = vmatprep.subr.bf16.mxu1 %v12510_v0  ;;  %10950 = vmatpush3.bf16.msra.mxu0 %v12083_v6  ;;  %v9785_v60 = vld [vmem:[%s12605_s14 + $0x1] ss:$0 sm:$0xff]  ;;  %v12091_v6 = vld [vmem:[%s12562_s6 + $0x98] sm:$0xff]   ;;  %s12901_s4 = sld [smem:[%s14342_s0 + %s12525_s30]]   ;;  %s12531_s30 = smov 22  }
   0xe   :  { %10963 = vmatprep.subr.bf16.mxu0 %v12510_v0  ;;  %s12907_s9 = sld [smem:[%s14342_s0 + %s12515_s18]]   ;;  %s12534_s11 = smov 23  }
   0xf   :  { %10960 = vmatmul.mubr.msk.bf16.vlgmr.msra.gmra.mrb[0].mxu1 %vm210_vm1, %v12581_v7  ;;  %s13482_s13 = sld [smem:[%s14342_s0 + %s12534_s11]]   ;;  %s12537_s8 = smov 2  }
  0x10   :  { %10973 = vmatprep.mubr.msk.bf16.mxu1 %vm12512_vm0, %v12510_v0  ;;  %10952 = vmatmul.mubr.msk.bf16.vlgmr.msra.gmra.mrb[0].mxu0 %vm210_vm1, %v12581_v7  ;;  %s13491_s28 = sld [smem:[%s14342_s0 + %s12518_s24]]   ;;  %s12541_s2 = smov 33  }
  0x11   :  { %10967 = vmatprep.mubr.msk.bf16.mxu0 %vm12512_vm0, %v12510_v0  ;;  %10964 = vmatpush3.bf16.msra.mxu0 %v12084_v8  ;;  %s12547_s26 = smov 36  }
  0x12   :  { %10965 = vmatprep.subr.bf16.mxu0 %v12510_v0 }
  0x15   :  { %10966 = vmatpush3.bf16.msra.mxu0 %v12085_v9 }
  0x16   :  { %10977 = vmatprep.subr.bf16.mxu0 %v12510_v0 }
  0x18   :  { %10968 = vmatmul.mubr.msk.bf16.vlgmr.msra.gmra.mrb[4].mxu0 %vm210_vm1, %v12581_v7 }
  0x19   :  { %10979 = vmatprep.mubr.msk.bf16.mxu0 %vm12512_vm0, %v12510_v0 }
  0xe2   :  { %v314_v11 = vpop.f32.mrb[0].mxu1 }
  0xe3   :  { %v10961_v13 = vpop.f32.mrb[1].mxu1  ;;  %v248_v15 = vpop.f32.mrb[0].mxu0  ;;  %v315_v16 = vadd.f32 %v9765_v10, %v314_v11 }
  0xe4   :  { %v317_v14 = vpop.f32.mrb[2].mxu1  ;;  %v249_v19 = vadd.f32 %v9756_v12, %v248_v15  ;;  %v10953_v20 = vpop.f32.mrb[1].mxu0 }
  0xe5   :  { %v318_v17 = vadd.f32 %v9765_v10, %v317_v14  ;;  %v10962_v18 = vpop.f32.mrb[3].mxu1  ;;  %v251_v21 = vpop.f32.mrb[2].mxu0 }
  0xe6   :  { %v252_v22 = vadd.f32 %v9756_v12, %v251_v21  ;;  %v10954_v23 = vpop.f32.mrb[3].mxu0  ;;  %v9794_v12 = vld [vmem:[%s12605_s14 + $0x5] ss:$0 sm:$0xff] }
  0xe7   :  { %v388_v24 = vpack.c.bf16 %v318_v17, %v315_v16 }
  0xe8   :  { %v387_v25 = vpack.c.bf16 %v252_v22, %v249_v19 }
  0xe9   :  { %v394_v26 = vsel %vm389_vm2, %v388_v24, 0 }
  0xea   :  { %10972 = vmatpush3.bf16.xpose.msra.mxu1 %v394_v26 }
  0xeb   :  { %10983 = vmatprep.subr.bf16.mxu1 %v12510_v0  ;;  %v380_v40 = vpop.f32.mrb[4].mxu0 }
  0xec   :  { %v381_v41 = vadd.f32 %v9774_v39, %v380_v40  ;;  %v10969_v42 = vpop.f32.mrb[5].mxu0 }
  0xed   :  { %v383_v43 = vpop.f32.mrb[6].mxu0  ;;  %v12095_v42 = vld [vmem:[%s12562_s6 + $0x28] sm:$0xff]  }
  0xee   :  { %v384_v44 = vadd.f32 %v9774_v39, %v383_v43  ;;  %v10970_v45 = vpop.f32.mrb[7].mxu0 }
  0xf0   :  { %v455_v46 = vpack.c.bf16 %v384_v44, %v381_v41  ;;  %v12094_v41 = vld [vmem:[%s12562_s6 + $0x20] sm:$0xff]  }
  0xf1   :  { %10974 = vmatmul.mubr.msk.bf16.vlgmr.msra.gmra.mrb[4].mxu1 %vm389_vm2, %v387_v25 }
  0xf2   :  { %10987 = vmatprep.mubr.msk.bf16.mxu1 %vm12512_vm0, %v12510_v0  ;;  %10978 = vmatpush3.bf16.msra.mxu0 %v455_v46 }
  0xf3   :  { %10991 = vmatprep.subr.bf16.mxu0 %v12510_v0  ;;  %10984 = vmatpush3.bf16.msra.mxu1 %v12088_v47 }
  0xf4   :  { %10985 = vmatprep.subr.bf16.mxu1 %v12510_v0 }
  0xf7   :  { %10986 = vmatpush3.bf16.msra.mxu1 %v12089_v48 }
  0xf8   :  { %10999 = vmatprep.subr.bf16.mxu1 %v12510_v0 }
  0xfa   :  { %10988 = vmatmul.mubr.msk.bf16.vlgmr.msra.gmra.mrb[8].mxu1 %vm210_vm1, %v12581_v7 }
  0xfb   :  { %11003 = vmatprep.mubr.msk.bf16.mxu1 %vm12512_vm0, %v12510_v0  ;;  %11000 = vmatpush3.bf16.msra.mxu1 %v12090_v5 }
  0xfc   :  { %11001 = vmatprep.subr.bf16.mxu1 %v12510_v0 }
  0xff   :  { %11002 = vmatpush3.bf16.msra.mxu1 %v12091_v6 }
 0x100   :  { %11013 = vmatprep.subr.bf16.mxu1 %v12510_v0 }
 0x102   :  { %11004 = vmatmul.mubr.msk.bf16.vlgmr.msra.gmra.mrb[12].mxu1 %vm210_vm1, %v12581_v7 }
 0x103   :  { %11015 = vmatprep.mubr.msk.bf16.mxu1 %vm12512_vm0, %v12510_v0 }
 0x1c4   :  { %v430_v27 = vpop.f32.mrb[4].mxu1 }
 0x1c5   :  { %v437_v29 = vmul.f32 0.35355338, %v430_v27  ;;  %v10975_v30 = vpop.f32.mrb[5].mxu1 }
 0x1c6   :  { %v433_v31 = vpop.f32.mrb[6].mxu1 }
 0x1c7   :  { %v438_v33 = vmul.f32 0.35355338, %v433_v31  ;;  %v10976_v34 = vpop.f32.mrb[7].mxu1  ;;  %v439_v35 = vadd.f32 %v437_v29, %v12620_v28 }
 0x1c9   :  { %v442_v36 = vsel %vm441_vm3, %v439_v35, -inf  ;;  %v440_v37 = vadd.f32 %v438_v33, %v12623_v32  ;;  %v9803_v33 = vld [vmem:[%s12605_s14 + $0x9] ss:$0 sm:$0xff] }
 0x1ca   :  { %443 = vmax.xlane.f32.xlu0 %v442_v36 }
 0x1cb   :  { %v445_v38 = vsel %vm441_vm3, %v440_v37, -inf }
 0x1cd   :  { %v569_v61 = vpop.f32.mrb[8].mxu1 }
 0x1ce   :  { %446 = vmax.xlane.f32.xlu0 %v445_v38  ;;  %v570_v62 = vadd.f32 %v9785_v60, %v569_v61  ;;  %v10989_v63 = vpop.f32.mrb[9].mxu1 }
 0x1cf   :  { %v572_v1 = vpop.f32.mrb[10].mxu1 }
 0x1d0   :  { %v573_v2 = vadd.f32 %v9785_v60, %v572_v1  ;;  %v10990_v3 = vpop.f32.mrb[11].mxu1  ;;  %v12096_v1 = vld [vmem:[%s12562_s6 + $0xa0] sm:$0xff]  }
 0x1d2   :  { %v708_v4 = vpack.c.bf16 %v573_v2, %v570_v62  ;;  %v12097_v2 = vld [vmem:[%s12562_s6 + $0xa8] sm:$0xff]  }
 0x1d5   :  { %v701_v34 = vpop.f32.mrb[12].mxu1 }
 0x1d6   :  { %v11005_v36 = vpop.f32.mrb[13].mxu1 }
 0x257   :  { %v444_v49 = vpop.xlane.xlu0 %443 }
 0x258   :  { %v448_v50 = vsub.f32 %v439_v35, %v444_v49  ;;  %v702_v35 = vadd.f32 %v9803_v33, %v701_v34 }
 0x25a   :  { %v450_v51 = vmul.f32 1.442695, %v448_v50 }
 0x25b   :  { %v447_v52 = vpop.xlane.xlu0 %446 }
 0x25c   :  { %v449_v53 = vsub.f32 %v440_v37, %v447_v52  ;;  %12262 = vpow2.f32 %v450_v51  ;;  %v704_v37 = vpop.f32.mrb[14].mxu1  ;;  %v12092_v51 = vld [vmem:[%s12562_s6 + $0x60] sm:$0xff]  }
 0x25d   :  { %v705_v38 = vadd.f32 %v9803_v33, %v704_v37  ;;  %v11006_v39 = vpop.f32.mrb[15].mxu1 }
 0x25e   :  { %v452_v54 = vmul.f32 1.442695, %v449_v53  ;;  %v12093_v53 = vld [vmem:[%s12562_s6 + $0x68] sm:$0xff]   ;;  %v12100_v39 = vld [vmem:[%s12562_s6 + $0x30] sm:$0xff]  }
 0x25f   :  { %v774_v40 = vpack.c.bf16 %v705_v38, %v702_v35 }
 0x260   :  { %12264 = vpow2.f32 %v452_v54  ;;  %v9814_v54 = vld [vmem:[%s12605_s14 + $0x2] ss:$0 sm:$0xff] }
 0x261   :  { %11014 = vmatpush3.bf16.msra.mxu1 %v774_v40  ;;  %v12101_v40 = vld [vmem:[%s12562_s6 + $0x38] sm:$0xff]  }
 0x262   :  { %11027 = vmatprep.subr.bf16.mxu1 %v12510_v0 }
 0x266   :  { %v12639_v55 = vpop.eup %12262 }
 0x26a   :  { %v12641_v56 = vpop.eup %12264 }
 0x26b   :  { %v454_v58 = vpack.c.bf16 %v12641_v56, %v12639_v55 }
 0x26d   :  { %10980 = vmatmul.mubr.msk.bf16.vlgmr.msra.gmra.mrb[8].mxu0 %vm441_vm3, %v454_v58 }
 0x26e   :  { %10992 = vmatpush3.bf16.msra.mxu0 %v12086_v57  ;;  %10995 = vmatprep.mubr.msk.bf16.mxu0 %vm12512_vm0, %v12510_v0 }
 0x26f   :  { %10993 = vmatprep.subr.bf16.mxu0 %v12510_v0 }
 0x272   :  { %10994 = vmatpush3.bf16.msra.mxu0 %v12087_v59 }
 0x273   :  { %11007 = vmatprep.subr.bf16.mxu0 %v12510_v0 }
 0x275   :  { %10996 = vmatmul.mubr.msk.bf16.vlgmr.msra.gmra.mrb[12].mxu0 %vm210_vm1, %v12581_v7 }
 0x276   :  { %11009 = vmatprep.mubr.msk.bf16.mxu0 %vm12512_vm0, %v12510_v0 }
 0x340   :  { %v12665_v8 = vpop.f32.mrb[8].mxu0 }
 0x341   :  { %v10981_v9 = vpop.f32.mrb[9].mxu0 }
 0x342   :  { %v12667_v10 = vpop.f32.mrb[10].mxu0  ;;  %v9823_v9 = vld [vmem:[%s12605_s14 + $0x6] ss:$0 sm:$0xff] }
 0x343   :  { %v10982_v11 = vpop.f32.mrb[11].mxu0 }
 0x348   :  { %v635_v13 = vpop.f32.mrb[12].mxu0 }
 0x349   :  { %v10997_v14 = vpop.f32.mrb[13].mxu0  ;;  %v636_v16 = vadd.f32 %v9794_v12, %v635_v13 }
 0x34a   :  { %v638_v15 = vpop.f32.mrb[14].mxu0 }
 0x34b   :  { %v639_v17 = vadd.f32 %v9794_v12, %v638_v15  ;;  %v10998_v18 = vpop.f32.mrb[15].mxu0 }
 0x34d   :  { %v709_v19 = vpack.c.bf16 %v639_v17, %v636_v16 }
 0x34f   :  { %v714_v20 = vsel %vm389_vm2, %v709_v19, 0 }
 0x350   :  { %11008 = vmatpush3.bf16.xpose.msra.mxu0 %v714_v20 }
 0x351   :  { %11019 = vmatprep.subr.bf16.mxu0 %v12510_v0 }
 0x357   :  { %11010 = vmatmul.mubr.msk.bf16.vlgmr.msra.gmra.mrb[16].mxu0 %vm389_vm2, %v708_v4 }
 0x358   :  { %11023 = vmatprep.mubr.msk.bf16.mxu0 %vm12512_vm0, %v12510_v0  ;;  %11020 = vmatpush3.bf16.msra.mxu0 %v12094_v41 }
 0x359   :  { %11021 = vmatprep.subr.bf16.mxu0 %v12510_v0 }
 0x35c   :  { %11022 = vmatpush3.bf16.msra.mxu0 %v12095_v42 }
 0x35d   :  { %11035 = vmatprep.subr.bf16.mxu0 %v12510_v0 }
 0x35f   :  { %11024 = vmatmul.mubr.msk.bf16.vlgmr.msra.gmra.mrb[20].mxu0 %vm210_vm1, %v12581_v7 }
 0x360   :  { %11039 = vmatprep.mubr.msk.bf16.mxu0 %vm12512_vm0, %v12510_v0  ;;  %11036 = vmatpush3.bf16.msra.mxu0 %v12096_v1  ;;  %v12102_v1 = vld [vmem:[%s12562_s6 + $0xb0] sm:$0xff]  }
 0x361   :  { %11037 = vmatprep.subr.bf16.mxu0 %v12510_v0 }
 0x364   :  { %11038 = vmatpush3.bf16.msra.mxu0 %v12097_v2  ;;  %v12103_v2 = vld [vmem:[%s12562_s6 + $0xb8] sm:$0xff]  }
 0x365   :  { %11049 = vmatprep.subr.bf16.mxu0 %v12510_v0 }
 0x367   :  { %11040 = vmatmul.mubr.msk.bf16.vlgmr.msra.gmra.mrb[24].mxu0 %vm210_vm1, %v12581_v7 }
 0x368   :  { %11051 = vmatprep.mubr.msk.bf16.mxu0 %vm12512_vm0, %v12510_v0 }
 0x42a   :  { %v750_v21 = vpop.f32.mrb[16].mxu0 }
 0x42b   :  { %v757_v22 = vmul.f32 0.35355338, %v750_v21  ;;  %v11011_v23 = vpop.f32.mrb[17].mxu0 }
 0x42c   :  { %v753_v24 = vpop.f32.mrb[18].mxu0 }
 0x42d   :  { %v758_v25 = vmul.f32 0.35355338, %v753_v24  ;;  %v11012_v26 = vpop.f32.mrb[19].mxu0  ;;  %v759_v27 = vadd.f32 %v757_v22, %v12620_v28 }
 0x42f   :  { %v761_v29 = vsel %vm441_vm3, %v759_v27, -inf  ;;  %v760_v30 = vadd.f32 %v758_v25, %v12623_v32 }
 0x430   :  { %762 = vmax.xlane.f32.xlu1 %v761_v29 }
 0x431   :  { %v764_v31 = vsel %vm441_vm3, %v760_v30, -inf }
 0x432   :  { %v888_v57 = vpop.f32.mrb[20].mxu0 }
 0x433   :  { %v889_v58 = vadd.f32 %v9814_v54, %v888_v57  ;;  %v11025_v59 = vpop.f32.mrb[21].mxu0 }
 0x434   :  { %765 = vmax.xlane.f32.xlu1 %v764_v31  ;;  %v891_v60 = vpop.f32.mrb[22].mxu0 }
 0x435   :  { %v892_v61 = vadd.f32 %v9814_v54, %v891_v60  ;;  %v11026_v62 = vpop.f32.mrb[23].mxu0  ;;  %v9843_v54 = vld [vmem:[%s12605_s14 + $0x3] ss:$0 sm:$0xff] }
 0x437   :  { %v1027_v63 = vpack.c.bf16 %v892_v61, %v889_v58 }
 0x43a   :  { %v1020_v31 = vpop.f32.mrb[24].mxu0 }
 0x43b   :  { %v11041_v34 = vpop.f32.mrb[25].mxu0 }
 0x43c   :  { %v1023_v35 = vpop.f32.mrb[26].mxu0 }
 0x43d   :  { %v11042_v37 = vpop.f32.mrb[27].mxu0 }
 0x4bd   :  { %v763_v43 = vpop.xlane.xlu1 %762 }
 0x4be   :  { %v767_v44 = vsub.f32 %v759_v27, %v763_v43 }
 0x4c0   :  { %v769_v45 = vmul.f32 1.442695, %v767_v44 }
 0x4c1   :  { %v766_v46 = vpop.xlane.xlu1 %765 }
 0x4c2   :  { %v768_v47 = vsub.f32 %v760_v30, %v766_v46  ;;  %12266 = vpow2.f32 %v769_v45  ;;  %v9832_v30 = vld [vmem:[%s12605_s14 + $0xa] ss:$0 sm:$0xff] }
 0x4c3   :  { %v1021_v33 = vadd.f32 %v9832_v30, %v1020_v31  ;;  %v1024_v36 = vadd.f32 %v9832_v30, %v1023_v35 }
 0x4c4   :  { %v771_v48 = vmul.f32 1.442695, %v768_v47 }
 0x4c5   :  { %v1093_v38 = vpack.c.bf16 %v1024_v36, %v1021_v33 }
 0x4c6   :  { %12268 = vpow2.f32 %v771_v48 }
 0x4c7   :  { %11050 = vmatpush3.bf16.msra.mxu0 %v1093_v38 }
 0x4c8   :  { %11063 = vmatprep.subr.bf16.mxu0 %v12510_v0 }
 0x4cc   :  { %v12689_v49 = vpop.eup %12266 }
 0x4cd   :  { %v819_v31 = vsel %vm441_vm3, %v12689_v49, 0.0 }
 0x4d0   :  { %v12691_v50 = vpop.eup %12268 }
 0x4d1   :  { %v773_v52 = vpack.c.bf16 %v12691_v50, %v12689_v49  ;;  %v822_v33 = vsel %vm441_vm3, %v12691_v50, 0.0 }
 0x4d3   :  { %11016 = vmatmul.mubr.msk.bf16.vlgmr.msra.gmra.mrb[16].mxu1 %vm441_vm3, %v773_v52 }
 0x4d4   :  { %11028 = vmatpush3.bf16.msra.mxu1 %v12092_v51  ;;  %11031 = vmatprep.mubr.msk.bf16.mxu1 %vm12512_vm0, %v12510_v0  ;;  %v12098_v51 = vld [vmem:[%s12562_s6 + $0x70] sm:$0xff]  }
 0x4d5   :  { %11029 = vmatprep.subr.bf16.mxu1 %v12510_v0 }
 0x4d8   :  { %11030 = vmatpush3.bf16.msra.mxu1 %v12093_v53  ;;  %v12099_v53 = vld [vmem:[%s12562_s6 + $0x78] sm:$0xff]  }
 0x4d9   :  { %11043 = vmatprep.subr.bf16.mxu1 %v12510_v0 }
 0x4db   :  { %11032 = vmatmul.mubr.msk.bf16.vlgmr.msra.gmra.mrb[20].mxu1 %vm210_vm1, %v12581_v7 }
 0x4dc   :  { %11045 = vmatprep.mubr.msk.bf16.mxu1 %vm12512_vm0, %v12510_v0 }
 0x5a6   :  { %v12715_v3 = vpop.f32.mrb[16].mxu1 }
 0x5a7   :  { %v11017_v4 = vpop.f32.mrb[17].mxu1 }
 0x5a8   :  { %v12717_v5 = vpop.f32.mrb[18].mxu1 }
 0x5a9   :  { %v11018_v6 = vpop.f32.mrb[19].mxu1 }
 0x5ae   :  { %v954_v11 = vpop.f32.mrb[20].mxu1 }
 0x5af   :  { %v11033_v12 = vpop.f32.mrb[21].mxu1  ;;  %v955_v14 = vadd.f32 %v9823_v9, %v954_v11 }
 0x5b0   :  { %v957_v13 = vpop.f32.mrb[22].mxu1  ;;  %v9852_v12 = vld [vmem:[%s12605_s14 + $0x7] ss:$0 sm:$0xff] }
 0x5b1   :  { %v958_v15 = vadd.f32 %v9823_v9, %v957_v13  ;;  %v11034_v16 = vpop.f32.mrb[23].mxu1 }
 0x5b3   :  { %v1028_v17 = vpack.c.bf16 %v958_v15, %v955_v14 }
 0x5b5   :  { %v1033_v18 = vsel %vm389_vm2, %v1028_v17, 0 }
 0x5b6   :  { %11044 = vmatpush3.bf16.xpose.msra.mxu1 %v1033_v18 }
 0x5b7   :  { %11055 = vmatprep.subr.bf16.mxu1 %v12510_v0 }
 0x5bd   :  { %11046 = vmatmul.mubr.msk.bf16.vlgmr.msra.gmra.mrb[24].mxu1 %vm389_vm2, %v1027_v63 }
 0x5be   :  { %11059 = vmatprep.mubr.msk.bf16.mxu1 %vm12512_vm0, %v12510_v0  ;;  %11056 = vmatpush3.bf16.msra.mxu1 %v12100_v39 }
 0x5bf   :  { %11057 = vmatprep.subr.bf16.mxu1 %v12510_v0 }
 0x5c2   :  { %11058 = vmatpush3.bf16.msra.mxu1 %v12101_v40 }
 0x5c3   :  { %11071 = vmatprep.subr.bf16.mxu1 %v12510_v0 }
 0x5c5   :  { %11060 = vmatmul.mubr.msk.bf16.vlgmr.msra.gmra.mrb[28].mxu1 %vm210_vm1, %v12581_v7 }
 0x5c6   :  { %11075 = vmatprep.mubr.msk.bf16.mxu1 %vm12512_vm0, %v12510_v0  ;;  %11072 = vmatpush3.bf16.msra.mxu1 %v12102_v1  ;;  %v500_v1 = vsel %vm441_vm3, %v12639_v55, 0.0  ;;  %v12104_v55 = vld [vmem:[%s12803_s23] sm:$0xff]  }
 0x5c7   :  { %11073 = vmatprep.subr.bf16.mxu1 %v12510_v0 }
 0x5ca   :  { %11074 = vmatpush3.bf16.msra.mxu1 %v12103_v2 }
 0x5cb   :  { %11085 = vmatprep.subr.bf16.mxu1 %v12510_v0 }
 0x5cd   :  { %11076 = vmatmul.mubr.msk.bf16.vlgmr.msra.gmra.mrb[32].mxu1 %vm210_vm1, %v12581_v7 }
 0x5ce   :  { %11087 = vmatprep.mubr.msk.bf16.mxu1 %vm12512_vm0, %v12510_v0 }
 0x690   :  { %v1069_v19 = vpop.f32.mrb[24].mxu1 }
 0x691   :  { %v1076_v20 = vmul.f32 0.35355338, %v1069_v19  ;;  %v11047_v21 = vpop.f32.mrb[25].mxu1 }
 0x692   :  { %v1072_v22 = vpop.f32.mrb[26].mxu1 }
 0x693   :  { %v1077_v23 = vmul.f32 0.35355338, %v1072_v22  ;;  %v11048_v24 = vpop.f32.mrb[27].mxu1  ;;  %v1078_v25 = vadd.f32 %v1076_v20, %v12620_v28 }
 0x695   :  { %v1080_v26 = vsel %vm441_vm3, %v1078_v25, -inf  ;;  %v1079_v27 = vadd.f32 %v1077_v23, %v12623_v32 }
 0x696   :  { %1081 = vmax.xlane.f32.xlu0 %v1080_v26 }
 0x697   :  { %v1083_v29 = vsel %vm441_vm3, %v1079_v27, -inf }
 0x698   :  { %1084 = vmax.xlane.f32.xlu1 %v1083_v29  ;;  %v1207_v57 = vpop.f32.mrb[28].mxu1 }
 0x699   :  { %v1208_v58 = vadd.f32 %v9843_v54, %v1207_v57  ;;  %v11061_v59 = vpop.f32.mrb[29].mxu1 }
 0x69a   :  { %v1210_v60 = vpop.f32.mrb[30].mxu1 }
 0x69b   :  { %v1211_v61 = vadd.f32 %v9843_v54, %v1210_v60  ;;  %v11062_v62 = vpop.f32.mrb[31].mxu1 }
 0x69d   :  { %v1346_v63 = vpack.c.bf16 %v1211_v61, %v1208_v58 }
 0x6a0   :  { %v1339_v35 = vpop.f32.mrb[32].mxu1 }
 0x6a1   :  { %v11077_v37 = vpop.f32.mrb[33].mxu1 }
 0x6a2   :  { %v1342_v38 = vpop.f32.mrb[34].mxu1 }
 0x6a3   :  { %v11078_v40 = vpop.f32.mrb[35].mxu1 }
 0x723   :  { %v1082_v41 = vpop.xlane.xlu0 %1081 }
 0x724   :  { %v1086_v42 = vsub.f32 %v1078_v25, %v1082_v41 }
 0x725   :  { %v1085_v43 = vpop.xlane.xlu1 %1084 }
 0x726   :  { %v1088_v44 = vmul.f32 1.442695, %v1086_v42  ;;  %v1087_v45 = vsub.f32 %v1079_v27, %v1085_v43 }
 0x728   :  { %v1090_v46 = vmul.f32 1.442695, %v1087_v45  ;;  %12270 = vpow2.f32 %v1088_v44 }
 0x72a   :  { %12272 = vpow2.f32 %v1090_v46 }
 0x732   :  { %v12271_v47 = vpop.eup %12270 }
 0x733   :  { %v1138_v34 = vsel %vm441_vm3, %v12271_v47, 0.0 }
 0x734   :  { %v12739_v48 = vpop.eup %12272 }
 0x735   :  { %v1092_v52 = vpack.c.bf16 %v12739_v48, %v12271_v47 }
 0x737   :  { %11052 = vmatmul.mubr.msk.bf16.vlgmr.msra.gmra.mrb[28].mxu0 %vm441_vm3, %v1092_v52 }
 0x738   :  { %11064 = vmatpush3.bf16.msra.mxu0 %v12098_v51  ;;  %11067 = vmatprep.mubr.msk.bf16.mxu0 %vm12512_vm0, %v12510_v0 }
 0x739   :  { %11065 = vmatprep.subr.bf16.mxu0 %v12510_v0 }
 0x73c   :  { %11066 = vmatpush3.bf16.msra.mxu0 %v12099_v53 }
 0x73d   :  { %11079 = vmatprep.subr.bf16.mxu0 %v12510_v0 }
 0x73f   :  { %11068 = vmatmul.mubr.msk.bf16.vlgmr.msra.gmra.mrb[32].mxu0 %vm210_vm1, %v12581_v7 }
 0x740   :  { %11081 = vmatprep.mubr.msk.bf16.mxu0 %vm12512_vm0, %v12510_v0 }
 0x80a   :  { %v12762_v4 = vpop.f32.mrb[28].mxu0 }
 0x80b   :  { %v11053_v6 = vpop.f32.mrb[29].mxu0 }
 0x80c   :  { %v12764_v9 = vpop.f32.mrb[30].mxu0 }
 0x80d   :  { %v11054_v11 = vpop.f32.mrb[31].mxu0 }
 0x80e   :  { %v503_v11 = vsel %vm441_vm3, %v12641_v56, 0.0 }
 0x812   :  { %v1273_v13 = vpop.f32.mrb[32].mxu0 }
 0x813   :  { %v11069_v14 = vpop.f32.mrb[33].mxu0  ;;  %v1274_v16 = vadd.f32 %v9852_v12, %v1273_v13 }
 0x814   :  { %v1276_v15 = vpop.f32.mrb[34].mxu0 }
 0x815   :  { %v1277_v17 = vadd.f32 %v9852_v12, %v1276_v15  ;;  %v11070_v18 = vpop.f32.mrb[35].mxu0 }
 0x817   :  { %v1347_v19 = vpack.c.bf16 %v1277_v17, %v1274_v16 }
 0x819   :  { %v1352_v20 = vsel %vm389_vm2, %v1347_v19, 0 }
 0x81a   :  { %11080 = vmatpush3.bf16.xpose.msra.mxu0 %v1352_v20 }
 0x81b   :  { %11091 = vmatprep.subr.bf16.mxu0 %v12510_v0 }
 0x821   :  { %11082 = vmatmul.mubr.msk.bf16.vlgmr.msra.gmra.mrb[36].mxu0 %vm389_vm2, %v1346_v63 }
 0x822   :  { %11095 = vmatprep.mubr.msk.bf16.mxu0 %vm12512_vm0, %v12510_v0  ;;  %11092 = vmatpush3.bf16.msra.mxu0 %v12104_v55 }
 0x823   :  { %11093 = vmatprep.subr.bf16.mxu0 %v12510_v0 }
 0x8f4   :  { %v1388_v7 = vpop.f32.mrb[36].mxu0 }
 0x8f5   :  { %v1395_v21 = vmul.f32 0.35355338, %v1388_v7  ;;  %v11083_v22 = vpop.f32.mrb[37].mxu0 }
 0x8f6   :  { %v1391_v23 = vpop.f32.mrb[38].mxu0 }
 0x8f7   :  { %v1396_v24 = vmul.f32 0.35355338, %v1391_v23  ;;  %v11084_v25 = vpop.f32.mrb[39].mxu0  ;;  %v1397_v26 = vadd.f32 %v1395_v21, %v12620_v28  ;;  %v1141_v28 = vsel %vm441_vm3, %v12739_v48, 0.0 }
 0x8f9   :  { %v1399_v27 = vsel %vm441_vm3, %v1397_v26, -inf  ;;  %v1398_v29 = vadd.f32 %v1396_v24, %v12623_v32  ;;  %v9861_v32 = vld [vmem:[%s12605_s14 + $0xb] ss:$0 sm:$0xff] }
 0x8fa   :  { %1400 = vmax.xlane.f32.xlu0 %v1399_v27  ;;  %v1340_v36 = vadd.f32 %v9861_v32, %v1339_v35  ;;  %v1343_v39 = vadd.f32 %v9861_v32, %v1342_v38 }
 0x8fb   :  { %v1402_v30 = vsel %vm441_vm3, %v1398_v29, -inf }
 0x8fc   :  { %1403 = vmax.xlane.f32.xlu1 %v1402_v30  ;;  %v1412_v49 = vpack.c.bf16 %v1343_v39, %v1340_v36 }
 0x8fe   :  { %820 = vadd.xlane.f32.xlu0 %v819_v31  ;;  %11086 = vmatpush3.bf16.msra.mxu1 %v1412_v49  ;;  %v9867_v49 = vld [vmem:[%s12825_s27] ss:$0 sm:$0xff] }
 0x8ff   :  { %11099 = vmatprep.subr.bf16.mxu1 %v12510_v0 }
 0x900   :  { %823 = vadd.xlane.f32.xlu1 %v822_v33 }
 0x902   :  { %1139 = vadd.xlane.f32.xlu0 %v1138_v34 }
 0x904   :  { %1142 = vadd.xlane.f32.xlu1 %v1141_v28 }
 0x987   :  { %v1401_v50 = vpop.xlane.xlu0 %1400 }
 0x988   :  { %v1405_v41 = vsub.f32 %v1397_v26, %v1401_v50 }
 0x989   :  { %v1404_v42 = vpop.xlane.xlu1 %1403 }
 0x98a   :  { %v1407_v43 = vmul.f32 1.442695, %v1405_v41  ;;  %v1406_v44 = vsub.f32 %v1398_v29, %v1404_v42 }
 0x98b   :  { %v821_v45 = vpop.xlane.xlu0 %820 }
 0x98c   :  { %12274 = vpow2.f32 %v1407_v43  ;;  %v1409_v46 = vmul.f32 1.442695, %v1406_v44 }
 0x98d   :  { %12276 = vrcp.f32 %v821_v45  ;;  %v824_v47 = vpop.xlane.xlu1 %823 }
 0x98e   :  { %12278 = vpow2.f32 %v1409_v46  ;;  %v12502_v46 = vld [vmem:[%s12570_s10] sm:$0xff] }
 0x98f   :  { %12280 = vrcp.f32 %v824_v47  ;;  %v1140_v48 = vpop.xlane.xlu0 %1139 }
 0x990   :  { %12282 = vrcp.f32 %v1140_v48 }
 0x991   :  { %v1143_v51 = vpop.xlane.xlu1 %1142 }
 0x992   :  { %12284 = vrcp.f32 %v1143_v51  ;;  %v12503_v51 = vld [vmem:[%s12570_s10 + $0x8] sm:$0xff]  ;;  %s12855_s10 = sld [smem:[%s14342_s0 + %s12521_s7]]  }
 0x993   :  { %s13448_s7 = sld [smem:[%s14342_s0 + %s12531_s30]]   ;;  %s12536_s30 = smov 26  }
 0x996   :  { %v12275_v52 = vpop.eup %12274 }
 0x997   :  { %v12277_v53 = vpop.eup %12276  ;;  %v1457_v54 = vsel %vm441_vm3, %v12275_v52, 0.0 }
 0x998   :  { %v12279_v57 = vpop.eup %12278  ;;  %1458 = vadd.xlane.f32.xlu0 %v1457_v54  ;;  %v827_v62 = vmul.f32 %v12277_v53, %v12715_v3 }
 0x999   :  { %v12281_v58 = vpop.eup %12280  ;;  %v1460_v59 = vsel %vm441_vm3, %v12279_v57, 0.0  ;;  %v1411_v60 = vpack.c.bf16 %v12279_v57, %v12275_v52 }
 0x99a   :  { %v12283_v61 = vpop.eup %12282  ;;  %1461 = vadd.xlane.f32.xlu1 %v1460_v59  ;;  %v828_v63 = vmul.f32 %v12281_v58, %v12717_v5 }
 0x99b   :  { %11088 = vmatmul.mubr.msk.bf16.vlgmr.msra.gmra.mrb[36].mxu1 %vm441_vm3, %v1411_v60  ;;  %v1146_v12 = vmul.f32 %v12283_v61, %v12762_v4 }
 0x99c   :  { %v12285_v2 = vpop.eup %12284  ;;  %501 = vadd.xlane.f32.xlu0 %v500_v1  ;;  %v11990_v6 = vpack.i.bf16 %v828_v63, %v827_v62  ;;  %11103 = vmatprep.mubr.msk.bf16.mxu1 %vm12512_vm0, %v12510_v0 }
 0x99d   :  { %v1147_v3 = vmul.f32 %v12285_v2, %v12764_v9  ;;  %v12105_v9 = vld [vmem:[%s12803_s23 + $0x8] sm:$0xff]  }
 0x99e   :  { %504 = vadd.xlane.f32.xlu1 %v503_v11  ;;  %11094 = vmatpush3.bf16.msra.mxu0 %v12105_v9  ;;  %v12107_v11 = vld [vmem:[%s12837_s1 + $0x8] sm:$0xff]  }
 0x99f   :  { %v11995_v5 = vpack.i.bf16 %v1147_v3, %v1146_v12  ;;  %11107 = vmatprep.subr.bf16.mxu0 %v12510_v0  ;;  %v12108_v12 = vld [vmem:[%s12846_s5] sm:$0xff]   ;;  %v12109_v3 = vld [vmem:[%s12846_s5 + $0x8] sm:$0xff]  }
 0x9af   :  { %11996 = vrot.lane.b32.xlu1 %v11995_v5, %s12515_s18 }
 0x9b2   :  { %11991 = vrot.lane.b32.xlu0 %v11990_v6, %s12516_s19  ;;  %v12106_v6 = vld [vmem:[%s12837_s1] sm:$0xff]  }
 0x9b3   :  { %11100 = vmatpush3.bf16.msra.mxu1 %v12106_v6 }
 0x9b4   :  { %11101 = vmatprep.subr.bf16.mxu1 %v12510_v0 }
 0x9b7   :  { %11102 = vmatpush3.bf16.msra.mxu1 %v12107_v11 }
 0x9b8   :  { %11119 = vmatprep.subr.bf16.mxu1 %v12510_v0 }
 0xa25   :  { %v1459_v56 = vpop.xlane.xlu0 %1458 }
 0xa26   :  { %12286 = vrcp.f32 %v1459_v56 }
 0xa27   :  { %v1462_v4 = vpop.xlane.xlu1 %1461 }
 0xa28   :  { %12288 = vrcp.f32 %v1462_v4 }
 0xa29   :  { %v502_v21 = vpop.xlane.xlu0 %501 }
 0xa2a   :  { %12290 = vrcp.f32 %v502_v21 }
 0xa2b   :  { %v505_v22 = vpop.xlane.xlu1 %504 }
 0xa2c   :  { %12292 = vrcp.f32 %v505_v22 }
 0xa2d   :  { %v11992_v25 = vpop.permute.xlu0 %11991 }
 0xa2e   :  { %v11994_v30 = vunpack.i.h.bf16 %v11992_v25  ;;  %v11993_v31 = vunpack.i.l.bf16 %v11992_v25  ;;  %v12111_v25 = vld [vmem:[%s12846_s5 + $0x18] sm:$0xff]  }
 0xa2f   :  { %v11997_v29 = vpop.permute.xlu1 %11996 }
 0xa30   :  { %v12287_v14 = vpop.eup %12286  ;;  %v11999_v28 = vunpack.i.h.bf16 %v11997_v29  ;;  %v11998_v32 = vunpack.i.l.bf16 %v11997_v29 }
 0xa32   :  { %v12289_v16 = vpop.eup %12288 }
 0xa34   :  { %v12291_v23 = vpop.eup %12290 }
 0xa35   :  { %v508_v26 = vmul.f32 %v12291_v23, %v12665_v8 }
 0xa36   :  { %v12293_v24 = vpop.eup %12292 }
 0xa37   :  { %v509_v27 = vmul.f32 %v12293_v24, %v12667_v10  ;;  %v1491_v33 = vsel %vm389_vm2, %v508_v26, %v11993_v31  ;;  %v12110_v24 = vld [vmem:[%s12846_s5 + $0x10] sm:$0xff]   ;;  %v9873_v26 = vld [vmem:[%s12874_s22] ss:$0 sm:$0xff] }
 0xa38   :  { %v1493_v8 = vsel %vm441_vm3, %v1491_v33, %v11998_v32 }
 0xa39   :  { %v1492_v34 = vsel %vm389_vm2, %v509_v27, %v11994_v30 }
 0xa3a   :  { %v1494_v38 = vsel %vm441_vm3, %v1492_v34, %v11999_v28 }
 0xa6e   :  { %v1450_v13 = vpop.f32.mrb[36].mxu1 }
 0xa6f   :  { %v11089_v15 = vpop.f32.mrb[37].mxu1  ;;  %v1465_v18 = vmul.f32 %v12287_v14, %v1450_v13 }
 0xa70   :  { %v1453_v17 = vpop.f32.mrb[38].mxu1 }
 0xa71   :  { %v1466_v19 = vmul.f32 %v12289_v16, %v1453_v17  ;;  %v11090_v20 = vpop.f32.mrb[39].mxu1  ;;  %v9871_v16 = vld [vmem:[%s12855_s10] ss:$0 sm:$0xff] }
 0xa72   :  { %v9872_v20 = vld [vmem:[%s12860_s15] ss:$0 sm:$0xff] }
 0xa73   :  { %v12000_v7 = vpack.i.bf16 %v1466_v19, %v1465_v18 }
 0xa75   :  { %12001 = vrot.lane.b32.xlu1 %v12000_v7, %s12518_s24 }
 0xae7   :  { %v12002_v35 = vpop.permute.xlu1 %12001 }
 0xae8   :  { %v12004_v36 = vunpack.i.h.bf16 %v12002_v35  ;;  %v12003_v37 = vunpack.i.l.bf16 %v12002_v35 }
 0xaea   :  { %v1496_v10 = vsel %vm1495_vm4, %v1493_v8, %v12003_v37  ;;  %v1497_v39 = vsel %vm1495_vm4, %v1494_v38, %v12004_v36  ;;  %v9877_v36 = vld [vmem:[%s12883_s29] ss:$0 sm:$0xff] }
 0xaeb   :  { %v1498_v40 = vpack.c.bf16 %v1497_v39, %v1496_v10 }
 0xaed   :  { %11096 = vmatmul.mubr.msk.bf16.vlgmr.msra.gmra.mrb[40].mxu0 %vm210_vm1, %v1498_v40 }
 0xaee   :  { %11115 = vmatprep.mubr.msk.bf16.mxu0 %vm12512_vm0, %v12510_v0  ;;  %11108 = vmatpush3.bf16.msra.mxu0 %v12108_v12  ;;  %v9883_v12 = vld [vmem:[%s12901_s4] ss:$0 sm:$0xff] }
 0xaef   :  { %11109 = vmatprep.subr.bf16.mxu0 %v12510_v0 }
 0xaf2   :  { %11110 = vmatpush3.bf16.msra.mxu0 %v12109_v3 }
 0xaf3   :  { %11111 = vmatprep.subr.bf16.mxu0 %v12510_v0 }
 0xaf6   :  { %11112 = vmatpush3.bf16.msra.mxu0 %v12110_v24 }
 0xaf7   :  { %11113 = vmatprep.subr.bf16.mxu0 %v12510_v0 }
 0xafa   :  { %11114 = vmatpush3.bf16.msra.mxu0 %v12111_v25 }
 0xafb   :  { %11135 = vmatprep.subr.bf16.mxu0 %v12510_v0 }
 0xbc0   :  { %v1554_v50 = vpop.f32.mrb[40].mxu0 }
 0xbc1   :  { %v1555_v41 = vadd.f32 %v9867_v49, %v1554_v50  ;;  %v11097_v42 = vpop.f32.mrb[41].mxu0 }
 0xbc2   :  { %v1557_v43 = vpop.f32.mrb[42].mxu0 }
 0xbc3   :  { %v1558_v44 = vadd.f32 %v9867_v49, %v1557_v43  ;;  %v11098_v45 = vpop.f32.mrb[43].mxu0  ;;  %v1561_v47 = vadd.f32 %v12502_v46, %v1555_v41 }
 0xbc5   :  { %v1565_v48 = vsel %vm210_vm1, %v1561_v47, 0.0  ;;  %v1562_v52 = vadd.f32 %v12503_v51, %v1558_v44 }
 0xbc6   :  { %1566 = vadd.xlane.f32.xlu1 %v1565_v48 }
 0xbc7   :  { %v1568_v53 = vsel %vm210_vm1, %v1562_v52, 0.0 }
 0xbc8   :  { %1569 = vadd.xlane.f32.xlu0 %v1568_v53 }
 0xc53   :  { %v1567_v54 = vpop.xlane.xlu1 %1566 }
 0xc54   :  { %v1572_v57 = vmul.f32 0.03125, %v1567_v54 }
 0xc55   :  { %v1570_v58 = vpop.xlane.xlu0 %1569 }
 0xc56   :  { %v1574_v59 = vsub.f32 %v1561_v47, %v1572_v57  ;;  %v1573_v60 = vmul.f32 0.03125, %v1570_v58  ;;  %v12112_v57 = vld [vmem:[%s12562_s6 + $0xc0] sm:$0xff]  }
 0xc57   :  { %v12113_v58 = vld [vmem:[%s12562_s6 + $0x140] sm:$0xff]  }
 0xc58   :  { %v1575_v61 = vsub.f32 %v1562_v52, %v1573_v60  ;;  %v1576_v62 = vmul.f32 %v1574_v59, %v1574_v59  ;;  %v12115_v60 = vld [vmem:[%s12562_s6 + $0x148] sm:$0xff]  }
 0xc5a   :  { %v1578_v63 = vsel %vm210_vm1, %v1576_v62, 0.0  ;;  %v1577_v1 = vmul.f32 %v1575_v61, %v1575_v61 }
 0xc5b   :  { %1579 = vadd.xlane.f32.xlu0 %v1578_v63 }
 0xc5c   :  { %v1581_v2 = vsel %vm210_vm1, %v1577_v1, 0.0 }
 0xc5f   :  { %1582 = vadd.xlane.f32.xlu0 %v1581_v2 }
 0xce8   :  { %v1580_v5 = vpop.xlane.xlu0 %1579 }
 0xce9   :  { %v1584_v55 = vmul.f32 0.03125, %v1580_v5 }
 0xceb   :  { %v1586_v56 = vadd.f32 1e-05, %v1584_v55 }
 0xcec   :  { %v1583_v4 = vpop.xlane.xlu0 %1582 }
 0xced   :  { %12294 = vrsqrt.f32 %v1586_v56  ;;  %v1585_v9 = vmul.f32 0.03125, %v1583_v4  ;;  %v9884_v4 = vld [vmem:[%s12907_s9] ss:$0 sm:$0xff] }
 0xcef   :  { %v1587_v13 = vadd.f32 1e-05, %v1585_v9 }
 0xcf1   :  { %12296 = vrsqrt.f32 %v1587_v13 }
 0xcf7   :  { %v12295_v14 = vpop.eup %12294 }
 0xcf8   :  { %v1590_v15 = vmul.f32 %v12295_v14, %v1574_v59  ;;  %v12114_v59 = vld [vmem:[%s12562_s6 + $0xc8] sm:$0xff]  }
 0xcfa   :  { %v1598_v18 = vmul.f32 %v9871_v16, %v1590_v15  ;;  %v12116_v15 = vld [vmem:[%s12562_s6 + $0x100] sm:$0xff]  }
 0xcfb   :  { %v12297_v17 = vpop.eup %12296 }
 0xcfc   :  { %v1591_v19 = vmul.f32 %v12297_v17, %v1575_v61  ;;  %v1606_v21 = vadd.f32 %v9872_v20, %v1598_v18  ;;  %v12117_v17 = vld [vmem:[%s12562_s6 + $0x108] sm:$0xff]  }
 0xcfd   :  { %v9895_v18 = vld [vmem:[%s12605_s14 + $0xc] ss:$0 sm:$0xff] }
 0xcfe   :  { %v1599_v7 = vmul.f32 %v9871_v16, %v1591_v19 }
 0xd00   :  { %v1607_v22 = vadd.f32 %v9872_v20, %v1599_v7  ;;  %v9913_v20 = vld [vmem:[%s12605_s14 + $0x14] ss:$0 sm:$0xff] }
 0xd02   :  { %v1612_v23 = vpack.c.bf16 %v1607_v22, %v1606_v21 }
 0xd04   :  { %11104 = vmatmul.mubr.msk.bf16.vlgmr.msra.gmra.mrb[40].mxu1 %vm210_vm1, %v1612_v23 }
 0xd05   :  { %11123 = vmatprep.mubr.msk.bf16.mxu1 %vm12512_vm0, %v12510_v0  ;;  %11120 = vmatpush3.bf16.msra.mxu1 %v12112_v57 }
 0xd06   :  { %11121 = vmatprep.subr.bf16.mxu1 %v12510_v0 }
 0xd09   :  { %11122 = vmatpush3.bf16.msra.mxu1 %v12114_v59 }
 0xd0a   :  { %11127 = vmatprep.subr.bf16.mxu1 %v12510_v0 }
 0xdd7   :  { %v1669_v27 = vpop.f32.mrb[40].mxu1 }
 0xdd8   :  { %v1670_v29 = vadd.f32 %v9873_v26, %v1669_v27  ;;  %v11105_v30 = vpop.f32.mrb[41].mxu1 }
 0xdd9   :  { %v1672_v31 = vpop.f32.mrb[42].mxu1 }
 0xdda   :  { %v1673_v33 = vadd.f32 %v9873_v26, %v1672_v31  ;;  %v11106_v34 = vpop.f32.mrb[43].mxu1  ;;  %v1676_v28 = vmax.f32 %v1670_v29, 0.0 }
 0xddc   :  { %v1677_v32 = vmax.f32 %v1673_v33, 0.0 }
 0xdde   :  { %v1686_v35 = vpack.c.bf16 %v1677_v32, %v1676_v28  ;;  %v9904_v28 = vld [vmem:[%s12605_s14 + $0x10] ss:$0 sm:$0xff] }
 0xde0   :  { %11116 = vmatmul.mubr.msk.bf16.vlgmr.msra.gmra.mrb[44].mxu0 %vm1718_vm5, %v1686_v35 }
 0xde1   :  { %11139 = vmatprep.mubr.msk.bf16.mxu0 %vm12512_vm0, %v12510_v0  ;;  %11136 = vmatpush3.bf16.msra.mxu0 %v12113_v58  ;;  %v9924_v58 = vld [vmem:[%s12605_s14 + $0xd] ss:$0 sm:$0xff] }
 0xde2   :  { %11137 = vmatprep.subr.bf16.mxu0 %v12510_v0 }
 0xde5   :  { %11138 = vmatpush3.bf16.msra.mxu0 %v12115_v60 }
 0xde6   :  { %11149 = vmatprep.subr.bf16.mxu0 %v12510_v0 }
 0xeb3   :  { %v1756_v37 = vpop.f32.mrb[44].mxu0 }
 0xeb4   :  { %v1757_v38 = vadd.f32 %v9877_v36, %v1756_v37  ;;  %v11117_v8 = vpop.f32.mrb[45].mxu0 }
 0xeb5   :  { %v1759_v10 = vpop.f32.mrb[46].mxu0 }
 0xeb6   :  { %v1760_v39 = vadd.f32 %v9877_v36, %v1759_v10  ;;  %v11118_v40 = vpop.f32.mrb[47].mxu0  ;;  %v1763_v49 = vadd.f32 %v1757_v38, %v1606_v21 }
 0xeb7   :  { %v12118_v40 = vld [vmem:[%s12562_s6 + $0xd0] sm:$0xff]  }
 0xeb8   :  { %v1767_v50 = vsel %vm210_vm1, %v1763_v49, 0.0  ;;  %v1764_v41 = vadd.f32 %v1760_v39, %v1607_v22 }
 0xeb9   :  { %1768 = vadd.xlane.f32.xlu1 %v1767_v50  ;;  %v12120_v50 = vld [vmem:[%s12562_s6 + $0x150] sm:$0xff]  }
 0xeba   :  { %v1770_v42 = vsel %vm210_vm1, %v1764_v41, 0.0 }
 0xebb   :  { %1771 = vadd.xlane.f32.xlu0 %v1770_v42 }
 0xf46   :  { %v1769_v43 = vpop.xlane.xlu1 %1768 }
 0xf47   :  { %v1773_v44 = vmul.f32 0.03125, %v1769_v43 }
 0xf48   :  { %v1772_v45 = vpop.xlane.xlu0 %1771 }
 0xf49   :  { %v1775_v46 = vsub.f32 %v1763_v49, %v1773_v44  ;;  %v1774_v47 = vmul.f32 0.03125, %v1772_v45  ;;  %v12119_v49 = vld [vmem:[%s12562_s6 + $0xd8] sm:$0xff]  }
 0xf4b   :  { %v1776_v48 = vsub.f32 %v1764_v41, %v1774_v47  ;;  %v1777_v51 = vmul.f32 %v1775_v46, %v1775_v46  ;;  %v12121_v41 = vld [vmem:[%s12562_s6 + $0x158] sm:$0xff]  }
 0xf4d   :  { %v1779_v52 = vsel %vm210_vm1, %v1777_v51, 0.0  ;;  %v1778_v53 = vmul.f32 %v1776_v48, %v1776_v48 }
 0xf4e   :  { %1780 = vadd.xlane.f32.xlu1 %v1779_v52 }
 0xf4f   :  { %v1782_v54 = vsel %vm210_vm1, %v1778_v53, 0.0  ;;  %v12966_v53 = vld [vmem:[%s12617_s17 + $0x8] sm:$0xff] }
 0xf50   :  { %1783 = vadd.xlane.f32.xlu0 %v1782_v54 }
 0xfdb   :  { %v1781_v61 = vpop.xlane.xlu1 %1780 }
 0xfdc   :  { %v1785_v62 = vmul.f32 0.03125, %v1781_v61 }
 0xfdd   :  { %v1784_v63 = vpop.xlane.xlu0 %1783 }
 0xfde   :  { %v1787_v1 = vadd.f32 1e-05, %v1785_v62  ;;  %v1786_v2 = vmul.f32 0.03125, %v1784_v63 }
 0xfe0   :  { %12298 = vrsqrt.f32 %v1787_v1  ;;  %v1788_v6 = vadd.f32 1e-05, %v1786_v2 }
 0xfe2   :  { %12300 = vrsqrt.f32 %v1788_v6  ;;  %v9942_v6 = vld [vmem:[%s12605_s14 + $0x15] ss:$0 sm:$0xff] }
 0xfea   :  { %v12299_v11 = vpop.eup %12298 }
 0xfeb   :  { %v1791_v3 = vmul.f32 %v12299_v11, %v1775_v46 }
 0xfec   :  { %v12301_v5 = vpop.eup %12300 }
 0xfed   :  { %v1799_v55 = vmul.f32 %v9883_v12, %v1791_v3  ;;  %v1792_v56 = vmul.f32 %v12301_v5, %v1776_v48  ;;  %v12961_v48 = vld [vmem:[%s12617_s17] sm:$0xff]  ;;  %s13554_s17 = sld [smem:[%s14342_s0 + %s12537_s8]]   ;;  %s12545_s8 = smov 34  }
 0xfef   :  { %v1800_v9 = vmul.f32 %v9883_v12, %v1792_v56  ;;  %v12911_v13 = vadd.f32 %v9884_v4, %v1799_v55 }
 0xff1   :  { %v12913_v14 = vadd.f32 %v9884_v4, %v1800_v9 }
 0xff3   :  { %v12918_v16 = vpack.c.bf16 %v12913_v14, %v12911_v13 }
 0xff5   :  { %11124 = vmatmul.mubr.msk.bf16.vlgmr.msra.gmra.mrb[44].mxu1 %vm210_vm1, %v12918_v16  ;;  %11140 = vmatmul.mubr.msk.bf16.vlgmr.msra.gmra.mrb[48].mxu0 %vm210_vm1, %v12918_v16 }
 0xff6   :  { %11128 = vmatpush3.bf16.msra.mxu1 %v12116_v15  ;;  %11131 = vmatprep.mubr.msk.bf16.mxu1 %vm12512_vm0, %v12510_v0 }
 0xff7   :  { %11129 = vmatprep.subr.bf16.mxu1 %v12510_v0  ;;  %11151 = vmatprep.mubr.msk.bf16.mxu0 %vm12512_vm0, %v12510_v0 }
 0xffa   :  { %11130 = vmatpush3.bf16.msra.mxu1 %v12117_v17 }
 0xffb   :  { %11143 = vmatprep.subr.bf16.mxu1 %v12510_v0 }
 0xffd   :  { %11132 = vmatmul.mubr.msk.bf16.vlgmr.msra.gmra.mrb[48].mxu1 %vm210_vm1, %v12918_v16 }
 0xffe   :  { %11145 = vmatprep.mubr.msk.bf16.mxu1 %vm12512_vm0, %v12510_v0 }
0x10c8   :  { %v1879_v19 = vpop.f32.mrb[44].mxu1  ;;  %v2011_v7 = vpop.f32.mrb[48].mxu0 }
0x10c9   :  { %v11125_v21 = vpop.f32.mrb[45].mxu1  ;;  %v11141_v22 = vpop.f32.mrb[49].mxu0  ;;  %v1880_v25 = vadd.f32 %v9895_v18, %v1879_v19  ;;  %v2012_v26 = vadd.f32 %v9913_v20, %v2011_v7 }
0x10ca   :  { %v1882_v23 = vpop.f32.mrb[46].mxu1  ;;  %v2014_v24 = vpop.f32.mrb[50].mxu0  ;;  %v12122_v22 = vld [vmem:[%s12562_s6 + $0x110] sm:$0xff]  }
0x10cb   :  { %v1883_v27 = vadd.f32 %v9895_v18, %v1882_v23  ;;  %v2015_v29 = vadd.f32 %v9913_v20, %v2014_v24  ;;  %v11126_v30 = vpop.f32.mrb[47].mxu1  ;;  %v11142_v31 = vpop.f32.mrb[51].mxu0  ;;  %v12123_v24 = vld [vmem:[%s12562_s6 + $0x118] sm:$0xff]  }
0x10cc   :  { %v9933_v30 = vld [vmem:[%s12605_s14 + $0x11] ss:$0 sm:$0xff] }
0x10cd   :  { %v2018_v33 = vpack.c.bf16 %v1883_v27, %v1880_v25  ;;  %v2084_v34 = vpack.c.bf16 %v2015_v29, %v2012_v26 }
0x10cf   :  { %11150 = vmatpush3.bf16.msra.mxu0 %v2084_v34 }
0x10d0   :  { %v1945_v32 = vpop.f32.mrb[48].mxu1  ;;  %11163 = vmatprep.subr.bf16.mxu0 %v12510_v0 }
0x10d1   :  { %v11133_v35 = vpop.f32.mrb[49].mxu1  ;;  %v1946_v37 = vadd.f32 %v9904_v28, %v1945_v32 }
0x10d2   :  { %v1948_v36 = vpop.f32.mrb[50].mxu1 }
0x10d3   :  { %v1949_v38 = vadd.f32 %v9904_v28, %v1948_v36  ;;  %v11134_v8 = vpop.f32.mrb[51].mxu1 }
0x10d4   :  { %v12125_v8 = vld [vmem:[%s12562_s6 + $0xe8] sm:$0xff]  }
0x10d5   :  { %v2019_v10 = vpack.c.bf16 %v1949_v38, %v1946_v37  ;;  %v12124_v38 = vld [vmem:[%s12562_s6 + $0xe0] sm:$0xff]  }
0x10d7   :  { %v2024_v39 = vsel %vm389_vm2, %v2019_v10, 0  ;;  %v12126_v10 = vld [vmem:[%s12562_s6 + $0x160] sm:$0xff]  }
0x10d8   :  { %11144 = vmatpush3.bf16.xpose.msra.mxu1 %v2024_v39  ;;  %v12127_v39 = vld [vmem:[%s12562_s6 + $0x168] sm:$0xff]  }
0x10d9   :  { %11155 = vmatprep.subr.bf16.mxu1 %v12510_v0 }
0x10df   :  { %11146 = vmatmul.mubr.msk.bf16.vlgmr.msra.gmra.mrb[52].mxu1 %vm389_vm2, %v2018_v33 }
0x10e0   :  { %11156 = vmatpush3.bf16.msra.mxu1 %v12118_v40  ;;  %11159 = vmatprep.mubr.msk.bf16.mxu1 %vm12512_vm0, %v12510_v0 }
0x10e1   :  { %11157 = vmatprep.subr.bf16.mxu1 %v12510_v0 }
0x10e4   :  { %11158 = vmatpush3.bf16.msra.mxu1 %v12119_v49 }
0x10e5   :  { %11171 = vmatprep.subr.bf16.mxu1 %v12510_v0 }
0x10e7   :  { %11160 = vmatmul.mubr.msk.bf16.vlgmr.msra.gmra.mrb[56].mxu1 %vm210_vm1, %v12918_v16 }
0x10e8   :  { %11172 = vmatpush3.bf16.msra.mxu1 %v12120_v50  ;;  %11175 = vmatprep.mubr.msk.bf16.mxu1 %vm12512_vm0, %v12510_v0 }
0x10e9   :  { %11173 = vmatprep.subr.bf16.mxu1 %v12510_v0 }
0x10ec   :  { %11174 = vmatpush3.bf16.msra.mxu1 %v12121_v41 }
0x10ed   :  { %11185 = vmatprep.subr.bf16.mxu1 %v12510_v0 }
0x10ef   :  { %11176 = vmatmul.mubr.msk.bf16.vlgmr.msra.gmra.mrb[60].mxu1 %vm210_vm1, %v12918_v16 }
0x10f0   :  { %11187 = vmatprep.mubr.msk.bf16.mxu1 %vm12512_vm0, %v12510_v0 }
0x11b2   :  { %v2060_v42 = vpop.f32.mrb[52].mxu1 }
0x11b3   :  { %v2067_v43 = vmul.f32 0.35355338, %v2060_v42  ;;  %v11147_v44 = vpop.f32.mrb[53].mxu1 }
0x11b4   :  { %v2063_v45 = vpop.f32.mrb[54].mxu1 }
0x11b5   :  { %v2068_v46 = vmul.f32 0.35355338, %v2063_v45  ;;  %v11148_v47 = vpop.f32.mrb[55].mxu1  ;;  %v2069_v51 = vadd.f32 %v12961_v48, %v2067_v43 }
0x11b7   :  { %v2071_v52 = vsel %vm441_vm3, %v2069_v51, -inf  ;;  %v2070_v54 = vadd.f32 %v12966_v53, %v2068_v46 }
0x11b8   :  { %2072 = vmax.xlane.f32.xlu1 %v2071_v52 }
0x11b9   :  { %v2074_v57 = vsel %vm441_vm3, %v2070_v54, -inf }
0x11ba   :  { %2075 = vmax.xlane.f32.xlu0 %v2074_v57  ;;  %v2198_v59 = vpop.f32.mrb[56].mxu1 }
0x11bb   :  { %v11161_v60 = vpop.f32.mrb[57].mxu1  ;;  %v2199_v62 = vadd.f32 %v9924_v58, %v2198_v59 }
0x11bc   :  { %v2201_v61 = vpop.f32.mrb[58].mxu1 }
0x11bd   :  { %v2202_v63 = vadd.f32 %v9924_v58, %v2201_v61  ;;  %v11162_v1 = vpop.f32.mrb[59].mxu1 }
0x11bf   :  { %v2337_v2 = vpack.c.bf16 %v2202_v63, %v2199_v62  ;;  %v9971_v62 = vld [vmem:[%s12605_s14 + $0x16] ss:$0 sm:$0xff] }
0x11c2   :  { %v2330_v11 = vpop.f32.mrb[60].mxu1 }
0x11c3   :  { %v11177_v12 = vpop.f32.mrb[61].mxu1  ;;  %v2331_v5 = vadd.f32 %v9942_v6, %v2330_v11 }
0x11c4   :  { %v2333_v3 = vpop.f32.mrb[62].mxu1 }
0x11c5   :  { %v2334_v55 = vadd.f32 %v9942_v6, %v2333_v3  ;;  %v11178_v56 = vpop.f32.mrb[63].mxu1 }
0x11c7   :  { %v2403_v4 = vpack.c.bf16 %v2334_v55, %v2331_v5 }
0x11c9   :  { %11186 = vmatpush3.bf16.msra.mxu1 %v2403_v4 }
0x11ca   :  { %11199 = vmatprep.subr.bf16.mxu1 %v12510_v0 }
0x1245   :  { %v2073_v9 = vpop.xlane.xlu1 %2072 }
0x1246   :  { %v2077_v15 = vsub.f32 %v2069_v51, %v2073_v9  ;;  %v9953_v51 = vld [vmem:[%s12605_s14 + $0xe] ss:$0 sm:$0xff] }
0x1247   :  { %v2076_v17 = vpop.xlane.xlu0 %2075 }
0x1248   :  { %v2079_v18 = vmul.f32 1.442695, %v2077_v15  ;;  %v2078_v19 = vsub.f32 %v2070_v54, %v2076_v17 }
0x124a   :  { %v2081_v20 = vmul.f32 1.442695, %v2078_v19  ;;  %12302 = vpow2.f32 %v2079_v18  ;;  %v12128_v19 = vld [vmem:[%s12562_s6 + $0x120] sm:$0xff]  }
0x124c   :  { %12304 = vpow2.f32 %v2081_v20 }
0x1254   :  { %v12973_v7 = vpop.eup %12302 }
0x1256   :  { %v12975_v21 = vpop.eup %12304 }
0x1257   :  { %v2083_v23 = vpack.c.bf16 %v12975_v21, %v12973_v7 }
0x1259   :  { %11152 = vmatmul.mubr.msk.bf16.vlgmr.msra.gmra.mrb[52].mxu0 %vm441_vm3, %v2083_v23 }
0x125a   :  { %11164 = vmatpush3.bf16.msra.mxu0 %v12122_v22  ;;  %11167 = vmatprep.mubr.msk.bf16.mxu0 %vm12512_vm0, %v12510_v0  ;;  %v12129_v22 = vld [vmem:[%s12562_s6 + $0x128] sm:$0xff]  }
0x125b   :  { %11165 = vmatprep.subr.bf16.mxu0 %v12510_v0 }
0x125e   :  { %11166 = vmatpush3.bf16.msra.mxu0 %v12123_v24 }
0x125f   :  { %11179 = vmatprep.subr.bf16.mxu0 %v12510_v0 }
0x1261   :  { %11168 = vmatmul.mubr.msk.bf16.vlgmr.msra.gmra.mrb[56].mxu0 %vm210_vm1, %v12918_v16 }
0x1262   :  { %11181 = vmatprep.mubr.msk.bf16.mxu0 %vm12512_vm0, %v12510_v0 }
0x132c   :  { %v12990_v25 = vpop.f32.mrb[52].mxu0 }
0x132d   :  { %v11153_v26 = vpop.f32.mrb[53].mxu0 }
0x132e   :  { %v12992_v27 = vpop.f32.mrb[54].mxu0 }
0x132f   :  { %v11154_v29 = vpop.f32.mrb[55].mxu0 }
0x1334   :  { %v2264_v31 = vpop.f32.mrb[56].mxu0 }
0x1335   :  { %v11169_v33 = vpop.f32.mrb[57].mxu0  ;;  %v2265_v28 = vadd.f32 %v9933_v30, %v2264_v31 }
0x1336   :  { %v2267_v34 = vpop.f32.mrb[58].mxu0 }
0x1337   :  { %v2268_v32 = vadd.f32 %v9933_v30, %v2267_v34  ;;  %v11170_v35 = vpop.f32.mrb[59].mxu0  ;;  %v9962_v30 = vld [vmem:[%s12605_s14 + $0x12] ss:$0 sm:$0xff] }
0x1339   :  { %v2338_v36 = vpack.c.bf16 %v2268_v32, %v2265_v28 }
0x133b   :  { %v2343_v37 = vsel %vm389_vm2, %v2338_v36, 0 }
0x133c   :  { %11180 = vmatpush3.bf16.xpose.msra.mxu0 %v2343_v37 }
0x133d   :  { %11191 = vmatprep.subr.bf16.mxu0 %v12510_v0 }
0x1343   :  { %11182 = vmatmul.mubr.msk.bf16.vlgmr.msra.gmra.mrb[60].mxu0 %vm389_vm2, %v2337_v2 }
0x1344   :  { %11192 = vmatpush3.bf16.msra.mxu0 %v12124_v38  ;;  %11195 = vmatprep.mubr.msk.bf16.mxu0 %vm12512_vm0, %v12510_v0  ;;  %v12130_v38 = vld [vmem:[%s12562_s6 + $0xf0] sm:$0xff]  }
0x1345   :  { %11193 = vmatprep.subr.bf16.mxu0 %v12510_v0 }
0x1348   :  { %11194 = vmatpush3.bf16.msra.mxu0 %v12125_v8  ;;  %v12131_v8 = vld [vmem:[%s12562_s6 + $0xf8] sm:$0xff]  }
0x1349   :  { %11207 = vmatprep.subr.bf16.mxu0 %v12510_v0 }
0x134b   :  { %11196 = vmatmul.mubr.msk.bf16.vlgmr.msra.gmra.mrb[64].mxu0 %vm210_vm1, %v12918_v16 }
0x134c   :  { %11208 = vmatpush3.bf16.msra.mxu0 %v12126_v10  ;;  %11211 = vmatprep.mubr.msk.bf16.mxu0 %vm12512_vm0, %v12510_v0  ;;  %v12132_v10 = vld [vmem:[%s12562_s6 + $0x170] sm:$0xff]  }
0x134d   :  { %11209 = vmatprep.subr.bf16.mxu0 %v12510_v0 }
0x1350   :  { %11210 = vmatpush3.bf16.msra.mxu0 %v12127_v39  ;;  %v12133_v39 = vld [vmem:[%s12562_s6 + $0x178] sm:$0xff]  }
0x1351   :  { %11221 = vmatprep.subr.bf16.mxu0 %v12510_v0 }
0x1353   :  { %11212 = vmatmul.mubr.msk.bf16.vlgmr.msra.gmra.mrb[68].mxu0 %vm210_vm1, %v12918_v16 }
0x1354   :  { %11223 = vmatprep.mubr.msk.bf16.mxu0 %vm12512_vm0, %v12510_v0 }
0x1416   :  { %v2379_v40 = vpop.f32.mrb[60].mxu0 }
0x1417   :  { %v2386_v49 = vmul.f32 0.35355338, %v2379_v40  ;;  %v11183_v50 = vpop.f32.mrb[61].mxu0 }
0x1418   :  { %v2382_v41 = vpop.f32.mrb[62].mxu0 }
0x1419   :  { %v2387_v42 = vmul.f32 0.35355338, %v2382_v41  ;;  %v11184_v43 = vpop.f32.mrb[63].mxu0  ;;  %v2388_v44 = vadd.f32 %v12961_v48, %v2386_v49 }
0x141b   :  { %v2390_v45 = vsel %vm441_vm3, %v2388_v44, -inf  ;;  %v2389_v46 = vadd.f32 %v12966_v53, %v2387_v42 }
0x141c   :  { %2391 = vmax.xlane.f32.xlu1 %v2390_v45 }
0x141d   :  { %v2393_v47 = vsel %vm441_vm3, %v2389_v46, -inf }
0x141e   :  { %2394 = vmax.xlane.f32.xlu0 %v2393_v47  ;;  %v2517_v52 = vpop.f32.mrb[64].mxu0 }
0x141f   :  { %v11197_v54 = vpop.f32.mrb[65].mxu0  ;;  %v2518_v58 = vadd.f32 %v9953_v51, %v2517_v52 }
0x1420   :  { %v2520_v57 = vpop.f32.mrb[66].mxu0 }
0x1421   :  { %v2521_v59 = vadd.f32 %v9953_v51, %v2520_v57  ;;  %v11198_v60 = vpop.f32.mrb[67].mxu0  ;;  %v9982_v51 = vld [vmem:[%s12605_s14 + $0xf] ss:$0 sm:$0xff] }
0x1423   :  { %v2656_v61 = vpack.c.bf16 %v2521_v59, %v2518_v58 }
0x1426   :  { %v2649_v63 = vpop.f32.mrb[68].mxu0 }
0x1427   :  { %v11213_v1 = vpop.f32.mrb[69].mxu0  ;;  %v2650_v6 = vadd.f32 %v9971_v62, %v2649_v63 }
0x1428   :  { %v2652_v2 = vpop.f32.mrb[70].mxu0 }
0x1429   :  { %v2653_v11 = vadd.f32 %v9971_v62, %v2652_v2  ;;  %v11214_v12 = vpop.f32.mrb[71].mxu0  ;;  %v10000_v62 = vld [vmem:[%s12605_s14 + $0x17] ss:$0 sm:$0xff] }
0x142b   :  { %v2722_v3 = vpack.c.bf16 %v2653_v11, %v2650_v6 }
0x142d   :  { %11222 = vmatpush3.bf16.msra.mxu0 %v2722_v3 }
0x142e   :  { %11235 = vmatprep.subr.bf16.mxu0 %v12510_v0 }
0x14a9   :  { %v2392_v5 = vpop.xlane.xlu1 %2391 }
0x14aa   :  { %v2396_v55 = vsub.f32 %v2388_v44, %v2392_v5 }
0x14ab   :  { %v2395_v56 = vpop.xlane.xlu0 %2394 }
0x14ac   :  { %v2398_v4 = vmul.f32 1.442695, %v2396_v55  ;;  %v2397_v9 = vsub.f32 %v2389_v46, %v2395_v56 }
0x14ae   :  { %v2400_v15 = vmul.f32 1.442695, %v2397_v9  ;;  %12306 = vpow2.f32 %v2398_v4 }
0x14b0   :  { %12308 = vpow2.f32 %v2400_v15 }
0x14b8   :  { %v13023_v17 = vpop.eup %12306 }
0x14ba   :  { %v13025_v18 = vpop.eup %12308 }
0x14bb   :  { %v2402_v20 = vpack.c.bf16 %v13025_v18, %v13023_v17 }
0x14bd   :  { %11188 = vmatmul.mubr.msk.bf16.vlgmr.msra.gmra.mrb[64].mxu1 %vm441_vm3, %v2402_v20 }
0x14be   :  { %11200 = vmatpush3.bf16.msra.mxu1 %v12128_v19  ;;  %11203 = vmatprep.mubr.msk.bf16.mxu1 %vm12512_vm0, %v12510_v0 }
0x14bf   :  { %11201 = vmatprep.subr.bf16.mxu1 %v12510_v0 }
0x14c2   :  { %11202 = vmatpush3.bf16.msra.mxu1 %v12129_v22  ;;  %v12134_v22 = vld [vmem:[%s12562_s6 + $0x130] sm:$0xff]  }
0x14c3   :  { %11215 = vmatprep.subr.bf16.mxu1 %v12510_v0 }
0x14c5   :  { %11204 = vmatmul.mubr.msk.bf16.vlgmr.msra.gmra.mrb[68].mxu1 %vm210_vm1, %v12918_v16 }
0x14c6   :  { %11217 = vmatprep.mubr.msk.bf16.mxu1 %vm12512_vm0, %v12510_v0 }
0x1590   :  { %v13040_v23 = vpop.f32.mrb[64].mxu1 }
0x1591   :  { %v11189_v24 = vpop.f32.mrb[65].mxu1 }
0x1592   :  { %v13042_v26 = vpop.f32.mrb[66].mxu1 }
0x1593   :  { %v11190_v29 = vpop.f32.mrb[67].mxu1 }
0x1594   :  { %v12135_v29 = vld [vmem:[%s12562_s6 + $0x138] sm:$0xff]   ;;  %s12526_s6 = smov 19  }
0x1598   :  { %v2583_v31 = vpop.f32.mrb[68].mxu1 }
0x1599   :  { %v11205_v33 = vpop.f32.mrb[69].mxu1  ;;  %v2584_v28 = vadd.f32 %v9962_v30, %v2583_v31 }
0x159a   :  { %v2586_v34 = vpop.f32.mrb[70].mxu1 }
0x159b   :  { %v2587_v32 = vadd.f32 %v9962_v30, %v2586_v34  ;;  %v11206_v35 = vpop.f32.mrb[71].mxu1 }
0x159d   :  { %v2657_v36 = vpack.c.bf16 %v2587_v32, %v2584_v28  ;;  %v9991_v28 = vld [vmem:[%s12605_s14 + $0x13] ss:$0 sm:$0xff]  ;;  %s12533_s14 = smov 17  }
0x159f   :  { %v2662_v37 = vsel %vm389_vm2, %v2657_v36, 0 }
0x15a0   :  { %11216 = vmatpush3.bf16.xpose.msra.mxu1 %v2662_v37 }
0x15a1   :  { %11227 = vmatprep.subr.bf16.mxu1 %v12510_v0 }
0x15a7   :  { %11218 = vmatmul.mubr.msk.bf16.vlgmr.msra.gmra.mrb[72].mxu1 %vm389_vm2, %v2656_v61 }
0x15a8   :  { %11228 = vmatpush3.bf16.msra.mxu1 %v12130_v38  ;;  %11231 = vmatprep.mubr.msk.bf16.mxu1 %vm12512_vm0, %v12510_v0 }
0x15a9   :  { %11229 = vmatprep.subr.bf16.mxu1 %v12510_v0 }
0x15ac   :  { %11230 = vmatpush3.bf16.msra.mxu1 %v12131_v8 }
0x15ad   :  { %11243 = vmatprep.subr.bf16.mxu1 %v12510_v0 }
0x15af   :  { %11232 = vmatmul.mubr.msk.bf16.vlgmr.msra.gmra.mrb[76].mxu1 %vm210_vm1, %v12918_v16 }
0x15b0   :  { %11244 = vmatpush3.bf16.msra.mxu1 %v12132_v10  ;;  %11247 = vmatprep.mubr.msk.bf16.mxu1 %vm12512_vm0, %v12510_v0 }
0x15b1   :  { %11245 = vmatprep.subr.bf16.mxu1 %v12510_v0 }
0x15b4   :  { %11246 = vmatpush3.bf16.msra.mxu1 %v12133_v39 }
0x15b5   :  { %11257 = vmatprep.subr.bf16.mxu1 %v12510_v0 }
0x15b7   :  { %11248 = vmatmul.mubr.msk.bf16.vlgmr.msra.gmra.mrb[80].mxu1 %vm210_vm1, %v12918_v16 }
0x15b8   :  { %11259 = vmatprep.mubr.msk.bf16.mxu1 %vm12512_vm0, %v12510_v0 }
0x167a   :  { %v2698_v40 = vpop.f32.mrb[72].mxu1 }
0x167b   :  { %v2705_v49 = vmul.f32 0.35355338, %v2698_v40  ;;  %v11219_v50 = vpop.f32.mrb[73].mxu1 }
0x167c   :  { %v2701_v41 = vpop.f32.mrb[74].mxu1 }
0x167d   :  { %v2706_v42 = vmul.f32 0.35355338, %v2701_v41  ;;  %v11220_v43 = vpop.f32.mrb[75].mxu1  ;;  %v2707_v44 = vadd.f32 %v12961_v48, %v2705_v49 }
0x167f   :  { %v2709_v45 = vsel %vm441_vm3, %v2707_v44, -inf  ;;  %v2708_v46 = vadd.f32 %v12966_v53, %v2706_v42 }
0x1680   :  { %2710 = vmax.xlane.f32.xlu1 %v2709_v45 }
0x1681   :  { %v2712_v47 = vsel %vm441_vm3, %v2708_v46, -inf }
0x1682   :  { %2713 = vmax.xlane.f32.xlu0 %v2712_v47  ;;  %v2836_v52 = vpop.f32.mrb[76].mxu1  ;;  %v2448_v47 = vsel %vm441_vm3, %v13023_v17, 0.0 }
0x1683   :  { %v11233_v54 = vpop.f32.mrb[77].mxu1  ;;  %v2837_v58 = vadd.f32 %v9982_v51, %v2836_v52 }
0x1684   :  { %v2839_v57 = vpop.f32.mrb[78].mxu1 }
0x1685   :  { %v2840_v59 = vadd.f32 %v9982_v51, %v2839_v57  ;;  %v11234_v60 = vpop.f32.mrb[79].mxu1  ;;  %v2451_v51 = vsel %vm441_vm3, %v13025_v18, 0.0 }
0x1687   :  { %v2975_v61 = vpack.c.bf16 %v2840_v59, %v2837_v58 }
0x168a   :  { %v2968_v63 = vpop.f32.mrb[80].mxu1 }
0x168b   :  { %v11249_v1 = vpop.f32.mrb[81].mxu1  ;;  %v2969_v6 = vadd.f32 %v10000_v62, %v2968_v63 }
0x168c   :  { %v2971_v2 = vpop.f32.mrb[82].mxu1 }
0x168d   :  { %v2972_v11 = vadd.f32 %v10000_v62, %v2971_v2  ;;  %v11250_v12 = vpop.f32.mrb[83].mxu1 }
0x168f   :  { %v3041_v3 = vpack.c.bf16 %v2972_v11, %v2969_v6 }
0x1691   :  { %11258 = vmatpush3.bf16.msra.mxu1 %v3041_v3 }
0x1692   :  { %11271 = vmatprep.subr.bf16.mxu1 %v12510_v0 }
0x170d   :  { %v2711_v5 = vpop.xlane.xlu1 %2710 }
0x170e   :  { %v2715_v55 = vsub.f32 %v2707_v44, %v2711_v5 }
0x170f   :  { %v2714_v56 = vpop.xlane.xlu0 %2713 }
0x1710   :  { %v2717_v4 = vmul.f32 1.442695, %v2715_v55  ;;  %v2716_v9 = vsub.f32 %v2708_v46, %v2714_v56 }
0x1712   :  { %v2719_v15 = vmul.f32 1.442695, %v2716_v9  ;;  %12310 = vpow2.f32 %v2717_v4  ;;  %v2129_v4 = vsel %vm441_vm3, %v12973_v7, 0.0  ;;  %v12136_v7 = vld [vmem:[%s12803_s23 + $0x10] sm:$0xff]  }
0x1714   :  { %12312 = vpow2.f32 %v2719_v15 }
0x171c   :  { %v12311_v19 = vpop.eup %12310 }
0x171d   :  { %v2767_v52 = vsel %vm441_vm3, %v12311_v19, 0.0 }
0x171e   :  { %v12313_v20 = vpop.eup %12312 }
0x171f   :  { %v2721_v24 = vpack.c.bf16 %v12313_v20, %v12311_v19  ;;  %v2132_v19 = vsel %vm441_vm3, %v12975_v21, 0.0 }
0x1721   :  { %11224 = vmatmul.mubr.msk.bf16.vlgmr.msra.gmra.mrb[72].mxu0 %vm441_vm3, %v2721_v24 }
0x1722   :  { %11236 = vmatpush3.bf16.msra.mxu0 %v12134_v22  ;;  %11239 = vmatprep.mubr.msk.bf16.mxu0 %vm12512_vm0, %v12510_v0 }
0x1723   :  { %11237 = vmatprep.subr.bf16.mxu0 %v12510_v0 }
0x1726   :  { %11238 = vmatpush3.bf16.msra.mxu0 %v12135_v29  ;;  %v12137_v29 = vld [vmem:[%s12803_s23 + $0x18] sm:$0xff]   ;;  %s13147_s23 = sld [smem:[%s14342_s0 + %s12526_s6]]  }
0x1727   :  { %11251 = vmatprep.subr.bf16.mxu0 %v12510_v0 }
0x1729   :  { %11240 = vmatmul.mubr.msk.bf16.vlgmr.msra.gmra.mrb[76].mxu0 %vm210_vm1, %v12918_v16 }
0x172a   :  { %11253 = vmatprep.mubr.msk.bf16.mxu0 %vm12512_vm0, %v12510_v0 }
0x17f4   :  { %v13084_v30 = vpop.f32.mrb[72].mxu0 }
0x17f5   :  { %v11225_v31 = vpop.f32.mrb[73].mxu0 }
0x17f6   :  { %v13086_v33 = vpop.f32.mrb[74].mxu0 }
0x17f7   :  { %v11226_v34 = vpop.f32.mrb[75].mxu0 }
0x17fc   :  { %v2902_v32 = vpop.f32.mrb[76].mxu0 }
0x17fd   :  { %v11241_v35 = vpop.f32.mrb[77].mxu0  ;;  %v2903_v37 = vadd.f32 %v9991_v28, %v2902_v32 }
0x17fe   :  { %v2905_v36 = vpop.f32.mrb[78].mxu0 }
0x17ff   :  { %v2906_v38 = vadd.f32 %v9991_v28, %v2905_v36  ;;  %v11242_v8 = vpop.f32.mrb[79].mxu0 }
0x1801   :  { %v2976_v10 = vpack.c.bf16 %v2906_v38, %v2903_v37 }
0x1803   :  { %v2981_v39 = vsel %vm389_vm2, %v2976_v10, 0 }
0x1804   :  { %11252 = vmatpush3.bf16.xpose.msra.mxu0 %v2981_v39 }
0x1805   :  { %11263 = vmatprep.subr.bf16.mxu0 %v12510_v0 }
0x180b   :  { %11254 = vmatmul.mubr.msk.bf16.vlgmr.msra.gmra.mrb[80].mxu0 %vm389_vm2, %v2975_v61 }
0x180c   :  { %11267 = vmatprep.mubr.msk.bf16.mxu0 %vm12512_vm0, %v12510_v0  ;;  %11264 = vmatpush3.bf16.msra.mxu0 %v12136_v7 }
0x180d   :  { %11265 = vmatprep.subr.bf16.mxu0 %v12510_v0 }
0x1810   :  { %11266 = vmatpush3.bf16.msra.mxu0 %v12137_v29 }
0x1811   :  { %11279 = vmatprep.subr.bf16.mxu0 %v12510_v0 }
0x18de   :  { %v3017_v16 = vpop.f32.mrb[80].mxu0 }
0x18df   :  { %v3024_v40 = vmul.f32 0.35355338, %v3017_v16  ;;  %v11255_v49 = vpop.f32.mrb[81].mxu0 }
0x18e0   :  { %v3020_v50 = vpop.f32.mrb[82].mxu0 }
0x18e1   :  { %v3025_v41 = vmul.f32 0.35355338, %v3020_v50  ;;  %v11256_v42 = vpop.f32.mrb[83].mxu0  ;;  %v3026_v43 = vadd.f32 %v12961_v48, %v3024_v40  ;;  %v2770_v48 = vsel %vm441_vm3, %v12313_v20, 0.0 }
0x18e3   :  { %v3028_v44 = vsel %vm441_vm3, %v3026_v43, -inf  ;;  %v3027_v45 = vadd.f32 %v12966_v53, %v3025_v41 }
0x18e4   :  { %3029 = vmax.xlane.f32.xlu1 %v3028_v44 }
0x18e5   :  { %v3031_v46 = vsel %vm441_vm3, %v3027_v45, -inf }
0x18e6   :  { %3032 = vmax.xlane.f32.xlu0 %v3031_v46 }
0x18e8   :  { %2449 = vadd.xlane.f32.xlu1 %v2448_v47 }
0x18ea   :  { %2452 = vadd.xlane.f32.xlu0 %v2451_v51 }
0x18ec   :  { %2768 = vadd.xlane.f32.xlu1 %v2767_v52 }
0x18ee   :  { %2771 = vadd.xlane.f32.xlu0 %v2770_v48 }
0x1971   :  { %v3030_v54 = vpop.xlane.xlu1 %3029 }
0x1972   :  { %v3034_v53 = vsub.f32 %v3026_v43, %v3030_v54 }
0x1973   :  { %v3033_v57 = vpop.xlane.xlu0 %3032 }
0x1974   :  { %v3036_v58 = vmul.f32 1.442695, %v3034_v53  ;;  %v3035_v59 = vsub.f32 %v3027_v45, %v3033_v57  ;;  %v10006_v53 = vld [vmem:[%s12825_s27 + $0x1] ss:$0 sm:$0xff]  ;;  %s12527_s27 = smov 4  }
0x1975   :  { %v2450_v60 = vpop.xlane.xlu1 %2449  ;;  %s9718_s12 = sld [smem:[%s14342_s0 + %s12527_s27]]   ;;  %s12538_s27 = smov 27  }
0x1976   :  { %12314 = vpow2.f32 %v3036_v58  ;;  %v3038_v61 = vmul.f32 1.442695, %v3035_v59 }
0x1977   :  { %12316 = vrcp.f32 %v2450_v60  ;;  %v2453_v17 = vpop.xlane.xlu0 %2452 }
0x1978   :  { %12318 = vpow2.f32 %v3038_v61 }
0x1979   :  { %12320 = vrcp.f32 %v2453_v17  ;;  %v2769_v18 = vpop.xlane.xlu1 %2768 }
0x197a   :  { %12322 = vrcp.f32 %v2769_v18 }
0x197b   :  { %v2772_v62 = vpop.xlane.xlu0 %2771 }
0x197c   :  { %12324 = vrcp.f32 %v2772_v62 }
0x1980   :  { %v12315_v63 = vpop.eup %12314 }
0x1981   :  { %v12317_v1 = vpop.eup %12316  ;;  %v3086_v2 = vsel %vm441_vm3, %v12315_v63, 0.0 }
0x1982   :  { %v12319_v6 = vpop.eup %12318  ;;  %3087 = vadd.xlane.f32.xlu1 %v3086_v2  ;;  %v2456_v55 = vmul.f32 %v12317_v1, %v13040_v23 }
0x1983   :  { %v12321_v11 = vpop.eup %12320  ;;  %v3089_v12 = vsel %vm441_vm3, %v12319_v6, 0.0  ;;  %v3040_v3 = vpack.c.bf16 %v12319_v6, %v12315_v63 }
0x1984   :  { %v12323_v5 = vpop.eup %12322  ;;  %3090 = vadd.xlane.f32.xlu0 %v3089_v12  ;;  %v2457_v56 = vmul.f32 %v12321_v11, %v13042_v26 }
0x1985   :  { %11260 = vmatmul.mubr.msk.bf16.vlgmr.msra.gmra.mrb[84].mxu1 %vm441_vm3, %v3040_v3  ;;  %v2775_v20 = vmul.f32 %v12323_v5, %v13084_v30 }
0x1986   :  { %v12325_v9 = vpop.eup %12324  ;;  %2130 = vadd.xlane.f32.xlu1 %v2129_v4  ;;  %v12005_v15 = vpack.i.bf16 %v2457_v56, %v2456_v55  ;;  %11275 = vmatprep.mubr.msk.bf16.mxu1 %vm12512_vm0, %v12510_v0  ;;  %v12138_v4 = vld [vmem:[%s12837_s1 + $0x10] sm:$0xff]  }
0x1987   :  { %v2776_v23 = vmul.f32 %v12325_v9, %v13086_v33  ;;  %11272 = vmatpush3.bf16.msra.mxu1 %v12138_v4  ;;  %v12139_v9 = vld [vmem:[%s12837_s1 + $0x18] sm:$0xff]   ;;  %s9731_s1 = sld [smem:[%s14342_s0 + %s12533_s14]]   ;;  %s12542_s14 = smov 29  }
0x1988   :  { %2133 = vadd.xlane.f32.xlu0 %v2132_v19  ;;  %11273 = vmatprep.subr.bf16.mxu1 %v12510_v0  ;;  %v12145_v19 = vld [vmem:[%s12846_s5 + $0x28] sm:$0xff]   ;;  %s13769_s11 = sld [smem:[%s14342_s0 + %s12542_s14]]  }
0x1989   :  { %v12010_v26 = vpack.i.bf16 %v2776_v23, %v2775_v20  ;;  %s13820_s14 = sld [smem:[%s14342_s0 + %s12547_s26]]  }
0x198b   :  { %11274 = vmatpush3.bf16.msra.mxu1 %v12139_v9 }
0x198c   :  { %11291 = vmatprep.subr.bf16.mxu1 %v12510_v0 }
0x1997   :  { %12006 = vrot.lane.b32.xlu1 %v12005_v15, %s12516_s19  ;;  %v12144_v15 = vld [vmem:[%s12846_s5 + $0x20] sm:$0xff]  }
0x199e   :  { %12011 = vrot.lane.b32.xlu0 %v12010_v26, %s12515_s18 }
0x1a0f   :  { %v3088_v22 = vpop.xlane.xlu1 %3087 }
0x1a10   :  { %12326 = vrcp.f32 %v3088_v22 }
0x1a11   :  { %v3091_v24 = vpop.xlane.xlu0 %3090 }
0x1a12   :  { %12328 = vrcp.f32 %v3091_v24 }
0x1a13   :  { %v2131_v37 = vpop.xlane.xlu1 %2130 }
0x1a14   :  { %12330 = vrcp.f32 %v2131_v37  ;;  %v12140_v37 = vld [vmem:[%s13147_s23] sm:$0xff]  }
0x1a15   :  { %v2134_v38 = vpop.xlane.xlu0 %2133 }
0x1a16   :  { %12332 = vrcp.f32 %v2134_v38 }
0x1a17   :  { %v12007_v39 = vpop.permute.xlu1 %12006 }
0x1a18   :  { %v12009_v49 = vunpack.i.h.bf16 %v12007_v39  ;;  %v12008_v50 = vunpack.i.l.bf16 %v12007_v39  ;;  %v13173_v39 = vld [vmem:[%s9718_s12 + $0x8] sm:$0xff] }
0x1a19   :  { %v12012_v41 = vpop.permute.xlu0 %12011 }
0x1a1a   :  { %v12327_v30 = vpop.eup %12326  ;;  %v12014_v44 = vunpack.i.h.bf16 %v12012_v41  ;;  %v12013_v45 = vunpack.i.l.bf16 %v12012_v41  ;;  %v12147_v41 = vld [vmem:[%s12846_s5 + $0x38] sm:$0xff]  }
0x1a1c   :  { %v12329_v33 = vpop.eup %12328 }
0x1a1e   :  { %v12331_v8 = vpop.eup %12330 }
0x1a1f   :  { %v2137_v16 = vmul.f32 %v12331_v8, %v12990_v25  ;;  %v12141_v8 = vld [vmem:[%s13147_s23 + $0x8] sm:$0xff]  }
0x1a20   :  { %v12333_v10 = vpop.eup %12332 }
0x1a21   :  { %v2138_v40 = vmul.f32 %v12333_v10, %v12992_v27  ;;  %v3120_v42 = vsel %vm389_vm2, %v2137_v16, %v12008_v50  ;;  %v13171_v10 = vld [vmem:[%s9718_s12] sm:$0xff]  ;;  %v12146_v50 = vld [vmem:[%s12846_s5 + $0x30] sm:$0xff]   ;;  %s12529_s5 = smov 1   ;;  %s13718_s12 = sld [smem:[%s14342_s0 + %s12538_s27]]  }
0x1a22   :  { %v3122_v48 = vsel %vm441_vm3, %v3120_v42, %v12013_v45  ;;  %v13178_v16 = vpack.c.bf16 %v13173_v39, %v13171_v10  ;;  %v10019_v42 = vld [vmem:[%s12874_s22 + $0x1] ss:$0 sm:$0xff]  ;;  %s13232_s22 = sld [smem:[%s14342_s0 + %s12529_s5]]  }
0x1a23   :  { %v3121_v43 = vsel %vm389_vm2, %v2138_v40, %v12009_v49  ;;  %v12142_v40 = vld [vmem:[%s13147_s23 + $0x40] sm:$0xff]   ;;  %v12143_v49 = vld [vmem:[%s13147_s23 + $0x48] sm:$0xff]  }
0x1a24   :  { %v3123_v52 = vsel %vm441_vm3, %v3121_v43, %v12014_v44 }
0x1a58   :  { %v3079_v21 = vpop.f32.mrb[84].mxu1 }
0x1a59   :  { %v11261_v31 = vpop.f32.mrb[85].mxu1  ;;  %v3094_v28 = vmul.f32 %v12327_v30, %v3079_v21  ;;  %v10012_v21 = vld [vmem:[%s12855_s10 + $0x1] ss:$0 sm:$0xff]  ;;  %s12528_s10 = smov 20  }
0x1a5a   :  { %v3082_v34 = vpop.f32.mrb[86].mxu1  ;;  %s13201_s16 = sld [smem:[%s14342_s0 + %s12528_s10]]   ;;  %s12539_s10 = smov 28  }
0x1a5b   :  { %v3095_v32 = vmul.f32 %v12329_v33, %v3082_v34  ;;  %v11262_v35 = vpop.f32.mrb[87].mxu1  ;;  %s13739_s20 = sld [smem:[%s14342_s0 + %s12539_s10]]   ;;  %s12543_s10 = smov 30  }
0x1a5d   :  { %v12015_v36 = vpack.i.bf16 %v3095_v32, %v3094_v28  ;;  %v10013_v28 = vld [vmem:[%s12860_s15 + $0x1] ss:$0 sm:$0xff]  ;;  %s12535_s15 = smov 18  }
0x1a5e   :  { %s9732_s21 = sld [smem:[%s14342_s0 + %s12535_s15]]  }
0x1a5f   :  { %12016 = vrot.lane.b32.xlu1 %v12015_v36, %s12518_s24 }
0x1ad1   :  { %v12017_v46 = vpop.permute.xlu1 %12016 }
0x1ad2   :  { %v12019_v47 = vunpack.i.h.bf16 %v12017_v46  ;;  %v12018_v51 = vunpack.i.l.bf16 %v12017_v46 }
0x1ad4   :  { %v3124_v25 = vsel %vm1495_vm4, %v3122_v48, %v12018_v51  ;;  %v3125_v27 = vsel %vm1495_vm4, %v3123_v52, %v12019_v47 }
0x1ad5   :  { %v3126_v54 = vpack.c.bf16 %v3125_v27, %v3124_v25  ;;  %v12148_v25 = vld [vmem:[%s13147_s23 + $0x80] sm:$0xff]  }
0x1ad7   :  { %11268 = vmatmul.mubr.msk.bf16.vlgmr.msra.gmra.mrb[84].mxu0 %vm210_vm1, %v3126_v54  ;;  %v10044_v54 = vld [vmem:[%s13201_s16] ss:$0 sm:$0xff] }
0x1ad8   :  { %11287 = vmatprep.mubr.msk.bf16.mxu0 %vm12512_vm0, %v12510_v0  ;;  %11280 = vmatpush3.bf16.msra.mxu0 %v12144_v15 }
0x1ad9   :  { %11281 = vmatprep.subr.bf16.mxu0 %v12510_v0 }
0x1adc   :  { %11282 = vmatpush3.bf16.msra.mxu0 %v12145_v19  ;;  %v13235_v19 = vld [vmem:[%s13232_s22] sm:$0xff] }
0x1add   :  { %11283 = vmatprep.subr.bf16.mxu0 %v12510_v0 }
0x1ae0   :  { %11284 = vmatpush3.bf16.msra.mxu0 %v12146_v50  ;;  %v12153_v50 = vld [vmem:[%s13147_s23 + $0x18] sm:$0xff]  }
0x1ae1   :  { %11285 = vmatprep.subr.bf16.mxu0 %v12510_v0 }
0x1ae4   :  { %11286 = vmatpush3.bf16.msra.mxu0 %v12147_v41 }
0x1ae5   :  { %11307 = vmatprep.subr.bf16.mxu0 %v12510_v0 }
0x1baa   :  { %v3182_v57 = vpop.f32.mrb[84].mxu0 }
0x1bab   :  { %v3183_v58 = vadd.f32 %v10006_v53, %v3182_v57  ;;  %v11269_v59 = vpop.f32.mrb[85].mxu0 }
0x1bac   :  { %v3185_v60 = vpop.f32.mrb[86].mxu0  ;;  %v12149_v59 = vld [vmem:[%s13147_s23 + $0x88] sm:$0xff]  }
0x1bad   :  { %v3186_v61 = vadd.f32 %v10006_v53, %v3185_v60  ;;  %v11270_v17 = vpop.f32.mrb[87].mxu0  ;;  %v3189_v18 = vadd.f32 %v3183_v58, %v12911_v13 }
0x1baf   :  { %v3195_v62 = vsel %vm210_vm1, %v3189_v18, 0.0  ;;  %v3190_v63 = vadd.f32 %v3186_v61, %v12913_v14 }
0x1bb0   :  { %3196 = vadd.xlane.f32.xlu1 %v3195_v62  ;;  %v10053_v62 = vld [vmem:[%s13201_s16 + $0x4] ss:$0 sm:$0xff] }
0x1bb1   :  { %v3198_v1 = vsel %vm210_vm1, %v3190_v63, 0.0 }
0x1bb2   :  { %3199 = vadd.xlane.f32.xlu0 %v3198_v1 }
0x1c3d   :  { %v3197_v2 = vpop.xlane.xlu1 %3196 }
0x1c3e   :  { %v3201_v6 = vmul.f32 0.03125, %v3197_v2 }
0x1c3f   :  { %v3200_v11 = vpop.xlane.xlu0 %3199 }
0x1c40   :  { %v3203_v12 = vsub.f32 %v3189_v18, %v3201_v6  ;;  %v3202_v3 = vmul.f32 0.03125, %v3200_v11 }
0x1c42   :  { %v3204_v5 = vsub.f32 %v3190_v63, %v3202_v3  ;;  %v3205_v55 = vmul.f32 %v3203_v12, %v3203_v12 }
0x1c44   :  { %v3207_v13 = vsel %vm210_vm1, %v3205_v55, 0.0  ;;  %v3206_v56 = vmul.f32 %v3204_v5, %v3204_v5  ;;  %v13222_v55 = vld [vmem:[%s12883_s29 + $0x1] ss:$0 sm:$0xff]  ;;  %s13422_s29 = sld [smem:[%s14342_s0 + %s12530_s25]]   ;;  %s12544_s25 = smov 32  }
0x1c45   :  { %3208 = vadd.xlane.f32.xlu0 %v3207_v13  ;;  %s13788_s3 = sld [smem:[%s14342_s0 + %s12544_s25]]  }
0x1c46   :  { %v3210_v14 = vsel %vm210_vm1, %v3206_v56, 0.0 }
0x1c47   :  { %3211 = vadd.xlane.f32.xlu1 %v3210_v14 }
0x1cd2   :  { %v3209_v20 = vpop.xlane.xlu0 %3208 }
0x1cd3   :  { %v3213_v23 = vmul.f32 0.03125, %v3209_v20 }
0x1cd4   :  { %v3212_v26 = vpop.xlane.xlu1 %3211 }
0x1cd5   :  { %v3215_v7 = vadd.f32 1e-05, %v3213_v23  ;;  %v3214_v22 = vmul.f32 0.03125, %v3212_v26 }
0x1cd7   :  { %12334 = vrsqrt.f32 %v3215_v7  ;;  %v3216_v24 = vadd.f32 1e-05, %v3214_v22  ;;  %v13238_v7 = vld [vmem:[%s13232_s22 + $0x8] sm:$0xff] }
0x1cd9   :  { %12336 = vrsqrt.f32 %v3216_v24 }
0x1ce1   :  { %v12335_v29 = vpop.eup %12334 }
0x1ce2   :  { %v3219_v30 = vmul.f32 %v12335_v29, %v3203_v12 }
0x1ce3   :  { %v12337_v31 = vpop.eup %12336 }
0x1ce4   :  { %v3227_v33 = vmul.f32 %v10012_v21, %v3219_v30  ;;  %v3220_v34 = vmul.f32 %v12337_v31, %v3204_v5 }
0x1ce6   :  { %v3228_v32 = vmul.f32 %v10012_v21, %v3220_v34  ;;  %v13160_v35 = vadd.f32 %v10013_v28, %v3227_v33  ;;  %v10062_v33 = vld [vmem:[%s13201_s16 + $0x8] ss:$0 sm:$0xff] }
0x1ce8   :  { %v13162_v36 = vadd.f32 %v10013_v28, %v3228_v32 }
0x1cea   :  { %v3242_v38 = vpack.c.bf16 %v13162_v36, %v13160_v35 }
0x1cec   :  { %11276 = vmatmul.mubr.msk.bf16.vlgmr.msra.gmra.mrb[88].mxu1 %vm210_vm1, %v3242_v38 }
0x1ced   :  { %11292 = vmatpush3.bf16.msra.mxu1 %v12140_v37  ;;  %11295 = vmatprep.mubr.msk.bf16.mxu1 %vm12512_vm0, %v12510_v0 }
0x1cee   :  { %11293 = vmatprep.subr.bf16.mxu1 %v12510_v0 }
0x1cf1   :  { %11294 = vmatpush3.bf16.msra.mxu1 %v12141_v8 }
0x1cf2   :  { %11299 = vmatprep.subr.bf16.mxu1 %v12510_v0 }
0x1cf4   :  { %11296 = vmatmul.mubr.msk.bf16.vlgmr.msra.gmra.mrb[92].mxu1 %vm210_vm1, %v13178_v16 }
0x1cf5   :  { %11300 = vmatpush3.bf16.msra.mxu1 %v12142_v40  ;;  %11303 = vmatprep.mubr.msk.bf16.mxu1 %vm12512_vm0, %v12510_v0 }
0x1cf6   :  { %11301 = vmatprep.subr.bf16.mxu1 %v12510_v0 }
0x1cf9   :  { %11302 = vmatpush3.bf16.msra.mxu1 %v12143_v49  ;;  %v12152_v49 = vld [vmem:[%s13147_s23 + $0x10] sm:$0xff]  }
0x1cfa   :  { %11315 = vmatprep.subr.bf16.mxu1 %v12510_v0 }
0x1cfc   :  { %11304 = vmatmul.mubr.msk.bf16.vlgmr.msra.gmra.mrb[96].mxu1 %vm210_vm1, %v13178_v16 }
0x1cfd   :  { %11317 = vmatprep.mubr.msk.bf16.mxu1 %vm12512_vm0, %v12510_v0 }
0x1dbf   :  { %v3300_v43 = vpop.f32.mrb[88].mxu1 }
0x1dc0   :  { %v3301_v44 = vadd.f32 %v10019_v42, %v3300_v43  ;;  %v11277_v45 = vpop.f32.mrb[89].mxu1 }
0x1dc1   :  { %v3303_v46 = vpop.f32.mrb[90].mxu1 }
0x1dc2   :  { %v3304_v47 = vadd.f32 %v10019_v42, %v3303_v46  ;;  %v11278_v51 = vpop.f32.mrb[91].mxu1  ;;  %v3307_v52 = vmax.f32 %v3301_v44, 0.0 }
0x1dc4   :  { %v3308_v48 = vmax.f32 %v3304_v47, 0.0 }
0x1dc6   :  { %v3318_v27 = vpack.c.bf16 %v3308_v48, %v3307_v52  ;;  %v12150_v52 = vld [vmem:[%s13147_s23 + $0x50] sm:$0xff]  }
0x1dc7   :  { %v3553_v53 = vpop.f32.mrb[92].mxu1 }
0x1dc8   :  { %11288 = vmatmul.mubr.msk.bf16.vlgmr.msra.gmra.mrb[88].mxu0 %vm1718_vm5, %v3318_v27  ;;  %v11297_v57 = vpop.f32.mrb[93].mxu1  ;;  %v3554_v60 = vadd.f32 %v10044_v54, %v3553_v53  ;;  %v10073_v27 = vld [vmem:[%s13201_s16 + $0x1] ss:$0 sm:$0xff] }
0x1dc9   :  { %v3556_v58 = vpop.f32.mrb[94].mxu1  ;;  %11308 = vmatpush3.bf16.msra.mxu0 %v12148_v25  ;;  %11311 = vmatprep.mubr.msk.bf16.mxu0 %vm12512_vm0, %v12510_v0  ;;  %v12151_v25 = vld [vmem:[%s13147_s23 + $0x58] sm:$0xff]  }
0x1dca   :  { %v3557_v61 = vadd.f32 %v10044_v54, %v3556_v58  ;;  %v11298_v17 = vpop.f32.mrb[95].mxu1  ;;  %11309 = vmatprep.subr.bf16.mxu0 %v12510_v0 }
0x1dcb   :  { %v12154_v17 = vld [vmem:[%s13147_s23 + $0x90] sm:$0xff]  }
0x1dcc   :  { %v3692_v18 = vpack.c.bf16 %v3557_v61, %v3554_v60 }
0x1dcd   :  { %11310 = vmatpush3.bf16.msra.mxu0 %v12149_v59 }
0x1dce   :  { %11321 = vmatprep.subr.bf16.mxu0 %v12510_v0 }
0x1dcf   :  { %v3619_v63 = vpop.f32.mrb[96].mxu1 }
0x1dd0   :  { %v11305_v1 = vpop.f32.mrb[97].mxu1  ;;  %11312 = vmatmul.mubr.msk.bf16.vlgmr.msra.gmra.mrb[92].mxu0 %vm210_vm1, %v13178_v16  ;;  %v3620_v6 = vadd.f32 %v10053_v62, %v3619_v63 }
0x1dd1   :  { %v3622_v2 = vpop.f32.mrb[98].mxu1  ;;  %11323 = vmatprep.mubr.msk.bf16.mxu0 %vm12512_vm0, %v12510_v0 }
0x1dd2   :  { %v3623_v11 = vadd.f32 %v10053_v62, %v3622_v2  ;;  %v11306_v12 = vpop.f32.mrb[99].mxu1 }
0x1dd4   :  { %v3693_v3 = vpack.c.bf16 %v3623_v11, %v3620_v6  ;;  %v10082_v6 = vld [vmem:[%s13201_s16 + $0x5] ss:$0 sm:$0xff] }
0x1dd6   :  { %v3698_v5 = vsel %vm389_vm2, %v3693_v3, 0 }
0x1dd7   :  { %11316 = vmatpush3.bf16.xpose.msra.mxu1 %v3698_v5 }
0x1dd8   :  { %11327 = vmatprep.subr.bf16.mxu1 %v12510_v0 }
0x1dde   :  { %11318 = vmatmul.mubr.msk.bf16.vlgmr.msra.gmra.mrb[100].mxu1 %vm389_vm2, %v3692_v18  ;;  %v12155_v18 = vld [vmem:[%s13147_s23 + $0x98] sm:$0xff]  }
0x1ddf   :  { %11331 = vmatprep.mubr.msk.bf16.mxu1 %vm12512_vm0, %v12510_v0  ;;  %11328 = vmatpush3.bf16.msra.mxu1 %v12152_v49 }
0x1de0   :  { %11329 = vmatprep.subr.bf16.mxu1 %v12510_v0 }
0x1de3   :  { %11330 = vmatpush3.bf16.msra.mxu1 %v12153_v50  ;;  %v12158_v50 = vld [vmem:[%s13147_s23 + $0x20] sm:$0xff]  }
0x1de4   :  { %11343 = vmatprep.subr.bf16.mxu1 %v12510_v0 }
0x1de6   :  { %11332 = vmatmul.mubr.msk.bf16.vlgmr.msra.gmra.mrb[104].mxu1 %vm210_vm1, %v13178_v16 }
0x1de7   :  { %11347 = vmatprep.mubr.msk.bf16.mxu1 %vm12512_vm0, %v12510_v0  ;;  %11344 = vmatpush3.bf16.msra.mxu1 %v12154_v17 }
0x1de8   :  { %11345 = vmatprep.subr.bf16.mxu1 %v12510_v0 }
0x1deb   :  { %11346 = vmatpush3.bf16.msra.mxu1 %v12155_v18 }
0x1dec   :  { %11357 = vmatprep.subr.bf16.mxu1 %v12510_v0 }
0x1dee   :  { %11348 = vmatmul.mubr.msk.bf16.vlgmr.msra.gmra.mrb[108].mxu1 %vm210_vm1, %v13178_v16 }
0x1def   :  { %11359 = vmatprep.mubr.msk.bf16.mxu1 %vm12512_vm0, %v12510_v0 }
0x1e9b   :  { %v3388_v13 = vpop.f32.mrb[88].mxu0 }
0x1e9c   :  { %v13225_v56 = vadd.f32 %v13222_v55, %v3388_v13  ;;  %v11289_v14 = vpop.f32.mrb[89].mxu0 }
0x1e9d   :  { %v13227_v4 = vpop.f32.mrb[90].mxu0 }
0x1e9e   :  { %v11290_v9 = vpop.f32.mrb[91].mxu0 }
0x1ea3   :  { %v3685_v34 = vpop.f32.mrb[92].mxu0 }
0x1ea4   :  { %v3686_v28 = vadd.f32 %v10062_v33, %v3685_v34  ;;  %v11313_v32 = vpop.f32.mrb[93].mxu0  ;;  %v10091_v34 = vld [vmem:[%s13201_s16 + $0x9] ss:$0 sm:$0xff] }
0x1ea5   :  { %v3688_v37 = vpop.f32.mrb[94].mxu0 }
0x1ea6   :  { %v3689_v38 = vadd.f32 %v10062_v33, %v3688_v37  ;;  %v11314_v8 = vpop.f32.mrb[95].mxu0 }
0x1ea8   :  { %v3758_v40 = vpack.c.bf16 %v3689_v38, %v3686_v28 }
0x1eaa   :  { %11322 = vmatpush3.bf16.msra.mxu0 %v3758_v40 }
0x1eab   :  { %11335 = vmatprep.subr.bf16.mxu0 %v12510_v0 }
0x1eb1   :  { %v3734_v15 = vpop.f32.mrb[100].mxu1 }
0x1eb2   :  { %v3741_v20 = vmul.f32 0.35355338, %v3734_v15  ;;  %v11319_v23 = vpop.f32.mrb[101].mxu1 }
0x1eb3   :  { %v3737_v26 = vpop.f32.mrb[102].mxu1 }
0x1eb4   :  { %v3742_v22 = vmul.f32 0.35355338, %v3737_v26  ;;  %v11320_v24 = vpop.f32.mrb[103].mxu1  ;;  %v3743_v29 = vadd.f32 %v3741_v20, %v13235_v19 }
0x1eb6   :  { %v3745_v21 = vsel %vm441_vm3, %v3743_v29, -inf  ;;  %v3744_v30 = vadd.f32 %v3742_v22, %v13238_v7 }
0x1eb7   :  { %3746 = vmax.xlane.f32.xlu0 %v3745_v21 }
0x1eb8   :  { %v3748_v31 = vsel %vm441_vm3, %v3744_v30, -inf }
0x1eb9   :  { %3749 = vmax.xlane.f32.xlu1 %v3748_v31  ;;  %v3872_v54 = vpop.f32.mrb[104].mxu1 }
0x1eba   :  { %v3873_v53 = vadd.f32 %v10073_v27, %v3872_v54  ;;  %v11333_v57 = vpop.f32.mrb[105].mxu1 }
0x1ebb   :  { %v3875_v58 = vpop.f32.mrb[106].mxu1  ;;  %v10102_v57 = vld [vmem:[%s13201_s16 + $0x2] ss:$0 sm:$0xff] }
0x1ebc   :  { %v3876_v59 = vadd.f32 %v10073_v27, %v3875_v58  ;;  %v11334_v60 = vpop.f32.mrb[107].mxu1  ;;  %v12156_v27 = vld [vmem:[%s13147_s23 + $0x60] sm:$0xff]  }
0x1ebe   :  { %v4011_v61 = vpack.c.bf16 %v3876_v59, %v3873_v53  ;;  %v12157_v53 = vld [vmem:[%s13147_s23 + $0x68] sm:$0xff]  }
0x1ec1   :  { %v4004_v28 = vpop.f32.mrb[108].mxu1 }
0x1ec2   :  { %v4005_v32 = vadd.f32 %v10091_v34, %v4004_v28  ;;  %v11349_v37 = vpop.f32.mrb[109].mxu1 }
0x1ec3   :  { %v4007_v38 = vpop.f32.mrb[110].mxu1 }
0x1ec4   :  { %v4008_v8 = vadd.f32 %v10091_v34, %v4007_v38  ;;  %v11350_v40 = vpop.f32.mrb[111].mxu1 }
0x1ec6   :  { %v4077_v49 = vpack.c.bf16 %v4008_v8, %v4005_v32  ;;  %v10120_v8 = vld [vmem:[%s13201_s16 + $0xa] ss:$0 sm:$0xff] }
0x1ec8   :  { %11358 = vmatpush3.bf16.msra.mxu1 %v4077_v49 }
0x1ec9   :  { %11371 = vmatprep.subr.bf16.mxu1 %v12510_v0 }
0x1f44   :  { %v3747_v41 = vpop.xlane.xlu0 %3746 }
0x1f45   :  { %v3751_v42 = vsub.f32 %v3743_v29, %v3747_v41  ;;  %v12159_v41 = vld [vmem:[%s13147_s23 + $0x28] sm:$0xff]  }
0x1f46   :  { %v3750_v43 = vpop.xlane.xlu1 %3749 }
0x1f47   :  { %v3753_v44 = vmul.f32 1.442695, %v3751_v42  ;;  %v3752_v45 = vsub.f32 %v3744_v30, %v3750_v43 }
0x1f49   :  { %v3755_v46 = vmul.f32 1.442695, %v3752_v45  ;;  %12338 = vpow2.f32 %v3753_v44 }
0x1f4b   :  { %12340 = vpow2.f32 %v3755_v46 }
0x1f53   :  { %v13254_v47 = vpop.eup %12338 }
0x1f55   :  { %v13256_v51 = vpop.eup %12340 }
0x1f56   :  { %v3757_v48 = vpack.c.bf16 %v13256_v51, %v13254_v47 }
0x1f58   :  { %11324 = vmatmul.mubr.msk.bf16.vlgmr.msra.gmra.mrb[96].mxu0 %vm441_vm3, %v3757_v48 }
0x1f59   :  { %11336 = vmatpush3.bf16.msra.mxu0 %v12150_v52  ;;  %11339 = vmatprep.mubr.msk.bf16.mxu0 %vm12512_vm0, %v12510_v0 }
0x1f5a   :  { %11337 = vmatprep.subr.bf16.mxu0 %v12510_v0 }
0x1f5d   :  { %11338 = vmatpush3.bf16.msra.mxu0 %v12151_v25 }
0x1f5e   :  { %11351 = vmatprep.subr.bf16.mxu0 %v12510_v0 }
0x1f60   :  { %11340 = vmatmul.mubr.msk.bf16.vlgmr.msra.gmra.mrb[100].mxu0 %vm210_vm1, %v13178_v16 }
0x1f61   :  { %11353 = vmatprep.mubr.msk.bf16.mxu0 %vm12512_vm0, %v12510_v0 }
0x202b   :  { %v13280_v62 = vpop.f32.mrb[96].mxu0 }
0x202c   :  { %v11325_v63 = vpop.f32.mrb[97].mxu0 }
0x202d   :  { %v13282_v1 = vpop.f32.mrb[98].mxu0 }
0x202e   :  { %v11326_v2 = vpop.f32.mrb[99].mxu0 }
0x202f   :  { %v12160_v2 = vld [vmem:[%s13147_s23 + $0xa0] sm:$0xff]  }
0x2033   :  { %v3938_v11 = vpop.f32.mrb[100].mxu0 }
0x2034   :  { %v11341_v12 = vpop.f32.mrb[101].mxu0  ;;  %v3939_v5 = vadd.f32 %v10082_v6, %v3938_v11 }
0x2035   :  { %v3941_v3 = vpop.f32.mrb[102].mxu0 }
0x2036   :  { %v3942_v13 = vadd.f32 %v10082_v6, %v3941_v3  ;;  %v11342_v14 = vpop.f32.mrb[103].mxu0  ;;  %v12161_v6 = vld [vmem:[%s13147_s23 + $0xa8] sm:$0xff]  }
0x2038   :  { %v4012_v9 = vpack.c.bf16 %v3942_v13, %v3939_v5  ;;  %v10111_v13 = vld [vmem:[%s13201_s16 + $0x6] ss:$0 sm:$0xff] }
0x203a   :  { %v4017_v15 = vsel %vm389_vm2, %v4012_v9, 0 }
0x203b   :  { %11352 = vmatpush3.bf16.xpose.msra.mxu0 %v4017_v15 }
0x203c   :  { %11363 = vmatprep.subr.bf16.mxu0 %v12510_v0 }
0x2042   :  { %11354 = vmatmul.mubr.msk.bf16.vlgmr.msra.gmra.mrb[104].mxu0 %vm389_vm2, %v4011_v61 }
0x2043   :  { %11367 = vmatprep.mubr.msk.bf16.mxu0 %vm12512_vm0, %v12510_v0  ;;  %11364 = vmatpush3.bf16.msra.mxu0 %v12158_v50 }
0x2044   :  { %11365 = vmatprep.subr.bf16.mxu0 %v12510_v0 }
0x2047   :  { %11366 = vmatpush3.bf16.msra.mxu0 %v12159_v41 }
0x2048   :  { %11379 = vmatprep.subr.bf16.mxu0 %v12510_v0 }
0x204a   :  { %11368 = vmatmul.mubr.msk.bf16.vlgmr.msra.gmra.mrb[108].mxu0 %vm210_vm1, %v13178_v16 }
0x204b   :  { %11383 = vmatprep.mubr.msk.bf16.mxu0 %vm12512_vm0, %v12510_v0  ;;  %11380 = vmatpush3.bf16.msra.mxu0 %v12160_v2 }
0x204c   :  { %11381 = vmatprep.subr.bf16.mxu0 %v12510_v0 }
0x204f   :  { %11382 = vmatpush3.bf16.msra.mxu0 %v12161_v6 }
0x2050   :  { %11393 = vmatprep.subr.bf16.mxu0 %v12510_v0 }
0x2052   :  { %11384 = vmatmul.mubr.msk.bf16.vlgmr.msra.gmra.mrb[112].mxu0 %vm210_vm1, %v13178_v16 }
0x2053   :  { %11395 = vmatprep.mubr.msk.bf16.mxu0 %vm12512_vm0, %v12510_v0 }
0x2115   :  { %v4053_v20 = vpop.f32.mrb[104].mxu0 }
0x2116   :  { %v4060_v23 = vmul.f32 0.35355338, %v4053_v20  ;;  %v11355_v26 = vpop.f32.mrb[105].mxu0 }
0x2117   :  { %v4056_v22 = vpop.f32.mrb[106].mxu0 }
0x2118   :  { %v4061_v24 = vmul.f32 0.35355338, %v4056_v22  ;;  %v11356_v29 = vpop.f32.mrb[107].mxu0  ;;  %v4062_v21 = vadd.f32 %v4060_v23, %v13235_v19 }
0x211a   :  { %v4064_v30 = vsel %vm441_vm3, %v4062_v21, -inf  ;;  %v4063_v31 = vadd.f32 %v4061_v24, %v13238_v7 }
0x211b   :  { %4065 = vmax.xlane.f32.xlu0 %v4064_v30 }
0x211c   :  { %v4067_v33 = vsel %vm441_vm3, %v4063_v31, -inf }
0x211d   :  { %4068 = vmax.xlane.f32.xlu1 %v4067_v33  ;;  %v4191_v58 = vpop.f32.mrb[108].mxu0 }
0x211e   :  { %v4192_v59 = vadd.f32 %v10102_v57, %v4191_v58  ;;  %v11369_v60 = vpop.f32.mrb[109].mxu0 }
0x211f   :  { %v4194_v61 = vpop.f32.mrb[110].mxu0 }
0x2120   :  { %v4195_v17 = vadd.f32 %v10102_v57, %v4194_v61  ;;  %v11370_v18 = vpop.f32.mrb[111].mxu0  ;;  %v12162_v61 = vld [vmem:[%s13147_s23 + $0x70] sm:$0xff]  }
0x2121   :  { %v12163_v18 = vld [vmem:[%s13147_s23 + $0x78] sm:$0xff]  }
0x2122   :  { %v4330_v63 = vpack.c.bf16 %v4195_v17, %v4192_v59 }
0x2125   :  { %v4323_v40 = vpop.f32.mrb[112].mxu0 }
0x2126   :  { %v4324_v49 = vadd.f32 %v10120_v8, %v4323_v40  ;;  %v11385_v50 = vpop.f32.mrb[113].mxu0 }
0x2127   :  { %v4326_v41 = vpop.f32.mrb[114].mxu0 }
0x21a8   :  { %v4066_v42 = vpop.xlane.xlu0 %4065 }
0x21a9   :  { %v4070_v43 = vsub.f32 %v4062_v21, %v4066_v42  ;;  %v4327_v42 = vadd.f32 %v10120_v8, %v4326_v41 }
0x21aa   :  { %v4069_v44 = vpop.xlane.xlu1 %4068 }
0x21ab   :  { %v4072_v45 = vmul.f32 1.442695, %v4070_v43  ;;  %v4071_v46 = vsub.f32 %v4063_v31, %v4069_v44  ;;  %v11386_v43 = vpop.f32.mrb[115].mxu0  ;;  %v4396_v44 = vpack.c.bf16 %v4327_v42, %v4324_v49 }
0x21ad   :  { %v4074_v52 = vmul.f32 1.442695, %v4071_v46  ;;  %12342 = vpow2.f32 %v4072_v45  ;;  %11394 = vmatpush3.bf16.msra.mxu0 %v4396_v44  ;;  %v12164_v45 = vld [vmem:[%s13147_s23 + $0x30] sm:$0xff]   ;;  %v12165_v46 = vld [vmem:[%s13147_s23 + $0x38] sm:$0xff]  }
0x21ae   :  { %11407 = vmatprep.subr.bf16.mxu0 %v12510_v0 }
0x21af   :  { %12344 = vpow2.f32 %v4074_v52 }
0x21b7   :  { %v13304_v48 = vpop.eup %12342 }
0x21b9   :  { %v13306_v25 = vpop.eup %12344 }
0x21ba   :  { %v4076_v54 = vpack.c.bf16 %v13306_v25, %v13304_v48 }
0x21bc   :  { %11360 = vmatmul.mubr.msk.bf16.vlgmr.msra.gmra.mrb[112].mxu1 %vm441_vm3, %v4076_v54 }
0x21bd   :  { %11372 = vmatpush3.bf16.msra.mxu1 %v12156_v27  ;;  %11375 = vmatprep.mubr.msk.bf16.mxu1 %vm12512_vm0, %v12510_v0 }
0x21be   :  { %11373 = vmatprep.subr.bf16.mxu1 %v12510_v0 }
0x21c1   :  { %11374 = vmatpush3.bf16.msra.mxu1 %v12157_v53 }
0x21c2   :  { %11387 = vmatprep.subr.bf16.mxu1 %v12510_v0 }
0x21c4   :  { %11376 = vmatmul.mubr.msk.bf16.vlgmr.msra.gmra.mrb[116].mxu1 %vm210_vm1, %v13178_v16 }
0x21c5   :  { %11389 = vmatprep.mubr.msk.bf16.mxu1 %vm12512_vm0, %v12510_v0 }
0x228f   :  { %v13330_v11 = vpop.f32.mrb[112].mxu1 }
0x2290   :  { %v11361_v12 = vpop.f32.mrb[113].mxu1 }
0x2291   :  { %v13332_v3 = vpop.f32.mrb[114].mxu1 }
0x2292   :  { %v11362_v5 = vpop.f32.mrb[115].mxu1 }
0x2297   :  { %v4257_v14 = vpop.f32.mrb[116].mxu1 }
0x2298   :  { %v11377_v9 = vpop.f32.mrb[117].mxu1  ;;  %v4258_v20 = vadd.f32 %v10111_v13, %v4257_v14 }
0x2299   :  { %v4260_v15 = vpop.f32.mrb[118].mxu1 }
0x229a   :  { %v4261_v23 = vadd.f32 %v10111_v13, %v4260_v15  ;;  %v11378_v26 = vpop.f32.mrb[119].mxu1  ;;  %v12166_v15 = vld [vmem:[%s13147_s23 + $0xb0] sm:$0xff]  }
0x229c   :  { %v4331_v22 = vpack.c.bf16 %v4261_v23, %v4258_v20  ;;  %v12167_v20 = vld [vmem:[%s13147_s23 + $0xb8] sm:$0xff]  }
0x229e   :  { %v4336_v24 = vsel %vm389_vm2, %v4331_v22, 0 }
0x229f   :  { %11388 = vmatpush3.bf16.xpose.msra.mxu1 %v4336_v24 }
0x22a0   :  { %11399 = vmatprep.subr.bf16.mxu1 %v12510_v0 }
0x22a6   :  { %11390 = vmatmul.mubr.msk.bf16.vlgmr.msra.gmra.mrb[120].mxu1 %vm389_vm2, %v4330_v63  ;;  %v10131_v63 = vld [vmem:[%s13201_s16 + $0x3] ss:$0 sm:$0xff] }
0x22a7   :  { %11403 = vmatprep.mubr.msk.bf16.mxu1 %vm12512_vm0, %v12510_v0  ;;  %11400 = vmatpush3.bf16.msra.mxu1 %v12164_v45  ;;  %v4122_v45 = vsel %vm441_vm3, %v13304_v48, 0.0 }
0x22a8   :  { %11401 = vmatprep.subr.bf16.mxu1 %v12510_v0 }
0x22ab   :  { %11402 = vmatpush3.bf16.msra.mxu1 %v12165_v46  ;;  %v4125_v46 = vsel %vm441_vm3, %v13306_v25, 0.0 }
0x22ac   :  { %11415 = vmatprep.subr.bf16.mxu1 %v12510_v0 }
0x22ae   :  { %11404 = vmatmul.mubr.msk.bf16.vlgmr.msra.gmra.mrb[124].mxu1 %vm210_vm1, %v13178_v16 }
0x22af   :  { %11419 = vmatprep.mubr.msk.bf16.mxu1 %vm12512_vm0, %v12510_v0  ;;  %11416 = vmatpush3.bf16.msra.mxu1 %v12166_v15 }
0x22b0   :  { %11417 = vmatprep.subr.bf16.mxu1 %v12510_v0 }
0x22b3   :  { %11418 = vmatpush3.bf16.msra.mxu1 %v12167_v20 }
0x22b4   :  { %11429 = vmatprep.subr.bf16.mxu1 %v12510_v0 }
0x22b6   :  { %11420 = vmatmul.mubr.msk.bf16.vlgmr.msra.gmra.mrb[128].mxu1 %vm210_vm1, %v13178_v16 }
0x22b7   :  { %11431 = vmatprep.mubr.msk.bf16.mxu1 %vm12512_vm0, %v12510_v0 }
0x2379   :  { %v4372_v29 = vpop.f32.mrb[120].mxu1 }
0x237a   :  { %v4379_v21 = vmul.f32 0.35355338, %v4372_v29  ;;  %v11391_v30 = vpop.f32.mrb[121].mxu1  ;;  %v10140_v29 = vld [vmem:[%s13201_s16 + $0x7] ss:$0 sm:$0xff] }
0x237b   :  { %v4375_v31 = vpop.f32.mrb[122].mxu1 }
0x237c   :  { %v4380_v33 = vmul.f32 0.35355338, %v4375_v31  ;;  %v11392_v34 = vpop.f32.mrb[123].mxu1  ;;  %v4381_v28 = vadd.f32 %v4379_v21, %v13235_v19 }
0x237e   :  { %v4383_v32 = vsel %vm441_vm3, %v4381_v28, -inf  ;;  %v4382_v37 = vadd.f32 %v4380_v33, %v13238_v7 }
0x237f   :  { %4384 = vmax.xlane.f32.xlu0 %v4383_v32 }
0x2380   :  { %v4386_v38 = vsel %vm441_vm3, %v4382_v37, -inf }
0x2381   :  { %4387 = vmax.xlane.f32.xlu1 %v4386_v38  ;;  %v4510_v2 = vpop.f32.mrb[124].mxu1 }
0x2382   :  { %v4511_v6 = vadd.f32 %v10131_v63, %v4510_v2  ;;  %v11405_v12 = vpop.f32.mrb[125].mxu1 }
0x2383   :  { %v4513_v5 = vpop.f32.mrb[126].mxu1 }
0x2384   :  { %v4514_v13 = vadd.f32 %v10131_v63, %v4513_v5  ;;  %v11406_v14 = vpop.f32.mrb[127].mxu1 }
0x2386   :  { %v4649_v9 = vpack.c.bf16 %v4514_v13, %v4511_v6 }
0x240c   :  { %v4385_v52 = vpop.xlane.xlu0 %4384 }
0x240d   :  { %v4389_v27 = vsub.f32 %v4381_v28, %v4385_v52 }
0x240e   :  { %v4388_v54 = vpop.xlane.xlu1 %4387 }
0x240f   :  { %v4391_v53 = vmul.f32 1.442695, %v4389_v27  ;;  %v4390_v57 = vsub.f32 %v4382_v37, %v4388_v54  ;;  %v4642_v27 = vpop.f32.mrb[128].mxu1 }
0x2411   :  { %v4393_v58 = vmul.f32 1.442695, %v4390_v57  ;;  %12346 = vpow2.f32 %v4391_v53  ;;  %v11421_v53 = vpop.f32.mrb[129].mxu1 }
0x2412   :  { %v4645_v57 = vpop.f32.mrb[130].mxu1 }
0x2413   :  { %12348 = vpow2.f32 %v4393_v58 }
0x241b   :  { %v12347_v59 = vpop.eup %12346 }
0x241c   :  { %v4441_v52 = vsel %vm441_vm3, %v12347_v59, 0.0 }
0x241d   :  { %v13354_v60 = vpop.eup %12348 }
0x241e   :  { %v4395_v17 = vpack.c.bf16 %v13354_v60, %v12347_v59 }
0x2420   :  { %11396 = vmatmul.mubr.msk.bf16.vlgmr.msra.gmra.mrb[116].mxu0 %vm441_vm3, %v4395_v17 }
0x2421   :  { %11408 = vmatpush3.bf16.msra.mxu0 %v12162_v61  ;;  %11411 = vmatprep.mubr.msk.bf16.mxu0 %vm12512_vm0, %v12510_v0  ;;  %v11422_v61 = vpop.f32.mrb[131].mxu1 }
0x2422   :  { %11409 = vmatprep.subr.bf16.mxu0 %v12510_v0 }
0x2425   :  { %11410 = vmatpush3.bf16.msra.mxu0 %v12163_v18 }
0x2426   :  { %11423 = vmatprep.subr.bf16.mxu0 %v12510_v0 }
0x2428   :  { %11412 = vmatmul.mubr.msk.bf16.vlgmr.msra.gmra.mrb[120].mxu0 %vm210_vm1, %v13178_v16 }
0x2429   :  { %11425 = vmatprep.mubr.msk.bf16.mxu0 %vm12512_vm0, %v12510_v0 }
0x24f3   :  { %v13377_v23 = vpop.f32.mrb[116].mxu0 }
0x24f4   :  { %v11397_v26 = vpop.f32.mrb[117].mxu0 }
0x24f5   :  { %v13379_v22 = vpop.f32.mrb[118].mxu0 }
0x24f6   :  { %v11398_v24 = vpop.f32.mrb[119].mxu0 }
0x24fb   :  { %v4576_v21 = vpop.f32.mrb[120].mxu0 }
0x24fc   :  { %v11413_v30 = vpop.f32.mrb[121].mxu0  ;;  %v4577_v33 = vadd.f32 %v10140_v29, %v4576_v21 }
0x24fd   :  { %v4579_v31 = vpop.f32.mrb[122].mxu0 }
0x24fe   :  { %v4580_v34 = vadd.f32 %v10140_v29, %v4579_v31  ;;  %v11414_v28 = vpop.f32.mrb[123].mxu0  ;;  %v3803_v31 = vsel %vm441_vm3, %v13254_v47, 0.0  ;;  %v3392_v47 = vadd.f32 %v13222_v55, %v13227_v4 }
0x24ff   :  { %v3806_v28 = vsel %vm441_vm3, %v13256_v51, 0.0  ;;  %v12168_v51 = vld [vmem:[%s13422_s29] sm:$0xff]  }
0x2500   :  { %v4650_v32 = vpack.c.bf16 %v4580_v34, %v4577_v33 }
0x2502   :  { %v4655_v37 = vsel %vm389_vm2, %v4650_v32, 0 }
0x2503   :  { %11424 = vmatpush3.bf16.xpose.msra.mxu0 %v4655_v37  ;;  %v3396_v37 = vadd.f32 %v3392_v47, %v13162_v36  ;;  %v12169_v36 = vld [vmem:[%s13422_s29 + $0x8] sm:$0xff]   ;;  %v10155_v47 = vld [vmem:[%s13448_s7] ss:$0 sm:$0xff] }
0x2504   :  { %11435 = vmatprep.subr.bf16.mxu0 %v12510_v0 }
0x250a   :  { %11426 = vmatmul.mubr.msk.bf16.vlgmr.msra.gmra.mrb[124].mxu0 %vm389_vm2, %v4649_v9 }
0x250b   :  { %11439 = vmatprep.mubr.msk.bf16.mxu0 %vm12512_vm0, %v12510_v0  ;;  %11436 = vmatpush3.bf16.msra.mxu0 %v12168_v51  ;;  %v10041_v51 = vld [vmem:[%s12907_s9 + $0x1] ss:$0 sm:$0xff]  ;;  %s13760_s9 = sld [smem:[%s14342_s0 + %s12541_s2]]  }
0x250c   :  { %11437 = vmatprep.subr.bf16.mxu0 %v12510_v0 }
0x250f   :  { %11438 = vmatpush3.bf16.msra.mxu0 %v12169_v36 }
0x2510   :  { %11451 = vmatprep.subr.bf16.mxu0 %v12510_v0 }
0x25dd   :  { %v4691_v16 = vpop.f32.mrb[124].mxu0 }
0x25de   :  { %v4698_v38 = vmul.f32 0.35355338, %v4691_v16  ;;  %v11427_v8 = vpop.f32.mrb[125].mxu0  ;;  %v3404_v16 = vsel %vm210_vm1, %v3396_v37, 0.0 }
0x25df   :  { %v4694_v40 = vpop.f32.mrb[126].mxu0 }
0x25e0   :  { %v4699_v49 = vmul.f32 0.35355338, %v4694_v40  ;;  %v11428_v50 = vpop.f32.mrb[127].mxu0  ;;  %v4700_v41 = vadd.f32 %v4698_v38, %v13235_v19  ;;  %v4444_v19 = vsel %vm441_vm3, %v13354_v60, 0.0 }
0x25e2   :  { %v4702_v42 = vsel %vm441_vm3, %v4700_v41, -inf  ;;  %v4701_v43 = vadd.f32 %v4699_v49, %v13238_v7  ;;  %v10149_v7 = vld [vmem:[%s13201_s16 + $0xb] ss:$0 sm:$0xff] }
0x25e3   :  { %4703 = vmax.xlane.f32.xlu0 %v4702_v42  ;;  %v4643_v54 = vadd.f32 %v10149_v7, %v4642_v27  ;;  %v4646_v58 = vadd.f32 %v10149_v7, %v4645_v57 }
0x25e4   :  { %v4705_v44 = vsel %vm441_vm3, %v4701_v43, -inf }
0x25e5   :  { %4706 = vmax.xlane.f32.xlu1 %v4705_v44  ;;  %v4715_v48 = vpack.c.bf16 %v4646_v58, %v4643_v54 }
0x25e7   :  { %4123 = vadd.xlane.f32.xlu0 %v4122_v45  ;;  %11430 = vmatpush3.bf16.msra.mxu1 %v4715_v48 }
0x25e8   :  { %11443 = vmatprep.subr.bf16.mxu1 %v12510_v0 }
0x25e9   :  { %4126 = vadd.xlane.f32.xlu1 %v4125_v46 }
0x25eb   :  { %4442 = vadd.xlane.f32.xlu0 %v4441_v52 }
0x25ed   :  { %4445 = vadd.xlane.f32.xlu1 %v4444_v19 }
0x2670   :  { %v4704_v25 = vpop.xlane.xlu0 %4703 }
0x2671   :  { %v4708_v17 = vsub.f32 %v4700_v41, %v4704_v25 }
0x2672   :  { %v4707_v18 = vpop.xlane.xlu1 %4706 }
0x2673   :  { %v4710_v59 = vmul.f32 1.442695, %v4708_v17  ;;  %v4709_v63 = vsub.f32 %v4701_v43, %v4707_v18  ;;  %v3395_v43 = vadd.f32 %v13225_v56, %v13160_v35 }
0x2674   :  { %v4124_v2 = vpop.xlane.xlu0 %4123 }
0x2675   :  { %12350 = vpow2.f32 %v4710_v59  ;;  %v4712_v60 = vmul.f32 1.442695, %v4709_v63  ;;  %v3401_v44 = vsel %vm210_vm1, %v3395_v43, 0.0 }
0x2676   :  { %12352 = vrcp.f32 %v4124_v2  ;;  %v4127_v6 = vpop.xlane.xlu1 %4126 }
0x2677   :  { %12354 = vpow2.f32 %v4712_v60 }
0x2678   :  { %12356 = vrcp.f32 %v4127_v6  ;;  %v4443_v12 = vpop.xlane.xlu0 %4442 }
0x2679   :  { %12358 = vrcp.f32 %v4443_v12 }
0x267a   :  { %v4446_v5 = vpop.xlane.xlu1 %4445 }
0x267b   :  { %12360 = vrcp.f32 %v4446_v5 }
0x267f   :  { %v12351_v13 = vpop.eup %12350 }
0x2680   :  { %v12353_v14 = vpop.eup %12352  ;;  %v4760_v9 = vsel %vm441_vm3, %v12351_v13, 0.0 }
0x2681   :  { %v12355_v15 = vpop.eup %12354  ;;  %4761 = vadd.xlane.f32.xlu0 %v4760_v9  ;;  %v4130_v21 = vmul.f32 %v12353_v14, %v13330_v11 }
0x2682   :  { %v12357_v20 = vpop.eup %12356  ;;  %v4763_v26 = vsel %vm441_vm3, %v12355_v15, 0.0  ;;  %v4714_v24 = vpack.c.bf16 %v12355_v15, %v12351_v13 }
0x2683   :  { %v12359_v29 = vpop.eup %12358  ;;  %4764 = vadd.xlane.f32.xlu1 %v4763_v26  ;;  %v4131_v30 = vmul.f32 %v12357_v20, %v13332_v3 }
0x2684   :  { %11432 = vmatmul.mubr.msk.bf16.vlgmr.msra.gmra.mrb[132].mxu1 %vm441_vm3, %v4714_v24  ;;  %v4449_v32 = vmul.f32 %v12359_v29, %v13377_v23 }
0x2685   :  { %v12361_v33 = vpop.eup %12360  ;;  %3804 = vadd.xlane.f32.xlu0 %v3803_v31  ;;  %v12020_v34 = vpack.i.bf16 %v4131_v30, %v4130_v21  ;;  %11447 = vmatprep.mubr.msk.bf16.mxu1 %vm12512_vm0, %v12510_v0 }
0x2686   :  { %v4450_v11 = vmul.f32 %v12361_v33, %v13379_v22 }
0x2687   :  { %3807 = vadd.xlane.f32.xlu1 %v3806_v28 }
0x2688   :  { %v12025_v3 = vpack.i.bf16 %v4450_v11, %v4449_v32 }
0x2698   :  { %12026 = vrot.lane.b32.xlu1 %v12025_v3, %s12515_s18 }
0x269b   :  { %12021 = vrot.lane.b32.xlu0 %v12020_v34, %s12516_s19 }
0x26ba   :  { %3405 = vadd.xlane.f32.xlu0 %v3404_v16 }
0x270e   :  { %v4762_v23 = vpop.xlane.xlu0 %4761 }
0x270f   :  { %12362 = vrcp.f32 %v4762_v23 }
0x2710   :  { %v4765_v22 = vpop.xlane.xlu1 %4764 }
0x2711   :  { %12364 = vrcp.f32 %v4765_v22 }
0x2712   :  { %v3805_v45 = vpop.xlane.xlu0 %3804 }
0x2713   :  { %12366 = vrcp.f32 %v3805_v45 }
0x2714   :  { %v3808_v46 = vpop.xlane.xlu1 %3807 }
0x2715   :  { %12368 = vrcp.f32 %v3808_v46 }
0x2716   :  { %v12022_v7 = vpop.permute.xlu0 %12021 }
0x2717   :  { %v12024_v57 = vunpack.i.h.bf16 %v12022_v7  ;;  %v12023_v58 = vunpack.i.l.bf16 %v12022_v7 }
0x2718   :  { %v12027_v53 = vpop.permute.xlu1 %12026 }
0x2719   :  { %v12363_v4 = vpop.eup %12362  ;;  %v12029_v56 = vunpack.i.h.bf16 %v12027_v53  ;;  %v12028_v48 = vunpack.i.l.bf16 %v12027_v53 }
0x271b   :  { %v12365_v8 = vpop.eup %12364 }
0x271d   :  { %v12367_v52 = vpop.eup %12366 }
0x271e   :  { %v3811_v27 = vmul.f32 %v12367_v52, %v13280_v62 }
0x271f   :  { %v12369_v19 = vpop.eup %12368 }
0x2720   :  { %v3812_v54 = vmul.f32 %v12369_v19, %v13282_v1  ;;  %v4794_v61 = vsel %vm389_vm2, %v3811_v27, %v12023_v58 }
0x2721   :  { %v4796_v63 = vsel %vm441_vm3, %v4794_v61, %v12028_v48 }
0x2722   :  { %v4795_v35 = vsel %vm389_vm2, %v3812_v54, %v12024_v57 }
0x2723   :  { %v4797_v59 = vsel %vm441_vm3, %v4795_v35, %v12029_v56 }
0x2747   :  { %v3406_v60 = vpop.xlane.xlu0 %3405 }
0x2748   :  { %v3408_v6 = vmul.f32 0.03125, %v3406_v60 }
0x274a   :  { %v3410_v13 = vsub.f32 %v3396_v37, %v3408_v6  ;;  %v10040_v37 = vld [vmem:[%s12901_s4 + $0x1] ss:$0 sm:$0xff]  ;;  %s12532_s4 = smov 25  }
0x274b   :  { %s13466_s6 = sld [smem:[%s14342_s0 + %s12532_s4]]  }
0x274c   :  { %v3412_v20 = vmul.f32 %v3410_v13, %v3410_v13  ;;  %s13524_s4 = sld [smem:[%s14342_s0 + %s12536_s30]]  }
0x274e   :  { %v3416_v26 = vsel %vm210_vm1, %v3412_v20, 0.0 }
0x2757   :  { %v4753_v55 = vpop.f32.mrb[132].mxu1 }
0x2758   :  { %v11433_v38 = vpop.f32.mrb[133].mxu1  ;;  %v4768_v49 = vmul.f32 %v12363_v4, %v4753_v55 }
0x2759   :  { %v4756_v40 = vpop.f32.mrb[134].mxu1 }
0x275a   :  { %v4769_v50 = vmul.f32 %v12365_v8, %v4756_v40  ;;  %v11434_v41 = vpop.f32.mrb[135].mxu1 }
0x275c   :  { %v12030_v42 = vpack.i.bf16 %v4769_v50, %v4768_v49 }
0x275e   :  { %12031 = vrot.lane.b32.xlu1 %v12030_v42, %s12518_s24 }
0x2782   :  { %3402 = vadd.xlane.f32.xlu1 %v3401_v44 }
0x27d0   :  { %v12032_v25 = vpop.permute.xlu1 %12031 }
0x27d1   :  { %v12034_v17 = vunpack.i.h.bf16 %v12032_v25  ;;  %v12033_v18 = vunpack.i.l.bf16 %v12032_v25 }
0x27d3   :  { %v4798_v62 = vsel %vm1495_vm4, %v4796_v63, %v12033_v18  ;;  %v4799_v1 = vsel %vm1495_vm4, %v4797_v59, %v12034_v17  ;;  %v12170_v63 = vld [vmem:[%s13466_s6 + $0x40] sm:$0xff]  }
0x27d4   :  { %v4800_v2 = vpack.c.bf16 %v4799_v1, %v4798_v62  ;;  %v12171_v62 = vld [vmem:[%s13466_s6] sm:$0xff]   ;;  %v12172_v1 = vld [vmem:[%s13466_s6 + $0x48] sm:$0xff]  }
0x27d5   :  { %11444 = vmatpush3.bf16.msra.mxu1 %v12171_v62 }
0x27d6   :  { %11440 = vmatmul.mubr.msk.bf16.vlgmr.msra.gmra.mrb[128].mxu0 %vm210_vm1, %v4800_v2  ;;  %11445 = vmatprep.subr.bf16.mxu1 %v12510_v0  ;;  %v12173_v2 = vld [vmem:[%s13466_s6 + $0x8] sm:$0xff]  }
0x27d7   :  { %11455 = vmatprep.mubr.msk.bf16.mxu0 %vm12512_vm0, %v12510_v0  ;;  %11452 = vmatpush3.bf16.msra.mxu0 %v12170_v63 }
0x27d8   :  { %11453 = vmatprep.subr.bf16.mxu0 %v12510_v0 }
0x27d9   :  { %11446 = vmatpush3.bf16.msra.mxu1 %v12173_v2  ;;  %v12177_v2 = vld [vmem:[%s13466_s6 + $0x18] sm:$0xff]  }
0x27da   :  { %11459 = vmatprep.subr.bf16.mxu1 %v12510_v0 }
0x27db   :  { %11454 = vmatpush3.bf16.msra.mxu0 %v12172_v1 }
0x27dc   :  { %11467 = vmatprep.subr.bf16.mxu0 %v12510_v0 }
0x280f   :  { %v3403_v12 = vpop.xlane.xlu1 %3402 }
0x2810   :  { %v3407_v5 = vmul.f32 0.03125, %v3403_v12 }
0x2812   :  { %v3409_v14 = vsub.f32 %v3395_v43, %v3407_v5 }
0x2814   :  { %v3411_v9 = vmul.f32 %v3409_v14, %v3409_v14 }
0x2816   :  { %v3413_v15 = vsel %vm210_vm1, %v3411_v9, 0.0 }
0x2817   :  { %3414 = vadd.xlane.f32.xlu0 %v3413_v15 }
0x281b   :  { %3417 = vadd.xlane.f32.xlu0 %v3416_v26 }
0x28a4   :  { %v3415_v24 = vpop.xlane.xlu0 %3414 }
0x28a5   :  { %v3419_v29 = vmul.f32 0.03125, %v3415_v24 }
0x28a7   :  { %v3421_v21 = vadd.f32 1e-05, %v3419_v29 }
0x28a8   :  { %v3418_v30 = vpop.xlane.xlu0 %3417 }
0x28a9   :  { %12370 = vrsqrt.f32 %v3421_v21  ;;  %v3420_v31 = vmul.f32 0.03125, %v3418_v30  ;;  %v4856_v33 = vpop.f32.mrb[128].mxu0 }
0x28aa   :  { %v11441_v34 = vpop.f32.mrb[129].mxu0  ;;  %v4857_v23 = vadd.f32 %v10155_v47, %v4856_v33 }
0x28ab   :  { %v3422_v28 = vadd.f32 1e-05, %v3420_v31  ;;  %v4859_v32 = vpop.f32.mrb[130].mxu0  ;;  %v10042_v31 = vld [vmem:[%s9731_s1] ss:$0 sm:$0xff]  ;;  %s13797_s1 = sld [smem:[%s14342_s0 + %s12545_s8]]  }
0x28ac   :  { %v11442_v11 = vpop.f32.mrb[131].mxu0  ;;  %v4860_v38 = vadd.f32 %v10155_v47, %v4859_v32  ;;  %v4863_v49 = vadd.f32 %v4857_v23, %v13171_v10  ;;  %v10043_v47 = vld [vmem:[%s9732_s21] ss:$0 sm:$0xff]  ;;  %s12540_s21 = smov 31  }
0x28ad   :  { %12372 = vrsqrt.f32 %v3422_v28  ;;  %v10159_v11 = vld [vmem:[%s13482_s13] ss:$0 sm:$0xff]  ;;  %s13751_s30 = sld [smem:[%s14342_s0 + %s12540_s21]]  }
0x28ae   :  { %v4867_v42 = vsel %vm210_vm1, %v4863_v49, 0.0  ;;  %v4864_v43 = vadd.f32 %v4860_v38, %v13173_v39  ;;  %s13774_s21 = sld [smem:[%s14342_s0 + %s12543_s10]]   ;;  %s12546_s10 = smov 35  }
0x28af   :  { %s13815_s25 = sld [smem:[%s14342_s0 + %s12546_s10]]  }
0x28b0   :  { %v4870_v44 = vsel %vm210_vm1, %v4864_v43, 0.0 }
0x28b3   :  { %v12371_v3 = vpop.eup %12370 }
0x28b4   :  { %v3425_v16 = vmul.f32 %v12371_v3, %v3409_v14 }
0x28b6   :  { %v3433_v22 = vmul.f32 %v10040_v37, %v3425_v16 }
0x28b7   :  { %v12373_v36 = vpop.eup %12372 }
0x28b8   :  { %v3441_v55 = vadd.f32 %v10041_v51, %v3433_v22  ;;  %v3426_v4 = vmul.f32 %v12373_v36, %v3410_v13 }
0x28ba   :  { %v3445_v8 = vsel %vm210_vm1, %v3441_v55, 0.0  ;;  %v3434_v40 = vmul.f32 %v10040_v37, %v3426_v4 }
0x28bb   :  { %3446 = vadd.xlane.f32.xlu1 %v3445_v8 }
0x28bc   :  { %v3442_v50 = vadd.f32 %v10041_v51, %v3434_v40 }
0x28be   :  { %v3448_v41 = vsel %vm210_vm1, %v3442_v50, 0.0 }
0x28bf   :  { %3449 = vadd.xlane.f32.xlu0 %v3448_v41  ;;  %4868 = vadd.xlane.f32.xlu1 %v4867_v42  ;;  %v12175_v41 = vld [vmem:[%s13466_s6 + $0x88] sm:$0xff]   ;;  %v10170_v42 = vld [vmem:[%s13524_s4 + $0x4] ss:$0 sm:$0xff] }
0x28c3   :  { %4871 = vadd.xlane.f32.xlu0 %v4870_v44 }
0x2948   :  { %v3447_v45 = vpop.xlane.xlu1 %3446 }
0x2949   :  { %v3451_v46 = vmul.f32 0.03125, %v3447_v45 }
0x294b   :  { %v3453_v52 = vsub.f32 %v3441_v55, %v3451_v46  ;;  %v10160_v55 = vld [vmem:[%s13491_s28] ss:$0 sm:$0xff] }
0x294c   :  { %v3450_v19 = vpop.xlane.xlu0 %3449  ;;  %v4869_v7 = vpop.xlane.xlu1 %4868 }
0x294d   :  { %v3452_v27 = vmul.f32 0.03125, %v3450_v19  ;;  %v4873_v10 = vmul.f32 0.03125, %v4869_v7  ;;  %v3455_v54 = vmul.f32 %v3453_v52, %v3453_v52  ;;  %v10161_v7 = vld [vmem:[%s13524_s4] ss:$0 sm:$0xff] }
0x294f   :  { %v3454_v53 = vsub.f32 %v3442_v50, %v3452_v27  ;;  %v4875_v57 = vsub.f32 %v4863_v49, %v4873_v10  ;;  %v3457_v58 = vsel %vm210_vm1, %v3455_v54, 0.0  ;;  %v12174_v49 = vld [vmem:[%s13466_s6 + $0x80] sm:$0xff]  }
0x2950   :  { %3458 = vadd.xlane.f32.xlu1 %v3457_v58  ;;  %v4872_v61 = vpop.xlane.xlu0 %4871 }
0x2951   :  { %v4874_v39 = vmul.f32 0.03125, %v4872_v61  ;;  %v4877_v35 = vmul.f32 %v4875_v57, %v4875_v57  ;;  %v3456_v56 = vmul.f32 %v3454_v53, %v3454_v53 }
0x2953   :  { %v4876_v48 = vsub.f32 %v4864_v43, %v4874_v39  ;;  %v4879_v25 = vsel %vm210_vm1, %v4877_v35, 0.0  ;;  %v3460_v17 = vsel %vm210_vm1, %v3456_v56, 0.0  ;;  %v10179_v56 = vld [vmem:[%s13524_s4 + $0x8] ss:$0 sm:$0xff] }
0x2954   :  { %4880 = vadd.xlane.f32.xlu1 %v4879_v25  ;;  %3461 = vadd.xlane.f32.xlu0 %v3460_v17  ;;  %v12176_v17 = vld [vmem:[%s13466_s6 + $0x10] sm:$0xff]  }
0x2955   :  { %v4878_v18 = vmul.f32 %v4876_v48, %v4876_v48 }
0x2957   :  { %v4882_v59 = vsel %vm210_vm1, %v4878_v18, 0.0 }
0x2958   :  { %4883 = vadd.xlane.f32.xlu0 %v4882_v59 }
0x29dd   :  { %v3459_v60 = vpop.xlane.xlu1 %3458 }
0x29de   :  { %v3463_v6 = vmul.f32 0.03125, %v3459_v60  ;;  %v12178_v60 = vld [vmem:[%s13466_s6 + $0x90] sm:$0xff]  }
0x29e0   :  { %v3465_v12 = vadd.f32 1e-05, %v3463_v6  ;;  %v12179_v6 = vld [vmem:[%s13466_s6 + $0x98] sm:$0xff]  }
0x29e1   :  { %v4881_v5 = vpop.xlane.xlu1 %4880  ;;  %v3462_v13 = vpop.xlane.xlu0 %3461 }
0x29e2   :  { %12374 = vrsqrt.f32 %v3465_v12  ;;  %v4885_v14 = vmul.f32 0.03125, %v4881_v5  ;;  %v3464_v9 = vmul.f32 0.03125, %v3462_v13  ;;  %v13557_v5 = vld [vmem:[%s13554_s17] sm:$0xff] }
0x29e4   :  { %v4887_v15 = vadd.f32 1e-05, %v4885_v14  ;;  %v3466_v20 = vadd.f32 1e-05, %v3464_v9 }
0x29e5   :  { %v4884_v26 = vpop.xlane.xlu0 %4883 }
0x29e6   :  { %12376 = vrsqrt.f32 %v4887_v15  ;;  %v4886_v24 = vmul.f32 0.03125, %v4884_v26  ;;  %v13560_v15 = vld [vmem:[%s13554_s17 + $0x8] sm:$0xff] }
0x29e7   :  { %12378 = vrsqrt.f32 %v3466_v20 }
0x29e8   :  { %v4888_v29 = vadd.f32 1e-05, %v4886_v24 }
0x29ea   :  { %12380 = vrsqrt.f32 %v4888_v29 }
0x29ec   :  { %v12375_v21 = vpop.eup %12374 }
0x29ed   :  { %v3469_v30 = vmul.f32 %v12375_v21, %v3453_v52 }
0x29ef   :  { %v3477_v32 = vmul.f32 %v10042_v31, %v3469_v30 }
0x29f0   :  { %v12377_v33 = vpop.eup %12376 }
0x29f1   :  { %v12379_v34 = vpop.eup %12378  ;;  %v4891_v28 = vmul.f32 %v12377_v33, %v4875_v57  ;;  %v3485_v22 = vadd.f32 %v10043_v47, %v3477_v32 }
0x29f2   :  { %v3470_v3 = vmul.f32 %v12379_v34, %v3454_v53 }
0x29f3   :  { %v4899_v51 = vmul.f32 %v10159_v11, %v4891_v28 }
0x29f4   :  { %v12381_v37 = vpop.eup %12380  ;;  %v3478_v16 = vmul.f32 %v10042_v31, %v3470_v3  ;;  %v10190_v31 = vld [vmem:[%s13524_s4 + $0x1] ss:$0 sm:$0xff] }
0x29f5   :  { %v4892_v23 = vmul.f32 %v12381_v37, %v4876_v48  ;;  %v13497_v8 = vadd.f32 %v10160_v55, %v4899_v51  ;;  %v10208_v37 = vld [vmem:[%s13524_s4 + $0x9] ss:$0 sm:$0xff] }
0x29f6   :  { %v3486_v36 = vadd.f32 %v10043_v47, %v3478_v16 }
0x29f7   :  { %v4900_v4 = vmul.f32 %v10159_v11, %v4892_v23 }
0x29f8   :  { %v13495_v38 = vpack.c.bf16 %v3486_v36, %v3485_v22 }
0x29f9   :  { %v13499_v40 = vadd.f32 %v10160_v55, %v4900_v4 }
0x29fa   :  { %11456 = vmatmul.mubr.msk.bf16.vlgmr.msra.gmra.mrb[132].mxu0 %vm210_vm1, %v13495_v38 }
0x29fb   :  { %v13506_v50 = vpack.c.bf16 %v13499_v40, %v13497_v8  ;;  %11469 = vmatprep.mubr.msk.bf16.mxu0 %vm12512_vm0, %v12510_v0 }
0x29fd   :  { %11448 = vmatmul.mubr.msk.bf16.vlgmr.msra.gmra.mrb[136].mxu1 %vm210_vm1, %v13506_v50 }
0x29fe   :  { %11460 = vmatpush3.bf16.msra.mxu1 %v12174_v49  ;;  %11463 = vmatprep.mubr.msk.bf16.mxu1 %vm12512_vm0, %v12510_v0 }
0x29ff   :  { %11461 = vmatprep.subr.bf16.mxu1 %v12510_v0 }
0x2a02   :  { %11462 = vmatpush3.bf16.msra.mxu1 %v12175_v41 }
0x2a03   :  { %11473 = vmatprep.subr.bf16.mxu1 %v12510_v0 }
0x2a05   :  { %11464 = vmatmul.mubr.msk.bf16.vlgmr.msra.gmra.mrb[140].mxu1 %vm210_vm1, %v13495_v38 }
0x2a06   :  { %11475 = vmatprep.mubr.msk.bf16.mxu1 %vm12512_vm0, %v12510_v0 }
0x2acd   :  { %v5045_v43 = vpop.f32.mrb[132].mxu0 }
0x2ace   :  { %v11457_v44 = vpop.f32.mrb[133].mxu0  ;;  %v5046_v46 = vadd.f32 %v10170_v42, %v5045_v43 }
0x2acf   :  { %v5048_v45 = vpop.f32.mrb[134].mxu0 }
0x2ad0   :  { %v5049_v52 = vadd.f32 %v10170_v42, %v5048_v45  ;;  %v11458_v19 = vpop.f32.mrb[135].mxu0  ;;  %v4976_v27 = vpop.f32.mrb[136].mxu1 }
0x2ad1   :  { %v11449_v10 = vpop.f32.mrb[137].mxu1  ;;  %v4977_v57 = vadd.f32 %v10161_v7, %v4976_v27  ;;  %v12180_v19 = vld [vmem:[%s13466_s6 + $0x50] sm:$0xff]   ;;  %v12181_v27 = vld [vmem:[%s13466_s6 + $0x58] sm:$0xff]  }
0x2ad2   :  { %v5119_v54 = vpack.c.bf16 %v5049_v52, %v5046_v46  ;;  %v4979_v53 = vpop.f32.mrb[138].mxu1 }
0x2ad3   :  { %v4980_v58 = vadd.f32 %v10161_v7, %v4979_v53  ;;  %v11450_v61 = vpop.f32.mrb[139].mxu1 }
0x2ad4   :  { %v5124_v39 = vsel %vm389_vm2, %v5119_v54, 0 }
0x2ad5   :  { %v5118_v35 = vpack.c.bf16 %v4980_v58, %v4977_v57  ;;  %11468 = vmatpush3.bf16.xpose.msra.mxu0 %v5124_v39  ;;  %v10199_v58 = vld [vmem:[%s13524_s4 + $0x5] ss:$0 sm:$0xff] }
0x2ad6   :  { %11479 = vmatprep.subr.bf16.mxu0 %v12510_v0 }
0x2ad8   :  { %v5111_v48 = vpop.f32.mrb[140].mxu1 }
0x2ad9   :  { %v11465_v25 = vpop.f32.mrb[141].mxu1  ;;  %v5112_v59 = vadd.f32 %v10179_v56, %v5111_v48 }
0x2ada   :  { %v5114_v18 = vpop.f32.mrb[142].mxu1 }
0x2adb   :  { %v5115_v63 = vadd.f32 %v10179_v56, %v5114_v18  ;;  %v11466_v62 = vpop.f32.mrb[143].mxu1 }
0x2adc   :  { %11470 = vmatmul.mubr.msk.bf16.vlgmr.msra.gmra.mrb[136].mxu0 %vm389_vm2, %v5118_v35  ;;  %v12184_v62 = vld [vmem:[%s13466_s6 + $0xa0] sm:$0xff]  }
0x2add   :  { %v5184_v1 = vpack.c.bf16 %v5115_v63, %v5112_v59  ;;  %11480 = vmatpush3.bf16.msra.mxu0 %v12176_v17  ;;  %11483 = vmatprep.mubr.msk.bf16.mxu0 %vm12512_vm0, %v12510_v0  ;;  %v12182_v59 = vld [vmem:[%s13466_s6 + $0x20] sm:$0xff]   ;;  %v12183_v63 = vld [vmem:[%s13466_s6 + $0x28] sm:$0xff]  }
0x2ade   :  { %11481 = vmatprep.subr.bf16.mxu0 %v12510_v0 }
0x2adf   :  { %11474 = vmatpush3.bf16.msra.mxu1 %v5184_v1  ;;  %v12185_v1 = vld [vmem:[%s13466_s6 + $0xa8] sm:$0xff]  }
0x2ae0   :  { %11487 = vmatprep.subr.bf16.mxu1 %v12510_v0 }
0x2ae1   :  { %11482 = vmatpush3.bf16.msra.mxu0 %v12177_v2 }
0x2ae2   :  { %11495 = vmatprep.subr.bf16.mxu0 %v12510_v0 }
0x2ae4   :  { %11484 = vmatmul.mubr.msk.bf16.vlgmr.msra.gmra.mrb[140].mxu0 %vm210_vm1, %v13506_v50 }
0x2ae5   :  { %11496 = vmatpush3.bf16.msra.mxu0 %v12178_v60  ;;  %11499 = vmatprep.mubr.msk.bf16.mxu0 %vm12512_vm0, %v12510_v0 }
0x2ae6   :  { %11497 = vmatprep.subr.bf16.mxu0 %v12510_v0 }
0x2ae9   :  { %11498 = vmatpush3.bf16.msra.mxu0 %v12179_v6 }
0x2aea   :  { %11509 = vmatprep.subr.bf16.mxu0 %v12510_v0 }
0x2aec   :  { %11500 = vmatmul.mubr.msk.bf16.vlgmr.msra.gmra.mrb[144].mxu0 %vm210_vm1, %v13495_v38 }
0x2aed   :  { %11511 = vmatprep.mubr.msk.bf16.mxu0 %vm12512_vm0, %v12510_v0 }
0x2baf   :  { %v5160_v12 = vpop.f32.mrb[136].mxu0 }
0x2bb0   :  { %v5167_v13 = vmul.f32 0.35355338, %v5160_v12  ;;  %v11471_v14 = vpop.f32.mrb[137].mxu0 }
0x2bb1   :  { %v5163_v9 = vpop.f32.mrb[138].mxu0 }
0x2bb2   :  { %v5168_v20 = vmul.f32 0.35355338, %v5163_v9  ;;  %v11472_v26 = vpop.f32.mrb[139].mxu0  ;;  %v5169_v24 = vadd.f32 %v5167_v13, %v13557_v5 }
0x2bb4   :  { %v5171_v29 = vsel %vm441_vm3, %v5169_v24, -inf  ;;  %v5170_v21 = vadd.f32 %v5168_v20, %v13560_v15 }
0x2bb5   :  { %5172 = vmax.xlane.f32.xlu1 %v5171_v29  ;;  %v10219_v29 = vld [vmem:[%s13524_s4 + $0x2] ss:$0 sm:$0xff] }
0x2bb6   :  { %v5174_v30 = vsel %vm441_vm3, %v5170_v21, -inf }
0x2bb7   :  { %5175 = vmax.xlane.f32.xlu0 %v5174_v30  ;;  %v5298_v33 = vpop.f32.mrb[140].mxu0 }
0x2bb8   :  { %v11485_v34 = vpop.f32.mrb[141].mxu0  ;;  %v5299_v32 = vadd.f32 %v10190_v31, %v5298_v33 }
0x2bb9   :  { %v5301_v28 = vpop.f32.mrb[142].mxu0 }
0x2bba   :  { %v5302_v11 = vadd.f32 %v10190_v31, %v5301_v28  ;;  %v11486_v3 = vpop.f32.mrb[143].mxu0 }
0x2bbc   :  { %v5437_v47 = vpack.c.bf16 %v5302_v11, %v5299_v32  ;;  %v10237_v11 = vld [vmem:[%s13524_s4 + $0xa] ss:$0 sm:$0xff] }
0x2bbf   :  { %v5430_v16 = vpop.f32.mrb[144].mxu0 }
0x2bc0   :  { %v11501_v51 = vpop.f32.mrb[145].mxu0  ;;  %v5431_v22 = vadd.f32 %v10208_v37, %v5430_v16 }
0x2bc1   :  { %v5433_v23 = vpop.f32.mrb[146].mxu0 }
0x2bc2   :  { %v5434_v36 = vadd.f32 %v10208_v37, %v5433_v23  ;;  %v11502_v55 = vpop.f32.mrb[147].mxu0 }
0x2bc4   :  { %v5503_v4 = vpack.c.bf16 %v5434_v36, %v5431_v22 }
0x2bc6   :  { %11510 = vmatpush3.bf16.msra.mxu0 %v5503_v4 }
0x2bc7   :  { %11523 = vmatprep.subr.bf16.mxu0 %v12510_v0 }
0x2c42   :  { %v5173_v49 = vpop.xlane.xlu1 %5172 }
0x2c43   :  { %v5177_v41 = vsub.f32 %v5169_v24, %v5173_v49 }
0x2c44   :  { %v5176_v42 = vpop.xlane.xlu0 %5175 }
0x2c45   :  { %v5179_v43 = vmul.f32 1.442695, %v5177_v41  ;;  %v5178_v44 = vsub.f32 %v5170_v21, %v5176_v42 }
0x2c47   :  { %v5181_v45 = vmul.f32 1.442695, %v5178_v44  ;;  %12382 = vpow2.f32 %v5179_v43 }
0x2c49   :  { %12384 = vpow2.f32 %v5181_v45  ;;  %v12186_v45 = vld [vmem:[%s13466_s6 + $0x60] sm:$0xff]  }
0x2c51   :  { %v13569_v46 = vpop.eup %12382 }
0x2c53   :  { %v13571_v52 = vpop.eup %12384 }
0x2c54   :  { %v5183_v7 = vpack.c.bf16 %v13571_v52, %v13569_v46 }
0x2c56   :  { %11476 = vmatmul.mubr.msk.bf16.vlgmr.msra.gmra.mrb[144].mxu1 %vm441_vm3, %v5183_v7  ;;  %v12187_v7 = vld [vmem:[%s13466_s6 + $0x68] sm:$0xff]  }
0x2c57   :  { %11488 = vmatpush3.bf16.msra.mxu1 %v12180_v19  ;;  %11491 = vmatprep.mubr.msk.bf16.mxu1 %vm12512_vm0, %v12510_v0 }
0x2c58   :  { %11489 = vmatprep.subr.bf16.mxu1 %v12510_v0 }
0x2c5b   :  { %11490 = vmatpush3.bf16.msra.mxu1 %v12181_v27 }
0x2c5c   :  { %11503 = vmatprep.subr.bf16.mxu1 %v12510_v0 }
0x2c5e   :  { %11492 = vmatmul.mubr.msk.bf16.vlgmr.msra.gmra.mrb[148].mxu1 %vm210_vm1, %v13495_v38 }
0x2c5f   :  { %11505 = vmatprep.mubr.msk.bf16.mxu1 %vm12512_vm0, %v12510_v0 }
0x2d29   :  { %v13586_v10 = vpop.f32.mrb[144].mxu1 }
0x2d2a   :  { %v11477_v54 = vpop.f32.mrb[145].mxu1 }
0x2d2b   :  { %v13588_v53 = vpop.f32.mrb[146].mxu1 }
0x2d2c   :  { %v11478_v57 = vpop.f32.mrb[147].mxu1 }
0x2d31   :  { %v5364_v61 = vpop.f32.mrb[148].mxu1 }
0x2d32   :  { %v11493_v39 = vpop.f32.mrb[149].mxu1  ;;  %v5365_v56 = vadd.f32 %v10199_v58, %v5364_v61  ;;  %v10228_v61 = vld [vmem:[%s13524_s4 + $0x6] ss:$0 sm:$0xff] }
0x2d33   :  { %v5367_v35 = vpop.f32.mrb[150].mxu1 }
0x2d34   :  { %v5368_v48 = vadd.f32 %v10199_v58, %v5367_v35  ;;  %v11494_v25 = vpop.f32.mrb[151].mxu1 }
0x2d36   :  { %v5438_v17 = vpack.c.bf16 %v5368_v48, %v5365_v56 }
0x2d38   :  { %v5443_v18 = vsel %vm389_vm2, %v5438_v17, 0 }
0x2d39   :  { %11504 = vmatpush3.bf16.xpose.msra.mxu1 %v5443_v18 }
0x2d3a   :  { %11515 = vmatprep.subr.bf16.mxu1 %v12510_v0 }
0x2d40   :  { %11506 = vmatmul.mubr.msk.bf16.vlgmr.msra.gmra.mrb[152].mxu1 %vm389_vm2, %v5437_v47 }
0x2d41   :  { %11516 = vmatpush3.bf16.msra.mxu1 %v12182_v59  ;;  %11519 = vmatprep.mubr.msk.bf16.mxu1 %vm12512_vm0, %v12510_v0 }
0x2d42   :  { %11517 = vmatprep.subr.bf16.mxu1 %v12510_v0 }
0x2d45   :  { %11518 = vmatpush3.bf16.msra.mxu1 %v12183_v63  ;;  %v12188_v63 = vld [vmem:[%s13466_s6 + $0x30] sm:$0xff]  }
0x2d46   :  { %11531 = vmatprep.subr.bf16.mxu1 %v12510_v0 }
0x2d48   :  { %11520 = vmatmul.mubr.msk.bf16.vlgmr.msra.gmra.mrb[156].mxu1 %vm210_vm1, %v13506_v50 }
0x2d49   :  { %11532 = vmatpush3.bf16.msra.mxu1 %v12184_v62  ;;  %11535 = vmatprep.mubr.msk.bf16.mxu1 %vm12512_vm0, %v12510_v0  ;;  %v12189_v62 = vld [vmem:[%s13466_s6 + $0x38] sm:$0xff]  }
0x2d4a   :  { %11533 = vmatprep.subr.bf16.mxu1 %v12510_v0 }
0x2d4d   :  { %11534 = vmatpush3.bf16.msra.mxu1 %v12185_v1  ;;  %v12190_v1 = vld [vmem:[%s13466_s6 + $0xb0] sm:$0xff]  }
0x2d4e   :  { %11545 = vmatprep.subr.bf16.mxu1 %v12510_v0 }
0x2d50   :  { %11536 = vmatmul.mubr.msk.bf16.vlgmr.msra.gmra.mrb[160].mxu1 %vm210_vm1, %v13495_v38 }
0x2d51   :  { %11547 = vmatprep.mubr.msk.bf16.mxu1 %vm12512_vm0, %v12510_v0 }
0x2e13   :  { %v5479_v2 = vpop.f32.mrb[152].mxu1 }
0x2e14   :  { %v5486_v60 = vmul.f32 0.35355338, %v5479_v2  ;;  %v11507_v6 = vpop.f32.mrb[153].mxu1  ;;  %v12191_v2 = vld [vmem:[%s13466_s6 + $0xb8] sm:$0xff]  }
0x2e15   :  { %v5482_v12 = vpop.f32.mrb[154].mxu1 }
0x2e16   :  { %v5487_v13 = vmul.f32 0.35355338, %v5482_v12  ;;  %v11508_v14 = vpop.f32.mrb[155].mxu1  ;;  %v5488_v9 = vadd.f32 %v5486_v60, %v13557_v5 }
0x2e18   :  { %v5490_v20 = vsel %vm441_vm3, %v5488_v9, -inf  ;;  %v5489_v26 = vadd.f32 %v5487_v13, %v13560_v15 }
0x2e19   :  { %5491 = vmax.xlane.f32.xlu1 %v5490_v20 }
0x2e1a   :  { %v5493_v24 = vsel %vm441_vm3, %v5489_v26, -inf }
0x2e1b   :  { %5494 = vmax.xlane.f32.xlu0 %v5493_v24  ;;  %v5617_v21 = vpop.f32.mrb[156].mxu1 }
0x2e1c   :  { %v11521_v30 = vpop.f32.mrb[157].mxu1  ;;  %v5618_v33 = vadd.f32 %v10219_v29, %v5617_v21 }
0x2e1d   :  { %v5620_v31 = vpop.f32.mrb[158].mxu1 }
0x2e1e   :  { %v5621_v34 = vadd.f32 %v10219_v29, %v5620_v31  ;;  %v11522_v28 = vpop.f32.mrb[159].mxu1  ;;  %v10248_v29 = vld [vmem:[%s13524_s4 + $0x3] ss:$0 sm:$0xff] }
0x2e20   :  { %v5756_v32 = vpack.c.bf16 %v5621_v34, %v5618_v33 }
0x2e23   :  { %v5749_v3 = vpop.f32.mrb[160].mxu1 }
0x2e24   :  { %v11537_v47 = vpop.f32.mrb[161].mxu1  ;;  %v5750_v16 = vadd.f32 %v10237_v11, %v5749_v3 }
0x2e25   :  { %v5752_v37 = vpop.f32.mrb[162].mxu1 }
0x2e26   :  { %v5753_v51 = vadd.f32 %v10237_v11, %v5752_v37  ;;  %v11538_v23 = vpop.f32.mrb[163].mxu1  ;;  %v10266_v11 = vld [vmem:[%s13524_s4 + $0xb] ss:$0 sm:$0xff] }
0x2e28   :  { %v5822_v22 = vpack.c.bf16 %v5753_v51, %v5750_v16 }
0x2e2a   :  { %11546 = vmatpush3.bf16.msra.mxu1 %v5822_v22 }
0x2e2b   :  { %11559 = vmatprep.subr.bf16.mxu1 %v12510_v0 }
0x2ea6   :  { %v5492_v36 = vpop.xlane.xlu1 %5491 }
0x2ea7   :  { %v5496_v55 = vsub.f32 %v5488_v9, %v5492_v36 }
0x2ea8   :  { %v5495_v4 = vpop.xlane.xlu0 %5494 }
0x2ea9   :  { %v5498_v49 = vmul.f32 1.442695, %v5496_v55  ;;  %v5497_v41 = vsub.f32 %v5489_v26, %v5495_v4 }
0x2eab   :  { %v5500_v42 = vmul.f32 1.442695, %v5497_v41  ;;  %12386 = vpow2.f32 %v5498_v49 }
0x2ead   :  { %12388 = vpow2.f32 %v5500_v42 }
0x2eb5   :  { %v13619_v43 = vpop.eup %12386 }
0x2eb7   :  { %v13621_v44 = vpop.eup %12388 }
0x2eb8   :  { %v5502_v19 = vpack.c.bf16 %v13621_v44, %v13619_v43 }
0x2eba   :  { %11512 = vmatmul.mubr.msk.bf16.vlgmr.msra.gmra.mrb[148].mxu0 %vm441_vm3, %v5502_v19 }
0x2ebb   :  { %11524 = vmatpush3.bf16.msra.mxu0 %v12186_v45  ;;  %11527 = vmatprep.mubr.msk.bf16.mxu0 %vm12512_vm0, %v12510_v0 }
0x2ebc   :  { %11525 = vmatprep.subr.bf16.mxu0 %v12510_v0 }
0x2ebf   :  { %11526 = vmatpush3.bf16.msra.mxu0 %v12187_v7  ;;  %v12192_v7 = vld [vmem:[%s13466_s6 + $0x70] sm:$0xff]  }
0x2ec0   :  { %11539 = vmatprep.subr.bf16.mxu0 %v12510_v0 }
0x2ec2   :  { %11528 = vmatmul.mubr.msk.bf16.vlgmr.msra.gmra.mrb[152].mxu0 %vm210_vm1, %v13495_v38 }
0x2ec3   :  { %11541 = vmatprep.mubr.msk.bf16.mxu0 %vm12512_vm0, %v12510_v0 }
0x2f8d   :  { %v13636_v27 = vpop.f32.mrb[148].mxu0 }
0x2f8e   :  { %v11513_v54 = vpop.f32.mrb[149].mxu0 }
0x2f8f   :  { %v13638_v57 = vpop.f32.mrb[150].mxu0 }
0x2f90   :  { %v11514_v58 = vpop.f32.mrb[151].mxu0 }
0x2f91   :  { %v12193_v58 = vld [vmem:[%s13466_s6 + $0x78] sm:$0xff]  }
0x2f95   :  { %v5683_v39 = vpop.f32.mrb[152].mxu0 }
0x2f96   :  { %v11529_v35 = vpop.f32.mrb[153].mxu0  ;;  %v5684_v48 = vadd.f32 %v10228_v61, %v5683_v39 }
0x2f97   :  { %v5686_v56 = vpop.f32.mrb[154].mxu0 }
0x2f98   :  { %v5687_v25 = vadd.f32 %v10228_v61, %v5686_v56  ;;  %v11530_v17 = vpop.f32.mrb[155].mxu0 }
0x2f9a   :  { %v5757_v18 = vpack.c.bf16 %v5687_v25, %v5684_v48  ;;  %v10257_v48 = vld [vmem:[%s13524_s4 + $0x7] ss:$0 sm:$0xff] }
0x2f9c   :  { %v5762_v59 = vsel %vm389_vm2, %v5757_v18, 0 }
0x2f9d   :  { %11540 = vmatpush3.bf16.xpose.msra.mxu0 %v5762_v59 }
0x2f9e   :  { %11551 = vmatprep.subr.bf16.mxu0 %v12510_v0 }
0x2fa4   :  { %11542 = vmatmul.mubr.msk.bf16.vlgmr.msra.gmra.mrb[156].mxu0 %vm389_vm2, %v5756_v32 }
0x2fa5   :  { %11552 = vmatpush3.bf16.msra.mxu0 %v12188_v63  ;;  %11555 = vmatprep.mubr.msk.bf16.mxu0 %vm12512_vm0, %v12510_v0 }
0x2fa6   :  { %11553 = vmatprep.subr.bf16.mxu0 %v12510_v0 }
0x2fa9   :  { %11554 = vmatpush3.bf16.msra.mxu0 %v12189_v62 }
0x2faa   :  { %11567 = vmatprep.subr.bf16.mxu0 %v12510_v0 }
0x2fac   :  { %11556 = vmatmul.mubr.msk.bf16.vlgmr.msra.gmra.mrb[160].mxu0 %vm210_vm1, %v13506_v50 }
0x2fad   :  { %11568 = vmatpush3.bf16.msra.mxu0 %v12190_v1  ;;  %11571 = vmatprep.mubr.msk.bf16.mxu0 %vm12512_vm0, %v12510_v0 }
0x2fae   :  { %11569 = vmatprep.subr.bf16.mxu0 %v12510_v0 }
0x2fb1   :  { %11570 = vmatpush3.bf16.msra.mxu0 %v12191_v2 }
0x2fb2   :  { %11581 = vmatprep.subr.bf16.mxu0 %v12510_v0 }
0x2fb4   :  { %11572 = vmatmul.mubr.msk.bf16.vlgmr.msra.gmra.mrb[164].mxu0 %vm210_vm1, %v13495_v38 }
0x2fb5   :  { %11583 = vmatprep.mubr.msk.bf16.mxu0 %vm12512_vm0, %v12510_v0 }
0x3077   :  { %v5798_v60 = vpop.f32.mrb[156].mxu0 }
0x3078   :  { %v5805_v6 = vmul.f32 0.35355338, %v5798_v60  ;;  %v11543_v50 = vpop.f32.mrb[157].mxu0 }
0x3079   :  { %v5801_v12 = vpop.f32.mrb[158].mxu0 }
0x307a   :  { %v5806_v13 = vmul.f32 0.35355338, %v5801_v12  ;;  %v11544_v14 = vpop.f32.mrb[159].mxu0  ;;  %v5807_v9 = vadd.f32 %v5805_v6, %v13557_v5 }
0x307c   :  { %v5809_v20 = vsel %vm441_vm3, %v5807_v9, -inf  ;;  %v5808_v26 = vadd.f32 %v5806_v13, %v13560_v15 }
0x307d   :  { %5810 = vmax.xlane.f32.xlu1 %v5809_v20 }
0x307e   :  { %v5812_v24 = vsel %vm441_vm3, %v5808_v26, -inf }
0x307f   :  { %5813 = vmax.xlane.f32.xlu0 %v5812_v24  ;;  %v5936_v21 = vpop.f32.mrb[160].mxu0 }
0x3080   :  { %v11557_v30 = vpop.f32.mrb[161].mxu0  ;;  %v5937_v33 = vadd.f32 %v10248_v29, %v5936_v21  ;;  %v5551_v21 = vsel %vm441_vm3, %v13621_v44, 0.0 }
0x3081   :  { %v5939_v31 = vpop.f32.mrb[162].mxu0 }
0x3082   :  { %v5940_v34 = vadd.f32 %v10248_v29, %v5939_v31  ;;  %v11558_v28 = vpop.f32.mrb[163].mxu0  ;;  %v5548_v29 = vsel %vm441_vm3, %v13619_v43, 0.0 }
0x3084   :  { %v6075_v32 = vpack.c.bf16 %v5940_v34, %v5937_v33 }
0x3087   :  { %v6068_v3 = vpop.f32.mrb[164].mxu0 }
0x3088   :  { %v11573_v47 = vpop.f32.mrb[165].mxu0  ;;  %v6069_v16 = vadd.f32 %v10266_v11, %v6068_v3 }
0x3089   :  { %v6071_v37 = vpop.f32.mrb[166].mxu0 }
0x308a   :  { %v6072_v51 = vadd.f32 %v10266_v11, %v6071_v37  ;;  %v11574_v23 = vpop.f32.mrb[167].mxu0 }
0x308c   :  { %v6141_v22 = vpack.c.bf16 %v6072_v51, %v6069_v16 }
0x308e   :  { %11582 = vmatpush3.bf16.msra.mxu0 %v6141_v22 }
0x308f   :  { %11595 = vmatprep.subr.bf16.mxu0 %v12510_v0 }
0x310a   :  { %v5811_v36 = vpop.xlane.xlu1 %5810 }
0x310b   :  { %v5815_v55 = vsub.f32 %v5807_v9, %v5811_v36 }
0x310c   :  { %v5814_v4 = vpop.xlane.xlu0 %5813 }
0x310d   :  { %v5817_v49 = vmul.f32 1.442695, %v5815_v55  ;;  %v5816_v41 = vsub.f32 %v5808_v26, %v5814_v4 }
0x310f   :  { %v5819_v42 = vmul.f32 1.442695, %v5816_v41  ;;  %12390 = vpow2.f32 %v5817_v49  ;;  %v5229_v41 = vsel %vm441_vm3, %v13569_v46, 0.0  ;;  %v12194_v46 = vld [vmem:[%s13718_s12] sm:$0xff]  }
0x3111   :  { %12392 = vpow2.f32 %v5819_v42 }
0x3119   :  { %v12391_v45 = vpop.eup %12390 }
0x311a   :  { %v5867_v30 = vsel %vm441_vm3, %v12391_v45, 0.0 }
0x311b   :  { %v12393_v19 = vpop.eup %12392 }
0x311c   :  { %v5821_v54 = vpack.c.bf16 %v12393_v19, %v12391_v45 }
0x311e   :  { %11548 = vmatmul.mubr.msk.bf16.vlgmr.msra.gmra.mrb[164].mxu1 %vm441_vm3, %v5821_v54 }
0x311f   :  { %11560 = vmatpush3.bf16.msra.mxu1 %v12192_v7  ;;  %11563 = vmatprep.mubr.msk.bf16.mxu1 %vm12512_vm0, %v12510_v0 }
0x3120   :  { %11561 = vmatprep.subr.bf16.mxu1 %v12510_v0 }
0x3123   :  { %11562 = vmatpush3.bf16.msra.mxu1 %v12193_v58  ;;  %v12195_v58 = vld [vmem:[%s13718_s12 + $0x8] sm:$0xff]  }
0x3124   :  { %11575 = vmatprep.subr.bf16.mxu1 %v12510_v0 }
0x3126   :  { %11564 = vmatmul.mubr.msk.bf16.vlgmr.msra.gmra.mrb[168].mxu1 %vm210_vm1, %v13495_v38 }
0x3127   :  { %11577 = vmatprep.mubr.msk.bf16.mxu1 %vm12512_vm0, %v12510_v0 }
0x31f1   :  { %v13680_v61 = vpop.f32.mrb[164].mxu1 }
0x31f2   :  { %v11549_v39 = vpop.f32.mrb[165].mxu1 }
0x31f3   :  { %v13682_v35 = vpop.f32.mrb[166].mxu1 }
0x31f4   :  { %v11550_v56 = vpop.f32.mrb[167].mxu1 }
0x31f9   :  { %v6002_v25 = vpop.f32.mrb[168].mxu1 }
0x31fa   :  { %v11565_v17 = vpop.f32.mrb[169].mxu1  ;;  %v6003_v59 = vadd.f32 %v10257_v48, %v6002_v25 }
0x31fb   :  { %v6005_v18 = vpop.f32.mrb[170].mxu1 }
0x31fc   :  { %v6006_v63 = vadd.f32 %v10257_v48, %v6005_v18  ;;  %v11566_v62 = vpop.f32.mrb[171].mxu1 }
0x31fe   :  { %v6076_v1 = vpack.c.bf16 %v6006_v63, %v6003_v59 }
0x3200   :  { %v6081_v2 = vsel %vm389_vm2, %v6076_v1, 0 }
0x3201   :  { %11576 = vmatpush3.bf16.xpose.msra.mxu1 %v6081_v2 }
0x3202   :  { %11587 = vmatprep.subr.bf16.mxu1 %v12510_v0 }
0x3208   :  { %11578 = vmatmul.mubr.msk.bf16.vlgmr.msra.gmra.mrb[172].mxu1 %vm389_vm2, %v6075_v32 }
0x3209   :  { %11591 = vmatprep.mubr.msk.bf16.mxu1 %vm12512_vm0, %v12510_v0  ;;  %11588 = vmatpush3.bf16.msra.mxu1 %v12194_v46 }
0x320a   :  { %11589 = vmatprep.subr.bf16.mxu1 %v12510_v0 }
0x320d   :  { %11590 = vmatpush3.bf16.msra.mxu1 %v12195_v58 }
0x320e   :  { %11603 = vmatprep.subr.bf16.mxu1 %v12510_v0 }
0x32db   :  { %v6117_v60 = vpop.f32.mrb[172].mxu1 }
0x32dc   :  { %v6124_v6 = vmul.f32 0.35355338, %v6117_v60  ;;  %v11579_v50 = vpop.f32.mrb[173].mxu1 }
0x32dd   :  { %v6120_v12 = vpop.f32.mrb[174].mxu1 }
0x32de   :  { %v6125_v13 = vmul.f32 0.35355338, %v6120_v12  ;;  %v11580_v14 = vpop.f32.mrb[175].mxu1  ;;  %v6126_v9 = vadd.f32 %v6124_v6, %v13557_v5  ;;  %v5870_v5 = vsel %vm441_vm3, %v12393_v19, 0.0  ;;  %v5232_v19 = vsel %vm441_vm3, %v13571_v52, 0.0 }
0x32e0   :  { %v6128_v20 = vsel %vm441_vm3, %v6126_v9, -inf  ;;  %v6127_v26 = vadd.f32 %v6125_v13, %v13560_v15 }
0x32e1   :  { %6129 = vmax.xlane.f32.xlu1 %v6128_v20 }
0x32e2   :  { %v6131_v24 = vsel %vm441_vm3, %v6127_v26, -inf }
0x32e3   :  { %6132 = vmax.xlane.f32.xlu0 %v6131_v24 }
0x32e5   :  { %5549 = vadd.xlane.f32.xlu1 %v5548_v29 }
0x32e7   :  { %5552 = vadd.xlane.f32.xlu0 %v5551_v21 }
0x32e9   :  { %5868 = vadd.xlane.f32.xlu1 %v5867_v30 }
0x32eb   :  { %5871 = vadd.xlane.f32.xlu0 %v5870_v5 }
0x336e   :  { %v6130_v31 = vpop.xlane.xlu1 %6129 }
0x336f   :  { %v6134_v15 = vsub.f32 %v6126_v9, %v6130_v31 }
0x3370   :  { %v6133_v33 = vpop.xlane.xlu0 %6132 }
0x3371   :  { %v6136_v34 = vmul.f32 1.442695, %v6134_v15  ;;  %v6135_v28 = vsub.f32 %v6127_v26, %v6133_v33  ;;  %v10272_v33 = vld [vmem:[%s13739_s20] ss:$0 sm:$0xff] }
0x3372   :  { %v5550_v32 = vpop.xlane.xlu1 %5549 }
0x3373   :  { %12394 = vpow2.f32 %v6136_v34  ;;  %v6138_v11 = vmul.f32 1.442695, %v6135_v28 }
0x3374   :  { %12396 = vrcp.f32 %v5550_v32  ;;  %v5553_v43 = vpop.xlane.xlu0 %5552 }
0x3375   :  { %12398 = vpow2.f32 %v6138_v11 }
0x3376   :  { %12400 = vrcp.f32 %v5553_v43  ;;  %v5869_v44 = vpop.xlane.xlu1 %5868 }
0x3377   :  { %12402 = vrcp.f32 %v5869_v44 }
0x3378   :  { %v5872_v3 = vpop.xlane.xlu0 %5871 }
0x3379   :  { %12404 = vrcp.f32 %v5872_v3 }
0x337d   :  { %v12395_v47 = vpop.eup %12394 }
0x337e   :  { %v12397_v37 = vpop.eup %12396  ;;  %v6186_v16 = vsel %vm441_vm3, %v12395_v47, 0.0 }
0x337f   :  { %v12399_v51 = vpop.eup %12398  ;;  %6187 = vadd.xlane.f32.xlu1 %v6186_v16  ;;  %v5556_v4 = vmul.f32 %v12397_v37, %v13636_v27 }
0x3380   :  { %v12401_v23 = vpop.eup %12400  ;;  %v6189_v22 = vsel %vm441_vm3, %v12399_v51, 0.0  ;;  %v6140_v36 = vpack.c.bf16 %v12399_v51, %v12395_v47 }
0x3381   :  { %v12403_v55 = vpop.eup %12402  ;;  %6190 = vadd.xlane.f32.xlu0 %v6189_v22  ;;  %v5557_v49 = vmul.f32 %v12401_v23, %v13638_v57 }
0x3382   :  { %11584 = vmatmul.mubr.msk.bf16.vlgmr.msra.gmra.mrb[168].mxu0 %vm441_vm3, %v6140_v36  ;;  %v5875_v7 = vmul.f32 %v12403_v55, %v13680_v61 }
0x3383   :  { %v12405_v42 = vpop.eup %12404  ;;  %5230 = vadd.xlane.f32.xlu1 %v5229_v41  ;;  %v12035_v45 = vpack.i.bf16 %v5557_v49, %v5556_v4  ;;  %11599 = vmatprep.mubr.msk.bf16.mxu0 %vm12512_vm0, %v12510_v0 }
0x3384   :  { %v5876_v27 = vmul.f32 %v12405_v42, %v13682_v35 }
0x3385   :  { %5233 = vadd.xlane.f32.xlu0 %v5232_v19  ;;  %v12198_v19 = vld [vmem:[%s13760_s9] sm:$0xff]  }
0x3386   :  { %v12040_v57 = vpack.i.bf16 %v5876_v27, %v5875_v7  ;;  %v12199_v7 = vld [vmem:[%s13760_s9 + $0x8] sm:$0xff]  }
0x3394   :  { %12036 = vrot.lane.b32.xlu1 %v12035_v45, %s12516_s19  ;;  %v12197_v45 = vld [vmem:[%s13751_s30 + $0x8] sm:$0xff]  }
0x339b   :  { %12041 = vrot.lane.b32.xlu0 %v12040_v57, %s12515_s18 }
0x340c   :  { %v6188_v52 = vpop.xlane.xlu1 %6187 }
0x340d   :  { %12406 = vrcp.f32 %v6188_v52 }
0x340e   :  { %v6191_v54 = vpop.xlane.xlu0 %6190 }
0x340f   :  { %12408 = vrcp.f32 %v6191_v54 }
0x3410   :  { %v5231_v63 = vpop.xlane.xlu1 %5230 }
0x3411   :  { %12410 = vrcp.f32 %v5231_v63 }
0x3412   :  { %v5234_v62 = vpop.xlane.xlu0 %5233 }
0x3413   :  { %12412 = vrcp.f32 %v5234_v62 }
0x3414   :  { %v12037_v60 = vpop.permute.xlu1 %12036 }
0x3415   :  { %v12039_v12 = vunpack.i.h.bf16 %v12037_v60  ;;  %v12038_v13 = vunpack.i.l.bf16 %v12037_v60  ;;  %v10278_v60 = vld [vmem:[%s13788_s3] ss:$0 sm:$0xff] }
0x3416   :  { %v12042_v14 = vpop.permute.xlu0 %12041 }
0x3417   :  { %v12407_v39 = vpop.eup %12406  ;;  %v12044_v26 = vunpack.i.h.bf16 %v12042_v14  ;;  %v12043_v24 = vunpack.i.l.bf16 %v12042_v14 }
0x3419   :  { %v12409_v56 = vpop.eup %12408 }
0x341b   :  { %v12411_v1 = vpop.eup %12410 }
0x341c   :  { %v5237_v6 = vmul.f32 %v12411_v1, %v13586_v10  ;;  %v12200_v1 = vld [vmem:[%s13760_s9 + $0x10] sm:$0xff]  }
0x341d   :  { %v12413_v2 = vpop.eup %12412 }
0x341e   :  { %v5238_v50 = vmul.f32 %v12413_v2, %v13588_v53  ;;  %v6220_v9 = vsel %vm389_vm2, %v5237_v6, %v12038_v13  ;;  %v12201_v2 = vld [vmem:[%s13760_s9 + $0x18] sm:$0xff]  }
0x341f   :  { %v6222_v31 = vsel %vm441_vm3, %v6220_v9, %v12043_v24 }
0x3420   :  { %v6221_v20 = vsel %vm389_vm2, %v5238_v50, %v12039_v12 }
0x3421   :  { %v6223_v5 = vsel %vm441_vm3, %v6221_v20, %v12044_v26 }
0x3455   :  { %v6179_v61 = vpop.f32.mrb[168].mxu0 }
0x3456   :  { %v11585_v35 = vpop.f32.mrb[169].mxu0  ;;  %v6194_v25 = vmul.f32 %v12407_v39, %v6179_v61  ;;  %v10276_v39 = vld [vmem:[%s13769_s11] ss:$0 sm:$0xff] }
0x3457   :  { %v6182_v48 = vpop.f32.mrb[170].mxu0 }
0x3458   :  { %v6195_v17 = vmul.f32 %v12409_v56, %v6182_v48  ;;  %v11586_v18 = vpop.f32.mrb[171].mxu0 }
0x345a   :  { %v12045_v59 = vpack.i.bf16 %v6195_v17, %v6194_v25  ;;  %v10277_v17 = vld [vmem:[%s13774_s21] ss:$0 sm:$0xff] }
0x345c   :  { %12046 = vrot.lane.b32.xlu1 %v12045_v59, %s12518_s24 }
0x34ce   :  { %v12047_v29 = vpop.permute.xlu1 %12046 }
0x34cf   :  { %v12049_v21 = vunpack.i.h.bf16 %v12047_v29  ;;  %v12048_v30 = vunpack.i.l.bf16 %v12047_v29  ;;  %v10282_v29 = vld [vmem:[%s13797_s1] ss:$0 sm:$0xff] }
0x34d1   :  { %v6225_v10 = vsel %vm1495_vm4, %v6223_v5, %v12049_v21  ;;  %v6224_v53 = vsel %vm1495_vm4, %v6222_v31, %v12048_v30 }
0x34d2   :  { %v6226_v15 = vpack.c.bf16 %v6225_v10, %v6224_v53 }
0x34d4   :  { %11592 = vmatmul.mubr.msk.bf16.vlgmr.msra.gmra.mrb[176].mxu1 %vm210_vm1, %v6226_v15 }
0x34d5   :  { %11611 = vmatprep.mubr.msk.bf16.mxu1 %vm12512_vm0, %v12510_v0  ;;  %11604 = vmatpush3.bf16.msra.mxu1 %v12198_v19 }
0x34d6   :  { %11605 = vmatprep.subr.bf16.mxu1 %v12510_v0 }
0x34d9   :  { %11606 = vmatpush3.bf16.msra.mxu1 %v12199_v7  ;;  %v10288_v7 = vld [vmem:[%s13815_s25] ss:$0 sm:$0xff] }
0x34da   :  { %11607 = vmatprep.subr.bf16.mxu1 %v12510_v0 }
0x34dd   :  { %11608 = vmatpush3.bf16.msra.mxu1 %v12200_v1 }
0x34de   :  { %11609 = vmatprep.subr.bf16.mxu1 %v12510_v0 }
0x34e1   :  { %11610 = vmatpush3.bf16.msra.mxu1 %v12201_v2 }
0x34e2   :  { %11631 = vmatprep.subr.bf16.mxu1 %v12510_v0 }
0x35a7   :  { %v6282_v34 = vpop.f32.mrb[176].mxu1 }
0x35a8   :  { %v6283_v28 = vadd.f32 %v10272_v33, %v6282_v34  ;;  %v11593_v32 = vpop.f32.mrb[177].mxu1 }
0x35a9   :  { %v6285_v11 = vpop.f32.mrb[178].mxu1 }
0x35aa   :  { %v6289_v43 = vadd.f32 %v6283_v28, %v13497_v8  ;;  %v6286_v44 = vadd.f32 %v10272_v33, %v6285_v11  ;;  %v11594_v3 = vpop.f32.mrb[179].mxu1 }
0x35ac   :  { %v6290_v47 = vadd.f32 %v6286_v44, %v13499_v40  ;;  %v6293_v37 = vsel %vm210_vm1, %v6289_v43, 0.0  ;;  %v12196_v40 = vld [vmem:[%s13751_s30] sm:$0xff]  }
0x35ad   :  { %6294 = vadd.xlane.f32.xlu1 %v6293_v37  ;;  %11596 = vmatpush3.bf16.msra.mxu0 %v12196_v40 }
0x35ae   :  { %v6296_v16 = vsel %vm210_vm1, %v6290_v47, 0.0  ;;  %11597 = vmatprep.subr.bf16.mxu0 %v12510_v0 }
0x35af   :  { %6297 = vadd.xlane.f32.xlu0 %v6296_v16 }
0x35b1   :  { %11598 = vmatpush3.bf16.msra.mxu0 %v12197_v45 }
0x35b2   :  { %11615 = vmatprep.subr.bf16.mxu0 %v12510_v0 }
0x363a   :  { %v6295_v51 = vpop.xlane.xlu1 %6294 }
0x363b   :  { %v6299_v23 = vmul.f32 0.03125, %v6295_v51 }
0x363c   :  { %v6298_v22 = vpop.xlane.xlu0 %6297 }
0x363d   :  { %v6301_v36 = vsub.f32 %v6289_v43, %v6299_v23  ;;  %v6300_v55 = vmul.f32 0.03125, %v6298_v22  ;;  %v12202_v22 = vld [vmem:[%s13147_s23 + $0xc0] sm:$0xff]  }
0x363f   :  { %v6302_v4 = vsub.f32 %v6290_v47, %v6300_v55  ;;  %v6303_v49 = vmul.f32 %v6301_v36, %v6301_v36  ;;  %v12204_v55 = vld [vmem:[%s13147_s23 + $0xc8] sm:$0xff]  }
0x3641   :  { %v6305_v41 = vsel %vm210_vm1, %v6303_v49, 0.0  ;;  %v6304_v8 = vmul.f32 %v6302_v4, %v6302_v4 }
0x3642   :  { %6306 = vadd.xlane.f32.xlu0 %v6305_v41 }
0x3643   :  { %v6308_v42 = vsel %vm210_vm1, %v6304_v8, 0.0 }
0x3644   :  { %6309 = vadd.xlane.f32.xlu1 %v6308_v42 }
0x36cf   :  { %v6307_v27 = vpop.xlane.xlu0 %6306 }
0x36d0   :  { %v6311_v57 = vmul.f32 0.03125, %v6307_v27 }
0x36d1   :  { %v6310_v46 = vpop.xlane.xlu1 %6309 }
0x36d2   :  { %v6313_v52 = vadd.f32 1e-05, %v6311_v57  ;;  %v6312_v54 = vmul.f32 0.03125, %v6310_v46 }
0x36d4   :  { %12414 = vrsqrt.f32 %v6313_v52  ;;  %v6314_v58 = vadd.f32 1e-05, %v6312_v54  ;;  %v10289_v54 = vld [vmem:[%s13820_s14] ss:$0 sm:$0xff] }
0x36d6   :  { %12416 = vrsqrt.f32 %v6314_v58 }
0x36de   :  { %v12415_v61 = vpop.eup %12414 }
0x36df   :  { %v6317_v35 = vmul.f32 %v12415_v61, %v6301_v36  ;;  %v12203_v36 = vld [vmem:[%s13147_s23 + $0x140] sm:$0xff]  }
0x36e0   :  { %v12417_v56 = vpop.eup %12416 }
0x36e1   :  { %v6325_v48 = vmul.f32 %v10276_v39, %v6317_v35  ;;  %v6318_v25 = vmul.f32 %v12417_v56, %v6302_v4  ;;  %v12205_v4 = vld [vmem:[%s13147_s23 + $0x148] sm:$0xff]   ;;  %v12206_v35 = vld [vmem:[%s13147_s23 + $0x100] sm:$0xff]  }
0x36e3   :  { %v6326_v18 = vmul.f32 %v10276_v39, %v6318_v25  ;;  %v6333_v59 = vadd.f32 %v10277_v17, %v6325_v48  ;;  %v12207_v48 = vld [vmem:[%s13147_s23 + $0x108] sm:$0xff]  }
0x36e4   :  { %v10300_v25 = vld [vmem:[%s13201_s16 + $0xc] ss:$0 sm:$0xff] }
0x36e5   :  { %v6334_v63 = vadd.f32 %v10277_v17, %v6326_v18  ;;  %v10318_v18 = vld [vmem:[%s13201_s16 + $0x14] ss:$0 sm:$0xff] }
0x36e7   :  { %v6339_v62 = vpack.c.bf16 %v6334_v63, %v6333_v59 }
0x36e9   :  { %11600 = vmatmul.mubr.msk.bf16.vlgmr.msra.gmra.mrb[172].mxu0 %vm210_vm1, %v6339_v62 }
0x36ea   :  { %11619 = vmatprep.mubr.msk.bf16.mxu0 %vm12512_vm0, %v12510_v0  ;;  %11616 = vmatpush3.bf16.msra.mxu0 %v12202_v22 }
0x36eb   :  { %11617 = vmatprep.subr.bf16.mxu0 %v12510_v0 }
0x36ee   :  { %11618 = vmatpush3.bf16.msra.mxu0 %v12204_v55  ;;  %v10329_v55 = vld [vmem:[%s13201_s16 + $0xd] ss:$0 sm:$0xff] }
0x36ef   :  { %11623 = vmatprep.subr.bf16.mxu0 %v12510_v0 }
0x37bc   :  { %v6396_v6 = vpop.f32.mrb[172].mxu0 }
0x37bd   :  { %v6397_v50 = vadd.f32 %v10278_v60, %v6396_v6  ;;  %v11601_v12 = vpop.f32.mrb[173].mxu0 }
0x37be   :  { %v6399_v13 = vpop.f32.mrb[174].mxu0 }
0x37bf   :  { %v6400_v14 = vadd.f32 %v10278_v60, %v6399_v13  ;;  %v11602_v9 = vpop.f32.mrb[175].mxu0  ;;  %v6403_v20 = vmax.f32 %v6397_v50, 0.0 }
0x37c1   :  { %v6404_v26 = vmax.f32 %v6400_v14, 0.0 }
0x37c3   :  { %v6413_v24 = vpack.c.bf16 %v6404_v26, %v6403_v20  ;;  %v10309_v26 = vld [vmem:[%s13201_s16 + $0x10] ss:$0 sm:$0xff] }
0x37c5   :  { %11612 = vmatmul.mubr.msk.bf16.vlgmr.msra.gmra.mrb[180].mxu1 %vm1718_vm5, %v6413_v24 }
0x37c6   :  { %11635 = vmatprep.mubr.msk.bf16.mxu1 %vm12512_vm0, %v12510_v0  ;;  %11632 = vmatpush3.bf16.msra.mxu1 %v12203_v36 }
0x37c7   :  { %11633 = vmatprep.subr.bf16.mxu1 %v12510_v0 }
0x37ca   :  { %11634 = vmatpush3.bf16.msra.mxu1 %v12205_v4 }
0x37cb   :  { %11645 = vmatprep.subr.bf16.mxu1 %v12510_v0 }
0x3898   :  { %v6482_v21 = vpop.f32.mrb[180].mxu1 }
0x3899   :  { %v6483_v30 = vadd.f32 %v10282_v29, %v6482_v21  ;;  %v11613_v5 = vpop.f32.mrb[181].mxu1 }
0x389a   :  { %v6485_v31 = vpop.f32.mrb[182].mxu1 }
0x389b   :  { %v6489_v10 = vadd.f32 %v6483_v30, %v6333_v59  ;;  %v6486_v53 = vadd.f32 %v10282_v29, %v6485_v31  ;;  %v11614_v15 = vpop.f32.mrb[183].mxu1 }
0x389c   :  { %v12208_v15 = vld [vmem:[%s13147_s23 + $0xd0] sm:$0xff]  }
0x389d   :  { %v6490_v33 = vadd.f32 %v6486_v53, %v6334_v63  ;;  %v6493_v34 = vsel %vm210_vm1, %v6489_v10, 0.0 }
0x389e   :  { %6494 = vadd.xlane.f32.xlu0 %v6493_v34  ;;  %v12210_v34 = vld [vmem:[%s13147_s23 + $0x150] sm:$0xff]  }
0x389f   :  { %v6496_v28 = vsel %vm210_vm1, %v6490_v33, 0.0 }
0x38a0   :  { %6497 = vadd.xlane.f32.xlu1 %v6496_v28  ;;  %v12211_v28 = vld [vmem:[%s13147_s23 + $0x158] sm:$0xff]  }
0x392b   :  { %v6495_v32 = vpop.xlane.xlu0 %6494 }
0x392c   :  { %v6499_v11 = vmul.f32 0.03125, %v6495_v32 }
0x392d   :  { %v6498_v43 = vpop.xlane.xlu1 %6497 }
0x392e   :  { %v6501_v44 = vsub.f32 %v6489_v10, %v6499_v11  ;;  %v6500_v3 = vmul.f32 0.03125, %v6498_v43 }
0x3930   :  { %v6502_v47 = vsub.f32 %v6490_v33, %v6500_v3  ;;  %v6503_v37 = vmul.f32 %v6501_v44, %v6501_v44  ;;  %v12209_v33 = vld [vmem:[%s13147_s23 + $0xd8] sm:$0xff]   ;;  %v13874_v3 = vld [vmem:[%s13232_s22] sm:$0xff] }
0x3932   :  { %v6505_v16 = vsel %vm210_vm1, %v6503_v37, 0.0  ;;  %v6504_v51 = vmul.f32 %v6502_v47, %v6502_v47 }
0x3933   :  { %6506 = vadd.xlane.f32.xlu0 %v6505_v16 }
0x3934   :  { %v6508_v23 = vsel %vm210_vm1, %v6504_v51, 0.0  ;;  %v13878_v51 = vld [vmem:[%s13232_s22 + $0x8] sm:$0xff] }
0x3935   :  { %6509 = vadd.xlane.f32.xlu1 %v6508_v23 }
0x39c0   :  { %v6507_v49 = vpop.xlane.xlu0 %6506 }
0x39c1   :  { %v6511_v41 = vmul.f32 0.03125, %v6507_v49 }
0x39c2   :  { %v6510_v8 = vpop.xlane.xlu1 %6509 }
0x39c3   :  { %v6513_v42 = vadd.f32 1e-05, %v6511_v41  ;;  %v6512_v40 = vmul.f32 0.03125, %v6510_v8 }
0x39c5   :  { %12418 = vrsqrt.f32 %v6513_v42  ;;  %v6514_v45 = vadd.f32 1e-05, %v6512_v40 }
0x39c7   :  { %12420 = vrsqrt.f32 %v6514_v45 }
0x39cf   :  { %v12419_v19 = vpop.eup %12418 }
0x39d0   :  { %v6517_v27 = vmul.f32 %v12419_v19, %v6501_v44  ;;  %v10347_v19 = vld [vmem:[%s13201_s16 + $0x15] ss:$0 sm:$0xff] }
0x39d1   :  { %v12421_v57 = vpop.eup %12420 }
0x39d2   :  { %v6525_v46 = vmul.f32 %v10288_v7, %v6517_v27  ;;  %v6518_v52 = vmul.f32 %v12421_v57, %v6502_v47 }
0x39d4   :  { %v6526_v58 = vmul.f32 %v10288_v7, %v6518_v52  ;;  %v13824_v61 = vadd.f32 %v10289_v54, %v6525_v46 }
0x39d6   :  { %v13826_v39 = vadd.f32 %v10289_v54, %v6526_v58 }
0x39d8   :  { %v13831_v56 = vpack.c.bf16 %v13826_v39, %v13824_v61 }
0x39da   :  { %11620 = vmatmul.mubr.msk.bf16.vlgmr.msra.gmra.mrb[176].mxu0 %vm210_vm1, %v13831_v56  ;;  %11636 = vmatmul.mubr.msk.bf16.vlgmr.msra.gmra.mrb[184].mxu1 %vm210_vm1, %v13831_v56 }
0x39db   :  { %11624 = vmatpush3.bf16.msra.mxu0 %v12206_v35  ;;  %11627 = vmatprep.mubr.msk.bf16.mxu0 %vm12512_vm0, %v12510_v0 }
0x39dc   :  { %11625 = vmatprep.subr.bf16.mxu0 %v12510_v0  ;;  %11647 = vmatprep.mubr.msk.bf16.mxu1 %vm12512_vm0, %v12510_v0 }
0x39df   :  { %11626 = vmatpush3.bf16.msra.mxu0 %v12207_v48 }
0x39e0   :  { %11639 = vmatprep.subr.bf16.mxu0 %v12510_v0 }
0x39e2   :  { %11628 = vmatmul.mubr.msk.bf16.vlgmr.msra.gmra.mrb[180].mxu0 %vm210_vm1, %v13831_v56 }
0x39e3   :  { %11641 = vmatprep.mubr.msk.bf16.mxu0 %vm12512_vm0, %v12510_v0 }
0x3aad   :  { %v6605_v17 = vpop.f32.mrb[176].mxu0  ;;  %v6737_v59 = vpop.f32.mrb[184].mxu1 }
0x3aae   :  { %v11621_v63 = vpop.f32.mrb[177].mxu0  ;;  %v11637_v62 = vpop.f32.mrb[185].mxu1  ;;  %v6606_v60 = vadd.f32 %v10300_v25, %v6605_v17  ;;  %v6738_v6 = vadd.f32 %v10318_v18, %v6737_v59 }
0x3aaf   :  { %v6608_v1 = vpop.f32.mrb[178].mxu0  ;;  %v6740_v2 = vpop.f32.mrb[186].mxu1 }
0x3ab0   :  { %v6609_v50 = vadd.f32 %v10300_v25, %v6608_v1  ;;  %v6741_v12 = vadd.f32 %v10318_v18, %v6740_v2  ;;  %v11622_v13 = vpop.f32.mrb[179].mxu0  ;;  %v11638_v14 = vpop.f32.mrb[187].mxu1  ;;  %v12212_v1 = vld [vmem:[%s13147_s23 + $0x110] sm:$0xff]  }
0x3ab1   :  { %v10338_v14 = vld [vmem:[%s13201_s16 + $0x11] ss:$0 sm:$0xff] }
0x3ab2   :  { %v6744_v9 = vpack.c.bf16 %v6609_v50, %v6606_v60  ;;  %v6810_v20 = vpack.c.bf16 %v6741_v12, %v6738_v6  ;;  %v12213_v60 = vld [vmem:[%s13147_s23 + $0x118] sm:$0xff]  }
0x3ab4   :  { %11646 = vmatpush3.bf16.msra.mxu1 %v6810_v20 }
0x3ab5   :  { %v6671_v24 = vpop.f32.mrb[180].mxu0  ;;  %11659 = vmatprep.subr.bf16.mxu1 %v12510_v0 }
0x3ab6   :  { %v11629_v29 = vpop.f32.mrb[181].mxu0  ;;  %v6672_v30 = vadd.f32 %v10309_v26, %v6671_v24 }
0x3ab7   :  { %v6674_v21 = vpop.f32.mrb[182].mxu0 }
0x3ab8   :  { %v6675_v5 = vadd.f32 %v10309_v26, %v6674_v21  ;;  %v11630_v31 = vpop.f32.mrb[183].mxu0 }
0x3ab9   :  { %v12214_v31 = vld [vmem:[%s13147_s23 + $0xe0] sm:$0xff]  }
0x3aba   :  { %v6745_v10 = vpack.c.bf16 %v6675_v5, %v6672_v30 }
0x3abc   :  { %v6750_v53 = vsel %vm389_vm2, %v6745_v10, 0  ;;  %v12215_v10 = vld [vmem:[%s13147_s23 + $0xe8] sm:$0xff]  }
0x3abd   :  { %11640 = vmatpush3.bf16.xpose.msra.mxu0 %v6750_v53  ;;  %v12216_v53 = vld [vmem:[%s13147_s23 + $0x160] sm:$0xff]  }
0x3abe   :  { %11651 = vmatprep.subr.bf16.mxu0 %v12510_v0 }
0x3ac4   :  { %11642 = vmatmul.mubr.msk.bf16.vlgmr.msra.gmra.mrb[184].mxu0 %vm389_vm2, %v6744_v9 }
0x3ac5   :  { %11652 = vmatpush3.bf16.msra.mxu0 %v12208_v15  ;;  %11655 = vmatprep.mubr.msk.bf16.mxu0 %vm12512_vm0, %v12510_v0  ;;  %v12217_v15 = vld [vmem:[%s13147_s23 + $0x168] sm:$0xff]  }
0x3ac6   :  { %11653 = vmatprep.subr.bf16.mxu0 %v12510_v0 }
0x3ac9   :  { %11654 = vmatpush3.bf16.msra.mxu0 %v12209_v33 }
0x3aca   :  { %11667 = vmatprep.subr.bf16.mxu0 %v12510_v0 }
0x3acc   :  { %11656 = vmatmul.mubr.msk.bf16.vlgmr.msra.gmra.mrb[188].mxu0 %vm210_vm1, %v13831_v56 }
0x3acd   :  { %11668 = vmatpush3.bf16.msra.mxu0 %v12210_v34  ;;  %11671 = vmatprep.mubr.msk.bf16.mxu0 %vm12512_vm0, %v12510_v0 }
0x3ace   :  { %11669 = vmatprep.subr.bf16.mxu0 %v12510_v0 }
0x3ad1   :  { %11670 = vmatpush3.bf16.msra.mxu0 %v12211_v28 }
0x3ad2   :  { %11681 = vmatprep.subr.bf16.mxu0 %v12510_v0 }
0x3ad4   :  { %11672 = vmatmul.mubr.msk.bf16.vlgmr.msra.gmra.mrb[192].mxu0 %vm210_vm1, %v13831_v56 }
0x3ad5   :  { %11683 = vmatprep.mubr.msk.bf16.mxu0 %vm12512_vm0, %v12510_v0 }
0x3b97   :  { %v6786_v32 = vpop.f32.mrb[184].mxu0 }
0x3b98   :  { %v6793_v11 = vmul.f32 0.35355338, %v6786_v32  ;;  %v11643_v43 = vpop.f32.mrb[185].mxu0 }
0x3b99   :  { %v6789_v44 = vpop.f32.mrb[186].mxu0 }
0x3b9a   :  { %v6795_v47 = vadd.f32 %v13874_v3, %v6793_v11  ;;  %v6794_v37 = vmul.f32 0.35355338, %v6789_v44  ;;  %v11644_v16 = vpop.f32.mrb[187].mxu0 }
0x3b9c   :  { %v6796_v23 = vadd.f32 %v13878_v51, %v6794_v37  ;;  %v6797_v22 = vsel %vm441_vm3, %v6795_v47, -inf }
0x3b9d   :  { %6798 = vmax.xlane.f32.xlu0 %v6797_v22 }
0x3b9e   :  { %v6800_v36 = vsel %vm441_vm3, %v6796_v23, -inf }
0x3b9f   :  { %6801 = vmax.xlane.f32.xlu1 %v6800_v36  ;;  %v6924_v4 = vpop.f32.mrb[188].mxu0 }
0x3ba0   :  { %v11657_v49 = vpop.f32.mrb[189].mxu0  ;;  %v6925_v8 = vadd.f32 %v10329_v55, %v6924_v4 }
0x3ba1   :  { %v6927_v41 = vpop.f32.mrb[190].mxu0 }
0x3ba2   :  { %v6928_v42 = vadd.f32 %v10329_v55, %v6927_v41  ;;  %v11658_v40 = vpop.f32.mrb[191].mxu0 }
0x3ba4   :  { %v7063_v45 = vpack.c.bf16 %v6928_v42, %v6925_v8  ;;  %v10376_v42 = vld [vmem:[%s13201_s16 + $0x16] ss:$0 sm:$0xff] }
0x3ba7   :  { %v7056_v7 = vpop.f32.mrb[192].mxu0 }
0x3ba8   :  { %v11673_v27 = vpop.f32.mrb[193].mxu0  ;;  %v7057_v46 = vadd.f32 %v10347_v19, %v7056_v7 }
0x3ba9   :  { %v7059_v57 = vpop.f32.mrb[194].mxu0 }
0x3baa   :  { %v7060_v52 = vadd.f32 %v10347_v19, %v7059_v57  ;;  %v11674_v54 = vpop.f32.mrb[195].mxu0 }
0x3bac   :  { %v7129_v58 = vpack.c.bf16 %v7060_v52, %v7057_v46 }
0x3bae   :  { %11682 = vmatpush3.bf16.msra.mxu0 %v7129_v58 }
0x3baf   :  { %11695 = vmatprep.subr.bf16.mxu0 %v12510_v0 }
0x3c2a   :  { %v6799_v35 = vpop.xlane.xlu0 %6798 }
0x3c2b   :  { %v6803_v48 = vsub.f32 %v6795_v47, %v6799_v35 }
0x3c2c   :  { %v6802_v25 = vpop.xlane.xlu1 %6801 }
0x3c2d   :  { %v6805_v17 = vmul.f32 1.442695, %v6803_v48  ;;  %v6804_v18 = vsub.f32 %v6796_v23, %v6802_v25  ;;  %v10358_v23 = vld [vmem:[%s13201_s16 + $0xe] ss:$0 sm:$0xff] }
0x3c2f   :  { %v6807_v59 = vmul.f32 1.442695, %v6804_v18  ;;  %12422 = vpow2.f32 %v6805_v17 }
0x3c31   :  { %12424 = vpow2.f32 %v6807_v59  ;;  %v12218_v59 = vld [vmem:[%s13147_s23 + $0x120] sm:$0xff]  }
0x3c39   :  { %v13886_v63 = vpop.eup %12422 }
0x3c3b   :  { %v13888_v62 = vpop.eup %12424 }
0x3c3c   :  { %v6809_v2 = vpack.c.bf16 %v13888_v62, %v13886_v63 }
0x3c3e   :  { %11648 = vmatmul.mubr.msk.bf16.vlgmr.msra.gmra.mrb[188].mxu1 %vm441_vm3, %v6809_v2  ;;  %v12219_v2 = vld [vmem:[%s13147_s23 + $0x128] sm:$0xff]  }
0x3c3f   :  { %11660 = vmatpush3.bf16.msra.mxu1 %v12212_v1  ;;  %11663 = vmatprep.mubr.msk.bf16.mxu1 %vm12512_vm0, %v12510_v0 }
0x3c40   :  { %11661 = vmatprep.subr.bf16.mxu1 %v12510_v0 }
0x3c43   :  { %11662 = vmatpush3.bf16.msra.mxu1 %v12213_v60 }
0x3c44   :  { %11675 = vmatprep.subr.bf16.mxu1 %v12510_v0 }
0x3c46   :  { %11664 = vmatmul.mubr.msk.bf16.vlgmr.msra.gmra.mrb[192].mxu1 %vm210_vm1, %v13831_v56 }
0x3c47   :  { %11677 = vmatprep.mubr.msk.bf16.mxu1 %vm12512_vm0, %v12510_v0 }
0x3d11   :  { %v13903_v6 = vpop.f32.mrb[188].mxu1 }
0x3d12   :  { %v11649_v50 = vpop.f32.mrb[189].mxu1 }
0x3d13   :  { %v13905_v12 = vpop.f32.mrb[190].mxu1 }
0x3d14   :  { %v11650_v13 = vpop.f32.mrb[191].mxu1 }
0x3d19   :  { %v6990_v9 = vpop.f32.mrb[192].mxu1 }
0x3d1a   :  { %v11665_v20 = vpop.f32.mrb[193].mxu1  ;;  %v6991_v24 = vadd.f32 %v10338_v14, %v6990_v9  ;;  %v10367_v9 = vld [vmem:[%s13201_s16 + $0x12] ss:$0 sm:$0xff] }
0x3d1b   :  { %v6993_v26 = vpop.f32.mrb[194].mxu1 }
0x3d1c   :  { %v6994_v29 = vadd.f32 %v10338_v14, %v6993_v26  ;;  %v11666_v21 = vpop.f32.mrb[195].mxu1 }
0x3d1e   :  { %v7064_v30 = vpack.c.bf16 %v6994_v29, %v6991_v24 }
0x3d20   :  { %v7069_v5 = vsel %vm389_vm2, %v7064_v30, 0 }
0x3d21   :  { %11676 = vmatpush3.bf16.xpose.msra.mxu1 %v7069_v5 }
0x3d22   :  { %11687 = vmatprep.subr.bf16.mxu1 %v12510_v0 }
0x3d28   :  { %11678 = vmatmul.mubr.msk.bf16.vlgmr.msra.gmra.mrb[196].mxu1 %vm389_vm2, %v7063_v45 }
0x3d29   :  { %11688 = vmatpush3.bf16.msra.mxu1 %v12214_v31  ;;  %11691 = vmatprep.mubr.msk.bf16.mxu1 %vm12512_vm0, %v12510_v0 }
0x3d2a   :  { %11689 = vmatprep.subr.bf16.mxu1 %v12510_v0 }
0x3d2d   :  { %11690 = vmatpush3.bf16.msra.mxu1 %v12215_v10  ;;  %v12220_v10 = vld [vmem:[%s13147_s23 + $0xf0] sm:$0xff]  }
0x3d2e   :  { %11703 = vmatprep.subr.bf16.mxu1 %v12510_v0 }
0x3d30   :  { %11692 = vmatmul.mubr.msk.bf16.vlgmr.msra.gmra.mrb[200].mxu1 %vm210_vm1, %v13831_v56 }
0x3d31   :  { %11704 = vmatpush3.bf16.msra.mxu1 %v12216_v53  ;;  %11707 = vmatprep.mubr.msk.bf16.mxu1 %vm12512_vm0, %v12510_v0  ;;  %v12221_v53 = vld [vmem:[%s13147_s23 + $0xf8] sm:$0xff]  }
0x3d32   :  { %11705 = vmatprep.subr.bf16.mxu1 %v12510_v0 }
0x3d35   :  { %11706 = vmatpush3.bf16.msra.mxu1 %v12217_v15  ;;  %v12222_v15 = vld [vmem:[%s13147_s23 + $0x170] sm:$0xff]  }
0x3d36   :  { %11717 = vmatprep.subr.bf16.mxu1 %v12510_v0 }
0x3d38   :  { %11708 = vmatmul.mubr.msk.bf16.vlgmr.msra.gmra.mrb[204].mxu1 %vm210_vm1, %v13831_v56 }
0x3d39   :  { %11719 = vmatprep.mubr.msk.bf16.mxu1 %vm12512_vm0, %v12510_v0 }
0x3dfb   :  { %v7105_v33 = vpop.f32.mrb[196].mxu1 }
0x3dfc   :  { %v7112_v34 = vmul.f32 0.35355338, %v7105_v33  ;;  %v11679_v28 = vpop.f32.mrb[197].mxu1  ;;  %v12223_v33 = vld [vmem:[%s13147_s23 + $0x178] sm:$0xff]  }
0x3dfd   :  { %v7108_v32 = vpop.f32.mrb[198].mxu1 }
0x3dfe   :  { %v7114_v11 = vadd.f32 %v13874_v3, %v7112_v34  ;;  %v7113_v43 = vmul.f32 0.35355338, %v7108_v32  ;;  %v11680_v44 = vpop.f32.mrb[199].mxu1 }
0x3e00   :  { %v7115_v47 = vadd.f32 %v13878_v51, %v7113_v43  ;;  %v7116_v37 = vsel %vm441_vm3, %v7114_v11, -inf }
0x3e01   :  { %7117 = vmax.xlane.f32.xlu0 %v7116_v37 }
0x3e02   :  { %v7119_v16 = vsel %vm441_vm3, %v7115_v47, -inf }
0x3e03   :  { %7120 = vmax.xlane.f32.xlu1 %v7119_v16  ;;  %v7243_v22 = vpop.f32.mrb[200].mxu1 }
0x3e04   :  { %v11693_v36 = vpop.f32.mrb[201].mxu1  ;;  %v7244_v4 = vadd.f32 %v10358_v23, %v7243_v22  ;;  %v10387_v22 = vld [vmem:[%s13201_s16 + $0xf] ss:$0 sm:$0xff] }
0x3e05   :  { %v7246_v55 = vpop.f32.mrb[202].mxu1 }
0x3e06   :  { %v7247_v49 = vadd.f32 %v10358_v23, %v7246_v55  ;;  %v11694_v41 = vpop.f32.mrb[203].mxu1 }
0x3e08   :  { %v7382_v8 = vpack.c.bf16 %v7247_v49, %v7244_v4 }
0x3e0b   :  { %v7375_v40 = vpop.f32.mrb[204].mxu1 }
0x3e0c   :  { %v11709_v45 = vpop.f32.mrb[205].mxu1  ;;  %v7376_v7 = vadd.f32 %v10376_v42, %v7375_v40  ;;  %v10405_v40 = vld [vmem:[%s13201_s16 + $0x17] ss:$0 sm:$0xff] }
0x3e0d   :  { %v7378_v19 = vpop.f32.mrb[206].mxu1 }
0x3e0e   :  { %v7379_v27 = vadd.f32 %v10376_v42, %v7378_v19  ;;  %v11710_v57 = vpop.f32.mrb[207].mxu1 }
0x3e10   :  { %v7448_v46 = vpack.c.bf16 %v7379_v27, %v7376_v7 }
0x3e12   :  { %11718 = vmatpush3.bf16.msra.mxu1 %v7448_v46 }
0x3e13   :  { %11731 = vmatprep.subr.bf16.mxu1 %v12510_v0 }
0x3e8e   :  { %v7118_v52 = vpop.xlane.xlu0 %7117 }
0x3e8f   :  { %v7122_v54 = vsub.f32 %v7114_v11, %v7118_v52 }
0x3e90   :  { %v7121_v58 = vpop.xlane.xlu1 %7120 }
0x3e91   :  { %v7124_v35 = vmul.f32 1.442695, %v7122_v54  ;;  %v7123_v48 = vsub.f32 %v7115_v47, %v7121_v58 }
0x3e93   :  { %v7126_v25 = vmul.f32 1.442695, %v7123_v48  ;;  %12426 = vpow2.f32 %v7124_v35 }
0x3e95   :  { %12428 = vpow2.f32 %v7126_v25 }
0x3e9d   :  { %v13936_v17 = vpop.eup %12426 }
0x3e9f   :  { %v13938_v18 = vpop.eup %12428 }
0x3ea0   :  { %v7128_v1 = vpack.c.bf16 %v13938_v18, %v13936_v17 }
0x3ea2   :  { %11684 = vmatmul.mubr.msk.bf16.vlgmr.msra.gmra.mrb[196].mxu0 %vm441_vm3, %v7128_v1 }
0x3ea3   :  { %11696 = vmatpush3.bf16.msra.mxu0 %v12218_v59  ;;  %11699 = vmatprep.mubr.msk.bf16.mxu0 %vm12512_vm0, %v12510_v0 }
0x3ea4   :  { %11697 = vmatprep.subr.bf16.mxu0 %v12510_v0 }
0x3ea7   :  { %11698 = vmatpush3.bf16.msra.mxu0 %v12219_v2 }
0x3ea8   :  { %11711 = vmatprep.subr.bf16.mxu0 %v12510_v0 }
0x3eaa   :  { %11700 = vmatmul.mubr.msk.bf16.vlgmr.msra.gmra.mrb[200].mxu0 %vm210_vm1, %v13831_v56 }
0x3eab   :  { %11713 = vmatprep.mubr.msk.bf16.mxu0 %vm12512_vm0, %v12510_v0 }
0x3f75   :  { %v13953_v60 = vpop.f32.mrb[196].mxu0 }
0x3f76   :  { %v11685_v50 = vpop.f32.mrb[197].mxu0 }
0x3f77   :  { %v13955_v13 = vpop.f32.mrb[198].mxu0  ;;  %v12224_v50 = vld [vmem:[%s13147_s23 + $0x130] sm:$0xff]  }
0x3f78   :  { %v11686_v14 = vpop.f32.mrb[199].mxu0 }
0x3f7d   :  { %v7309_v20 = vpop.f32.mrb[200].mxu0 }
0x3f7e   :  { %v11701_v26 = vpop.f32.mrb[201].mxu0  ;;  %v7310_v29 = vadd.f32 %v10367_v9, %v7309_v20 }
0x3f7f   :  { %v7312_v24 = vpop.f32.mrb[202].mxu0 }
0x3f80   :  { %v7313_v21 = vadd.f32 %v10367_v9, %v7312_v24  ;;  %v11702_v30 = vpop.f32.mrb[203].mxu0  ;;  %v12225_v9 = vld [vmem:[%s13147_s23 + $0x138] sm:$0xff]  }
0x3f82   :  { %v7383_v5 = vpack.c.bf16 %v7313_v21, %v7310_v29  ;;  %v10396_v21 = vld [vmem:[%s13201_s16 + $0x13] ss:$0 sm:$0xff]  ;;  %s12549_s16 = smov 37  }
0x3f84   :  { %v7388_v31 = vsel %vm389_vm2, %v7383_v5, 0 }
0x3f85   :  { %11712 = vmatpush3.bf16.xpose.msra.mxu0 %v7388_v31 }
0x3f86   :  { %11723 = vmatprep.subr.bf16.mxu0 %v12510_v0 }
0x3f8c   :  { %11714 = vmatmul.mubr.msk.bf16.vlgmr.msra.gmra.mrb[204].mxu0 %vm389_vm2, %v7382_v8 }
0x3f8d   :  { %11724 = vmatpush3.bf16.msra.mxu0 %v12220_v10  ;;  %11727 = vmatprep.mubr.msk.bf16.mxu0 %vm12512_vm0, %v12510_v0 }
0x3f8e   :  { %11725 = vmatprep.subr.bf16.mxu0 %v12510_v0 }
0x3f91   :  { %11726 = vmatpush3.bf16.msra.mxu0 %v12221_v53 }
0x3f92   :  { %11739 = vmatprep.subr.bf16.mxu0 %v12510_v0 }
0x3f94   :  { %11728 = vmatmul.mubr.msk.bf16.vlgmr.msra.gmra.mrb[208].mxu0 %vm210_vm1, %v13831_v56 }
0x3f95   :  { %11740 = vmatpush3.bf16.msra.mxu0 %v12222_v15  ;;  %11743 = vmatprep.mubr.msk.bf16.mxu0 %vm12512_vm0, %v12510_v0 }
0x3f96   :  { %11741 = vmatprep.subr.bf16.mxu0 %v12510_v0 }
0x3f99   :  { %11742 = vmatpush3.bf16.msra.mxu0 %v12223_v33 }
0x3f9a   :  { %11753 = vmatprep.subr.bf16.mxu0 %v12510_v0 }
0x3f9c   :  { %11744 = vmatmul.mubr.msk.bf16.vlgmr.msra.gmra.mrb[212].mxu0 %vm210_vm1, %v13831_v56 }
0x3f9d   :  { %11755 = vmatprep.mubr.msk.bf16.mxu0 %vm12512_vm0, %v12510_v0 }
0x405f   :  { %v7424_v34 = vpop.f32.mrb[204].mxu0 }
0x4060   :  { %v7431_v28 = vmul.f32 0.35355338, %v7424_v34  ;;  %v11715_v32 = vpop.f32.mrb[205].mxu0 }
0x4061   :  { %v7427_v11 = vpop.f32.mrb[206].mxu0 }
0x4062   :  { %v7433_v43 = vadd.f32 %v13874_v3, %v7431_v28  ;;  %v7432_v44 = vmul.f32 0.35355338, %v7427_v11  ;;  %v11716_v47 = vpop.f32.mrb[207].mxu0 }
0x4064   :  { %v7434_v37 = vadd.f32 %v13878_v51, %v7432_v44  ;;  %v7435_v16 = vsel %vm441_vm3, %v7433_v43, -inf }
0x4065   :  { %7436 = vmax.xlane.f32.xlu0 %v7435_v16 }
0x4066   :  { %v7438_v23 = vsel %vm441_vm3, %v7434_v37, -inf }
0x4067   :  { %7439 = vmax.xlane.f32.xlu1 %v7438_v23  ;;  %v7562_v36 = vpop.f32.mrb[208].mxu0 }
0x4068   :  { %v11729_v55 = vpop.f32.mrb[209].mxu0  ;;  %v7563_v49 = vadd.f32 %v10387_v22, %v7562_v36  ;;  %v7177_v36 = vsel %vm441_vm3, %v13938_v18, 0.0 }
0x4069   :  { %v7565_v4 = vpop.f32.mrb[210].mxu0 }
0x406a   :  { %v7566_v41 = vadd.f32 %v10387_v22, %v7565_v4  ;;  %v11730_v8 = vpop.f32.mrb[211].mxu0  ;;  %v7174_v22 = vsel %vm441_vm3, %v13936_v17, 0.0 }
0x406c   :  { %v7701_v42 = vpack.c.bf16 %v7566_v41, %v7563_v49 }
0x406f   :  { %v7694_v45 = vpop.f32.mrb[212].mxu0 }
0x4070   :  { %v11745_v19 = vpop.f32.mrb[213].mxu0  ;;  %v7695_v27 = vadd.f32 %v10405_v40, %v7694_v45 }
0x4071   :  { %v7697_v7 = vpop.f32.mrb[214].mxu0 }
0x4072   :  { %v7698_v57 = vadd.f32 %v10405_v40, %v7697_v7  ;;  %v11746_v46 = vpop.f32.mrb[215].mxu0 }
0x4074   :  { %v7767_v52 = vpack.c.bf16 %v7698_v57, %v7695_v27 }
0x4076   :  { %11754 = vmatpush3.bf16.msra.mxu0 %v7767_v52 }
0x4077   :  { %11767 = vmatprep.subr.bf16.mxu0 %v12510_v0 }
0x40f2   :  { %v7437_v54 = vpop.xlane.xlu0 %7436 }
0x40f3   :  { %v7441_v58 = vsub.f32 %v7433_v43, %v7437_v54 }
0x40f4   :  { %v7440_v35 = vpop.xlane.xlu1 %7439 }
0x40f5   :  { %v7443_v48 = vmul.f32 1.442695, %v7441_v58  ;;  %v7442_v25 = vsub.f32 %v7434_v37, %v7440_v35 }
0x40f7   :  { %v7445_v59 = vmul.f32 1.442695, %v7442_v25  ;;  %12430 = vpow2.f32 %v7443_v48  ;;  %v6855_v25 = vsel %vm441_vm3, %v13886_v63, 0.0  ;;  %v12226_v63 = vld [vmem:[%s13422_s29 + $0x10] sm:$0xff]  }
0x40f9   :  { %12432 = vpow2.f32 %v7445_v59 }
0x4101   :  { %v12431_v1 = vpop.eup %12430 }
0x4103   :  { %v12433_v2 = vpop.eup %12432 }
0x4104   :  { %v7447_v14 = vpack.c.bf16 %v12433_v2, %v12431_v1  ;;  %v7496_v55 = vsel %vm441_vm3, %v12433_v2, 0.0  ;;  %v6858_v2 = vsel %vm441_vm3, %v13888_v62, 0.0 }
0x4106   :  { %11720 = vmatmul.mubr.msk.bf16.vlgmr.msra.gmra.mrb[208].mxu1 %vm441_vm3, %v7447_v14 }
0x4107   :  { %11732 = vmatpush3.bf16.msra.mxu1 %v12224_v50  ;;  %11735 = vmatprep.mubr.msk.bf16.mxu1 %vm12512_vm0, %v12510_v0 }
0x4108   :  { %11733 = vmatprep.subr.bf16.mxu1 %v12510_v0 }
0x410b   :  { %11734 = vmatpush3.bf16.msra.mxu1 %v12225_v9 }
0x410c   :  { %11747 = vmatprep.subr.bf16.mxu1 %v12510_v0 }
0x410e   :  { %11736 = vmatmul.mubr.msk.bf16.vlgmr.msra.gmra.mrb[212].mxu1 %vm210_vm1, %v13831_v56 }
0x410f   :  { %11749 = vmatprep.mubr.msk.bf16.mxu1 %vm12512_vm0, %v12510_v0 }
0x41d9   :  { %v13997_v20 = vpop.f32.mrb[208].mxu1 }
0x41da   :  { %v11721_v26 = vpop.f32.mrb[209].mxu1 }
0x41db   :  { %v13999_v24 = vpop.f32.mrb[210].mxu1  ;;  %v12227_v26 = vld [vmem:[%s13422_s29 + $0x18] sm:$0xff]  }
0x41dc   :  { %v11722_v29 = vpop.f32.mrb[211].mxu1 }
0x41e1   :  { %v7628_v30 = vpop.f32.mrb[212].mxu1 }
0x41e2   :  { %v11737_v5 = vpop.f32.mrb[213].mxu1  ;;  %v7629_v10 = vadd.f32 %v10396_v21, %v7628_v30 }
0x41e3   :  { %v7631_v31 = vpop.f32.mrb[214].mxu1 }
0x41e4   :  { %v7632_v53 = vadd.f32 %v10396_v21, %v7631_v31  ;;  %v11738_v15 = vpop.f32.mrb[215].mxu1 }
0x41e6   :  { %v7702_v33 = vpack.c.bf16 %v7632_v53, %v7629_v10 }
0x41e8   :  { %v7707_v34 = vsel %vm389_vm2, %v7702_v33, 0 }
0x41e9   :  { %11748 = vmatpush3.bf16.xpose.msra.mxu1 %v7707_v34 }
0x41ea   :  { %11759 = vmatprep.subr.bf16.mxu1 %v12510_v0 }
0x41f0   :  { %11750 = vmatmul.mubr.msk.bf16.vlgmr.msra.gmra.mrb[216].mxu1 %vm389_vm2, %v7701_v42 }
0x41f1   :  { %11763 = vmatprep.mubr.msk.bf16.mxu1 %vm12512_vm0, %v12510_v0  ;;  %11760 = vmatpush3.bf16.msra.mxu1 %v12226_v63 }
0x41f2   :  { %11761 = vmatprep.subr.bf16.mxu1 %v12510_v0 }
0x41f5   :  { %11762 = vmatpush3.bf16.msra.mxu1 %v12227_v26 }
0x41f6   :  { %11775 = vmatprep.subr.bf16.mxu1 %v12510_v0 }
0x42c3   :  { %v7743_v56 = vpop.f32.mrb[216].mxu1 }
0x42c4   :  { %v7750_v28 = vmul.f32 0.35355338, %v7743_v56  ;;  %v11751_v32 = vpop.f32.mrb[217].mxu1 }
0x42c5   :  { %v7746_v11 = vpop.f32.mrb[218].mxu1 }
0x42c6   :  { %v7752_v43 = vadd.f32 %v13874_v3, %v7750_v28  ;;  %v7751_v44 = vmul.f32 0.35355338, %v7746_v11  ;;  %v11752_v47 = vpop.f32.mrb[219].mxu1  ;;  %v7493_v3 = vsel %vm441_vm3, %v12431_v1, 0.0 }
0x42c8   :  { %v7753_v37 = vadd.f32 %v13878_v51, %v7751_v44  ;;  %v7754_v16 = vsel %vm441_vm3, %v7752_v43, -inf }
0x42c9   :  { %7755 = vmax.xlane.f32.xlu0 %v7754_v16 }
0x42ca   :  { %v7757_v23 = vsel %vm441_vm3, %v7753_v37, -inf }
0x42cb   :  { %7758 = vmax.xlane.f32.xlu1 %v7757_v23 }
0x42cd   :  { %7175 = vadd.xlane.f32.xlu0 %v7174_v22 }
0x42cf   :  { %7178 = vadd.xlane.f32.xlu1 %v7177_v36 }
0x42d1   :  { %7494 = vadd.xlane.f32.xlu0 %v7493_v3 }
0x42d3   :  { %7497 = vadd.xlane.f32.xlu1 %v7496_v55 }
0x4356   :  { %v7756_v51 = vpop.xlane.xlu0 %7755 }
0x4357   :  { %v7760_v4 = vsub.f32 %v7752_v43, %v7756_v51 }
0x4358   :  { %v7759_v49 = vpop.xlane.xlu1 %7758 }
0x4359   :  { %v7762_v41 = vmul.f32 1.442695, %v7760_v4  ;;  %v7761_v8 = vsub.f32 %v7753_v37, %v7759_v49  ;;  %v12228_v4 = vld [vmem:[%s13466_s6 + $0x100] sm:$0xff]  }
0x435a   :  { %v7176_v42 = vpop.xlane.xlu0 %7175 }
0x435b   :  { %12434 = vpow2.f32 %v7762_v41  ;;  %v7764_v40 = vmul.f32 1.442695, %v7761_v8  ;;  %v12229_v41 = vld [vmem:[%s13466_s6 + $0x108] sm:$0xff]   ;;  %v10411_v8 = vld [vmem:[%s13448_s7 + $0x1] ss:$0 sm:$0xff]  ;;  %s9751_s7 = sld [smem:[%s14342_s0 + %s12549_s16]]  }
0x435c   :  { %12436 = vrcp.f32 %v7176_v42  ;;  %v7179_v17 = vpop.xlane.xlu1 %7178 }
0x435d   :  { %12438 = vpow2.f32 %v7764_v40 }
0x435e   :  { %12440 = vrcp.f32 %v7179_v17  ;;  %v7495_v18 = vpop.xlane.xlu0 %7494 }
0x435f   :  { %12442 = vrcp.f32 %v7495_v18 }
0x4360   :  { %v7498_v45 = vpop.xlane.xlu1 %7497 }
0x4361   :  { %12444 = vrcp.f32 %v7498_v45 }
0x4365   :  { %v12435_v19 = vpop.eup %12434 }
0x4366   :  { %v12437_v7 = vpop.eup %12436  ;;  %v7812_v27 = vsel %vm441_vm3, %v12435_v19, 0.0 }
0x4367   :  { %v12439_v57 = vpop.eup %12438  ;;  %7813 = vadd.xlane.f32.xlu0 %v7812_v27  ;;  %v7182_v35 = vmul.f32 %v12437_v7, %v13953_v60 }
0x4368   :  { %v12441_v46 = vpop.eup %12440  ;;  %v7815_v52 = vsel %vm441_vm3, %v12439_v57, 0.0  ;;  %v7766_v54 = vpack.c.bf16 %v12439_v57, %v12435_v19 }
0x4369   :  { %v12443_v58 = vpop.eup %12442  ;;  %7816 = vadd.xlane.f32.xlu1 %v7815_v52  ;;  %v7183_v48 = vmul.f32 %v12441_v46, %v13955_v13  ;;  %v10438_v52 = vld [vmem:[%s13524_s4 + $0x10] ss:$0 sm:$0xff] }
0x436a   :  { %11756 = vmatmul.mubr.msk.bf16.vlgmr.msra.gmra.mrb[216].mxu0 %vm441_vm3, %v7766_v54  ;;  %v7501_v50 = vmul.f32 %v12443_v58, %v13997_v20 }
0x436b   :  { %v12445_v59 = vpop.eup %12444  ;;  %6856 = vadd.xlane.f32.xlu0 %v6855_v25  ;;  %v12050_v1 = vpack.i.bf16 %v7183_v48, %v7182_v35  ;;  %11771 = vmatprep.mubr.msk.bf16.mxu0 %vm12512_vm0, %v12510_v0 }
0x436c   :  { %v7502_v60 = vmul.f32 %v12445_v59, %v13999_v24 }
0x436d   :  { %6859 = vadd.xlane.f32.xlu1 %v6858_v2 }
0x436e   :  { %v12055_v13 = vpack.i.bf16 %v7502_v60, %v7501_v50 }
0x437e   :  { %12056 = vrot.lane.b32.xlu1 %v12055_v13, %s12515_s18 }
0x4381   :  { %12051 = vrot.lane.b32.xlu0 %v12050_v1, %s12516_s19 }
0x43f4   :  { %v7814_v14 = vpop.xlane.xlu0 %7813 }
0x43f5   :  { %12446 = vrcp.f32 %v7814_v14 }
0x43f6   :  { %v7817_v9 = vpop.xlane.xlu1 %7816 }
0x43f7   :  { %12448 = vrcp.f32 %v7817_v9 }
0x43f8   :  { %v6857_v53 = vpop.xlane.xlu0 %6856 }
0x43f9   :  { %12450 = vrcp.f32 %v6857_v53 }
0x43fa   :  { %v6860_v15 = vpop.xlane.xlu1 %6859 }
0x43fb   :  { %12452 = vrcp.f32 %v6860_v15 }
0x43fc   :  { %v12052_v56 = vpop.permute.xlu0 %12051 }
0x43fd   :  { %v12054_v43 = vunpack.i.h.bf16 %v12052_v56  ;;  %v12053_v44 = vunpack.i.l.bf16 %v12052_v56 }
0x43fe   :  { %v12057_v11 = vpop.permute.xlu1 %12056 }
0x43ff   :  { %v12447_v20 = vpop.eup %12446  ;;  %v12059_v16 = vunpack.i.h.bf16 %v12057_v11  ;;  %v12058_v23 = vunpack.i.l.bf16 %v12057_v11 }
0x4401   :  { %v12449_v29 = vpop.eup %12448 }
0x4403   :  { %v12451_v33 = vpop.eup %12450 }
0x4404   :  { %v6863_v28 = vmul.f32 %v12451_v33, %v13903_v6  ;;  %v10417_v33 = vld [vmem:[%s13482_s13 + $0x1] ss:$0 sm:$0xff] }
0x4405   :  { %v12453_v34 = vpop.eup %12452 }
0x4406   :  { %v6864_v32 = vmul.f32 %v12453_v34, %v13905_v12  ;;  %v7846_v47 = vsel %vm389_vm2, %v6863_v28, %v12053_v44 }
0x4407   :  { %v7848_v6 = vsel %vm441_vm3, %v7846_v47, %v12058_v23  ;;  %v12232_v47 = vld [vmem:[%s13466_s6 + $0x140] sm:$0xff]   ;;  %v10429_v23 = vld [vmem:[%s13524_s4 + $0xc] ss:$0 sm:$0xff] }
0x4408   :  { %v7847_v37 = vsel %vm389_vm2, %v6864_v32, %v12054_v43  ;;  %v10418_v32 = vld [vmem:[%s13491_s28 + $0x1] ss:$0 sm:$0xff] }
0x4409   :  { %v7849_v55 = vsel %vm441_vm3, %v7847_v37, %v12059_v16  ;;  %v12233_v16 = vld [vmem:[%s13466_s6 + $0x148] sm:$0xff]  }
0x443d   :  { %v7805_v62 = vpop.f32.mrb[216].mxu0 }
0x443e   :  { %v11757_v24 = vpop.f32.mrb[217].mxu0  ;;  %v7820_v30 = vmul.f32 %v12447_v20, %v7805_v62  ;;  %v12230_v20 = vld [vmem:[%s13466_s6 + $0xc0] sm:$0xff]  }
0x443f   :  { %v7808_v21 = vpop.f32.mrb[218].mxu0  ;;  %11768 = vmatpush3.bf16.msra.mxu0 %v12230_v20  ;;  %v12231_v24 = vld [vmem:[%s13466_s6 + $0xc8] sm:$0xff]  }
0x4440   :  { %v7821_v5 = vmul.f32 %v12449_v29, %v7808_v21  ;;  %v11758_v31 = vpop.f32.mrb[219].mxu0  ;;  %11769 = vmatprep.subr.bf16.mxu0 %v12510_v0 }
0x4442   :  { %v12060_v10 = vpack.i.bf16 %v7821_v5, %v7820_v30 }
0x4443   :  { %11770 = vmatpush3.bf16.msra.mxu0 %v12231_v24 }
0x4444   :  { %12061 = vrot.lane.b32.xlu1 %v12060_v10, %s12518_s24  ;;  %11783 = vmatprep.subr.bf16.mxu0 %v12510_v0 }
0x44b6   :  { %v12062_v22 = vpop.permute.xlu1 %12061 }
0x44b7   :  { %v12064_v36 = vunpack.i.h.bf16 %v12062_v22  ;;  %v12063_v3 = vunpack.i.l.bf16 %v12062_v22 }
0x44b9   :  { %v7851_v12 = vsel %vm1495_vm4, %v7849_v55, %v12064_v36  ;;  %v7850_v51 = vsel %vm1495_vm4, %v7848_v6, %v12063_v3 }
0x44ba   :  { %v7852_v49 = vpack.c.bf16 %v7851_v12, %v7850_v51  ;;  %v12234_v51 = vld [vmem:[%s13466_s6 + $0xd0] sm:$0xff]  }
0x44bc   :  { %11764 = vmatmul.mubr.msk.bf16.vlgmr.msra.gmra.mrb[220].mxu1 %vm210_vm1, %v7852_v49  ;;  %v10447_v49 = vld [vmem:[%s13524_s4 + $0x14] ss:$0 sm:$0xff] }
0x44bd   :  { %11776 = vmatpush3.bf16.msra.mxu1 %v12228_v4  ;;  %11779 = vmatprep.mubr.msk.bf16.mxu1 %vm12512_vm0, %v12510_v0 }
0x44be   :  { %11777 = vmatprep.subr.bf16.mxu1 %v12510_v0 }
0x44c1   :  { %11778 = vmatpush3.bf16.msra.mxu1 %v12229_v41 }
0x44c2   :  { %11791 = vmatprep.subr.bf16.mxu1 %v12510_v0 }
0x44c4   :  { %11780 = vmatmul.mubr.msk.bf16.vlgmr.msra.gmra.mrb[224].mxu1 %vm210_vm1, %v13495_v38 }
0x44c5   :  { %11793 = vmatprep.mubr.msk.bf16.mxu1 %vm12512_vm0, %v12510_v0 }
0x458f   :  { %v7908_v42 = vpop.f32.mrb[220].mxu1 }
0x4590   :  { %v7909_v40 = vadd.f32 %v10411_v8, %v7908_v42  ;;  %v11765_v17 = vpop.f32.mrb[221].mxu1 }
0x4591   :  { %v7911_v18 = vpop.f32.mrb[222].mxu1 }
0x4592   :  { %v7915_v45 = vadd.f32 %v7909_v40, %v13824_v61  ;;  %v7912_v19 = vadd.f32 %v10411_v8, %v7911_v18  ;;  %v11766_v7 = vpop.f32.mrb[223].mxu1  ;;  %v12235_v8 = vld [vmem:[%s13466_s6 + $0xd8] sm:$0xff]  }
0x4594   :  { %v7916_v27 = vadd.f32 %v7912_v19, %v13826_v39  ;;  %v7921_v57 = vsel %vm210_vm1, %v7915_v45, 0.0  ;;  %v12236_v19 = vld [vmem:[%s13466_s6 + $0x150] sm:$0xff]  }
0x4595   :  { %7922 = vadd.xlane.f32.xlu1 %v7921_v57 }
0x4596   :  { %v7924_v46 = vsel %vm210_vm1, %v7916_v27, 0.0 }
0x4597   :  { %7925 = vadd.xlane.f32.xlu0 %v7924_v46  ;;  %v8099_v54 = vpop.f32.mrb[224].mxu1 }
0x4598   :  { %v11781_v58 = vpop.f32.mrb[225].mxu1  ;;  %v8100_v48 = vadd.f32 %v10438_v52, %v8099_v54 }
0x4599   :  { %v8102_v35 = vpop.f32.mrb[226].mxu1  ;;  %v14115_v58 = vld [vmem:[%s13554_s17] sm:$0xff] }
0x459a   :  { %v8103_v25 = vadd.f32 %v10438_v52, %v8102_v35  ;;  %v11782_v59 = vpop.f32.mrb[227].mxu1 }
0x459b   :  { %v14119_v59 = vld [vmem:[%s13554_s17 + $0x8] sm:$0xff]  ;;  %s12551_s17 = smov 40  }
0x459c   :  { %v8173_v1 = vpack.c.bf16 %v8103_v25, %v8100_v48 }
0x459e   :  { %v8178_v61 = vsel %vm389_vm2, %v8173_v1, 0 }
0x459f   :  { %11792 = vmatpush3.bf16.xpose.msra.mxu1 %v8178_v61 }
0x45a0   :  { %11803 = vmatprep.subr.bf16.mxu1 %v12510_v0 }
0x4622   :  { %v7923_v39 = vpop.xlane.xlu1 %7922 }
0x4623   :  { %v7927_v2 = vmul.f32 0.03125, %v7923_v39 }
0x4624   :  { %v7926_v50 = vpop.xlane.xlu0 %7925 }
0x4625   :  { %v7929_v60 = vsub.f32 %v7915_v45, %v7927_v2  ;;  %v7928_v13 = vmul.f32 0.03125, %v7926_v50  ;;  %v10458_v2 = vld [vmem:[%s13524_s4 + $0xd] ss:$0 sm:$0xff] }
0x4627   :  { %v7930_v63 = vsub.f32 %v7916_v27, %v7928_v13  ;;  %v7931_v14 = vmul.f32 %v7929_v60, %v7929_v60  ;;  %v12237_v27 = vld [vmem:[%s13466_s6 + $0x158] sm:$0xff]  }
0x4629   :  { %v7933_v9 = vsel %vm210_vm1, %v7931_v14, 0.0  ;;  %v7932_v26 = vmul.f32 %v7930_v63, %v7930_v63 }
0x462a   :  { %7934 = vadd.xlane.f32.xlu0 %v7933_v9 }
0x462b   :  { %v7936_v62 = vsel %vm210_vm1, %v7932_v26, 0.0 }
0x462e   :  { %7937 = vadd.xlane.f32.xlu0 %v7936_v62  ;;  %v10476_v62 = vld [vmem:[%s13524_s4 + $0x15] ss:$0 sm:$0xff] }
0x46b7   :  { %v7935_v29 = vpop.xlane.xlu0 %7934 }
0x46b8   :  { %v7939_v21 = vmul.f32 0.03125, %v7935_v29 }
0x46ba   :  { %v7941_v30 = vadd.f32 1e-05, %v7939_v21 }
0x46bb   :  { %v7938_v5 = vpop.xlane.xlu0 %7937 }
0x46bc   :  { %12454 = vrsqrt.f32 %v7941_v30  ;;  %v7940_v31 = vmul.f32 0.03125, %v7938_v5 }
0x46be   :  { %v7942_v10 = vadd.f32 1e-05, %v7940_v31 }
0x46c0   :  { %12456 = vrsqrt.f32 %v7942_v10 }
0x46c6   :  { %v12455_v53 = vpop.eup %12454 }
0x46c7   :  { %v7945_v15 = vmul.f32 %v12455_v53, %v7929_v60 }
0x46c9   :  { %v7953_v56 = vmul.f32 %v10417_v33, %v7945_v15 }
0x46ca   :  { %v12457_v34 = vpop.eup %12456 }
0x46cb   :  { %v7946_v28 = vmul.f32 %v12457_v34, %v7930_v63  ;;  %v14072_v43 = vadd.f32 %v10418_v32, %v7953_v56 }
0x46cd   :  { %v7954_v11 = vmul.f32 %v10417_v33, %v7946_v28 }
0x46cf   :  { %v14074_v44 = vadd.f32 %v10418_v32, %v7954_v11  ;;  %v12238_v11 = vld [vmem:[%s13466_s6 + $0x110] sm:$0xff]  }
0x46d1   :  { %v14079_v37 = vpack.c.bf16 %v14074_v44, %v14072_v43 }
0x46d3   :  { %11772 = vmatmul.mubr.msk.bf16.vlgmr.msra.gmra.mrb[220].mxu0 %vm210_vm1, %v14079_v37 }
0x46d4   :  { %11784 = vmatpush3.bf16.msra.mxu0 %v12232_v47  ;;  %11787 = vmatprep.mubr.msk.bf16.mxu0 %vm12512_vm0, %v12510_v0 }
0x46d5   :  { %11785 = vmatprep.subr.bf16.mxu0 %v12510_v0 }
0x46d8   :  { %11786 = vmatpush3.bf16.msra.mxu0 %v12233_v16  ;;  %v12239_v16 = vld [vmem:[%s13466_s6 + $0x118] sm:$0xff]  }
0x46d9   :  { %11797 = vmatprep.subr.bf16.mxu0 %v12510_v0 }
0x46db   :  { %11788 = vmatmul.mubr.msk.bf16.vlgmr.msra.gmra.mrb[224].mxu0 %vm210_vm1, %v13495_v38 }
0x46dc   :  { %11799 = vmatprep.mubr.msk.bf16.mxu0 %vm12512_vm0, %v12510_v0 }
0x47a6   :  { %v8033_v22 = vpop.f32.mrb[220].mxu0 }
0x47a7   :  { %v11773_v36 = vpop.f32.mrb[221].mxu0  ;;  %v8034_v55 = vadd.f32 %v10429_v23, %v8033_v22 }
0x47a8   :  { %v8036_v3 = vpop.f32.mrb[222].mxu0 }
0x47a9   :  { %v8037_v6 = vadd.f32 %v10429_v23, %v8036_v3  ;;  %v11774_v12 = vpop.f32.mrb[223].mxu0 }
0x47ab   :  { %v8172_v4 = vpack.c.bf16 %v8037_v6, %v8034_v55  ;;  %v10467_v55 = vld [vmem:[%s13524_s4 + $0x11] ss:$0 sm:$0xff] }
0x47ad   :  { %11794 = vmatmul.mubr.msk.bf16.vlgmr.msra.gmra.mrb[228].mxu1 %vm389_vm2, %v8172_v4 }
0x47ae   :  { %v8165_v41 = vpop.f32.mrb[224].mxu0  ;;  %11804 = vmatpush3.bf16.msra.mxu1 %v12234_v51  ;;  %11807 = vmatprep.mubr.msk.bf16.mxu1 %vm12512_vm0, %v12510_v0 }
0x47af   :  { %v11789_v42 = vpop.f32.mrb[225].mxu0  ;;  %11805 = vmatprep.subr.bf16.mxu1 %v12510_v0  ;;  %v8166_v17 = vadd.f32 %v10447_v49, %v8165_v41 }
0x47b0   :  { %v8168_v40 = vpop.f32.mrb[226].mxu0 }
0x47b1   :  { %v8169_v18 = vadd.f32 %v10447_v49, %v8168_v40  ;;  %v11790_v45 = vpop.f32.mrb[227].mxu0  ;;  %v12240_v40 = vld [vmem:[%s13466_s6 + $0xe0] sm:$0xff]  }
0x47b2   :  { %11806 = vmatpush3.bf16.msra.mxu1 %v12235_v8  ;;  %v12243_v45 = vld [vmem:[%s13466_s6 + $0x168] sm:$0xff]  }
0x47b3   :  { %v8238_v7 = vpack.c.bf16 %v8169_v18, %v8166_v17  ;;  %11819 = vmatprep.subr.bf16.mxu1 %v12510_v0  ;;  %v12241_v17 = vld [vmem:[%s13466_s6 + $0xe8] sm:$0xff]   ;;  %v12242_v18 = vld [vmem:[%s13466_s6 + $0x160] sm:$0xff]  }
0x47b5   :  { %11798 = vmatpush3.bf16.msra.mxu0 %v8238_v7  ;;  %11808 = vmatmul.mubr.msk.bf16.vlgmr.msra.gmra.mrb[232].mxu1 %vm210_vm1, %v14079_v37 }
0x47b6   :  { %11820 = vmatpush3.bf16.msra.mxu1 %v12236_v19  ;;  %11823 = vmatprep.mubr.msk.bf16.mxu1 %vm12512_vm0, %v12510_v0 }
0x47b7   :  { %11821 = vmatprep.subr.bf16.mxu1 %v12510_v0  ;;  %11811 = vmatprep.subr.bf16.mxu0 %v12510_v0 }
0x47ba   :  { %11822 = vmatpush3.bf16.msra.mxu1 %v12237_v27 }
0x47bb   :  { %11833 = vmatprep.subr.bf16.mxu1 %v12510_v0 }
0x47bd   :  { %11824 = vmatmul.mubr.msk.bf16.vlgmr.msra.gmra.mrb[236].mxu1 %vm210_vm1, %v13495_v38 }
0x47be   :  { %11835 = vmatprep.mubr.msk.bf16.mxu1 %vm12512_vm0, %v12510_v0 }
0x4880   :  { %v8214_v57 = vpop.f32.mrb[228].mxu1 }
0x4881   :  { %v8221_v46 = vmul.f32 0.35355338, %v8214_v57  ;;  %v11795_v52 = vpop.f32.mrb[229].mxu1 }
0x4882   :  { %v8217_v54 = vpop.f32.mrb[230].mxu1 }
0x4883   :  { %v8223_v35 = vadd.f32 %v14115_v58, %v8221_v46  ;;  %v8222_v48 = vmul.f32 0.35355338, %v8217_v54  ;;  %v11796_v25 = vpop.f32.mrb[231].mxu1 }
0x4885   :  { %v8224_v1 = vadd.f32 %v14119_v59, %v8222_v48  ;;  %v8225_v61 = vsel %vm441_vm3, %v8223_v35, -inf }
0x4886   :  { %8226 = vmax.xlane.f32.xlu1 %v8225_v61 }
0x4887   :  { %v8228_v39 = vsel %vm441_vm3, %v8224_v1, -inf }
0x4888   :  { %8229 = vmax.xlane.f32.xlu0 %v8228_v39  ;;  %v8352_v50 = vpop.f32.mrb[232].mxu1 }
0x4889   :  { %v11809_v60 = vpop.f32.mrb[233].mxu1  ;;  %v8353_v63 = vadd.f32 %v10458_v2, %v8352_v50 }
0x488a   :  { %v8355_v13 = vpop.f32.mrb[234].mxu1 }
0x488b   :  { %v8356_v14 = vadd.f32 %v10458_v2, %v8355_v13  ;;  %v11810_v9 = vpop.f32.mrb[235].mxu1 }
0x488d   :  { %v8491_v26 = vpack.c.bf16 %v8356_v14, %v8353_v63  ;;  %v10505_v14 = vld [vmem:[%s13524_s4 + $0x16] ss:$0 sm:$0xff] }
0x4890   :  { %v8484_v20 = vpop.f32.mrb[236].mxu1 }
0x4891   :  { %v11825_v24 = vpop.f32.mrb[237].mxu1  ;;  %v8485_v21 = vadd.f32 %v10476_v62, %v8484_v20 }
0x4892   :  { %v8487_v29 = vpop.f32.mrb[238].mxu1 }
0x4893   :  { %v8488_v30 = vadd.f32 %v10476_v62, %v8487_v29  ;;  %v11826_v5 = vpop.f32.mrb[239].mxu1 }
0x4895   :  { %v8557_v31 = vpack.c.bf16 %v8488_v30, %v8485_v21 }
0x4897   :  { %11834 = vmatpush3.bf16.msra.mxu1 %v8557_v31 }
0x4898   :  { %11847 = vmatprep.subr.bf16.mxu1 %v12510_v0 }
0x4913   :  { %v8227_v10 = vpop.xlane.xlu1 %8226 }
0x4914   :  { %v8231_v53 = vsub.f32 %v8223_v35, %v8227_v10 }
0x4915   :  { %v8230_v15 = vpop.xlane.xlu0 %8229 }
0x4916   :  { %v8233_v33 = vmul.f32 1.442695, %v8231_v53  ;;  %v8232_v34 = vsub.f32 %v8224_v1, %v8230_v15  ;;  %v10487_v1 = vld [vmem:[%s13524_s4 + $0xe] ss:$0 sm:$0xff] }
0x4918   :  { %v8235_v56 = vmul.f32 1.442695, %v8232_v34  ;;  %12458 = vpow2.f32 %v8233_v33 }
0x491a   :  { %12460 = vpow2.f32 %v8235_v56  ;;  %v12244_v56 = vld [vmem:[%s13466_s6 + $0x120] sm:$0xff]  }
0x4922   :  { %v14127_v28 = vpop.eup %12458 }
0x4924   :  { %v14129_v32 = vpop.eup %12460 }
0x4925   :  { %v8237_v47 = vpack.c.bf16 %v14129_v32, %v14127_v28 }
0x4927   :  { %11800 = vmatmul.mubr.msk.bf16.vlgmr.msra.gmra.mrb[228].mxu0 %vm441_vm3, %v8237_v47  ;;  %v12245_v47 = vld [vmem:[%s13466_s6 + $0x128] sm:$0xff]  }
0x4928   :  { %11812 = vmatpush3.bf16.msra.mxu0 %v12238_v11  ;;  %11815 = vmatprep.mubr.msk.bf16.mxu0 %vm12512_vm0, %v12510_v0 }
0x4929   :  { %11813 = vmatprep.subr.bf16.mxu0 %v12510_v0 }
0x492c   :  { %11814 = vmatpush3.bf16.msra.mxu0 %v12239_v16 }
0x492d   :  { %11827 = vmatprep.subr.bf16.mxu0 %v12510_v0 }
0x492f   :  { %11816 = vmatmul.mubr.msk.bf16.vlgmr.msra.gmra.mrb[232].mxu0 %vm210_vm1, %v13495_v38 }
0x4930   :  { %11829 = vmatprep.mubr.msk.bf16.mxu0 %vm12512_vm0, %v12510_v0 }
0x49fa   :  { %v14144_v23 = vpop.f32.mrb[228].mxu0 }
0x49fb   :  { %v11801_v22 = vpop.f32.mrb[229].mxu0 }
0x49fc   :  { %v14146_v36 = vpop.f32.mrb[230].mxu0 }
0x49fd   :  { %v11802_v3 = vpop.f32.mrb[231].mxu0 }
0x4a02   :  { %v8418_v6 = vpop.f32.mrb[232].mxu0 }
0x4a03   :  { %v11817_v12 = vpop.f32.mrb[233].mxu0  ;;  %v8419_v4 = vadd.f32 %v10467_v55, %v8418_v6  ;;  %v10496_v6 = vld [vmem:[%s13524_s4 + $0x12] ss:$0 sm:$0xff] }
0x4a04   :  { %v8421_v51 = vpop.f32.mrb[234].mxu0 }
0x4a05   :  { %v8422_v49 = vadd.f32 %v10467_v55, %v8421_v51  ;;  %v11818_v41 = vpop.f32.mrb[235].mxu0 }
0x4a07   :  { %v8492_v8 = vpack.c.bf16 %v8422_v49, %v8419_v4 }
0x4a09   :  { %v8497_v42 = vsel %vm389_vm2, %v8492_v8, 0 }
0x4a0a   :  { %11828 = vmatpush3.bf16.xpose.msra.mxu0 %v8497_v42 }
0x4a0b   :  { %11839 = vmatprep.subr.bf16.mxu0 %v12510_v0 }
0x4a11   :  { %11830 = vmatmul.mubr.msk.bf16.vlgmr.msra.gmra.mrb[236].mxu0 %vm389_vm2, %v8491_v26 }
0x4a12   :  { %11840 = vmatpush3.bf16.msra.mxu0 %v12240_v40  ;;  %11843 = vmatprep.mubr.msk.bf16.mxu0 %vm12512_vm0, %v12510_v0 }
0x4a13   :  { %11841 = vmatprep.subr.bf16.mxu0 %v12510_v0 }
0x4a16   :  { %11842 = vmatpush3.bf16.msra.mxu0 %v12241_v17  ;;  %v12246_v17 = vld [vmem:[%s13466_s6 + $0xf0] sm:$0xff]  }
0x4a17   :  { %11855 = vmatprep.subr.bf16.mxu0 %v12510_v0 }
0x4a19   :  { %11844 = vmatmul.mubr.msk.bf16.vlgmr.msra.gmra.mrb[240].mxu0 %vm210_vm1, %v14079_v37 }
0x4a1a   :  { %11856 = vmatpush3.bf16.msra.mxu0 %v12242_v18  ;;  %11859 = vmatprep.mubr.msk.bf16.mxu0 %vm12512_vm0, %v12510_v0  ;;  %v12247_v18 = vld [vmem:[%s13466_s6 + $0xf8] sm:$0xff]  }
0x4a1b   :  { %11857 = vmatprep.subr.bf16.mxu0 %v12510_v0 }
0x4a1e   :  { %11858 = vmatpush3.bf16.msra.mxu0 %v12243_v45  ;;  %v12248_v45 = vld [vmem:[%s13466_s6 + $0x170] sm:$0xff]  }
0x4a1f   :  { %11869 = vmatprep.subr.bf16.mxu0 %v12510_v0 }
0x4a21   :  { %11860 = vmatmul.mubr.msk.bf16.vlgmr.msra.gmra.mrb[244].mxu0 %vm210_vm1, %v13495_v38 }
0x4a22   :  { %11871 = vmatprep.mubr.msk.bf16.mxu0 %vm12512_vm0, %v12510_v0 }
0x4ae4   :  { %v8533_v19 = vpop.f32.mrb[236].mxu0 }
0x4ae5   :  { %v8540_v7 = vmul.f32 0.35355338, %v8533_v19  ;;  %v11831_v27 = vpop.f32.mrb[237].mxu0  ;;  %v12249_v19 = vld [vmem:[%s13466_s6 + $0x178] sm:$0xff]  }
0x4ae6   :  { %v8536_v57 = vpop.f32.mrb[238].mxu0 }
0x4ae7   :  { %v8542_v46 = vadd.f32 %v14115_v58, %v8540_v7  ;;  %v8541_v52 = vmul.f32 0.35355338, %v8536_v57  ;;  %v11832_v54 = vpop.f32.mrb[239].mxu0 }
0x4ae9   :  { %v8543_v35 = vadd.f32 %v14119_v59, %v8541_v52  ;;  %v8544_v48 = vsel %vm441_vm3, %v8542_v46, -inf }
0x4aea   :  { %8545 = vmax.xlane.f32.xlu1 %v8544_v48 }
0x4aeb   :  { %v8547_v25 = vsel %vm441_vm3, %v8543_v35, -inf }
0x4aec   :  { %8548 = vmax.xlane.f32.xlu0 %v8547_v25  ;;  %v8671_v61 = vpop.f32.mrb[240].mxu0 }
0x4aed   :  { %v11845_v39 = vpop.f32.mrb[241].mxu0  ;;  %v8672_v50 = vadd.f32 %v10487_v1, %v8671_v61 }
0x4aee   :  { %v8674_v2 = vpop.f32.mrb[242].mxu0 }
0x4aef   :  { %v8675_v60 = vadd.f32 %v10487_v1, %v8674_v2  ;;  %v11846_v13 = vpop.f32.mrb[243].mxu0  ;;  %v10516_v1 = vld [vmem:[%s13524_s4 + $0xf] ss:$0 sm:$0xff] }
0x4af1   :  { %v8810_v63 = vpack.c.bf16 %v8675_v60, %v8672_v50 }
0x4af4   :  { %v8803_v9 = vpop.f32.mrb[244].mxu0 }
0x4af5   :  { %v11861_v26 = vpop.f32.mrb[245].mxu0  ;;  %v8804_v20 = vadd.f32 %v10505_v14, %v8803_v9 }
0x4af6   :  { %v8806_v62 = vpop.f32.mrb[246].mxu0 }
0x4af7   :  { %v8807_v24 = vadd.f32 %v10505_v14, %v8806_v62  ;;  %v11862_v29 = vpop.f32.mrb[247].mxu0  ;;  %v10534_v14 = vld [vmem:[%s13524_s4 + $0x17] ss:$0 sm:$0xff] }
0x4af9   :  { %v8876_v21 = vpack.c.bf16 %v8807_v24, %v8804_v20 }
0x4afb   :  { %11870 = vmatpush3.bf16.msra.mxu0 %v8876_v21 }
0x4afc   :  { %11883 = vmatprep.subr.bf16.mxu0 %v12510_v0 }
0x4b77   :  { %v8546_v30 = vpop.xlane.xlu1 %8545 }
0x4b78   :  { %v8550_v5 = vsub.f32 %v8542_v46, %v8546_v30 }
0x4b79   :  { %v8549_v31 = vpop.xlane.xlu0 %8548 }
0x4b7a   :  { %v8552_v10 = vmul.f32 1.442695, %v8550_v5  ;;  %v8551_v53 = vsub.f32 %v8543_v35, %v8549_v31 }
0x4b7c   :  { %v8554_v15 = vmul.f32 1.442695, %v8551_v53  ;;  %12462 = vpow2.f32 %v8552_v10 }
0x4b7e   :  { %12464 = vpow2.f32 %v8554_v15 }
0x4b86   :  { %v14177_v33 = vpop.eup %12462 }
0x4b88   :  { %v14179_v34 = vpop.eup %12464 }
0x4b89   :  { %v8556_v11 = vpack.c.bf16 %v14179_v34, %v14177_v33 }
0x4b8b   :  { %11836 = vmatmul.mubr.msk.bf16.vlgmr.msra.gmra.mrb[240].mxu1 %vm441_vm3, %v8556_v11 }
0x4b8c   :  { %11848 = vmatpush3.bf16.msra.mxu1 %v12244_v56  ;;  %11851 = vmatprep.mubr.msk.bf16.mxu1 %vm12512_vm0, %v12510_v0 }
0x4b8d   :  { %11849 = vmatprep.subr.bf16.mxu1 %v12510_v0 }
0x4b90   :  { %11850 = vmatpush3.bf16.msra.mxu1 %v12245_v47  ;;  %v12250_v47 = vld [vmem:[%s13466_s6 + $0x130] sm:$0xff]  }
0x4b91   :  { %11863 = vmatprep.subr.bf16.mxu1 %v12510_v0 }
0x4b93   :  { %11852 = vmatmul.mubr.msk.bf16.vlgmr.msra.gmra.mrb[244].mxu1 %vm210_vm1, %v13495_v38 }
0x4b94   :  { %11865 = vmatprep.mubr.msk.bf16.mxu1 %vm12512_vm0, %v12510_v0 }
0x4c5e   :  { %v14194_v16 = vpop.f32.mrb[240].mxu1 }
0x4c5f   :  { %v11837_v22 = vpop.f32.mrb[241].mxu1 }
0x4c60   :  { %v14196_v3 = vpop.f32.mrb[242].mxu1 }
0x4c61   :  { %v11838_v55 = vpop.f32.mrb[243].mxu1 }
0x4c62   :  { %v12251_v55 = vld [vmem:[%s13466_s6 + $0x138] sm:$0xff]   ;;  %s12550_s6 = smov 38  }
0x4c66   :  { %v8737_v12 = vpop.f32.mrb[244].mxu1 }
0x4c67   :  { %v11853_v51 = vpop.f32.mrb[245].mxu1  ;;  %v8738_v49 = vadd.f32 %v10496_v6, %v8737_v12 }
0x4c68   :  { %v8740_v4 = vpop.f32.mrb[246].mxu1 }
0x4c69   :  { %v8741_v41 = vadd.f32 %v10496_v6, %v8740_v4  ;;  %v11854_v8 = vpop.f32.mrb[247].mxu1 }
0x4c6b   :  { %v8811_v42 = vpack.c.bf16 %v8741_v41, %v8738_v49  ;;  %v10525_v49 = vld [vmem:[%s13524_s4 + $0x13] ss:$0 sm:$0xff]  ;;  %s9752_s4 = sld [smem:[%s14342_s0 + %s12550_s6]]  }
0x4c6d   :  { %v8816_v40 = vsel %vm389_vm2, %v8811_v42, 0 }
0x4c6e   :  { %11864 = vmatpush3.bf16.xpose.msra.mxu1 %v8816_v40 }
0x4c6f   :  { %11875 = vmatprep.subr.bf16.mxu1 %v12510_v0 }
0x4c75   :  { %11866 = vmatmul.mubr.msk.bf16.vlgmr.msra.gmra.mrb[248].mxu1 %vm389_vm2, %v8810_v63 }
0x4c76   :  { %11876 = vmatpush3.bf16.msra.mxu1 %v12246_v17  ;;  %11879 = vmatprep.mubr.msk.bf16.mxu1 %vm12512_vm0, %v12510_v0 }
0x4c77   :  { %11877 = vmatprep.subr.bf16.mxu1 %v12510_v0 }
0x4c7a   :  { %11878 = vmatpush3.bf16.msra.mxu1 %v12247_v18 }
0x4c7b   :  { %11891 = vmatprep.subr.bf16.mxu1 %v12510_v0 }
0x4c7d   :  { %11880 = vmatmul.mubr.msk.bf16.vlgmr.msra.gmra.mrb[252].mxu1 %vm210_vm1, %v14079_v37 }
0x4c7e   :  { %11892 = vmatpush3.bf16.msra.mxu1 %v12248_v45  ;;  %11895 = vmatprep.mubr.msk.bf16.mxu1 %vm12512_vm0, %v12510_v0 }
0x4c7f   :  { %11893 = vmatprep.subr.bf16.mxu1 %v12510_v0 }
0x4c82   :  { %11894 = vmatpush3.bf16.msra.mxu1 %v12249_v19 }
0x4c83   :  { %11905 = vmatprep.subr.bf16.mxu1 %v12510_v0 }
0x4c85   :  { %11896 = vmatmul.mubr.msk.bf16.vlgmr.msra.gmra.mrb[0].mxu1 %vm210_vm1, %v13495_v38 }
0x4c86   :  { %11907 = vmatprep.mubr.msk.bf16.mxu1 %vm12512_vm0, %v12510_v0 }
0x4d48   :  { %v8852_v7 = vpop.f32.mrb[248].mxu1 }
0x4d49   :  { %v8859_v27 = vmul.f32 0.35355338, %v8852_v7  ;;  %v11867_v37 = vpop.f32.mrb[249].mxu1 }
0x4d4a   :  { %v8855_v57 = vpop.f32.mrb[250].mxu1 }
0x4d4b   :  { %v8861_v46 = vadd.f32 %v14115_v58, %v8859_v27  ;;  %v8860_v52 = vmul.f32 0.35355338, %v8855_v57  ;;  %v11868_v54 = vpop.f32.mrb[251].mxu1 }
0x4d4d   :  { %v8862_v35 = vadd.f32 %v14119_v59, %v8860_v52  ;;  %v8863_v48 = vsel %vm441_vm3, %v8861_v46, -inf }
0x4d4e   :  { %8864 = vmax.xlane.f32.xlu1 %v8863_v48 }
0x4d4f   :  { %v8866_v25 = vsel %vm441_vm3, %v8862_v35, -inf }
0x4d50   :  { %8867 = vmax.xlane.f32.xlu0 %v8866_v25  ;;  %v8990_v61 = vpop.f32.mrb[252].mxu1  ;;  %v8602_v25 = vsel %vm441_vm3, %v14177_v33, 0.0 }
0x4d51   :  { %v11881_v39 = vpop.f32.mrb[253].mxu1  ;;  %v8991_v50 = vadd.f32 %v10516_v1, %v8990_v61 }
0x4d52   :  { %v8993_v2 = vpop.f32.mrb[254].mxu1 }
0x4d53   :  { %v8994_v60 = vadd.f32 %v10516_v1, %v8993_v2  ;;  %v11882_v13 = vpop.f32.mrb[255].mxu1  ;;  %v8605_v1 = vsel %vm441_vm3, %v14179_v34, 0.0 }
0x4d55   :  { %v9129_v63 = vpack.c.bf16 %v8994_v60, %v8991_v50 }
0x4d58   :  { %v9122_v9 = vpop.f32.mrb[0].mxu1 }
0x4d59   :  { %v11897_v26 = vpop.f32.mrb[1].mxu1  ;;  %v9123_v20 = vadd.f32 %v10534_v14, %v9122_v9 }
0x4d5a   :  { %v9125_v62 = vpop.f32.mrb[2].mxu1 }
0x4d5b   :  { %v9126_v24 = vadd.f32 %v10534_v14, %v9125_v62  ;;  %v11898_v29 = vpop.f32.mrb[3].mxu1 }
0x4d5d   :  { %v9195_v21 = vpack.c.bf16 %v9126_v24, %v9123_v20 }
0x4d5f   :  { %11906 = vmatpush3.bf16.msra.mxu1 %v9195_v21 }
0x4d60   :  { %11919 = vmatprep.subr.bf16.mxu1 %v12510_v0 }
0x4ddb   :  { %v8865_v30 = vpop.xlane.xlu1 %8864 }
0x4ddc   :  { %v8869_v5 = vsub.f32 %v8861_v46, %v8865_v30 }
0x4ddd   :  { %v8868_v31 = vpop.xlane.xlu0 %8867 }
0x4dde   :  { %v8871_v10 = vmul.f32 1.442695, %v8869_v5  ;;  %v8870_v53 = vsub.f32 %v8862_v35, %v8868_v31 }
0x4de0   :  { %v8873_v15 = vmul.f32 1.442695, %v8870_v53  ;;  %12466 = vpow2.f32 %v8871_v10  ;;  %v8283_v10 = vsel %vm441_vm3, %v14127_v28, 0.0  ;;  %v12252_v28 = vld [vmem:[%s13718_s12 + $0x10] sm:$0xff]  }
0x4de2   :  { %12468 = vpow2.f32 %v8873_v15 }
0x4dea   :  { %v12467_v56 = vpop.eup %12466 }
0x4dec   :  { %v12469_v11 = vpop.eup %12468 }
0x4ded   :  { %v8875_v22 = vpack.c.bf16 %v12469_v11, %v12467_v56  ;;  %v8924_v61 = vsel %vm441_vm3, %v12469_v11, 0.0 }
0x4def   :  { %11872 = vmatmul.mubr.msk.bf16.vlgmr.msra.gmra.mrb[248].mxu0 %vm441_vm3, %v8875_v22 }
0x4df0   :  { %11884 = vmatpush3.bf16.msra.mxu0 %v12250_v47  ;;  %11887 = vmatprep.mubr.msk.bf16.mxu0 %vm12512_vm0, %v12510_v0 }
0x4df1   :  { %11885 = vmatprep.subr.bf16.mxu0 %v12510_v0 }
0x4df4   :  { %11886 = vmatpush3.bf16.msra.mxu0 %v12251_v55  ;;  %v12253_v55 = vld [vmem:[%s13718_s12 + $0x18] sm:$0xff]  }
0x4df5   :  { %11899 = vmatprep.subr.bf16.mxu0 %v12510_v0 }
0x4df7   :  { %11888 = vmatmul.mubr.msk.bf16.vlgmr.msra.gmra.mrb[252].mxu0 %vm210_vm1, %v13495_v38 }
0x4df8   :  { %11901 = vmatprep.mubr.msk.bf16.mxu0 %vm12512_vm0, %v12510_v0 }
0x4ec2   :  { %v14238_v6 = vpop.f32.mrb[248].mxu0 }
0x4ec3   :  { %v11873_v12 = vpop.f32.mrb[249].mxu0 }
0x4ec4   :  { %v14240_v51 = vpop.f32.mrb[250].mxu0 }
0x4ec5   :  { %v11874_v4 = vpop.f32.mrb[251].mxu0 }
0x4eca   :  { %v9056_v41 = vpop.f32.mrb[252].mxu0 }
0x4ecb   :  { %v11889_v8 = vpop.f32.mrb[253].mxu0  ;;  %v9057_v40 = vadd.f32 %v10525_v49, %v9056_v41 }
0x4ecc   :  { %v9059_v42 = vpop.f32.mrb[254].mxu0 }
0x4ecd   :  { %v9060_v17 = vadd.f32 %v10525_v49, %v9059_v42  ;;  %v11890_v18 = vpop.f32.mrb[255].mxu0 }
0x4ecf   :  { %v9130_v45 = vpack.c.bf16 %v9060_v17, %v9057_v40 }
0x4ed1   :  { %v9135_v19 = vsel %vm389_vm2, %v9130_v45, 0 }
0x4ed2   :  { %11900 = vmatpush3.bf16.xpose.msra.mxu0 %v9135_v19 }
0x4ed3   :  { %11911 = vmatprep.subr.bf16.mxu0 %v12510_v0 }
0x4ed9   :  { %11902 = vmatmul.mubr.msk.bf16.vlgmr.msra.gmra.mrb[0].mxu0 %vm389_vm2, %v9129_v63 }
0x4eda   :  { %11915 = vmatprep.mubr.msk.bf16.mxu0 %vm12512_vm0, %v12510_v0  ;;  %11912 = vmatpush3.bf16.msra.mxu0 %v12252_v28 }
0x4edb   :  { %11913 = vmatprep.subr.bf16.mxu0 %v12510_v0 }
0x4ede   :  { %11914 = vmatpush3.bf16.msra.mxu0 %v12253_v55 }
0x4edf   :  { %11927 = vmatprep.subr.bf16.mxu0 %v12510_v0 }
0x4fac   :  { %v9171_v38 = vpop.f32.mrb[0].mxu0 }
0x4fad   :  { %v9178_v7 = vmul.f32 0.35355338, %v9171_v38  ;;  %v11903_v27 = vpop.f32.mrb[1].mxu0 }
0x4fae   :  { %v9174_v37 = vpop.f32.mrb[2].mxu0 }
0x4faf   :  { %v9180_v57 = vadd.f32 %v14115_v58, %v9178_v7  ;;  %v9179_v46 = vmul.f32 0.35355338, %v9174_v37  ;;  %v11904_v52 = vpop.f32.mrb[3].mxu0  ;;  %v8921_v58 = vsel %vm441_vm3, %v12467_v56, 0.0  ;;  %v8286_v56 = vsel %vm441_vm3, %v14129_v32, 0.0 }
0x4fb1   :  { %v9181_v54 = vadd.f32 %v14119_v59, %v9179_v46  ;;  %v9182_v35 = vsel %vm441_vm3, %v9180_v57, -inf }
0x4fb2   :  { %9183 = vmax.xlane.f32.xlu1 %v9182_v35 }
0x4fb3   :  { %v9185_v48 = vsel %vm441_vm3, %v9181_v54, -inf }
0x4fb4   :  { %9186 = vmax.xlane.f32.xlu0 %v9185_v48 }
0x4fb6   :  { %8603 = vadd.xlane.f32.xlu1 %v8602_v25 }
0x4fb8   :  { %8606 = vadd.xlane.f32.xlu0 %v8605_v1 }
0x4fba   :  { %8922 = vadd.xlane.f32.xlu1 %v8921_v58 }
0x4fbc   :  { %8925 = vadd.xlane.f32.xlu0 %v8924_v61 }
0x503f   :  { %v9184_v59 = vpop.xlane.xlu1 %9183 }
0x5040   :  { %v9188_v39 = vsub.f32 %v9180_v57, %v9184_v59 }
0x5041   :  { %v9187_v2 = vpop.xlane.xlu0 %9186 }
0x5042   :  { %v9190_v50 = vmul.f32 1.442695, %v9188_v39  ;;  %v9189_v60 = vsub.f32 %v9181_v54, %v9187_v2  ;;  %v10540_v39 = vld [vmem:[%s13739_s20 + $0x1] ss:$0 sm:$0xff] }
0x5043   :  { %v8604_v13 = vpop.xlane.xlu1 %8603 }
0x5044   :  { %12470 = vpow2.f32 %v9190_v50  ;;  %v9192_v63 = vmul.f32 1.442695, %v9189_v60 }
0x5045   :  { %12472 = vrcp.f32 %v8604_v13  ;;  %v8607_v33 = vpop.xlane.xlu0 %8606 }
0x5046   :  { %12474 = vpow2.f32 %v9192_v63 }
0x5047   :  { %12476 = vrcp.f32 %v8607_v33  ;;  %v8923_v34 = vpop.xlane.xlu1 %8922 }
0x5048   :  { %12478 = vrcp.f32 %v8923_v34 }
0x5049   :  { %v8926_v14 = vpop.xlane.xlu0 %8925 }
0x504a   :  { %12480 = vrcp.f32 %v8926_v14 }
0x504e   :  { %v12471_v9 = vpop.eup %12470 }
0x504f   :  { %v12473_v26 = vpop.eup %12472  ;;  %v9240_v62 = vsel %vm441_vm3, %v12471_v9, 0.0 }
0x5050   :  { %v12475_v20 = vpop.eup %12474  ;;  %9241 = vadd.xlane.f32.xlu1 %v9240_v62  ;;  %v8610_v5 = vmul.f32 %v12473_v26, %v14194_v16 }
0x5051   :  { %v12477_v24 = vpop.eup %12476  ;;  %v9194_v29 = vpack.c.bf16 %v12475_v20, %v12471_v9  ;;  %v9243_v21 = vsel %vm441_vm3, %v12475_v20, 0.0 }
0x5052   :  { %v12479_v30 = vpop.eup %12478  ;;  %9244 = vadd.xlane.f32.xlu0 %v9243_v21  ;;  %v8611_v31 = vmul.f32 %v12477_v24, %v14196_v3 }
0x5053   :  { %11908 = vmatmul.mubr.msk.bf16.vlgmr.msra.gmra.mrb[4].mxu1 %vm441_vm3, %v9194_v29  ;;  %v8929_v11 = vmul.f32 %v12479_v30, %v14238_v6 }
0x5054   :  { %v12481_v53 = vpop.eup %12480  ;;  %8284 = vadd.xlane.f32.xlu1 %v8283_v10  ;;  %v12065_v15 = vpack.i.bf16 %v8611_v31, %v8610_v5  ;;  %11923 = vmatprep.mubr.msk.bf16.mxu1 %vm12512_vm0, %v12510_v0  ;;  %v12254_v10 = vld [vmem:[%s13751_s30 + $0x10] sm:$0xff]  }
0x5055   :  { %v8930_v16 = vmul.f32 %v12481_v53, %v14240_v51  ;;  %11920 = vmatpush3.bf16.msra.mxu1 %v12254_v10  ;;  %v12255_v53 = vld [vmem:[%s13751_s30 + $0x18] sm:$0xff]   ;;  %s9754_s30 = sld [smem:[%s14342_s0 + %s12551_s17]]  }
0x5056   :  { %8287 = vadd.xlane.f32.xlu0 %v8286_v56  ;;  %11921 = vmatprep.subr.bf16.mxu1 %v12510_v0  ;;  %v12257_v56 = vld [vmem:[%s13760_s9 + $0x28] sm:$0xff]  }
0x5057   :  { %v12070_v3 = vpack.i.bf16 %v8930_v16, %v8929_v11 }
0x5059   :  { %11922 = vmatpush3.bf16.msra.mxu1 %v12255_v53  ;;  %v10575_v53 = vld [vmem:[%s13820_s14 + $0x1] ss:$0 sm:$0xff] }
0x505a   :  { %11939 = vmatprep.subr.bf16.mxu1 %v12510_v0 }
0x5065   :  { %12066 = vrot.lane.b32.xlu1 %v12065_v15, %s12516_s19  ;;  %v12256_v15 = vld [vmem:[%s13760_s9 + $0x20] sm:$0xff]  }
0x506c   :  { %12071 = vrot.lane.b32.xlu0 %v12070_v3, %s12515_s18  ;;  %s12548_s18 = smov 39  }
0x506d   :  { %s9753_s23 = sld [smem:[%s14342_s0 + %s12548_s18]]  }
0x50dd   :  { %v9242_v47 = vpop.xlane.xlu1 %9241 }
0x50de   :  { %12482 = vrcp.f32 %v9242_v47 }
0x50df   :  { %v9245_v22 = vpop.xlane.xlu0 %9244 }
0x50e0   :  { %12484 = vrcp.f32 %v9245_v22 }
0x50e1   :  { %v8285_v40 = vpop.xlane.xlu1 %8284 }
0x50e2   :  { %12486 = vrcp.f32 %v8285_v40 }
0x50e3   :  { %v8288_v17 = vpop.xlane.xlu0 %8287 }
0x50e4   :  { %12488 = vrcp.f32 %v8288_v17  ;;  %v12258_v17 = vld [vmem:[%s13760_s9 + $0x30] sm:$0xff]  }
0x50e5   :  { %v12067_v19 = vpop.permute.xlu1 %12066 }
0x50e6   :  { %v12069_v27 = vunpack.i.h.bf16 %v12067_v19  ;;  %v12068_v37 = vunpack.i.l.bf16 %v12067_v19 }
0x50e7   :  { %v12072_v57 = vpop.permute.xlu0 %12071 }
0x50e8   :  { %v12483_v6 = vpop.eup %12482  ;;  %v12074_v54 = vunpack.i.h.bf16 %v12072_v57  ;;  %v12073_v35 = vunpack.i.l.bf16 %v12072_v57 }
0x50ea   :  { %v12485_v51 = vpop.eup %12484 }
0x50ec   :  { %v12487_v18 = vpop.eup %12486 }
0x50ed   :  { %v8291_v38 = vmul.f32 %v12487_v18, %v14144_v23  ;;  %v12259_v18 = vld [vmem:[%s13760_s9 + $0x38] sm:$0xff]   ;;  %s12552_s9 = smov 41  }
0x50ee   :  { %v12489_v45 = vpop.eup %12488 }
0x50ef   :  { %v8292_v7 = vmul.f32 %v12489_v45, %v14146_v36  ;;  %v9274_v46 = vsel %vm389_vm2, %v8291_v38, %v12068_v37  ;;  %v10553_v45 = vld [vmem:[%s13788_s3 + $0x1] ss:$0 sm:$0xff]  ;;  %s9755_s3 = sld [smem:[%s14342_s0 + %s12552_s9]]  }
0x50f0   :  { %v9276_v61 = vsel %vm441_vm3, %v9274_v46, %v12073_v35  ;;  %v10566_v35 = vld [vmem:[%s13797_s1 + $0x1] ss:$0 sm:$0xff] }
0x50f1   :  { %v9275_v52 = vsel %vm389_vm2, %v8292_v7, %v12069_v27 }
0x50f2   :  { %v9277_v58 = vsel %vm441_vm3, %v9275_v52, %v12074_v54 }
0x5126   :  { %v9233_v32 = vpop.f32.mrb[4].mxu1 }
0x5127   :  { %v11909_v12 = vpop.f32.mrb[5].mxu1  ;;  %v9248_v49 = vmul.f32 %v12483_v6, %v9233_v32  ;;  %v10546_v32 = vld [vmem:[%s13769_s11 + $0x1] ss:$0 sm:$0xff] }
0x5128   :  { %v9236_v4 = vpop.f32.mrb[6].mxu1 }
0x5129   :  { %v9249_v41 = vmul.f32 %v12485_v51, %v9236_v4  ;;  %v11910_v8 = vpop.f32.mrb[7].mxu1 }
0x512b   :  { %v12075_v42 = vpack.i.bf16 %v9249_v41, %v9248_v49  ;;  %v10547_v49 = vld [vmem:[%s13774_s21 + $0x1] ss:$0 sm:$0xff] }
0x512d   :  { %12076 = vrot.lane.b32.xlu1 %v12075_v42, %s12518_s24 }
0x519f   :  { %v12077_v48 = vpop.permute.xlu1 %12076 }
0x51a0   :  { %v12079_v25 = vunpack.i.h.bf16 %v12077_v48  ;;  %v12078_v1 = vunpack.i.l.bf16 %v12077_v48 }
0x51a2   :  { %v9278_v23 = vsel %vm1495_vm4, %v9276_v61, %v12078_v1  ;;  %v9279_v36 = vsel %vm1495_vm4, %v9277_v58, %v12079_v25 }
0x51a3   :  { %v9280_v59 = vpack.c.bf16 %v9279_v36, %v9278_v23 }
0x51a5   :  { %11916 = vmatmul.mubr.msk.bf16.vlgmr.msra.gmra.mrb[4].mxu0 %vm210_vm1, %v9280_v59 }
0x51a6   :  { %11935 = vmatprep.mubr.msk.bf16.mxu0 %vm12512_vm0, %v12510_v0  ;;  %11928 = vmatpush3.bf16.msra.mxu0 %v12256_v15 }
0x51a7   :  { %11929 = vmatprep.subr.bf16.mxu0 %v12510_v0 }
0x51aa   :  { %11930 = vmatpush3.bf16.msra.mxu0 %v12257_v56 }
0x51ab   :  { %11931 = vmatprep.subr.bf16.mxu0 %v12510_v0 }
0x51ae   :  { %11932 = vmatpush3.bf16.msra.mxu0 %v12258_v17 }
0x51af   :  { %11933 = vmatprep.subr.bf16.mxu0 %v12510_v0 }
0x51b2   :  { %11934 = vmatpush3.bf16.msra.mxu0 %v12259_v18 }
0x5278   :  { %v9336_v2 = vpop.f32.mrb[4].mxu0 }
0x5279   :  { %v9337_v50 = vadd.f32 %v10540_v39, %v9336_v2  ;;  %v11917_v60 = vpop.f32.mrb[5].mxu0 }
0x527a   :  { %v9339_v13 = vpop.f32.mrb[6].mxu0 }
0x527b   :  { %v9343_v63 = vadd.f32 %v9337_v50, %v14072_v43  ;;  %v9340_v33 = vadd.f32 %v10540_v39, %v9339_v13  ;;  %v11918_v34 = vpop.f32.mrb[7].mxu0 }
0x527d   :  { %v9344_v14 = vadd.f32 %v9340_v33, %v14074_v44  ;;  %v9349_v9 = vsel %vm210_vm1, %v9343_v63, 0.0 }
0x527e   :  { %9350 = vadd.xlane.f32.xlu1 %v9349_v9 }
0x527f   :  { %v9352_v26 = vsel %vm210_vm1, %v9344_v14, 0.0 }
0x5280   :  { %9353 = vadd.xlane.f32.xlu0 %v9352_v26 }
0x530b   :  { %v9351_v62 = vpop.xlane.xlu1 %9350 }
0x530c   :  { %v9355_v20 = vmul.f32 0.03125, %v9351_v62 }
0x530d   :  { %v9354_v24 = vpop.xlane.xlu0 %9353 }
0x530e   :  { %v9357_v29 = vsub.f32 %v9343_v63, %v9355_v20  ;;  %v9356_v21 = vmul.f32 0.03125, %v9354_v24 }
0x5310   :  { %v9358_v43 = vsub.f32 %v9344_v14, %v9356_v21  ;;  %v9359_v30 = vmul.f32 %v9357_v29, %v9357_v29 }
0x5312   :  { %v9361_v5 = vsel %vm210_vm1, %v9359_v30, 0.0  ;;  %v9360_v44 = vmul.f32 %v9358_v43, %v9358_v43 }
0x5313   :  { %9362 = vadd.xlane.f32.xlu0 %v9361_v5 }
0x5314   :  { %v9364_v31 = vsel %vm210_vm1, %v9360_v44, 0.0  ;;  %v10574_v44 = vld [vmem:[%s13815_s25 + $0x1] ss:$0 sm:$0xff] }
0x5315   :  { %9365 = vadd.xlane.f32.xlu1 %v9364_v31 }
0x53a0   :  { %v9363_v11 = vpop.xlane.xlu0 %9362 }
0x53a1   :  { %v9367_v16 = vmul.f32 0.03125, %v9363_v11 }
0x53a2   :  { %v9366_v3 = vpop.xlane.xlu1 %9365 }
0x53a3   :  { %v9369_v28 = vadd.f32 1e-05, %v9367_v16  ;;  %v9368_v47 = vmul.f32 0.03125, %v9366_v3 }
0x53a5   :  { %12490 = vrsqrt.f32 %v9369_v28  ;;  %v9370_v22 = vadd.f32 1e-05, %v9368_v47 }
0x53a7   :  { %12492 = vrsqrt.f32 %v9370_v22 }
0x53af   :  { %v12491_v55 = vpop.eup %12490 }
0x53b0   :  { %v9373_v6 = vmul.f32 %v12491_v55, %v9357_v29 }
0x53b1   :  { %v12493_v12 = vpop.eup %12492 }
0x53b2   :  { %v9381_v51 = vmul.f32 %v10546_v32, %v9373_v6  ;;  %v9374_v4 = vmul.f32 %v12493_v12, %v9358_v43 }
0x53b4   :  { %v9382_v41 = vmul.f32 %v10546_v32, %v9374_v4  ;;  %v9389_v8 = vadd.f32 %v10547_v49, %v9381_v51 }
0x53b6   :  { %v9390_v42 = vadd.f32 %v10547_v49, %v9382_v41 }
0x53b8   :  { %v9396_v40 = vpack.c.bf16 %v9390_v42, %v9389_v8 }
0x53ba   :  { %11924 = vmatmul.mubr.msk.bf16.vlgmr.msra.gmra.mrb[8].mxu1 %vm210_vm1, %v9396_v40  ;;  %v12261_v40 = vld [vmem:[%s9753_s23 + $0x8] sm:$0xff]  }
0x53bb   :  { %11943 = vmatprep.mubr.msk.bf16.mxu1 %vm12512_vm0, %v12510_v0 }
0x548d   :  { %v9454_v19 = vpop.f32.mrb[8].mxu1 }
0x548e   :  { %v9455_v38 = vadd.f32 %v10553_v45, %v9454_v19  ;;  %v11925_v7 = vpop.f32.mrb[9].mxu1 }
0x548f   :  { %v9457_v27 = vpop.f32.mrb[10].mxu1 }
0x5490   :  { %v9458_v37 = vadd.f32 %v10553_v45, %v9457_v27  ;;  %v11926_v57 = vpop.f32.mrb[11].mxu1  ;;  %v9461_v46 = vmax.f32 %v9455_v38, 0.0  ;;  %v10576_v27 = vld [vmem:[%s9751_s7] ss:$0 sm:$0xff] }
0x5492   :  { %v9462_v52 = vmax.f32 %v9458_v37, 0.0 }
0x5494   :  { %v9472_v54 = vpack.c.bf16 %v9462_v52, %v9461_v46 }
0x5496   :  { %11936 = vmatmul.mubr.msk.bf16.vlgmr.msra.gmra.mrb[8].mxu0 %vm1718_vm5, %v9472_v54  ;;  %v10577_v54 = vld [vmem:[%s9752_s4] ss:$0 sm:$0xff] }
0x5569   :  { %v9542_v48 = vpop.f32.mrb[8].mxu0 }
0x556a   :  { %v9543_v25 = vadd.f32 %v10566_v35, %v9542_v48  ;;  %v11937_v1 = vpop.f32.mrb[9].mxu0 }
0x556b   :  { %v9545_v58 = vpop.f32.mrb[10].mxu0 }
0x556c   :  { %v9549_v61 = vadd.f32 %v9543_v25, %v9389_v8  ;;  %v9546_v23 = vadd.f32 %v10566_v35, %v9545_v58  ;;  %v11938_v36 = vpop.f32.mrb[11].mxu0  ;;  %v10578_v58 = vld [vmem:[%s9754_s30] ss:$0 sm:$0xff] }
0x556e   :  { %v9550_v59 = vadd.f32 %v9546_v23, %v9390_v42  ;;  %v9555_v39 = vsel %vm210_vm1, %v9549_v61, 0.0  ;;  %v12260_v42 = vld [vmem:[%s9753_s23] sm:$0xff]  }
0x556f   :  { %9556 = vadd.xlane.f32.xlu0 %v9555_v39  ;;  %11940 = vmatpush3.bf16.msra.mxu1 %v12260_v42 }
0x5570   :  { %v9558_v2 = vsel %vm210_vm1, %v9550_v59, 0.0  ;;  %11941 = vmatprep.subr.bf16.mxu1 %v12510_v0 }
0x5571   :  { %9559 = vadd.xlane.f32.xlu1 %v9558_v2 }
0x5573   :  { %11942 = vmatpush3.bf16.msra.mxu1 %v12261_v40 }
0x55fc   :  { %v9557_v50 = vpop.xlane.xlu0 %9556 }
0x55fd   :  { %v9561_v60 = vmul.f32 0.03125, %v9557_v50 }
0x55fe   :  { %v9560_v13 = vpop.xlane.xlu1 %9559 }
0x55ff   :  { %v9563_v63 = vsub.f32 %v9549_v61, %v9561_v60  ;;  %v9562_v33 = vmul.f32 0.03125, %v9560_v13 }
0x5601   :  { %v9564_v34 = vsub.f32 %v9550_v59, %v9562_v33  ;;  %v9565_v14 = vmul.f32 %v9563_v63, %v9563_v63 }
0x5603   :  { %v9567_v9 = vsel %vm210_vm1, %v9565_v14, 0.0  ;;  %v9566_v26 = vmul.f32 %v9564_v34, %v9564_v34 }
0x5604   :  { %9568 = vadd.xlane.f32.xlu0 %v9567_v9 }
0x5605   :  { %v9570_v62 = vsel %vm210_vm1, %v9566_v26, 0.0 }
0x5606   :  { %9571 = vadd.xlane.f32.xlu1 %v9570_v62 }
0x5691   :  { %v9569_v20 = vpop.xlane.xlu0 %9568 }
0x5692   :  { %v9573_v24 = vmul.f32 0.03125, %v9569_v20 }
0x5693   :  { %v9572_v29 = vpop.xlane.xlu1 %9571 }
0x5694   :  { %v9575_v21 = vadd.f32 1e-05, %v9573_v24  ;;  %v9574_v43 = vmul.f32 0.03125, %v9572_v29 }
0x5696   :  { %12494 = vrsqrt.f32 %v9575_v21  ;;  %v9576_v30 = vadd.f32 1e-05, %v9574_v43 }
0x5698   :  { %12496 = vrsqrt.f32 %v9576_v30 }
0x56a0   :  { %v12495_v5 = vpop.eup %12494 }
0x56a1   :  { %v9579_v31 = vmul.f32 %v12495_v5, %v9563_v63 }
0x56a2   :  { %v12497_v10 = vpop.eup %12496 }
0x56a3   :  { %v9587_v15 = vmul.f32 %v10574_v44, %v9579_v31  ;;  %v9580_v56 = vmul.f32 %v12497_v10, %v9564_v34 }
0x56a5   :  { %v9595_v11 = vadd.f32 %v10575_v53, %v9587_v15  ;;  %v9588_v16 = vmul.f32 %v10574_v44, %v9580_v56 }
0x56a7   :  { %v9599_v3 = vsel %vm210_vm1, %v9595_v11, 0.0  ;;  %v9596_v28 = vadd.f32 %v10575_v53, %v9588_v16 }
0x56a8   :  { %9600 = vadd.xlane.f32.xlu0 %v9599_v3 }
0x56a9   :  { %v9602_v47 = vsel %vm210_vm1, %v9596_v28, 0.0 }
0x56aa   :  { %9603 = vadd.xlane.f32.xlu1 %v9602_v47 }
0x5735   :  { %v9601_v22 = vpop.xlane.xlu0 %9600 }
0x5736   :  { %v9605_v55 = vmul.f32 0.03125, %v9601_v22 }
0x5737   :  { %v9604_v32 = vpop.xlane.xlu1 %9603 }
0x5738   :  { %v9607_v6 = vsub.f32 %v9595_v11, %v9605_v55  ;;  %v9606_v12 = vmul.f32 0.03125, %v9604_v32 }
0x573a   :  { %v9608_v51 = vsub.f32 %v9596_v28, %v9606_v12  ;;  %v9609_v4 = vmul.f32 %v9607_v6, %v9607_v6 }
0x573c   :  { %v9611_v49 = vsel %vm210_vm1, %v9609_v4, 0.0  ;;  %v9610_v41 = vmul.f32 %v9608_v51, %v9608_v51 }
0x573d   :  { %9612 = vadd.xlane.f32.xlu0 %v9611_v49 }
0x573e   :  { %v9614_v8 = vsel %vm210_vm1, %v9610_v41, 0.0 }
0x573f   :  { %9615 = vadd.xlane.f32.xlu1 %v9614_v8 }
0x57ca   :  { %v9613_v17 = vpop.xlane.xlu0 %9612 }
0x57cb   :  { %v9617_v18 = vmul.f32 0.03125, %v9613_v17 }
0x57cc   :  { %v9616_v45 = vpop.xlane.xlu1 %9615 }
0x57cd   :  { %v9619_v19 = vadd.f32 1e-05, %v9617_v18  ;;  %v9618_v38 = vmul.f32 0.03125, %v9616_v45 }
0x57cf   :  { %12498 = vrsqrt.f32 %v9619_v19  ;;  %v9620_v7 = vadd.f32 1e-05, %v9618_v38 }
0x57d1   :  { %12500 = vrsqrt.f32 %v9620_v7 }
0x57d9   :  { %v12499_v0 = vpop.eup %12498 }
0x57da   :  { %v9623_v37 = vmul.f32 %v12499_v0, %v9607_v6 }
0x57db   :  { %v12501_v57 = vpop.eup %12500 }
0x57dc   :  { %v9631_v46 = vmul.f32 %v10576_v27, %v9623_v37  ;;  %v9624_v52 = vmul.f32 %v12501_v57, %v9608_v51 }
0x57de   :  { %v9632_v35 = vmul.f32 %v10576_v27, %v9624_v52  ;;  %v9639_v48 = vadd.f32 %v10577_v54, %v9631_v46 }
0x57e0   :  { %v9640_v25 = vadd.f32 %v10577_v54, %v9632_v35 }
0x57e2   :  { %v9645_v1 = vpack.c.bf16 %v9640_v25, %v9639_v48 }
0x57e4   :  { %11944 = vmatmul.mubr.msk.bf16.vlgmr.msra.gmra.mrb[12].mxu1 %vm210_vm1, %v9645_v1 }
0x58b7   :  { %v9702_v61 = vpop.f32.mrb[12].mxu1 }
0x58b8   :  { %v9703_v23 = vadd.f32 %v10578_v58, %v9702_v61  ;;  %v11945_v36 = vpop.f32.mrb[13].mxu1 }
0x58b9   :  { %v9705_v59 = vpop.f32.mrb[14].mxu1 }
0x58ba   :  { %9709 = vst [vmem:[%s9755_s3] sm:$0xff] %v9703_v23  ;;  %v9706_v39 = vadd.f32 %v10578_v58, %v9705_v59  ;;  %v11946_v2 = vpop.f32.mrb[15].mxu1 }
0x58bc   :  { %9710 = vst [vmem:[%s9755_s3 + $0x8] sm:$0xff] %v9706_v39 }

</bundles_post_ra>
